<compile_context>
chip_gen: v7x
topology: tpu7x:2x2x1
jax: 0.10.0
libtpu: 0.0.40
codegen_flags: <defaults>
</compile_context>

<pallas_src>
import numpy as np
import jax
import jax.numpy as jnp
from jax.experimental import pallas as pl
from jax.experimental.pallas import tpu as pltpu

EPS = 1e-5  # nn.BatchNorm2d default eps


def _ceil_to(v, m):
    return ((v + m - 1) // m) * m


def lenet_pallas(x, params, num_classes):
    """LeNet forward (train-mode BatchNorm) as one fused Pallas TPU kernel."""
    (w1, g1, b1, w2, g2, b2, fcw, fcb, f1w, f1b, f2w, f2b) = params
    n, cin, s, _ = x.shape
    c1, c2 = 6, 16
    S0 = s + 4                        # zero-padded raster side (conv1 padding=2)
    P = S0 * S0                       # per-image raster size (1024 for s=28)
    L = n * P                         # lane extent of the stage-1 tiles
    p1o = s // 2                      # pool1 side (14)
    s2o = p1o - 4                     # conv2 output side (10)
    p2o = s2o // 2                    # pool2 side (5)
    npos = p2o * p2o                  # 25
    fc_in = c2 * npos                 # 400
    assert fcw.shape[1] == fc_in, "fc layer does not match this input size"

    K1 = 25 * cin                     # unpadded im2col depth (100 for cin=4)
    K2 = 25 * c1                      # 150
    R2 = _ceil_to(p1o, 8)             # compacted pooled-1 raster side (16)
    P2 = R2 * R2                      # per-image compacted raster (256)
    L2 = n * P2                       # lane extent of the stage-2 tiles
    TAIL1 = _ceil_to(4 * S0 + 4, 128)   # reach of the conv1 im2col shifts
    TAIL2 = _ceil_to(4 * R2 + 4, 128)   # reach of the conv2 im2col shifts
    cnt1 = float(n * s * s)           # valid conv1 outputs per channel
    cnt2 = float(n * s2o * s2o)       # valid conv2 outputs per channel
    bf16 = jnp.bfloat16

    # --------------- host glue: O(batch) layouts, batch-independent constants ---------------
    xp = jnp.pad(x, ((0, 0), (0, 0), (2, 2), (2, 2)))                # (n, cin, S0, S0)
    xin = jnp.transpose(xp, (1, 0, 2, 3)).reshape(cin, L)
    xin = jnp.pad(xin, ((0, 0), (0, TAIL1))).astype(bf16)            # zero tail, bf16

    # Conv weights, tap-major / channel-minor, matching the unpadded im2col rows.
    w1f = jnp.transpose(w1, (0, 2, 3, 1)).reshape(c1, K1).astype(bf16)   # (6, 100)
    w2f = jnp.transpose(w2, (0, 2, 3, 1)).reshape(c2, K2).astype(bf16)   # (16, 150)

    m1 = np.zeros((S0, S0), np.float32)
    m1[:s, :s] = 1.0                                                 # conv1 valid positions
    mask1 = np.tile(m1.reshape(-1), n)[None, :]                      # (1, L)
    m2 = np.zeros((R2, R2), np.float32)
    m2[:s2o, :s2o] = 1.0                                             # conv2 valid positions
    mask2 = np.tile(m2.reshape(-1), n)[None, :]                      # (1, L2)

    # AvgPool2d #1 + compaction onto the dense R2 x R2 raster, one (P, P2) constant.
    cmat = np.zeros((P, P2), np.float32)
    for i in range(p1o):
        for j in range(p1o):
            for di in (0, 1):
                for dj in (0, 1):
                    cmat[S0 * (2 * i + di) + (2 * j + dj), R2 * i + j] = 0.25

    # AvgPool2d #2 + flatten position ordering, tiled per output channel: (P2, fc_in).
    pf = np.zeros((P2, npos), np.float32)
    for i in range(p2o):
        for j in range(p2o):
            for di in (0, 1):
                for dj in (0, 1):
                    pf[R2 * (2 * i + di) + (2 * j + dj), i * p2o + j] = 0.25
    p400 = np.tile(pf, (1, c2))                                      # (256, 400)
    cmask = np.kron(np.eye(c2, dtype=np.float32),
                    np.ones((1, npos), np.float32))                  # (16, 400)

    def kernel(xin_ref, w1f_ref, g1_ref, b1_ref, m1_ref, cmat_ref,
               w2f_ref, g2_ref, b2_ref, m2_ref, p400_ref, cmask_ref,
               fcw_ref, fcb_ref, f1w_ref, f1b_ref, f2w_ref, f2b_ref,
               out_ref, x1_s, s1c_s, x2_s, xfct_s):
        f32 = jnp.float32

        def bn_relu(y, m_ref, g_ref, b_ref, cnt):
            # BatchNorm2d, training-mode batch stats over the valid-lane mask,
            # centered two-pass variance (no E[x^2]-E[x]^2 cancellation) + ReLU.
            m = m_ref[...]
            mean = jnp.sum(y * m, axis=-1, keepdims=True) * (1.0 / cnt)
            d = (y - mean) * m
            var = jnp.sum(d * d, axis=-1, keepdims=True) * (1.0 / cnt)
            scale = g_ref[...] * jax.lax.rsqrt(var + EPS)
            shift = b_ref[...] - mean * scale
            return jnp.maximum(y * scale + shift, 0.0)

        # ---- layer 1: im2col via 25 shifted bf16 copies (no zero-fill), one bf16 matmul ----
        for k in range(25):
            off = S0 * (k // 5) + (k % 5)
            x1_s[k * cin:(k + 1) * cin, :] = xin_ref[:, off:off + L]
        y1 = jnp.dot(w1f_ref[...], x1_s[...], preferred_element_type=f32)   # (6, L) f32
        y1r = bn_relu(y1, m1_ref, g1_ref, b1_ref, cnt1)

        # ---- AvgPool2d #1 + raster compaction: per-image bf16 matmul, fully-written output ----
        s1c_s[:, L2:L2 + TAIL2] = jnp.zeros((c1, TAIL2), bf16)
        for bi in range(n):
            blk = y1r[:, bi * P:(bi + 1) * P].astype(bf16)
            s1c_s[:, bi * P2:(bi + 1) * P2] = jnp.dot(
                blk, cmat_ref[...], preferred_element_type=f32).astype(bf16)

        # ---- layer 2 on the compacted raster: 25 shifted copies + one bf16 K=150 matmul ----
        for k in range(25):
            off = R2 * (k // 5) + (k % 5)
            x2_s[k * c1:(k + 1) * c1, :] = s1c_s[:, off:off + L2]
        y2 = jnp.dot(w2f_ref[...], x2_s[...], preferred_element_type=f32)   # (16, L2) f32
        y2r = bn_relu(y2, m2_ref, g2_ref, b2_ref, cnt2)

        # ---- AvgPool2d #2 + (C,H,W) flatten realign; batch moves to sublanes ----
        for bi in range(n):
            blk = y2r[:, bi * P2:(bi + 1) * P2]                              # (16, 256)
            t = jnp.dot(blk, p400_ref[...], preferred_element_type=f32)      # (16, 400)
            xfct_s[bi:bi + 1, :] = jnp.sum(t * cmask_ref[...], axis=0, keepdims=True)

        # ---- classifier: batch on sublanes, features lane-dense, f32 ----
        h = jnp.maximum(jnp.dot(xfct_s[...], fcw_ref[...], preferred_element_type=f32)
                        + fcb_ref[...], 0.0)
        h = jnp.maximum(jnp.dot(h, f1w_ref[...], preferred_element_type=f32)
                        + f1b_ref[...], 0.0)
        out_ref[...] = (jnp.dot(h, f2w_ref[...], preferred_element_type=f32)
                        + f2b_ref[...])

    inputs = (xin, w1f, g1.reshape(c1, 1), b1.reshape(c1, 1), jnp.asarray(mask1),
              jnp.asarray(cmat).astype(bf16),
              w2f, g2.reshape(c2, 1), b2.reshape(c2, 1), jnp.asarray(mask2),
              jnp.asarray(p400), jnp.asarray(cmask),
              fcw.T, fcb.reshape(1, -1), f1w.T, f1b.reshape(1, -1),
              f2w.T, f2b.reshape(1, -1))
    vspec = pl.BlockSpec(memory_space=pltpu.MemorySpace.VMEM)
    out = pl.pallas_call(
        kernel,
        out_shape=jax.ShapeDtypeStruct((n, num_classes), jnp.float32),
        in_specs=[vspec] * len(inputs),
        out_specs=vspec,
        scratch_shapes=[
            pltpu.VMEM((K1, L), bf16),               # conv1 im2col (bf16)
            pltpu.VMEM((c1, L2 + TAIL2), bf16),      # compacted pooled-1 (+ shift tail)
            pltpu.VMEM((K2, L2), bf16),              # conv2 im2col (bf16)
            pltpu.VMEM((n, fc_in), jnp.float32),     # transposed flatten (batch, 400)
        ],
        compiler_params=pltpu.CompilerParams(vmem_limit_bytes=32 * 1024 * 1024),
    )(*inputs)
    return out                                        # (n, num_classes)


def lenet_ref(x, params):
    """Pure-JAX reference matching the PyTorch forward (train-mode BatchNorm)."""
    (w1, g1, b1, w2, g2, b2, fcw, fcb, f1w, f1b, f2w, f2b) = params
    hi = jax.lax.Precision.HIGHEST

    def bn_relu(y, g, b):
        mu = jnp.mean(y, axis=(0, 2, 3), keepdims=True)
        d = y - mu
        var = jnp.mean(d * d, axis=(0, 2, 3), keepdims=True)
        out = d * jax.lax.rsqrt(var + EPS) * g.reshape(1, -1, 1, 1) + b.reshape(1, -1, 1, 1)
        return jnp.maximum(out, 0.0)

    def avgpool(y):
        nb, c, h, w = y.shape
        return y.reshape(nb, c, h // 2, 2, w // 2, 2).mean(axis=(3, 5))

    o = jax.lax.conv_general_dilated(x, w1, (1, 1), ((2, 2), (2, 2)),
                                     dimension_numbers=("NCHW", "OIHW", "NCHW"),
                                     precision=hi)
    o = avgpool(bn_relu(o, g1, b1))
    o = jax.lax.conv_general_dilated(o, w2, (1, 1), ((0, 0), (0, 0)),
                                     dimension_numbers=("NCHW", "OIHW", "NCHW"),
                                     precision=hi)
    o = avgpool(bn_relu(o, g2, b2))
    o = o.reshape(o.shape[0], -1)
    o = jnp.maximum(jnp.dot(o, fcw.T, precision=hi) + fcb, 0.0)
    o = jnp.maximum(jnp.dot(o, f1w.T, precision=hi) + f1b, 0.0)
    return jnp.dot(o, f2w.T, precision=hi) + f2b


if __name__ == "__main__":
    batch, in_channels, input_size, num_classes = 2, 4, 28, 10
    key = jax.random.PRNGKey(0)
    ks = jax.random.split(key, 13)
    nrm = jax.random.normal
    w1 = 0.2 * nrm(ks[0], (6, in_channels, 5, 5), jnp.float32)
    g1 = 1.0 + 0.1 * nrm(ks[1], (6,), jnp.float32)
    b1 = 0.1 * nrm(ks[2], (6,), jnp.float32)
    w2 = 0.2 * nrm(ks[3], (16, 6, 5, 5), jnp.float32)
    g2 = 1.0 + 0.1 * nrm(ks[4], (16,), jnp.float32)
    b2 = 0.1 * nrm(ks[5], (16,), jnp.float32)
    fcw = nrm(ks[6], (120, 400), jnp.float32) / np.sqrt(400.0)
    fcb = 0.1 * nrm(ks[7], (120,), jnp.float32)
    f1w = nrm(ks[8], (84, 120), jnp.float32) / np.sqrt(120.0)
    f1b = 0.1 * nrm(ks[9], (84,), jnp.float32)
    f2w = nrm(ks[10], (num_classes, 84), jnp.float32) / np.sqrt(84.0)
    f2b = 0.1 * nrm(ks[11], (num_classes,), jnp.float32)
    x = nrm(ks[12], (batch, in_channels, input_size, input_size), jnp.float32)

    params = (w1, g1, b1, w2, g2, b2, fcw, fcb, f1w, f1b, f2w, f2b)
    out = jax.block_until_ready(lenet_pallas(x, params, num_classes))
    ref = jax.block_until_ready(lenet_ref(x, params))
    if not np.allclose(np.asarray(out), np.asarray(ref), rtol=2e-2, atol=2e-2):
        raise AssertionError("Pallas LeNet output does not match the JAX reference")
    print("KERNEL_OK")
</pallas_src>

<mosaic_0001>
module attributes {stable_mosaic.version = 11 : i64} {
  func.func @kernel(%arg0: memref<4x2304xbf16, #tpu.memory_space<vmem>>, %arg1: memref<6x100xbf16, #tpu.memory_space<vmem>>, %arg2: memref<6x1xf32, #tpu.memory_space<vmem>>, %arg3: memref<6x1xf32, #tpu.memory_space<vmem>>, %arg4: memref<1x2048xf32, #tpu.memory_space<vmem>>, %arg5: memref<1024x256xbf16, #tpu.memory_space<vmem>>, %arg6: memref<16x150xbf16, #tpu.memory_space<vmem>>, %arg7: memref<16x1xf32, #tpu.memory_space<vmem>>, %arg8: memref<16x1xf32, #tpu.memory_space<vmem>>, %arg9: memref<1x512xf32, #tpu.memory_space<vmem>>, %arg10: memref<256x400xf32, #tpu.memory_space<vmem>>, %arg11: memref<16x400xf32, #tpu.memory_space<vmem>>, %arg12: memref<400x120xf32, #tpu.memory_space<vmem>>, %arg13: memref<1x120xf32, #tpu.memory_space<vmem>>, %arg14: memref<120x84xf32, #tpu.memory_space<vmem>>, %arg15: memref<1x84xf32, #tpu.memory_space<vmem>>, %arg16: memref<84x10xf32, #tpu.memory_space<vmem>>, %arg17: memref<1x10xf32, #tpu.memory_space<vmem>>, %arg18: memref<2x10xf32, #tpu.memory_space<vmem>>, %arg19: memref<100x2048xbf16, #tpu.memory_space<vmem>>, %arg20: memref<6x640xbf16, #tpu.memory_space<vmem>>, %arg21: memref<150x512xbf16, #tpu.memory_space<vmem>>, %arg22: memref<2x400xf32, #tpu.memory_space<vmem>>) attributes {dimension_semantics = [], scalar_prefetch = 0 : i64, scratch_operands = 4 : i64, tpu.core_type = #tpu.core_type<tc>} {
    %c0 = arith.constant 0 : index
    %c0_0 = arith.constant 0 : index
    %0 = vector.load %arg0[%c0, %c0_0] : memref<4x2304xbf16, #tpu.memory_space<vmem>>, vector<4x2048xbf16>
    %c0_1 = arith.constant 0 : index
    %c0_2 = arith.constant 0 : index
    %1 = vector.load %arg19[%c0_1, %c0_2] : memref<100x2048xbf16, #tpu.memory_space<vmem>>, vector<4x2048xbf16>
    tpu.vector_store %arg19[%c0_1, %c0_2], %0 {strides = array<i32>} : memref<100x2048xbf16, #tpu.memory_space<vmem>>, vector<4x2048xbf16>,
    %c0_3 = arith.constant 0 : index
    %c1 = arith.constant 1 : index
    %2 = vector.load %arg0[%c0_3, %c1] : memref<4x2304xbf16, #tpu.memory_space<vmem>>, vector<4x2048xbf16>
    %c4 = arith.constant 4 : index
    %c0_4 = arith.constant 0 : index
    %3 = vector.load %arg19[%c4, %c0_4] : memref<100x2048xbf16, #tpu.memory_space<vmem>>, vector<4x2048xbf16>
    tpu.vector_store %arg19[%c4, %c0_4], %2 {strides = array<i32>} : memref<100x2048xbf16, #tpu.memory_space<vmem>>, vector<4x2048xbf16>,
    %c0_5 = arith.constant 0 : index
    %c2 = arith.constant 2 : index
    %4 = vector.load %arg0[%c0_5, %c2] : memref<4x2304xbf16, #tpu.memory_space<vmem>>, vector<4x2048xbf16>
    %c8 = arith.constant 8 : index
    %c0_6 = arith.constant 0 : index
    %5 = vector.load %arg19[%c8, %c0_6] : memref<100x2048xbf16, #tpu.memory_space<vmem>>, vector<4x2048xbf16>
    tpu.vector_store %arg19[%c8, %c0_6], %4 {strides = array<i32>} : memref<100x2048xbf16, #tpu.memory_space<vmem>>, vector<4x2048xbf16>,
    %c0_7 = arith.constant 0 : index
    %c3 = arith.constant 3 : index
    %6 = vector.load %arg0[%c0_7, %c3] : memref<4x2304xbf16, #tpu.memory_space<vmem>>, vector<4x2048xbf16>
    %c12 = arith.constant 12 : index
    %c0_8 = arith.constant 0 : index
    %7 = vector.load %arg19[%c12, %c0_8] : memref<100x2048xbf16, #tpu.memory_space<vmem>>, vector<4x2048xbf16>
    tpu.vector_store %arg19[%c12, %c0_8], %6 {strides = array<i32>} : memref<100x2048xbf16, #tpu.memory_space<vmem>>, vector<4x2048xbf16>,
    %c0_9 = arith.constant 0 : index
    %c4_10 = arith.constant 4 : index
    %8 = vector.load %arg0[%c0_9, %c4_10] : memref<4x2304xbf16, #tpu.memory_space<vmem>>, vector<4x2048xbf16>
    %c16 = arith.constant 16 : index
    %c0_11 = arith.constant 0 : index
    %9 = vector.load %arg19[%c16, %c0_11] : memref<100x2048xbf16, #tpu.memory_space<vmem>>, vector<4x2048xbf16>
    tpu.vector_store %arg19[%c16, %c0_11], %8 {strides = array<i32>} : memref<100x2048xbf16, #tpu.memory_space<vmem>>, vector<4x2048xbf16>,
    %c0_12 = arith.constant 0 : index
    %c32 = arith.constant 32 : index
    %10 = vector.load %arg0[%c0_12, %c32] : memref<4x2304xbf16, #tpu.memory_space<vmem>>, vector<4x2048xbf16>
    %c20 = arith.constant 20 : index
    %c0_13 = arith.constant 0 : index
    %11 = vector.load %arg19[%c20, %c0_13] : memref<100x2048xbf16, #tpu.memory_space<vmem>>, vector<4x2048xbf16>
    tpu.vector_store %arg19[%c20, %c0_13], %10 {strides = array<i32>} : memref<100x2048xbf16, #tpu.memory_space<vmem>>, vector<4x2048xbf16>,
    %c0_14 = arith.constant 0 : index
    %c33 = arith.constant 33 : index
    %12 = vector.load %arg0[%c0_14, %c33] : memref<4x2304xbf16, #tpu.memory_space<vmem>>, vector<4x2048xbf16>
    %c24 = arith.constant 24 : index
    %c0_15 = arith.constant 0 : index
    %13 = vector.load %arg19[%c24, %c0_15] : memref<100x2048xbf16, #tpu.memory_space<vmem>>, vector<4x2048xbf16>
    tpu.vector_store %arg19[%c24, %c0_15], %12 {strides = array<i32>} : memref<100x2048xbf16, #tpu.memory_space<vmem>>, vector<4x2048xbf16>,
    %c0_16 = arith.constant 0 : index
    %c34 = arith.constant 34 : index
    %14 = vector.load %arg0[%c0_16, %c34] : memref<4x2304xbf16, #tpu.memory_space<vmem>>, vector<4x2048xbf16>
    %c28 = arith.constant 28 : index
    %c0_17 = arith.constant 0 : index
    %15 = vector.load %arg19[%c28, %c0_17] : memref<100x2048xbf16, #tpu.memory_space<vmem>>, vector<4x2048xbf16>
    tpu.vector_store %arg19[%c28, %c0_17], %14 {strides = array<i32>} : memref<100x2048xbf16, #tpu.memory_space<vmem>>, vector<4x2048xbf16>,
    %c0_18 = arith.constant 0 : index
    %c35 = arith.constant 35 : index
    %16 = vector.load %arg0[%c0_18, %c35] : memref<4x2304xbf16, #tpu.memory_space<vmem>>, vector<4x2048xbf16>
    %c32_19 = arith.constant 32 : index
    %c0_20 = arith.constant 0 : index
    %17 = vector.load %arg19[%c32_19, %c0_20] : memref<100x2048xbf16, #tpu.memory_space<vmem>>, vector<4x2048xbf16>
    tpu.vector_store %arg19[%c32_19, %c0_20], %16 {strides = array<i32>} : memref<100x2048xbf16, #tpu.memory_space<vmem>>, vector<4x2048xbf16>,
    %c0_21 = arith.constant 0 : index
    %c36 = arith.constant 36 : index
    %18 = vector.load %arg0[%c0_21, %c36] : memref<4x2304xbf16, #tpu.memory_space<vmem>>, vector<4x2048xbf16>
    %c36_22 = arith.constant 36 : index
    %c0_23 = arith.constant 0 : index
    %19 = vector.load %arg19[%c36_22, %c0_23] : memref<100x2048xbf16, #tpu.memory_space<vmem>>, vector<4x2048xbf16>
    tpu.vector_store %arg19[%c36_22, %c0_23], %18 {strides = array<i32>} : memref<100x2048xbf16, #tpu.memory_space<vmem>>, vector<4x2048xbf16>,
    %c0_24 = arith.constant 0 : index
    %c64 = arith.constant 64 : index
    %20 = vector.load %arg0[%c0_24, %c64] : memref<4x2304xbf16, #tpu.memory_space<vmem>>, vector<4x2048xbf16>
    %c40 = arith.constant 40 : index
    %c0_25 = arith.constant 0 : index
    %21 = vector.load %arg19[%c40, %c0_25] : memref<100x2048xbf16, #tpu.memory_space<vmem>>, vector<4x2048xbf16>
    tpu.vector_store %arg19[%c40, %c0_25], %20 {strides = array<i32>} : memref<100x2048xbf16, #tpu.memory_space<vmem>>, vector<4x2048xbf16>,
    %c0_26 = arith.constant 0 : index
    %c65 = arith.constant 65 : index
    %22 = vector.load %arg0[%c0_26, %c65] : memref<4x2304xbf16, #tpu.memory_space<vmem>>, vector<4x2048xbf16>
    %c44 = arith.constant 44 : index
    %c0_27 = arith.constant 0 : index
    %23 = vector.load %arg19[%c44, %c0_27] : memref<100x2048xbf16, #tpu.memory_space<vmem>>, vector<4x2048xbf16>
    tpu.vector_store %arg19[%c44, %c0_27], %22 {strides = array<i32>} : memref<100x2048xbf16, #tpu.memory_space<vmem>>, vector<4x2048xbf16>,
    %c0_28 = arith.constant 0 : index
    %c66 = arith.constant 66 : index
    %24 = vector.load %arg0[%c0_28, %c66] : memref<4x2304xbf16, #tpu.memory_space<vmem>>, vector<4x2048xbf16>
    %c48 = arith.constant 48 : index
    %c0_29 = arith.constant 0 : index
    %25 = vector.load %arg19[%c48, %c0_29] : memref<100x2048xbf16, #tpu.memory_space<vmem>>, vector<4x2048xbf16>
    tpu.vector_store %arg19[%c48, %c0_29], %24 {strides = array<i32>} : memref<100x2048xbf16, #tpu.memory_space<vmem>>, vector<4x2048xbf16>,
    %c0_30 = arith.constant 0 : index
    %c67 = arith.constant 67 : index
    %26 = vector.load %arg0[%c0_30, %c67] : memref<4x2304xbf16, #tpu.memory_space<vmem>>, vector<4x2048xbf16>
    %c52 = arith.constant 52 : index
    %c0_31 = arith.constant 0 : index
    %27 = vector.load %arg19[%c52, %c0_31] : memref<100x2048xbf16, #tpu.memory_space<vmem>>, vector<4x2048xbf16>
    tpu.vector_store %arg19[%c52, %c0_31], %26 {strides = array<i32>} : memref<100x2048xbf16, #tpu.memory_space<vmem>>, vector<4x2048xbf16>,
    %c0_32 = arith.constant 0 : index
    %c68 = arith.constant 68 : index
    %28 = vector.load %arg0[%c0_32, %c68] : memref<4x2304xbf16, #tpu.memory_space<vmem>>, vector<4x2048xbf16>
    %c56 = arith.constant 56 : index
    %c0_33 = arith.constant 0 : index
    %29 = vector.load %arg19[%c56, %c0_33] : memref<100x2048xbf16, #tpu.memory_space<vmem>>, vector<4x2048xbf16>
    tpu.vector_store %arg19[%c56, %c0_33], %28 {strides = array<i32>} : memref<100x2048xbf16, #tpu.memory_space<vmem>>, vector<4x2048xbf16>,
    %c0_34 = arith.constant 0 : index
    %c96 = arith.constant 96 : index
    %30 = vector.load %arg0[%c0_34, %c96] : memref<4x2304xbf16, #tpu.memory_space<vmem>>, vector<4x2048xbf16>
    %c60 = arith.constant 60 : index
    %c0_35 = arith.constant 0 : index
    %31 = vector.load %arg19[%c60, %c0_35] : memref<100x2048xbf16, #tpu.memory_space<vmem>>, vector<4x2048xbf16>
    tpu.vector_store %arg19[%c60, %c0_35], %30 {strides = array<i32>} : memref<100x2048xbf16, #tpu.memory_space<vmem>>, vector<4x2048xbf16>,
    %c0_36 = arith.constant 0 : index
    %c97 = arith.constant 97 : index
    %32 = vector.load %arg0[%c0_36, %c97] : memref<4x2304xbf16, #tpu.memory_space<vmem>>, vector<4x2048xbf16>
    %c64_37 = arith.constant 64 : index
    %c0_38 = arith.constant 0 : index
    %33 = vector.load %arg19[%c64_37, %c0_38] : memref<100x2048xbf16, #tpu.memory_space<vmem>>, vector<4x2048xbf16>
    tpu.vector_store %arg19[%c64_37, %c0_38], %32 {strides = array<i32>} : memref<100x2048xbf16, #tpu.memory_space<vmem>>, vector<4x2048xbf16>,
    %c0_39 = arith.constant 0 : index
    %c98 = arith.constant 98 : index
    %34 = vector.load %arg0[%c0_39, %c98] : memref<4x2304xbf16, #tpu.memory_space<vmem>>, vector<4x2048xbf16>
    %c68_40 = arith.constant 68 : index
    %c0_41 = arith.constant 0 : index
    %35 = vector.load %arg19[%c68_40, %c0_41] : memref<100x2048xbf16, #tpu.memory_space<vmem>>, vector<4x2048xbf16>
    tpu.vector_store %arg19[%c68_40, %c0_41], %34 {strides = array<i32>} : memref<100x2048xbf16, #tpu.memory_space<vmem>>, vector<4x2048xbf16>,
    %c0_42 = arith.constant 0 : index
    %c99 = arith.constant 99 : index
    %36 = vector.load %arg0[%c0_42, %c99] : memref<4x2304xbf16, #tpu.memory_space<vmem>>, vector<4x2048xbf16>
    %c72 = arith.constant 72 : index
    %c0_43 = arith.constant 0 : index
    %37 = vector.load %arg19[%c72, %c0_43] : memref<100x2048xbf16, #tpu.memory_space<vmem>>, vector<4x2048xbf16>
    tpu.vector_store %arg19[%c72, %c0_43], %36 {strides = array<i32>} : memref<100x2048xbf16, #tpu.memory_space<vmem>>, vector<4x2048xbf16>,
    %c0_44 = arith.constant 0 : index
    %c100 = arith.constant 100 : index
    %38 = vector.load %arg0[%c0_44, %c100] : memref<4x2304xbf16, #tpu.memory_space<vmem>>, vector<4x2048xbf16>
    %c76 = arith.constant 76 : index
    %c0_45 = arith.constant 0 : index
    %39 = vector.load %arg19[%c76, %c0_45] : memref<100x2048xbf16, #tpu.memory_space<vmem>>, vector<4x2048xbf16>
    tpu.vector_store %arg19[%c76, %c0_45], %38 {strides = array<i32>} : memref<100x2048xbf16, #tpu.memory_space<vmem>>, vector<4x2048xbf16>,
    %c0_46 = arith.constant 0 : index
    %c128 = arith.constant 128 : index
    %40 = vector.load %arg0[%c0_46, %c128] : memref<4x2304xbf16, #tpu.memory_space<vmem>>, vector<4x2048xbf16>
    %c80 = arith.constant 80 : index
    %c0_47 = arith.constant 0 : index
    %41 = vector.load %arg19[%c80, %c0_47] : memref<100x2048xbf16, #tpu.memory_space<vmem>>, vector<4x2048xbf16>
    tpu.vector_store %arg19[%c80, %c0_47], %40 {strides = array<i32>} : memref<100x2048xbf16, #tpu.memory_space<vmem>>, vector<4x2048xbf16>,
    %c0_48 = arith.constant 0 : index
    %c129 = arith.constant 129 : index
    %42 = vector.load %arg0[%c0_48, %c129] : memref<4x2304xbf16, #tpu.memory_space<vmem>>, vector<4x2048xbf16>
    %c84 = arith.constant 84 : index
    %c0_49 = arith.constant 0 : index
    %43 = vector.load %arg19[%c84, %c0_49] : memref<100x2048xbf16, #tpu.memory_space<vmem>>, vector<4x2048xbf16>
    tpu.vector_store %arg19[%c84, %c0_49], %42 {strides = array<i32>} : memref<100x2048xbf16, #tpu.memory_space<vmem>>, vector<4x2048xbf16>,
    %c0_50 = arith.constant 0 : index
    %c130 = arith.constant 130 : index
    %44 = vector.load %arg0[%c0_50, %c130] : memref<4x2304xbf16, #tpu.memory_space<vmem>>, vector<4x2048xbf16>
    %c88 = arith.constant 88 : index
    %c0_51 = arith.constant 0 : index
    %45 = vector.load %arg19[%c88, %c0_51] : memref<100x2048xbf16, #tpu.memory_space<vmem>>, vector<4x2048xbf16>
    tpu.vector_store %arg19[%c88, %c0_51], %44 {strides = array<i32>} : memref<100x2048xbf16, #tpu.memory_space<vmem>>, vector<4x2048xbf16>,
    %c0_52 = arith.constant 0 : index
    %c131 = arith.constant 131 : index
    %46 = vector.load %arg0[%c0_52, %c131] : memref<4x2304xbf16, #tpu.memory_space<vmem>>, vector<4x2048xbf16>
    %c92 = arith.constant 92 : index
    %c0_53 = arith.constant 0 : index
    %47 = vector.load %arg19[%c92, %c0_53] : memref<100x2048xbf16, #tpu.memory_space<vmem>>, vector<4x2048xbf16>
    tpu.vector_store %arg19[%c92, %c0_53], %46 {strides = array<i32>} : memref<100x2048xbf16, #tpu.memory_space<vmem>>, vector<4x2048xbf16>,
    %c0_54 = arith.constant 0 : index
    %c132 = arith.constant 132 : index
    %48 = vector.load %arg0[%c0_54, %c132] : memref<4x2304xbf16, #tpu.memory_space<vmem>>, vector<4x2048xbf16>
    %c96_55 = arith.constant 96 : index
    %c0_56 = arith.constant 0 : index
    %49 = vector.load %arg19[%c96_55, %c0_56] : memref<100x2048xbf16, #tpu.memory_space<vmem>>, vector<4x2048xbf16>
    tpu.vector_store %arg19[%c96_55, %c0_56], %48 {strides = array<i32>} : memref<100x2048xbf16, #tpu.memory_space<vmem>>, vector<4x2048xbf16>,
    %c0_57 = arith.constant 0 : index
    %c0_58 = arith.constant 0 : index
    %50 = vector.load %arg1[%c0_57, %c0_58] : memref<6x100xbf16, #tpu.memory_space<vmem>>, vector<6x100xbf16>
    %c0_59 = arith.constant 0 : index
    %c0_60 = arith.constant 0 : index
    %51 = vector.load %arg19[%c0_59, %c0_60] : memref<100x2048xbf16, #tpu.memory_space<vmem>>, vector<100x2048xbf16>
    %cst = arith.constant dense<0.000000e+00> : vector<6x2048xf32>
    %52 = tpu.matmul %50, %51, %cst {dimension_numbers = #tpu.dot_dimension_numbers<[1], [0], [0], [1], [0, 0, 1, 1], [], []>} : vector<6x100xbf16>, vector<100x2048xbf16>, vector<6x2048xf32> -> vector<6x2048xf32>
    %c0_61 = arith.constant 0 : index
    %c0_62 = arith.constant 0 : index
    %53 = vector.load %arg4[%c0_61, %c0_62] : memref<1x2048xf32, #tpu.memory_space<vmem>>, vector<1x2048xf32>
    %54 = vector.broadcast %53 : vector<1x2048xf32> to vector<6x2048xf32>
    %55 = arith.mulf %52, %54 : vector<6x2048xf32>
    %cst_63 = arith.constant dense<0.000000e+00> : vector<6xf32>
    %56 = vector.multi_reduction <add>, %55, %cst_63 [1] : vector<6x2048xf32> to vector<6xf32>
    %57 = vector.shape_cast %56 : vector<6xf32> to vector<6x1xf32>
    %cst_64 = arith.constant 6.37755089E-4 : f32
    %58 = vector.broadcast %cst_64 : f32 to vector<6x1xf32>
    %59 = arith.mulf %57, %58 : vector<6x1xf32>
    %60 = vector.broadcast %59 : vector<6x1xf32> to vector<6x2048xf32>
    %61 = arith.subf %52, %60 : vector<6x2048xf32>
    %62 = vector.broadcast %53 : vector<1x2048xf32> to vector<6x2048xf32>
    %63 = arith.mulf %61, %62 : vector<6x2048xf32>
    %64 = arith.mulf %63, %63 : vector<6x2048xf32>
    %cst_65 = arith.constant dense<0.000000e+00> : vector<6xf32>
    %65 = vector.multi_reduction <add>, %64, %cst_65 [1] : vector<6x2048xf32> to vector<6xf32>
    %66 = vector.shape_cast %65 : vector<6xf32> to vector<6x1xf32>
    %cst_66 = arith.constant 6.37755089E-4 : f32
    %67 = vector.broadcast %cst_66 : f32 to vector<6x1xf32>
    %68 = arith.mulf %66, %67 : vector<6x1xf32>
    %c0_67 = arith.constant 0 : index
    %c0_68 = arith.constant 0 : index
    %69 = vector.load %arg2[%c0_67, %c0_68] : memref<6x1xf32, #tpu.memory_space<vmem>>, vector<6x1xf32>
    %cst_69 = arith.constant 9.99999974E-6 : f32
    %70 = vector.broadcast %cst_69 : f32 to vector<6x1xf32>
    %71 = arith.addf %68, %70 : vector<6x1xf32>
    %72 = math.rsqrt %71 : vector<6x1xf32>
    %73 = arith.mulf %69, %72 : vector<6x1xf32>
    %c0_70 = arith.constant 0 : index
    %c0_71 = arith.constant 0 : index
    %74 = vector.load %arg3[%c0_70, %c0_71] : memref<6x1xf32, #tpu.memory_space<vmem>>, vector<6x1xf32>
    %75 = arith.mulf %59, %73 : vector<6x1xf32>
    %76 = arith.subf %74, %75 : vector<6x1xf32>
    %77 = vector.broadcast %73 : vector<6x1xf32> to vector<6x2048xf32>
    %78 = arith.mulf %52, %77 : vector<6x2048xf32>
    %79 = vector.broadcast %76 : vector<6x1xf32> to vector<6x2048xf32>
    %80 = arith.addf %78, %79 : vector<6x2048xf32>
    %cst_72 = arith.constant 0.000000e+00 : f32
    %81 = vector.broadcast %cst_72 : f32 to vector<6x2048xf32>
    %82 = arith.maximumf %80, %81 : vector<6x2048xf32>
    %cst_73 = arith.constant 0.000000e+00 : bf16
    %83 = vector.broadcast %cst_73 : bf16 to vector<6x128xbf16>
    %c0_74 = arith.constant 0 : index
    %c512 = arith.constant 512 : index
    %84 = vector.load %arg20[%c0_74, %c512] : memref<6x640xbf16, #tpu.memory_space<vmem>>, vector<6x128xbf16>
    tpu.vector_store %arg20[%c0_74, %c512], %83 {strides = array<i32>} : memref<6x640xbf16, #tpu.memory_space<vmem>>, vector<6x128xbf16>,
    %85 = vector.extract_strided_slice %82 {offsets = [0, 0], sizes = [6, 1024], strides = [1, 1]} : vector<6x2048xf32> to vector<6x1024xf32>
    %86 = arith.truncf %85 : vector<6x1024xf32> to vector<6x1024xbf16>
    %c0_75 = arith.constant 0 : index
    %c0_76 = arith.constant 0 : index
    %87 = vector.load %arg5[%c0_75, %c0_76] : memref<1024x256xbf16, #tpu.memory_space<vmem>>, vector<1024x256xbf16>
    %cst_77 = arith.constant dense<0.000000e+00> : vector<6x256xf32>
    %88 = tpu.matmul %86, %87, %cst_77 {dimension_numbers = #tpu.dot_dimension_numbers<[1], [0], [0], [1], [0, 0, 1, 1], [], []>} : vector<6x1024xbf16>, vector<1024x256xbf16>, vector<6x256xf32> -> vector<6x256xf32>
    %89 = arith.truncf %88 : vector<6x256xf32> to vector<6x256xbf16>
    %c0_78 = arith.constant 0 : index
    %c0_79 = arith.constant 0 : index
    %90 = vector.load %arg20[%c0_78, %c0_79] : memref<6x640xbf16, #tpu.memory_space<vmem>>, vector<6x256xbf16>
    tpu.vector_store %arg20[%c0_78, %c0_79], %89 {strides = array<i32>} : memref<6x640xbf16, #tpu.memory_space<vmem>>, vector<6x256xbf16>,
    %91 = vector.extract_strided_slice %82 {offsets = [0, 1024], sizes = [6, 1024], strides = [1, 1]} : vector<6x2048xf32> to vector<6x1024xf32>
    %92 = arith.truncf %91 : vector<6x1024xf32> to vector<6x1024xbf16>
    %c0_80 = arith.constant 0 : index
    %c0_81 = arith.constant 0 : index
    %93 = vector.load %arg5[%c0_80, %c0_81] : memref<1024x256xbf16, #tpu.memory_space<vmem>>, vector<1024x256xbf16>
    %cst_82 = arith.constant dense<0.000000e+00> : vector<6x256xf32>
    %94 = tpu.matmul %92, %93, %cst_82 {dimension_numbers = #tpu.dot_dimension_numbers<[1], [0], [0], [1], [0, 0, 1, 1], [], []>} : vector<6x1024xbf16>, vector<1024x256xbf16>, vector<6x256xf32> -> vector<6x256xf32>
    %95 = arith.truncf %94 : vector<6x256xf32> to vector<6x256xbf16>
    %c0_83 = arith.constant 0 : index
    %c256 = arith.constant 256 : index
    %96 = vector.load %arg20[%c0_83, %c256] : memref<6x640xbf16, #tpu.memory_space<vmem>>, vector<6x256xbf16>
    tpu.vector_store %arg20[%c0_83, %c256], %95 {strides = array<i32>} : memref<6x640xbf16, #tpu.memory_space<vmem>>, vector<6x256xbf16>,
    %c0_84 = arith.constant 0 : index
    %c0_85 = arith.constant 0 : index
    %97 = vector.load %arg20[%c0_84, %c0_85] : memref<6x640xbf16, #tpu.memory_space<vmem>>, vector<6x512xbf16>
    %c0_86 = arith.constant 0 : index
    %c0_87 = arith.constant 0 : index
    %98 = vector.load %arg21[%c0_86, %c0_87] : memref<150x512xbf16, #tpu.memory_space<vmem>>, vector<6x512xbf16>
    tpu.vector_store %arg21[%c0_86, %c0_87], %97 {strides = array<i32>} : memref<150x512xbf16, #tpu.memory_space<vmem>>, vector<6x512xbf16>,
    %c0_88 = arith.constant 0 : index
    %c1_89 = arith.constant 1 : index
    %99 = vector.load %arg20[%c0_88, %c1_89] : memref<6x640xbf16, #tpu.memory_space<vmem>>, vector<6x512xbf16>
    %c6 = arith.constant 6 : index
    %c0_90 = arith.constant 0 : index
    %100 = vector.load %arg21[%c6, %c0_90] : memref<150x512xbf16, #tpu.memory_space<vmem>>, vector<6x512xbf16>
    tpu.vector_store %arg21[%c6, %c0_90], %99 {strides = array<i32>} : memref<150x512xbf16, #tpu.memory_space<vmem>>, vector<6x512xbf16>,
    %c0_91 = arith.constant 0 : index
    %c2_92 = arith.constant 2 : index
    %101 = vector.load %arg20[%c0_91, %c2_92] : memref<6x640xbf16, #tpu.memory_space<vmem>>, vector<6x512xbf16>
    %c12_93 = arith.constant 12 : index
    %c0_94 = arith.constant 0 : index
    %102 = vector.load %arg21[%c12_93, %c0_94] : memref<150x512xbf16, #tpu.memory_space<vmem>>, vector<6x512xbf16>
    tpu.vector_store %arg21[%c12_93, %c0_94], %101 {strides = array<i32>} : memref<150x512xbf16, #tpu.memory_space<vmem>>, vector<6x512xbf16>,
    %c0_95 = arith.constant 0 : index
    %c3_96 = arith.constant 3 : index
    %103 = vector.load %arg20[%c0_95, %c3_96] : memref<6x640xbf16, #tpu.memory_space<vmem>>, vector<6x512xbf16>
    %c18 = arith.constant 18 : index
    %c0_97 = arith.constant 0 : index
    %104 = vector.load %arg21[%c18, %c0_97] : memref<150x512xbf16, #tpu.memory_space<vmem>>, vector<6x512xbf16>
    tpu.vector_store %arg21[%c18, %c0_97], %103 {strides = array<i32>} : memref<150x512xbf16, #tpu.memory_space<vmem>>, vector<6x512xbf16>,
    %c0_98 = arith.constant 0 : index
    %c4_99 = arith.constant 4 : index
    %105 = vector.load %arg20[%c0_98, %c4_99] : memref<6x640xbf16, #tpu.memory_space<vmem>>, vector<6x512xbf16>
    %c24_100 = arith.constant 24 : index
    %c0_101 = arith.constant 0 : index
    %106 = vector.load %arg21[%c24_100, %c0_101] : memref<150x512xbf16, #tpu.memory_space<vmem>>, vector<6x512xbf16>
    tpu.vector_store %arg21[%c24_100, %c0_101], %105 {strides = array<i32>} : memref<150x512xbf16, #tpu.memory_space<vmem>>, vector<6x512xbf16>,
    %c0_102 = arith.constant 0 : index
    %c16_103 = arith.constant 16 : index
    %107 = vector.load %arg20[%c0_102, %c16_103] : memref<6x640xbf16, #tpu.memory_space<vmem>>, vector<6x512xbf16>
    %c30 = arith.constant 30 : index
    %c0_104 = arith.constant 0 : index
    %108 = vector.load %arg21[%c30, %c0_104] : memref<150x512xbf16, #tpu.memory_space<vmem>>, vector<6x512xbf16>
    tpu.vector_store %arg21[%c30, %c0_104], %107 {strides = array<i32>} : memref<150x512xbf16, #tpu.memory_space<vmem>>, vector<6x512xbf16>,
    %c0_105 = arith.constant 0 : index
    %c17 = arith.constant 17 : index
    %109 = vector.load %arg20[%c0_105, %c17] : memref<6x640xbf16, #tpu.memory_space<vmem>>, vector<6x512xbf16>
    %c36_106 = arith.constant 36 : index
    %c0_107 = arith.constant 0 : index
    %110 = vector.load %arg21[%c36_106, %c0_107] : memref<150x512xbf16, #tpu.memory_space<vmem>>, vector<6x512xbf16>
    tpu.vector_store %arg21[%c36_106, %c0_107], %109 {strides = array<i32>} : memref<150x512xbf16, #tpu.memory_space<vmem>>, vector<6x512xbf16>,
    %c0_108 = arith.constant 0 : index
    %c18_109 = arith.constant 18 : index
    %111 = vector.load %arg20[%c0_108, %c18_109] : memref<6x640xbf16, #tpu.memory_space<vmem>>, vector<6x512xbf16>
    %c42 = arith.constant 42 : index
    %c0_110 = arith.constant 0 : index
    %112 = vector.load %arg21[%c42, %c0_110] : memref<150x512xbf16, #tpu.memory_space<vmem>>, vector<6x512xbf16>
    tpu.vector_store %arg21[%c42, %c0_110], %111 {strides = array<i32>} : memref<150x512xbf16, #tpu.memory_space<vmem>>, vector<6x512xbf16>,
    %c0_111 = arith.constant 0 : index
    %c19 = arith.constant 19 : index
    %113 = vector.load %arg20[%c0_111, %c19] : memref<6x640xbf16, #tpu.memory_space<vmem>>, vector<6x512xbf16>
    %c48_112 = arith.constant 48 : index
    %c0_113 = arith.constant 0 : index
    %114 = vector.load %arg21[%c48_112, %c0_113] : memref<150x512xbf16, #tpu.memory_space<vmem>>, vector<6x512xbf16>
    tpu.vector_store %arg21[%c48_112, %c0_113], %113 {strides = array<i32>} : memref<150x512xbf16, #tpu.memory_space<vmem>>, vector<6x512xbf16>,
    %c0_114 = arith.constant 0 : index
    %c20_115 = arith.constant 20 : index
    %115 = vector.load %arg20[%c0_114, %c20_115] : memref<6x640xbf16, #tpu.memory_space<vmem>>, vector<6x512xbf16>
    %c54 = arith.constant 54 : index
    %c0_116 = arith.constant 0 : index
    %116 = vector.load %arg21[%c54, %c0_116] : memref<150x512xbf16, #tpu.memory_space<vmem>>, vector<6x512xbf16>
    tpu.vector_store %arg21[%c54, %c0_116], %115 {strides = array<i32>} : memref<150x512xbf16, #tpu.memory_space<vmem>>, vector<6x512xbf16>,
    %c0_117 = arith.constant 0 : index
    %c32_118 = arith.constant 32 : index
    %117 = vector.load %arg20[%c0_117, %c32_118] : memref<6x640xbf16, #tpu.memory_space<vmem>>, vector<6x512xbf16>
    %c60_119 = arith.constant 60 : index
    %c0_120 = arith.constant 0 : index
    %118 = vector.load %arg21[%c60_119, %c0_120] : memref<150x512xbf16, #tpu.memory_space<vmem>>, vector<6x512xbf16>
    tpu.vector_store %arg21[%c60_119, %c0_120], %117 {strides = array<i32>} : memref<150x512xbf16, #tpu.memory_space<vmem>>, vector<6x512xbf16>,
    %c0_121 = arith.constant 0 : index
    %c33_122 = arith.constant 33 : index
    %119 = vector.load %arg20[%c0_121, %c33_122] : memref<6x640xbf16, #tpu.memory_space<vmem>>, vector<6x512xbf16>
    %c66_123 = arith.constant 66 : index
    %c0_124 = arith.constant 0 : index
    %120 = vector.load %arg21[%c66_123, %c0_124] : memref<150x512xbf16, #tpu.memory_space<vmem>>, vector<6x512xbf16>
    tpu.vector_store %arg21[%c66_123, %c0_124], %119 {strides = array<i32>} : memref<150x512xbf16, #tpu.memory_space<vmem>>, vector<6x512xbf16>,
    %c0_125 = arith.constant 0 : index
    %c34_126 = arith.constant 34 : index
    %121 = vector.load %arg20[%c0_125, %c34_126] : memref<6x640xbf16, #tpu.memory_space<vmem>>, vector<6x512xbf16>
    %c72_127 = arith.constant 72 : index
    %c0_128 = arith.constant 0 : index
    %122 = vector.load %arg21[%c72_127, %c0_128] : memref<150x512xbf16, #tpu.memory_space<vmem>>, vector<6x512xbf16>
    tpu.vector_store %arg21[%c72_127, %c0_128], %121 {strides = array<i32>} : memref<150x512xbf16, #tpu.memory_space<vmem>>, vector<6x512xbf16>,
    %c0_129 = arith.constant 0 : index
    %c35_130 = arith.constant 35 : index
    %123 = vector.load %arg20[%c0_129, %c35_130] : memref<6x640xbf16, #tpu.memory_space<vmem>>, vector<6x512xbf16>
    %c78 = arith.constant 78 : index
    %c0_131 = arith.constant 0 : index
    %124 = vector.load %arg21[%c78, %c0_131] : memref<150x512xbf16, #tpu.memory_space<vmem>>, vector<6x512xbf16>
    tpu.vector_store %arg21[%c78, %c0_131], %123 {strides = array<i32>} : memref<150x512xbf16, #tpu.memory_space<vmem>>, vector<6x512xbf16>,
    %c0_132 = arith.constant 0 : index
    %c36_133 = arith.constant 36 : index
    %125 = vector.load %arg20[%c0_132, %c36_133] : memref<6x640xbf16, #tpu.memory_space<vmem>>, vector<6x512xbf16>
    %c84_134 = arith.constant 84 : index
    %c0_135 = arith.constant 0 : index
    %126 = vector.load %arg21[%c84_134, %c0_135] : memref<150x512xbf16, #tpu.memory_space<vmem>>, vector<6x512xbf16>
    tpu.vector_store %arg21[%c84_134, %c0_135], %125 {strides = array<i32>} : memref<150x512xbf16, #tpu.memory_space<vmem>>, vector<6x512xbf16>,
    %c0_136 = arith.constant 0 : index
    %c48_137 = arith.constant 48 : index
    %127 = vector.load %arg20[%c0_136, %c48_137] : memref<6x640xbf16, #tpu.memory_space<vmem>>, vector<6x512xbf16>
    %c90 = arith.constant 90 : index
    %c0_138 = arith.constant 0 : index
    %128 = vector.load %arg21[%c90, %c0_138] : memref<150x512xbf16, #tpu.memory_space<vmem>>, vector<6x512xbf16>
    tpu.vector_store %arg21[%c90, %c0_138], %127 {strides = array<i32>} : memref<150x512xbf16, #tpu.memory_space<vmem>>, vector<6x512xbf16>,
    %c0_139 = arith.constant 0 : index
    %c49 = arith.constant 49 : index
    %129 = vector.load %arg20[%c0_139, %c49] : memref<6x640xbf16, #tpu.memory_space<vmem>>, vector<6x512xbf16>
    %c96_140 = arith.constant 96 : index
    %c0_141 = arith.constant 0 : index
    %130 = vector.load %arg21[%c96_140, %c0_141] : memref<150x512xbf16, #tpu.memory_space<vmem>>, vector<6x512xbf16>
    tpu.vector_store %arg21[%c96_140, %c0_141], %129 {strides = array<i32>} : memref<150x512xbf16, #tpu.memory_space<vmem>>, vector<6x512xbf16>,
    %c0_142 = arith.constant 0 : index
    %c50 = arith.constant 50 : index
    %131 = vector.load %arg20[%c0_142, %c50] : memref<6x640xbf16, #tpu.memory_space<vmem>>, vector<6x512xbf16>
    %c102 = arith.constant 102 : index
    %c0_143 = arith.constant 0 : index
    %132 = vector.load %arg21[%c102, %c0_143] : memref<150x512xbf16, #tpu.memory_space<vmem>>, vector<6x512xbf16>
    tpu.vector_store %arg21[%c102, %c0_143], %131 {strides = array<i32>} : memref<150x512xbf16, #tpu.memory_space<vmem>>, vector<6x512xbf16>,
    %c0_144 = arith.constant 0 : index
    %c51 = arith.constant 51 : index
    %133 = vector.load %arg20[%c0_144, %c51] : memref<6x640xbf16, #tpu.memory_space<vmem>>, vector<6x512xbf16>
    %c108 = arith.constant 108 : index
    %c0_145 = arith.constant 0 : index
    %134 = vector.load %arg21[%c108, %c0_145] : memref<150x512xbf16, #tpu.memory_space<vmem>>, vector<6x512xbf16>
    tpu.vector_store %arg21[%c108, %c0_145], %133 {strides = array<i32>} : memref<150x512xbf16, #tpu.memory_space<vmem>>, vector<6x512xbf16>,
    %c0_146 = arith.constant 0 : index
    %c52_147 = arith.constant 52 : index
    %135 = vector.load %arg20[%c0_146, %c52_147] : memref<6x640xbf16, #tpu.memory_space<vmem>>, vector<6x512xbf16>
    %c114 = arith.constant 114 : index
    %c0_148 = arith.constant 0 : index
    %136 = vector.load %arg21[%c114, %c0_148] : memref<150x512xbf16, #tpu.memory_space<vmem>>, vector<6x512xbf16>
    tpu.vector_store %arg21[%c114, %c0_148], %135 {strides = array<i32>} : memref<150x512xbf16, #tpu.memory_space<vmem>>, vector<6x512xbf16>,
    %c0_149 = arith.constant 0 : index
    %c64_150 = arith.constant 64 : index
    %137 = vector.load %arg20[%c0_149, %c64_150] : memref<6x640xbf16, #tpu.memory_space<vmem>>, vector<6x512xbf16>
    %c120 = arith.constant 120 : index
    %c0_151 = arith.constant 0 : index
    %138 = vector.load %arg21[%c120, %c0_151] : memref<150x512xbf16, #tpu.memory_space<vmem>>, vector<6x512xbf16>
    tpu.vector_store %arg21[%c120, %c0_151], %137 {strides = array<i32>} : memref<150x512xbf16, #tpu.memory_space<vmem>>, vector<6x512xbf16>,
    %c0_152 = arith.constant 0 : index
    %c65_153 = arith.constant 65 : index
    %139 = vector.load %arg20[%c0_152, %c65_153] : memref<6x640xbf16, #tpu.memory_space<vmem>>, vector<6x512xbf16>
    %c126 = arith.constant 126 : index
    %c0_154 = arith.constant 0 : index
    %140 = vector.load %arg21[%c126, %c0_154] : memref<150x512xbf16, #tpu.memory_space<vmem>>, vector<6x512xbf16>
    tpu.vector_store %arg21[%c126, %c0_154], %139 {strides = array<i32>} : memref<150x512xbf16, #tpu.memory_space<vmem>>, vector<6x512xbf16>,
    %c0_155 = arith.constant 0 : index
    %c66_156 = arith.constant 66 : index
    %141 = vector.load %arg20[%c0_155, %c66_156] : memref<6x640xbf16, #tpu.memory_space<vmem>>, vector<6x512xbf16>
    %c132_157 = arith.constant 132 : index
    %c0_158 = arith.constant 0 : index
    %142 = vector.load %arg21[%c132_157, %c0_158] : memref<150x512xbf16, #tpu.memory_space<vmem>>, vector<6x512xbf16>
    tpu.vector_store %arg21[%c132_157, %c0_158], %141 {strides = array<i32>} : memref<150x512xbf16, #tpu.memory_space<vmem>>, vector<6x512xbf16>,
    %c0_159 = arith.constant 0 : index
    %c67_160 = arith.constant 67 : index
    %143 = vector.load %arg20[%c0_159, %c67_160] : memref<6x640xbf16, #tpu.memory_space<vmem>>, vector<6x512xbf16>
    %c138 = arith.constant 138 : index
    %c0_161 = arith.constant 0 : index
    %144 = vector.load %arg21[%c138, %c0_161] : memref<150x512xbf16, #tpu.memory_space<vmem>>, vector<6x512xbf16>
    tpu.vector_store %arg21[%c138, %c0_161], %143 {strides = array<i32>} : memref<150x512xbf16, #tpu.memory_space<vmem>>, vector<6x512xbf16>,
    %c0_162 = arith.constant 0 : index
    %c68_163 = arith.constant 68 : index
    %145 = vector.load %arg20[%c0_162, %c68_163] : memref<6x640xbf16, #tpu.memory_space<vmem>>, vector<6x512xbf16>
    %c144 = arith.constant 144 : index
    %c0_164 = arith.constant 0 : index
    %146 = vector.load %arg21[%c144, %c0_164] : memref<150x512xbf16, #tpu.memory_space<vmem>>, vector<6x512xbf16>
    tpu.vector_store %arg21[%c144, %c0_164], %145 {strides = array<i32>} : memref<150x512xbf16, #tpu.memory_space<vmem>>, vector<6x512xbf16>,
    %c0_165 = arith.constant 0 : index
    %c0_166 = arith.constant 0 : index
    %147 = vector.load %arg6[%c0_165, %c0_166] : memref<16x150xbf16, #tpu.memory_space<vmem>>, vector<16x150xbf16>
    %c0_167 = arith.constant 0 : index
    %c0_168 = arith.constant 0 : index
    %148 = vector.load %arg21[%c0_167, %c0_168] : memref<150x512xbf16, #tpu.memory_space<vmem>>, vector<150x512xbf16>
    %cst_169 = arith.constant dense<0.000000e+00> : vector<16x512xf32>
    %149 = tpu.matmul %147, %148, %cst_169 {dimension_numbers = #tpu.dot_dimension_numbers<[1], [0], [0], [1], [0, 0, 1, 1], [], []>} : vector<16x150xbf16>, vector<150x512xbf16>, vector<16x512xf32> -> vector<16x512xf32>
    %c0_170 = arith.constant 0 : index
    %c0_171 = arith.constant 0 : index
    %150 = vector.load %arg9[%c0_170, %c0_171] : memref<1x512xf32, #tpu.memory_space<vmem>>, vector<1x512xf32>
    %151 = vector.broadcast %150 : vector<1x512xf32> to vector<16x512xf32>
    %152 = arith.mulf %149, %151 : vector<16x512xf32>
    %cst_172 = arith.constant dense<0.000000e+00> : vector<16xf32>
    %153 = vector.multi_reduction <add>, %152, %cst_172 [1] : vector<16x512xf32> to vector<16xf32>
    %154 = vector.shape_cast %153 : vector<16xf32> to vector<16x1xf32>
    %cst_173 = arith.constant 5.000000e-03 : f32
    %155 = vector.broadcast %cst_173 : f32 to vector<16x1xf32>
    %156 = arith.mulf %154, %155 : vector<16x1xf32>
    %157 = vector.broadcast %156 : vector<16x1xf32> to vector<16x512xf32>
    %158 = arith.subf %149, %157 : vector<16x512xf32>
    %159 = vector.broadcast %150 : vector<1x512xf32> to vector<16x512xf32>
    %160 = arith.mulf %158, %159 : vector<16x512xf32>
    %161 = arith.mulf %160, %160 : vector<16x512xf32>
    %cst_174 = arith.constant dense<0.000000e+00> : vector<16xf32>
    %162 = vector.multi_reduction <add>, %161, %cst_174 [1] : vector<16x512xf32> to vector<16xf32>
    %163 = vector.shape_cast %162 : vector<16xf32> to vector<16x1xf32>
    %cst_175 = arith.constant 5.000000e-03 : f32
    %164 = vector.broadcast %cst_175 : f32 to vector<16x1xf32>
    %165 = arith.mulf %163, %164 : vector<16x1xf32>
    %c0_176 = arith.constant 0 : index
    %c0_177 = arith.constant 0 : index
    %166 = vector.load %arg7[%c0_176, %c0_177] : memref<16x1xf32, #tpu.memory_space<vmem>>, vector<16x1xf32>
    %cst_178 = arith.constant 9.99999974E-6 : f32
    %167 = vector.broadcast %cst_178 : f32 to vector<16x1xf32>
    %168 = arith.addf %165, %167 : vector<16x1xf32>
    %169 = math.rsqrt %168 : vector<16x1xf32>
    %170 = arith.mulf %166, %169 : vector<16x1xf32>
    %c0_179 = arith.constant 0 : index
    %c0_180 = arith.constant 0 : index
    %171 = vector.load %arg8[%c0_179, %c0_180] : memref<16x1xf32, #tpu.memory_space<vmem>>, vector<16x1xf32>
    %172 = arith.mulf %156, %170 : vector<16x1xf32>
    %173 = arith.subf %171, %172 : vector<16x1xf32>
    %174 = vector.broadcast %170 : vector<16x1xf32> to vector<16x512xf32>
    %175 = arith.mulf %149, %174 : vector<16x512xf32>
    %176 = vector.broadcast %173 : vector<16x1xf32> to vector<16x512xf32>
    %177 = arith.addf %175, %176 : vector<16x512xf32>
    %cst_181 = arith.constant 0.000000e+00 : f32
    %178 = vector.broadcast %cst_181 : f32 to vector<16x512xf32>
    %179 = arith.maximumf %177, %178 : vector<16x512xf32>
    %180 = vector.extract_strided_slice %179 {offsets = [0, 0], sizes = [16, 256], strides = [1, 1]} : vector<16x512xf32> to vector<16x256xf32>
    %c0_182 = arith.constant 0 : index
    %c0_183 = arith.constant 0 : index
    %181 = vector.load %arg10[%c0_182, %c0_183] : memref<256x400xf32, #tpu.memory_space<vmem>>, vector<256x400xf32>
    %cst_184 = arith.constant dense<0.000000e+00> : vector<16x400xf32>
    %182 = tpu.matmul %180, %181, %cst_184 {dimension_numbers = #tpu.dot_dimension_numbers<[1], [0], [0], [1], [0, 0, 1, 1], [], []>} : vector<16x256xf32>, vector<256x400xf32>, vector<16x400xf32> -> vector<16x400xf32>
    %c0_185 = arith.constant 0 : index
    %c0_186 = arith.constant 0 : index
    %183 = vector.load %arg11[%c0_185, %c0_186] : memref<16x400xf32, #tpu.memory_space<vmem>>, vector<16x400xf32>
    %184 = arith.mulf %182, %183 : vector<16x400xf32>
    %cst_187 = arith.constant dense<0.000000e+00> : vector<400xf32>
    %185 = vector.multi_reduction <add>, %184, %cst_187 [0] : vector<16x400xf32> to vector<400xf32>
    %186 = vector.shape_cast %185 : vector<400xf32> to vector<1x400xf32>
    %c0_188 = arith.constant 0 : index
    %c0_189 = arith.constant 0 : index
    %187 = vector.load %arg22[%c0_188, %c0_189] : memref<2x400xf32, #tpu.memory_space<vmem>>, vector<1x400xf32>
    tpu.vector_store %arg22[%c0_188, %c0_189], %186 {strides = array<i32>} : memref<2x400xf32, #tpu.memory_space<vmem>>, vector<1x400xf32>,
    %188 = vector.extract_strided_slice %179 {offsets = [0, 256], sizes = [16, 256], strides = [1, 1]} : vector<16x512xf32> to vector<16x256xf32>
    %c0_190 = arith.constant 0 : index
    %c0_191 = arith.constant 0 : index
    %189 = vector.load %arg10[%c0_190, %c0_191] : memref<256x400xf32, #tpu.memory_space<vmem>>, vector<256x400xf32>
    %cst_192 = arith.constant dense<0.000000e+00> : vector<16x400xf32>
    %190 = tpu.matmul %188, %189, %cst_192 {dimension_numbers = #tpu.dot_dimension_numbers<[1], [0], [0], [1], [0, 0, 1, 1], [], []>} : vector<16x256xf32>, vector<256x400xf32>, vector<16x400xf32> -> vector<16x400xf32>
    %c0_193 = arith.constant 0 : index
    %c0_194 = arith.constant 0 : index
    %191 = vector.load %arg11[%c0_193, %c0_194] : memref<16x400xf32, #tpu.memory_space<vmem>>, vector<16x400xf32>
    %192 = arith.mulf %190, %191 : vector<16x400xf32>
    %cst_195 = arith.constant dense<0.000000e+00> : vector<400xf32>
    %193 = vector.multi_reduction <add>, %192, %cst_195 [0] : vector<16x400xf32> to vector<400xf32>
    %194 = vector.shape_cast %193 : vector<400xf32> to vector<1x400xf32>
    %c1_196 = arith.constant 1 : index
    %c0_197 = arith.constant 0 : index
    %195 = vector.load %arg22[%c1_196, %c0_197] : memref<2x400xf32, #tpu.memory_space<vmem>>, vector<1x400xf32>
    tpu.vector_store %arg22[%c1_196, %c0_197], %194 {strides = array<i32>} : memref<2x400xf32, #tpu.memory_space<vmem>>, vector<1x400xf32>,
    %c0_198 = arith.constant 0 : index
    %c0_199 = arith.constant 0 : index
    %196 = vector.load %arg22[%c0_198, %c0_199] : memref<2x400xf32, #tpu.memory_space<vmem>>, vector<2x400xf32>
    %c0_200 = arith.constant 0 : index
    %c0_201 = arith.constant 0 : index
    %197 = vector.load %arg12[%c0_200, %c0_201] : memref<400x120xf32, #tpu.memory_space<vmem>>, vector<400x120xf32>
    %cst_202 = arith.constant dense<0.000000e+00> : vector<2x120xf32>
    %198 = tpu.matmul %196, %197, %cst_202 {dimension_numbers = #tpu.dot_dimension_numbers<[1], [0], [0], [1], [0, 0, 1, 1], [], []>} : vector<2x400xf32>, vector<400x120xf32>, vector<2x120xf32> -> vector<2x120xf32>
    %c0_203 = arith.constant 0 : index
    %c0_204 = arith.constant 0 : index
    %199 = vector.load %arg13[%c0_203, %c0_204] : memref<1x120xf32, #tpu.memory_space<vmem>>, vector<1x120xf32>
    %200 = vector.broadcast %199 : vector<1x120xf32> to vector<2x120xf32>
    %201 = arith.addf %198, %200 : vector<2x120xf32>
    %cst_205 = arith.constant 0.000000e+00 : f32
    %202 = vector.broadcast %cst_205 : f32 to vector<2x120xf32>
    %203 = arith.maximumf %201, %202 : vector<2x120xf32>
    %c0_206 = arith.constant 0 : index
    %c0_207 = arith.constant 0 : index
    %204 = vector.load %arg14[%c0_206, %c0_207] : memref<120x84xf32, #tpu.memory_space<vmem>>, vector<120x84xf32>
    %cst_208 = arith.constant dense<0.000000e+00> : vector<2x84xf32>
    %205 = tpu.matmul %203, %204, %cst_208 {dimension_numbers = #tpu.dot_dimension_numbers<[1], [0], [0], [1], [0, 0, 1, 1], [], []>} : vector<2x120xf32>, vector<120x84xf32>, vector<2x84xf32> -> vector<2x84xf32>
    %c0_209 = arith.constant 0 : index
    %c0_210 = arith.constant 0 : index
    %206 = vector.load %arg15[%c0_209, %c0_210] : memref<1x84xf32, #tpu.memory_space<vmem>>, vector<1x84xf32>
    %207 = vector.broadcast %206 : vector<1x84xf32> to vector<2x84xf32>
    %208 = arith.addf %205, %207 : vector<2x84xf32>
    %cst_211 = arith.constant 0.000000e+00 : f32
    %209 = vector.broadcast %cst_211 : f32 to vector<2x84xf32>
    %210 = arith.maximumf %208, %209 : vector<2x84xf32>
    %c0_212 = arith.constant 0 : index
    %c0_213 = arith.constant 0 : index
    %211 = vector.load %arg16[%c0_212, %c0_213] : memref<84x10xf32, #tpu.memory_space<vmem>>, vector<84x10xf32>
    %cst_214 = arith.constant dense<0.000000e+00> : vector<2x10xf32>
    %212 = tpu.matmul %210, %211, %cst_214 {dimension_numbers = #tpu.dot_dimension_numbers<[1], [0], [0], [1], [0, 0, 1, 1], [], []>} : vector<2x84xf32>, vector<84x10xf32>, vector<2x10xf32> -> vector<2x10xf32>
    %c0_215 = arith.constant 0 : index
    %c0_216 = arith.constant 0 : index
    %213 = vector.load %arg17[%c0_215, %c0_216] : memref<1x10xf32, #tpu.memory_space<vmem>>, vector<1x10xf32>
    %214 = vector.broadcast %213 : vector<1x10xf32> to vector<2x10xf32>
    %215 = arith.addf %212, %214 : vector<2x10xf32>
    %c0_217 = arith.constant 0 : index
    %c0_218 = arith.constant 0 : index
    %216 = vector.load %arg18[%c0_217, %c0_218] : memref<2x10xf32, #tpu.memory_space<vmem>>, vector<2x10xf32>
    tpu.vector_store %arg18[%c0_217, %c0_218], %215 {strides = array<i32>} : memref<2x10xf32, #tpu.memory_space<vmem>>, vector<2x10xf32>,
    return
  }
}

</mosaic_0001>

<bundles_post_ra>
// kernel: tpu_custom_call.1
= control target key start
LH: loop header
LB: loop body
LE: loop exit
PB: predicated region body
PF: predicated region fallthrough
CT: control target
= control target key end

     0   :  { %s14427_s0 = inlined_call_operand.vmem [shape: bf16[4,2304], index: 0, kind: input, shape index: {}]   ;;  %s14428_s1 = inlined_call_operand.vmem [shape: bf16[6,100], index: 1, kind: input, shape index: {}]   ;;  %s14429_s2 = inlined_call_operand.vmem [shape: f32[6,1], index: 2, kind: input, shape index: {}]   ;;  %s14430_s3 = inlined_call_operand.vmem [shape: f32[6,1], index: 3, kind: input, shape index: {}]   ;;  %s14431_s4 = inlined_call_operand.vmem [shape: f32[1,2048], index: 4, kind: input, shape index: {}]   ;;  %s14432_s5 = inlined_call_operand.vmem [shape: bf16[1024,256], index: 5, kind: input, shape index: {}]   ;;  %s14433_s6 = inlined_call_operand.vmem [shape: bf16[16,150], index: 6, kind: input, shape index: {}]   ;;  %s14434_s7 = inlined_call_operand.vmem [shape: f32[16,1], index: 7, kind: input, shape index: {}]   ;;  %s14435_s8 = inlined_call_operand.vmem [shape: f32[16,1], index: 8, kind: input, shape index: {}]   ;;  %s14436_s9 = inlined_call_operand.vmem [shape: f32[1,512], index: 9, kind: input, shape index: {}]   ;;  %s14437_s10 = inlined_call_operand.vmem [shape: f32[256,400], index: 10, kind: input, shape index: {}]   ;;  %s14438_s11 = inlined_call_operand.vmem [shape: f32[16,400], index: 11, kind: input, shape index: {}]   ;;  %s14439_s12 = inlined_call_operand.vmem [shape: f32[400,120], index: 12, kind: input, shape index: {}]   ;;  %s14440_s13 = inlined_call_operand.vmem [shape: f32[1,120], index: 13, kind: input, shape index: {}]   ;;  %s14441_s14 = inlined_call_operand.vmem [shape: f32[120,84], index: 14, kind: input, shape index: {}]   ;;  %s14442_s15 = inlined_call_operand.vmem [shape: f32[1,84], index: 15, kind: input, shape index: {}]   ;;  %s14443_s16 = inlined_call_operand.vmem [shape: f32[84,10], index: 16, kind: input, shape index: {}]   ;;  %s14444_s17 = inlined_call_operand.vmem [shape: f32[1,10], index: 17, kind: input, shape index: {}]   ;;  %s14445_s18 = inlined_call_operand.hbm [shape: f32[2,10], index: 18, kind: output, shape index: {}]  }
   0x1   :  { %14565 = sst [smem:[#allocation30_spill]] %s14427_s0 }
   0x2   :  { %14566 = sst [smem:[#allocation31_spill]] %s14428_s1 }
   0x3   :  { %14567 = sst [smem:[#allocation32_spill]] %s14429_s2 }
   0x4   :  { %14568 = sst [smem:[#allocation33_spill]] %s14434_s7 }
   0x5   :  { %14569 = sst [smem:[#allocation34_spill]] %s14435_s8 }
   0x6   :  { %14570 = sst [smem:[#allocation35_spill]] %s14438_s11 }
   0x7   :  { %14571 = sst [smem:[#allocation36_spill]] %s14439_s12 }
   0x8   :  { %14572 = sst [smem:[#allocation37_spill]] %s14440_s13 }
   0x9   :  { %14573 = sst [smem:[#allocation38_spill]] %s14441_s14 }
   0xa   :  { %14574 = sst [smem:[#allocation39_spill]] %s14442_s15 }
   0xb   :  { %14575 = sst [smem:[#allocation40_spill]] %s14443_s16 }
   0xc   :  { %14576 = sst [smem:[#allocation41_spill]] %s14444_s17 }
   0xd   :  { %14577 = sst [smem:[#allocation42_spill]] %s14445_s18 }
   0xe   :  { %v14491_v0 = vlaneseq  ;;  %s14578_s29 = sld [smem:[#allocation30_spill]]  ;;  %v10450_v2 = vmov 1983009808   ;;  %s14472_s19 = smov 126  }
   0xf   :  { %v157_v3 = vunpack.c.l.s4 %v10450_v2  ;;  %s14476_s1 = smov 127   ;;  %s14474_s20 = smov 125  }
  0x10   :  { %v10585_v5 = vshrl.u32 %v14491_v0, 7  ;;  %s14470_s21 = smov 124   ;;  %s14466_s22 = smov 96  }
  0x11   :  { %v158_v6 = vunpack.c.0.s8 %v157_v3  ;;  %s14468_s2 = smov 95   ;;  %s14464_s23 = smov 94  }
  0x12   :  { %14579 = vst [vmem:[#allocation9_spill] sm:$0xff] %v10585_v5  ;;  %s14462_s24 = smov 93   ;;  %s14448_s25 = smov 92  }
  0x13   :  { %v10588_v8 = vsub.s32 %v158_v6, %v10585_v5 }
  0x14   :  { %v284_v1 = vld [vmem:[%s14578_s29] sm:$0xff]  ;;  %v10599_v11 = vld [vmem:[%s14578_s29 + $0x8] sm:$0xff] }
  0x15   :  { %v294_v4 = vcombine.high %v284_v1, %v284_v1  ;;  %9067 = vst.sshfl [vmem:[#allocation2] sm:$0xf pattern:$0x76325410] %v284_v1  ;;  %v155_v7 = vcombine.low %v284_v1, %v284_v1  ;;  %14580 = vst [vmem:[#allocation10_spill] sm:$0xff] %v10588_v8  ;;  %v10591_v9 = vrot.slane %v284_v1, %v10588_v8 }
  0x16   :  { %v170_v13 = vcombine.low %v10599_v11, %v10599_v11  ;;  %v10620_v14 = vrot.slane %v10599_v11, %v10588_v8 }
  0x17   :  { %9068 = vst.sshfl [vmem:[#allocation2 + $0x8] sm:$0xf pattern:$0x76325410] %v294_v4  ;;  %v10594_v10 = vrot.slane %v155_v7, %v10588_v8  ;;  %361 = vrot.lane.b32.xlu1 %v10591_v9, %s14472_s19  ;;  %v10606_v12 = vrot.slane %v294_v4, %v10588_v8 }
  0x18   :  { %v10623_v15 = vrot.slane %v170_v13, %v10588_v8 }
  0x19   :  { %223 = vrot.lane.b32.xlu0 %v10594_v10, %s14476_s1 }
  0x1b   :  { %363 = vrot.lane.b32.xlu1 %v10606_v12, %s14472_s19 }
  0x1d   :  { %225 = vrot.lane.b32.xlu0 %v10591_v9, %s14476_s1 }
  0x1f   :  { %501 = vrot.lane.b32.xlu1 %v10591_v9, %s14474_s20 }
  0x21   :  { %499 = vrot.lane.b32.xlu0 %v10594_v10, %s14474_s20 }
  0x23   :  { %365 = vrot.lane.b32.xlu1 %v10620_v14, %s14472_s19 }
  0x25   :  { %227 = vrot.lane.b32.xlu0 %v10623_v15, %s14476_s1 }
  0x27   :  { %636 = vrot.lane.b32.xlu1 %v10591_v9, %s14470_s21 }
  0x29   :  { %503 = vrot.lane.b32.xlu0 %v10623_v15, %s14474_s20 }
  0x2b   :  { %774 = vrot.lane.b32.xlu1 %v10594_v10, %s14466_s22 }
  0x2d   :  { %638 = vrot.lane.b32.xlu0 %v10606_v12, %s14470_s21 }
  0x2f   :  { %911 = vrot.lane.b32.xlu1 %v10591_v9, %s14468_s2 }
  0x31   :  { %776 = vrot.lane.b32.xlu0 %v10591_v9, %s14466_s22 }
  0x33   :  { %1049 = vrot.lane.b32.xlu1 %v10594_v10, %s14464_s23 }
  0x35   :  { %913 = vrot.lane.b32.xlu0 %v10606_v12, %s14468_s2 }
  0x37   :  { %640 = vrot.lane.b32.xlu1 %v10620_v14, %s14470_s21 }
  0x39   :  { %1051 = vrot.lane.b32.xlu0 %v10591_v9, %s14464_s23 }
  0x3b   :  { %915 = vrot.lane.b32.xlu1 %v10620_v14, %s14468_s2 }
  0x3d   :  { %778 = vrot.lane.b32.xlu0 %v10623_v15, %s14466_s22 }
  0x3f   :  { %1186 = vrot.lane.b32.xlu1 %v10591_v9, %s14462_s24 }
  0x41   :  { %1053 = vrot.lane.b32.xlu0 %v10623_v15, %s14464_s23 }
  0x43   :  { %1324 = vrot.lane.b32.xlu1 %v10594_v10, %s14448_s25 }
  0x45   :  { %1188 = vrot.lane.b32.xlu0 %v10606_v12, %s14462_s24 }
  0x46   :  { %23 = vsyncpa [#allocation7], 0  ;;  %s14452_s26 = smov 64   ;;  %s14450_s27 = smov 63   ;;  %v2843_v16 = vld [vmem:[%s14578_s29 + $0x2] sm:$0xff]  ;;  %v10739_v22 = vld [vmem:[%s14578_s29 + $0xa] sm:$0xff]  ;;  %v2234_v51 = vcombine.high %v10599_v11, %v10599_v11 }
  0x47   :  { %1461 = vrot.lane.b32.xlu1 %v10591_v9, %s14452_s26  ;;  %s14454_s28 = smov 62   ;;  %s14456_s30 = smov 61   ;;  %v2853_v17 = vcombine.low %v2843_v16, %v2843_v16  ;;  %v2759_v18 = vld [vmem:[%s14578_s29 + $0x2] sm:$0xff]  ;;  %v2997_v20 = vrot.slane %v2843_v16, %v10588_v8  ;;  %v2990_v21 = vcombine.high %v2843_v16, %v2843_v16  ;;  %v2868_v27 = vcombine.low %v10739_v22, %v10739_v22  ;;  %v10797_v61 = vld [vmem:[%s14578_s29 + $0x10] sm:$0xff] }
  0x48   :  { %s14460_s0 = smov 60   ;;  %9084 = vst.sshfl [vmem:[#allocation2 + $0x280] sm:$0xf pattern:$0x76325410] %v2759_v18  ;;  %v2767_v23 = vcombine.high %v2759_v18, %v2759_v18  ;;  %vm250_vm0 = vcmask 1043456   ;;  %v10757_v43 = vrot.slane %v10739_v22, %v10588_v8  ;;  %v10789_v59 = vrot.slane %v2234_v51, %v10588_v8 }
  0x49   :  { %1326 = vrot.lane.b32.xlu0 %v10591_v9, %s14448_s25  ;;  %v2860_v19 = vrot.slane %v2853_v17, %v10588_v8  ;;  %v3004_v26 = vrot.slane %v2990_v21, %v10588_v8  ;;  %vm389_vm1 = vcmask 1031168   ;;  %vm252_vm2 = vcmask 1039360   ;;  %v62_v48 = vld [vmem:[%s14578_s29 + $0x8] sm:$0xff]  ;;  %s14584_s23 = smov 92   ;;  %s14594_s18 = smov 124  }
  0x4a   :  { %9085 = vst.sshfl [vmem:[#allocation2 + $0x288] sm:$0xf pattern:$0x76325410] %v2767_v23  ;;  %v2875_v34 = vrot.slane %v2868_v27, %v10588_v8  ;;  %vm527_vm3 = vcmask 1022976   ;;  %vm664_vm4 = vcmask 1014784   ;;  %v84_v4 = vcombine.high %v62_v48, %v62_v48 }
  0x4b   :  { %1599 = vrot.lane.b32.xlu1 %v10594_v10, %s14450_s27  ;;  %9069 = vst.sshfl [vmem:[#allocation2 + $0x10] sm:$0xf pattern:$0x76325410] %v62_v48  ;;  %v185_v11 = vcombine.low %v10797_v61, %v10797_v61  ;;  %vm14523_vm5 = vcmask 785408   ;;  %v10470_v23 = vmov 0  }
  0x4c   :  { %9070 = vst.sshfl [vmem:[#allocation2 + $0x18] sm:$0xf pattern:$0x76325410] %v84_v4  ;;  %4099 = vmatprep.mubr.bf16.mxu0 %v10470_v23  ;;  %4677 = vst [vmem:[#allocation3 + $0x10] sm:$0x7] %v10470_v23  ;;  %4140 = vmatprep.mubr.bf16.mxu1 %v10470_v23 }
  0x4d   :  { %1463 = vrot.lane.b32.xlu0 %v10606_v12, %s14452_s26  ;;  %vm939_vm6 = vcmask 777216   ;;  %10068 = vset.pattern.permute.xlu1 %v10470_v23  ;;  %vm1077_vm7 = vcmask 769024   ;;  %vm14524_vm8 = vcmask 760832   ;;  %vm14507_vm9 = vcmask 752640   ;;  %s14595_s17 = smov 95   ;;  %s14597_s16 = sld [smem:[#allocation31_spill]] }
  0x4e   :  { %10067 = vset.pattern.permute.xlu0 %v10470_v23  ;;  %vm1489_vm10 = vcmask 523264   ;;  %vm14508_vm11 = vcmask 515072   ;;  %vm14487_vm12 = vcmask 506880   ;;  %vm14480_vm13 = vcmask 498688   ;;  %s14598_s13 = smov 31   ;;  %s14599_s15 = smov 29  }
  0x4f   :  { %1190 = vrot.lane.b32.xlu1 %v10620_v14, %s14462_s24  ;;  %s14581_s24 = smov 94   ;;  %vm14486_vm14 = vcmask 490496   ;;  %vm14483_vm15 = vcmask 261120   ;;  %s14600_s12 = smov 28  }
  0x50   :  { %s10473_s14 = smov 110   ;;  %s14527_s8 = smov 108  }
  0x51   :  { %1601 = vrot.lane.b32.xlu0 %v10591_v9, %s14450_s27  ;;  %s14529_s11 = smov 78  }
  0x53   :  { %1465 = vrot.lane.b32.xlu1 %v10620_v14, %s14452_s26  ;;  %s14478_s26 = smov 30  }
  0x55   :  { %1328 = vrot.lane.b32.xlu0 %v10623_v15, %s14448_s25  ;;  %s14458_s25 = smov 32  }
  0x57   :  { %1736 = vrot.lane.b32.xlu1 %v10591_v9, %s14454_s28 }
  0x59   :  { %1603 = vrot.lane.b32.xlu0 %v10623_v15, %s14450_s27  ;;  %s14481_s27 = smov 31  }
  0x5b   :  { %1874 = vrot.lane.b32.xlu1 %v10594_v10, %s14456_s30 }
  0x5d   :  { %1738 = vrot.lane.b32.xlu0 %v10606_v12, %s14454_s28 }
  0x5f   :  { %2011 = vrot.lane.b32.xlu1 %v10591_v9, %s14460_s0 }
  0x61   :  { %1876 = vrot.lane.b32.xlu0 %v10591_v9, %s14456_s30 }
  0x63   :  { %2149 = vrot.lane.b32.xlu1 %v10594_v10, %s14458_s25 }
  0x65   :  { %2013 = vrot.lane.b32.xlu0 %v10606_v12, %s14460_s0 }
  0x67   :  { %1740 = vrot.lane.b32.xlu1 %v10620_v14, %s14454_s28  ;;  %s14484_s28 = smov 29  }
  0x69   :  { %2151 = vrot.lane.b32.xlu0 %v10591_v9, %s14458_s25 }
  0x6b   :  { %2015 = vrot.lane.b32.xlu1 %v10620_v14, %s14460_s0  ;;  %s14582_s0 = smov 93  }
  0x6d   :  { %1878 = vrot.lane.b32.xlu0 %v10623_v15, %s14456_s30  ;;  %s14488_s30 = smov 28  }
  0x6f   :  { %2286 = vrot.lane.b32.xlu1 %v10591_v9, %s14481_s27 }
  0x71   :  { %2153 = vrot.lane.b32.xlu0 %v10623_v15, %s14458_s25  ;;  %s14583_s25 = smov 64  }
  0x73   :  { %2424 = vrot.lane.b32.xlu1 %v10594_v10, %s14478_s26 }
  0x75   :  { %2288 = vrot.lane.b32.xlu0 %v10606_v12, %s14481_s27 }
  0x77   :  { %2561 = vrot.lane.b32.xlu1 %v10591_v9, %s14484_s28 }
  0x79   :  { %2426 = vrot.lane.b32.xlu0 %v10591_v9, %s14478_s26 }
  0x7b   :  { %2699 = vrot.lane.b32.xlu1 %v10594_v10, %s14488_s30 }
  0x7d   :  { %2563 = vrot.lane.b32.xlu0 %v10606_v12, %s14484_s28 }
  0x7f   :  { %2290 = vrot.lane.b32.xlu1 %v10620_v14, %s14481_s27 }
  0x81   :  { %2701 = vrot.lane.b32.xlu0 %v10591_v9, %s14488_s30 }
  0x83   :  { %2565 = vrot.lane.b32.xlu1 %v10620_v14, %s14484_s28 }
  0x85   :  { %2428 = vrot.lane.b32.xlu0 %v10623_v15, %s14478_s26 }
  0x87   :  { %2921 = vrot.lane.b32.xlu1 %v2860_v19, %s14476_s1 }
  0x89   :  { %2703 = vrot.lane.b32.xlu0 %v10623_v15, %s14488_s30  ;;  %v362_v24 = vpop.permute.xlu1 %361 }
  0x8a   :  { %v379_v30 = vrot.slane %v362_v24, 4 }
  0x8b   :  { %v224_v25 = vpop.permute.xlu0 %223  ;;  %3057 = vrot.lane.b32.xlu1 %v2997_v20, %s14472_s19 }
  0x8c   :  { %v241_v31 = vrot.slane %v224_v25, 4 }
  0x8d   :  { %2923 = vrot.lane.b32.xlu0 %v2997_v20, %s14476_s1  ;;  %v364_v28 = vpop.permute.xlu1 %363 }
  0x8e   :  { %v380_v32 = vrot.slane %v364_v28, 4 }
  0x8f   :  { %v226_v29 = vpop.permute.xlu0 %225  ;;  %3194 = vrot.lane.b32.xlu1 %v2860_v19, %s14474_s20  ;;  %v10817_v19 = vrot.slane %v10797_v61, %v10588_v8 }
  0x90   :  { %v242_v33 = vrot.slane %v226_v29, 4  ;;  %v388_v35 = vsel %vm250_vm0, %v379_v30, %v380_v32 }
  0x91   :  { %3059 = vrot.lane.b32.xlu0 %v3004_v26, %s14472_s19  ;;  %v390_v37 = vsel %vm389_vm1, %v362_v24, %v388_v35  ;;  %v502_v39 = vpop.permute.xlu1 %501 }
  0x92   :  { %v251_v36 = vsel %vm250_vm0, %v241_v31, %v242_v33  ;;  %413 = vst [vmem:[#allocation2 + $0x40] sm:$0x33] %v390_v37  ;;  %v518_v41 = vrot.slane %v502_v39, 4 }
  0x93   :  { %v253_v38 = vsel %vm252_vm2, %v224_v25, %v251_v36  ;;  %v500_v40 = vpop.permute.xlu0 %499  ;;  %2925 = vrot.lane.b32.xlu1 %v2875_v34, %s14476_s1 }
  0x94   :  { %276 = vst [vmem:[#allocation2] sm:$0xcc] %v253_v38  ;;  %v517_v42 = vrot.slane %v500_v40, 4 }
  0x95   :  { %3196 = vrot.lane.b32.xlu0 %v2997_v20, %s14474_s20  ;;  %v10761_v46 = vpop.permute.xlu1 %365 }
  0x96   :  { %v526_v44 = vsel %vm250_vm0, %v517_v42, %v518_v41  ;;  %v381_v49 = vrot.slane %v10761_v46, 4 }
  0x97   :  { %v528_v45 = vsel %vm527_vm3, %v500_v40, %v526_v44  ;;  %v10763_v47 = vpop.permute.xlu0 %227  ;;  %3198 = vrot.lane.b32.xlu1 %v2875_v34, %s14474_s20 }
  0x98   :  { %551 = vst [vmem:[#allocation2 + $0x40] sm:$0xcc] %v528_v45  ;;  %v243_v50 = vrot.slane %v10763_v47, 4  ;;  %v391_v52 = vsel %vm250_vm0, %v380_v32, %v381_v49 }
  0x99   :  { %3061 = vrot.lane.b32.xlu0 %v10757_v43, %s14472_s19  ;;  %v392_v54 = vsel %vm389_vm1, %v364_v28, %v391_v52  ;;  %v637_v56 = vpop.permute.xlu1 %636 }
  0x9a   :  { %v254_v53 = vsel %vm250_vm0, %v242_v33, %v243_v50  ;;  %414 = vst [vmem:[#allocation2 + $0x48] sm:$0x33] %v392_v54  ;;  %v654_v6 = vrot.slane %v637_v56, 4 }
  0x9b   :  { %v255_v55 = vsel %vm252_vm2, %v226_v29, %v254_v53  ;;  %v10783_v57 = vpop.permute.xlu0 %503  ;;  %3332 = vrot.lane.b32.xlu1 %v3004_v26, %s14470_s21  ;;  %v3390_v2 = vld [vmem:[#allocation2] sm:$0xff] }
  0x9c   :  { %277 = vst [vmem:[#allocation2 + $0x8] sm:$0xcc] %v255_v55  ;;  %v519_v58 = vrot.slane %v10783_v57, 4 }
  0x9d   :  { %3330 = vrot.lane.b32.xlu0 %v2997_v20, %s14470_s21  ;;  %v775_v63 = vpop.permute.xlu1 %774  ;;  %v10820_v20 = vrot.slane %v185_v11, %v10588_v8 }
  0x9e   :  { %v529_v60 = vsel %vm250_vm0, %v518_v41, %v519_v58  ;;  %v792_v17 = vrot.slane %v775_v63, 4 }
  0x9f   :  { %v530_v62 = vsel %vm527_vm3, %v502_v39, %v529_v60  ;;  %v10800_v1 = vpop.permute.xlu0 %638  ;;  %v3398_v3 = vld [vmem:[#allocation2 + $0x40] sm:$0xff]  ;;  %367 = vrot.lane.b32.xlu1 %v10789_v59, %s14472_s19 }
  0xa0   :  { %552 = vst [vmem:[#allocation2 + $0x48] sm:$0xcc] %v530_v62  ;;  %v655_v7 = vrot.slane %v10800_v1, 4  ;;  %v9095_v9 = vcombine.high %v3390_v2, %v3398_v3  ;;  %v9094_v10 = vcombine.low %v3390_v2, %v3398_v3 }
  0xa1   :  { %229 = vrot.lane.b32.xlu0 %v10620_v14, %s14476_s1  ;;  %v912_v15 = vpop.permute.xlu1 %911 }
  0xa2   :  { %v663_v12 = vsel %vm250_vm0, %v654_v6, %v655_v7  ;;  %4067 = vmatprep.subr.bf16.mxu0 %v9095_v9  ;;  %v929_v29 = vrot.slane %v912_v15, 4 }
  0xa3   :  { %v665_v13 = vsel %vm664_vm4, %v637_v56, %v663_v12  ;;  %v777_v16 = vpop.permute.xlu0 %776  ;;  %4068 = vmatpush1.bf16.msra.mxu0 %v9094_v10  ;;  %3334 = vrot.lane.b32.xlu1 %v10757_v43, %s14470_s21  ;;  %v3391_v27 = vld [vmem:[#allocation2 + $0x8] sm:$0xff] }
  0xa4   :  { %688 = vst [vmem:[#allocation2 + $0x80] sm:$0x33] %v665_v13  ;;  %v793_v18 = vrot.slane %v777_v16, 4 }
  0xa5   :  { %505 = vrot.lane.b32.xlu0 %v10620_v14, %s14474_s20  ;;  %v1050_v25 = vpop.permute.xlu1 %1049 }
  0xa6   :  { %v801_v21 = vsel %vm250_vm0, %v792_v17, %v793_v18  ;;  %v1067_v37 = vrot.slane %v1050_v25, 4 }
  0xa7   :  { %v803_v24 = vsel %vm14523_vm5, %v775_v63, %v801_v21  ;;  %v914_v26 = vpop.permute.xlu0 %913  ;;  %v3399_v28 = vld [vmem:[#allocation2 + $0x48] sm:$0xff]  ;;  %369 = vrot.lane.b32.xlu1 %v10817_v19, %s14472_s19  ;;  %s14588_s19 = smov 61  }
  0xa8   :  { %826 = vst [vmem:[#allocation2 + $0x80] sm:$0xcc] %v803_v24  ;;  %v930_v30 = vrot.slane %v914_v26, 4  ;;  %v9097_v31 = vcombine.high %v3391_v27, %v3399_v28  ;;  %v9096_v32 = vcombine.low %v3391_v27, %v3399_v28 }
  0xa9   :  { %231 = vrot.lane.b32.xlu0 %v10820_v20, %s14476_s1  ;;  %v10835_v35 = vpop.permute.xlu1 %640  ;;  %s14590_s1 = smov 30  }
  0xaa   :  { %v938_v33 = vsel %vm250_vm0, %v929_v29, %v930_v30  ;;  %4108 = vmatprep.subr.bf16.mxu1 %v9097_v31  ;;  %v656_v38 = vrot.slane %v10835_v35, 4 }
  0xab   :  { %v940_v34 = vsel %vm939_vm6, %v912_v15, %v938_v33  ;;  %v1052_v36 = vpop.permute.xlu0 %1051  ;;  %4109 = vmatpush1.bf16.msra.mxu1 %v9096_v32  ;;  %642 = vrot.lane.b32.xlu1 %v10789_v59, %s14470_s21 }
  0xac   :  { %963 = vst [vmem:[#allocation2 + $0xc0] sm:$0x33] %v940_v34  ;;  %v1068_v39 = vrot.slane %v1052_v36, 4  ;;  %v666_v40 = vsel %vm250_vm0, %v655_v7, %v656_v38 }
  0xad   :  { %507 = vrot.lane.b32.xlu0 %v10820_v20, %s14474_s20  ;;  %v667_v42 = vsel %vm664_vm4, %v10800_v1, %v666_v40  ;;  %v10849_v45 = vpop.permute.xlu1 %915  ;;  %s14589_s20 = smov 32  }
  0xae   :  { %v1076_v41 = vsel %vm250_vm0, %v1067_v37, %v1068_v39  ;;  %689 = vst [vmem:[#allocation2 + $0x88] sm:$0x33] %v667_v42  ;;  %v931_v51 = vrot.slane %v10849_v45, 4 }
  0xaf   :  { %v1078_v44 = vsel %vm1077_vm7, %v1050_v25, %v1076_v41  ;;  %v10851_v48 = vpop.permute.xlu0 %778  ;;  %917 = vrot.lane.b32.xlu1 %v10789_v59, %s14468_s2  ;;  %v3406_v6 = vld [vmem:[#allocation2 + $0x80] sm:$0xff] }
  0xb0   :  { %1101 = vst [vmem:[#allocation2 + $0xc0] sm:$0xcc] %v1078_v44  ;;  %v794_v52 = vrot.slane %v10851_v48, 4  ;;  %v941_v53 = vsel %vm250_vm0, %v930_v30, %v931_v51 }
  0xb1   :  { %780 = vrot.lane.b32.xlu0 %v10620_v14, %s14466_s22  ;;  %v942_v55 = vsel %vm939_vm6, %v914_v26, %v941_v53  ;;  %v1187_v60 = vpop.permute.xlu1 %1186 }
  0xb2   :  { %v804_v54 = vsel %vm250_vm0, %v793_v18, %v794_v52  ;;  %964 = vst [vmem:[#allocation2 + $0xc8] sm:$0x33] %v942_v55  ;;  %v1204_v9 = vrot.slane %v1187_v60, 4 }
  0xb3   :  { %v805_v56 = vsel %vm14523_vm5, %v777_v16, %v804_v54  ;;  %v10867_v62 = vpop.permute.xlu0 %1053  ;;  %644 = vrot.lane.b32.xlu1 %v10817_v19, %s14470_s21  ;;  %s14587_s21 = smov 60  }
  0xb4   :  { %827 = vst [vmem:[#allocation2 + $0x88] sm:$0xcc] %v805_v56  ;;  %v1069_v63 = vrot.slane %v10867_v62, 4 }
  0xb5   :  { %1055 = vrot.lane.b32.xlu0 %v10620_v14, %s14581_s24  ;;  %v1325_v3 = vpop.permute.xlu1 %1324 }
  0xb6   :  { %v1079_v1 = vsel %vm250_vm0, %v1068_v39, %v1069_v63  ;;  %v1342_v18 = vrot.slane %v1325_v3, 4 }
  0xb7   :  { %v1080_v2 = vsel %vm1077_vm7, %v1052_v36, %v1079_v1  ;;  %v1189_v4 = vpop.permute.xlu0 %1188  ;;  %v3414_v7 = vld [vmem:[#allocation2 + $0xc0] sm:$0xff]  ;;  %919 = vrot.lane.b32.xlu1 %v10817_v19, %s14468_s2  ;;  %s14586_s2 = smov 62  }
  0xb8   :  { %1102 = vst [vmem:[#allocation2 + $0xc8] sm:$0xcc] %v1080_v2  ;;  %v1205_v10 = vrot.slane %v1189_v4, 4  ;;  %v9111_v11 = vcombine.high %v3406_v6, %v3414_v7  ;;  %v9110_v12 = vcombine.low %v3406_v6, %v3414_v7 }
  0xb9   :  { %782 = vrot.lane.b32.xlu0 %v10820_v20, %s14466_s22  ;;  %v1462_v16 = vpop.permute.xlu1 %1461  ;;  %s14585_s22 = smov 63  }
  0xba   :  { %v1213_v13 = vsel %vm250_vm0, %v1204_v9, %v1205_v10  ;;  %4069 = vmatprep.subr.bf16.mxu0 %v9111_v11  ;;  %v1479_v30 = vrot.slane %v1462_v16, 4 }
  0xbb   :  { %v1215_v15 = vsel %vm14524_vm8, %v1187_v60, %v1213_v13  ;;  %v1327_v17 = vpop.permute.xlu0 %1326  ;;  %4070 = vmatpush1.bf16.msra.mxu0 %v9110_v12  ;;  %1192 = vrot.lane.b32.xlu1 %v10789_v59, %s14582_s0  ;;  %v3407_v28 = vld [vmem:[#allocation2 + $0x88] sm:$0xff] }
  0xbc   :  { %1238 = vst [vmem:[#allocation2 + $0x100] sm:$0x33] %v1215_v15  ;;  %v1343_v21 = vrot.slane %v1327_v17, 4 }
  0xbd   :  { %1057 = vrot.lane.b32.xlu0 %v10820_v20, %s14581_s24  ;;  %v1600_v26 = vpop.permute.xlu1 %1599 }
  0xbe   :  { %v1351_v24 = vsel %vm250_vm0, %v1342_v18, %v1343_v21  ;;  %v1617_v40 = vrot.slane %v1600_v26, 4 }
  0xbf   :  { %v1353_v25 = vsel %vm14507_vm9, %v1325_v3, %v1351_v24  ;;  %v1464_v27 = vpop.permute.xlu0 %1463  ;;  %v3415_v29 = vld [vmem:[#allocation2 + $0xc8] sm:$0xff]  ;;  %1467 = vrot.lane.b32.xlu1 %v10789_v59, %s14583_s25 }
  0xc0   :  { %1376 = vst [vmem:[#allocation2 + $0x100] sm:$0xcc] %v1353_v25  ;;  %v1480_v31 = vrot.slane %v1464_v27, 4  ;;  %v9113_v32 = vcombine.high %v3407_v28, %v3415_v29  ;;  %v9112_v33 = vcombine.low %v3407_v28, %v3415_v29 }
  0xc1   :  { %1330 = vrot.lane.b32.xlu0 %v10620_v14, %s14584_s23  ;;  %v10896_v37 = vpop.permute.xlu1 %1190 }
  0xc2   :  { %v1488_v34 = vsel %vm250_vm0, %v1479_v30, %v1480_v31  ;;  %4110 = vmatprep.subr.bf16.mxu1 %v9113_v32  ;;  %v1206_v41 = vrot.slane %v10896_v37, 4 }
  0xc3   :  { %v1490_v36 = vsel %vm1489_vm10, %v1462_v16, %v1488_v34  ;;  %v1602_v39 = vpop.permute.xlu0 %1601  ;;  %4111 = vmatpush1.bf16.msra.mxu1 %v9112_v33  ;;  %1194 = vrot.lane.b32.xlu1 %v10817_v19, %s14582_s0 }
  0xc4   :  { %1513 = vst [vmem:[#allocation2 + $0x140] sm:$0x33] %v1490_v36  ;;  %v1618_v42 = vrot.slane %v1602_v39, 4  ;;  %v1216_v44 = vsel %vm250_vm0, %v1205_v10, %v1206_v41 }
  0xc5   :  { %1605 = vrot.lane.b32.xlu0 %v10620_v14, %s14585_s22  ;;  %v1217_v54 = vsel %vm14524_vm8, %v1189_v4, %v1216_v44  ;;  %v10909_v56 = vpop.permute.xlu1 %1465 }
  0xc6   :  { %v1626_v53 = vsel %vm250_vm0, %v1617_v40, %v1618_v42  ;;  %1239 = vst [vmem:[#allocation2 + $0x108] sm:$0x33] %v1217_v54  ;;  %v1481_v1 = vrot.slane %v10909_v56, 4 }
  0xc7   :  { %v1628_v55 = vsel %vm14508_vm11, %v1600_v26, %v1626_v53  ;;  %v10911_v60 = vpop.permute.xlu0 %1328  ;;  %1469 = vrot.lane.b32.xlu1 %v10817_v19, %s14583_s25 }
  0xc8   :  { %1651 = vst [vmem:[#allocation2 + $0x140] sm:$0xcc] %v1628_v55  ;;  %v1344_v2 = vrot.slane %v10911_v60, 4  ;;  %v1491_v3 = vsel %vm250_vm0, %v1480_v31, %v1481_v1 }
  0xc9   :  { %1332 = vrot.lane.b32.xlu0 %v10820_v20, %s14584_s23  ;;  %v1492_v6 = vsel %vm1489_vm10, %v1464_v27, %v1491_v3  ;;  %v1737_v9 = vpop.permute.xlu1 %1736 }
  0xca   :  { %v1354_v4 = vsel %vm250_vm0, %v1343_v21, %v1344_v2  ;;  %1514 = vst [vmem:[#allocation2 + $0x148] sm:$0x33] %v1492_v6  ;;  %v1754_v21 = vrot.slane %v1737_v9, 4 }
  0xcb   :  { %v1355_v7 = vsel %vm14507_vm9, %v1327_v17, %v1354_v4  ;;  %v10927_v10 = vpop.permute.xlu0 %1603  ;;  %1742 = vrot.lane.b32.xlu1 %v10789_v59, %s14586_s2  ;;  %v3422_v17 = vld [vmem:[#allocation2 + $0x100] sm:$0xff] }
  0xcc   :  { %1377 = vst [vmem:[#allocation2 + $0x108] sm:$0xcc] %v1355_v7  ;;  %v1619_v11 = vrot.slane %v10927_v10, 4 }
  0xcd   :  { %1607 = vrot.lane.b32.xlu0 %v10820_v20, %s14585_s22  ;;  %v1875_v15 = vpop.permute.xlu1 %1874 }
  0xce   :  { %v1629_v12 = vsel %vm250_vm0, %v1618_v42, %v1619_v11  ;;  %v1892_v31 = vrot.slane %v1875_v15, 4 }
  0xcf   :  { %v1630_v13 = vsel %vm14508_vm11, %v1602_v39, %v1629_v12  ;;  %v1739_v16 = vpop.permute.xlu0 %1738  ;;  %v3430_v18 = vld [vmem:[#allocation2 + $0x140] sm:$0xff]  ;;  %2017 = vrot.lane.b32.xlu1 %v10789_v59, %s14587_s21 }
  0xd0   :  { %1652 = vst [vmem:[#allocation2 + $0x148] sm:$0xcc] %v1630_v13  ;;  %v1755_v24 = vrot.slane %v1739_v16, 4  ;;  %v9127_v25 = vcombine.high %v3422_v17, %v3430_v18  ;;  %v9126_v26 = vcombine.low %v3422_v17, %v3430_v18 }
  0xd1   :  { %1880 = vrot.lane.b32.xlu0 %v10620_v14, %s14588_s19  ;;  %v2012_v29 = vpop.permute.xlu1 %2011 }
  0xd2   :  { %v1763_v27 = vsel %vm250_vm0, %v1754_v21, %v1755_v24  ;;  %4071 = vmatprep.subr.bf16.mxu0 %v9127_v25  ;;  %v2029_v44 = vrot.slane %v2012_v29, 4 }
  0xd3   :  { %v1765_v28 = vsel %vm14487_vm12, %v1737_v9, %v1763_v27  ;;  %v1877_v30 = vpop.permute.xlu0 %1876  ;;  %4072 = vmatpush1.bf16.msra.mxu0 %v9126_v26  ;;  %1744 = vrot.lane.b32.xlu1 %v10817_v19, %s14586_s2  ;;  %v3423_v40 = vld [vmem:[#allocation2 + $0x108] sm:$0xff] }
  0xd4   :  { %1788 = vst [vmem:[#allocation2 + $0x180] sm:$0x33] %v1765_v28  ;;  %v1893_v32 = vrot.slane %v1877_v30, 4 }
  0xd5   :  { %2155 = vrot.lane.b32.xlu0 %v10620_v14, %s14589_s20  ;;  %v2150_v36 = vpop.permute.xlu1 %2149 }
  0xd6   :  { %v1901_v33 = vsel %vm250_vm0, %v1892_v31, %v1893_v32  ;;  %v2167_v9 = vrot.slane %v2150_v36, 4 }
  0xd7   :  { %v1903_v34 = vsel %vm14480_vm13, %v1875_v15, %v1901_v33  ;;  %v2014_v39 = vpop.permute.xlu0 %2013  ;;  %v3431_v42 = vld [vmem:[#allocation2 + $0x148] sm:$0xff]  ;;  %2019 = vrot.lane.b32.xlu1 %v10817_v19, %s14587_s21 }
  0xd8   :  { %1926 = vst [vmem:[#allocation2 + $0x180] sm:$0xcc] %v1903_v34  ;;  %v2030_v53 = vrot.slane %v2014_v39, 4  ;;  %v9129_v54 = vcombine.high %v3423_v40, %v3431_v42  ;;  %v9128_v55 = vcombine.low %v3423_v40, %v3431_v42 }
  0xd9   :  { %1882 = vrot.lane.b32.xlu0 %v10820_v20, %s14588_s19  ;;  %v10956_v6 = vpop.permute.xlu1 %1740 }
  0xda   :  { %v2038_v3 = vsel %vm250_vm0, %v2029_v44, %v2030_v53  ;;  %4112 = vmatprep.subr.bf16.mxu1 %v9129_v54  ;;  %v1756_v12 = vrot.slane %v10956_v6, 4 }
  0xdb   :  { %v2040_v4 = vsel %vm14486_vm14, %v2012_v29, %v2038_v3  ;;  %v2152_v7 = vpop.permute.xlu0 %2151  ;;  %4113 = vmatpush1.bf16.msra.mxu1 %v9128_v55  ;;  %2292 = vrot.lane.b32.xlu1 %v10789_v59, %s14481_s27 }
  0xdc   :  { %2063 = vst [vmem:[#allocation2 + $0x1c0] sm:$0x33] %v2040_v4  ;;  %v2168_v13 = vrot.slane %v2152_v7, 4  ;;  %v1766_v15 = vsel %vm250_vm0, %v1755_v24, %v1756_v12 }
  0xdd   :  { %2157 = vrot.lane.b32.xlu0 %v10820_v20, %s14589_s20  ;;  %v1767_v18 = vsel %vm14487_vm12, %v1739_v16, %v1766_v15  ;;  %v10969_v25 = vpop.permute.xlu1 %2015  ;;  %vm14500_vm12 = vcmask 228352  }
  0xde   :  { %v2176_v17 = vsel %vm250_vm0, %v2167_v9, %v2168_v13  ;;  %1789 = vst [vmem:[#allocation2 + $0x188] sm:$0x33] %v1767_v18  ;;  %v2031_v27 = vrot.slane %v10969_v25, 4 }
  0xdf   :  { %v2178_v21 = vsel %vm14483_vm15, %v2150_v36, %v2176_v17  ;;  %v10971_v26 = vpop.permute.xlu0 %1878  ;;  %2567 = vrot.lane.b32.xlu1 %v10789_v59, %s14484_s28  ;;  %v2760_v36 = vld [vmem:[%s14578_s29 + $0xa] sm:$0xff]  ;;  %v3438_v42 = vld [vmem:[#allocation2 + $0x180] sm:$0xff] }
  0xe0   :  { %2201 = vst [vmem:[#allocation2 + $0x1c0] sm:$0xcc] %v2178_v21  ;;  %v1894_v28 = vrot.slane %v10971_v26, 4  ;;  %v2041_v16 = vsel %vm250_vm0, %v2030_v53, %v2031_v27 }
  0xe1   :  { %2430 = vrot.lane.b32.xlu0 %v10620_v14, %s14478_s26  ;;  %v2042_v29 = vsel %vm14486_vm14, %v2014_v39, %v2041_v16  ;;  %v2287_v33 = vpop.permute.xlu1 %2286  ;;  %9086 = vst.sshfl [vmem:[#allocation2 + $0x290] sm:$0xf pattern:$0x76325410] %v2760_v36  ;;  %vm2589_vm14 = vcmask 236544   ;;  %s14593_s26 = smov 126  }
  0xe2   :  { %v1904_v24 = vsel %vm250_vm0, %v1893_v32, %v1894_v28  ;;  %2064 = vst [vmem:[#allocation2 + $0x1c8] sm:$0x33] %v2042_v29  ;;  %v2304_v53 = vrot.slane %v2287_v33, 4 }
  0xe3   :  { %v1905_v31 = vsel %vm14480_vm13, %v1877_v30, %v1904_v24  ;;  %v10987_v34 = vpop.permute.xlu0 %2153  ;;  %2294 = vrot.lane.b32.xlu1 %v10817_v19, %s14481_s27  ;;  %vm2314_vm13 = vcmask 252928   ;;  %s14592_s27 = smov 125  }
  0xe4   :  { %1927 = vst [vmem:[#allocation2 + $0x188] sm:$0xcc] %v1905_v31  ;;  %v14499_v59 = vrot.slane %v10987_v34, 4 }
  0xe5   :  { %2705 = vrot.lane.b32.xlu0 %v10620_v14, %s14488_s30  ;;  %v2425_v39 = vpop.permute.xlu1 %2424  ;;  %v3005_v14 = vcombine.high %v10739_v22, %v10739_v22  ;;  %v2782_v22 = vcombine.high %v2760_v36, %v2760_v36 }
  0xe6   :  { %v2179_v30 = vsel %vm250_vm0, %v2168_v13, %v14499_v59  ;;  %v2442_v17 = vrot.slane %v2425_v39, 4 }
  0xe7   :  { %v2180_v32 = vsel %vm14483_vm15, %v2152_v7, %v2179_v30  ;;  %v11001_v40 = vpop.permute.xlu0 %2288  ;;  %v3446_v44 = vld [vmem:[#allocation2 + $0x1c0] sm:$0xff]  ;;  %2569 = vrot.lane.b32.xlu1 %v10817_v19, %s14484_s28  ;;  %v11014_v7 = vld [vmem:[%s14578_s29 + $0x12] sm:$0xff]  ;;  %vm14502_vm15 = vcmask 244736   ;;  %s14591_s28 = smov 127   ;;  %v3019_v21 = vrot.slane %v3005_v14, %v10588_v8 }
  0xe8   :  { %2202 = vst [vmem:[#allocation2 + $0x1c8] sm:$0xcc] %v2180_v32  ;;  %v2305_v54 = vrot.slane %v11001_v40, 4  ;;  %v9143_v55 = vcombine.high %v3438_v42, %v3446_v44  ;;  %v9142_v3 = vcombine.low %v3438_v42, %v3446_v44  ;;  %v2883_v16 = vcombine.low %v11014_v7, %v11014_v7 }
  0xe9   :  { %2432 = vrot.lane.b32.xlu0 %v10820_v20, %s14590_s1  ;;  %v2562_v13 = vpop.permute.xlu1 %2561  ;;  %9087 = vst.sshfl [vmem:[#allocation2 + $0x298] sm:$0xf pattern:$0x76325410] %v2782_v22 }
  0xea   :  { %v2313_v4 = vsel %vm250_vm0, %v2304_v53, %v2305_v54  ;;  %4073 = vmatprep.subr.bf16.mxu0 %v9143_v55  ;;  %v2579_v32 = vrot.slane %v2562_v13, 4  ;;  %v11031_v53 = vrot.slane %v11014_v7, %v10588_v8 }
  0xeb   :  { %v2315_v9 = vsel %vm2314_vm13, %v2287_v33, %v2313_v4  ;;  %v2427_v15 = vpop.permute.xlu0 %2426  ;;  %4074 = vmatpush1.bf16.msra.mxu0 %v9142_v3  ;;  %2927 = vrot.lane.b32.xlu1 %v10757_v43, %s14591_s28  ;;  %v3439_v36 = vld [vmem:[#allocation2 + $0x188] sm:$0xff] }
  0xec   :  { %2338 = vst [vmem:[#allocation2 + $0x200] sm:$0x33] %v2315_v9  ;;  %v2443_v18 = vrot.slane %v2427_v15, 4 }
  0xed   :  { %2707 = vrot.lane.b32.xlu0 %v10820_v20, %s14488_s30  ;;  %v2700_v31 = vpop.permute.xlu1 %2699  ;;  %s14596_s30 = smov 96  }
  0xee   :  { %v2451_v24 = vsel %vm250_vm0, %v2442_v17, %v2443_v18  ;;  %v2717_v9 = vrot.slane %v2700_v31, 4  ;;  %v63_v17 = vld [vmem:[%s14578_s29 + $0x10] sm:$0xff] }
  0xef   :  { %v2453_v29 = vsel %vm14502_vm15, %v2425_v39, %v2451_v24  ;;  %v2564_v33 = vpop.permute.xlu0 %2563  ;;  %v3447_v30 = vld [vmem:[#allocation2 + $0x1c8] sm:$0xff]  ;;  %3200 = vrot.lane.b32.xlu1 %v10757_v43, %s14592_s27  ;;  %v2890_v39 = vrot.slane %v2883_v16, %v10588_v8  ;;  %v324_v16 = vcombine.high %v10797_v61, %v10797_v61  ;;  %9071 = vst.sshfl [vmem:[#allocation2 + $0x20] sm:$0xf pattern:$0x76325410] %v63_v17 }
  0xf0   :  { %2476 = vst [vmem:[#allocation2 + $0x200] sm:$0xcc] %v2453_v29  ;;  %v2580_v42 = vrot.slane %v2564_v33, 4  ;;  %v9145_v44 = vcombine.high %v3439_v36, %v3447_v30  ;;  %v9144_v20 = vcombine.low %v3439_v36, %v3447_v30 }
  0xf1   :  { %3063 = vrot.lane.b32.xlu0 %v3019_v21, %s14593_s26  ;;  %v11036_v14 = vpop.permute.xlu1 %2290 }
  0xf2   :  { %v2588_v55 = vsel %vm250_vm0, %v2579_v32, %v2580_v42  ;;  %4114 = vmatprep.subr.bf16.mxu1 %v9145_v44  ;;  %v14495_v43 = vrot.slane %v11036_v14, 4 }
  0xf3   :  { %v2590_v3 = vsel %vm2589_vm14, %v2562_v13, %v2588_v55  ;;  %v2702_v4 = vpop.permute.xlu0 %2701  ;;  %4115 = vmatpush1.bf16.msra.mxu1 %v9144_v20  ;;  %3065 = vrot.lane.b32.xlu1 %v11031_v53, %s14593_s26  ;;  %v11074_v20 = vld [vmem:[%s14578_s29 + $0x18] sm:$0xff] }
  0xf4   :  { %2613 = vst [vmem:[#allocation2 + $0x240] sm:$0x33] %v2590_v3  ;;  %v2718_v22 = vrot.slane %v2702_v4, 4  ;;  %v2316_v13 = vsel %vm250_vm0, %v2305_v54, %v14495_v43  ;;  %v11063_v54 = vrot.slane %v324_v16, %v10588_v8 }
  0xf5   :  { %2929 = vrot.lane.b32.xlu0 %v2890_v39, %s14591_s28  ;;  %v2317_v29 = vsel %vm2314_vm13, %v11001_v40, %v2316_v13  ;;  %v11054_v30 = vpop.permute.xlu1 %2565 }
  0xf6   :  { %v2726_v24 = vsel %vm250_vm0, %v2717_v9, %v2718_v22  ;;  %2339 = vst [vmem:[#allocation2 + $0x208] sm:$0x33] %v2317_v29  ;;  %v14494_v32 = vrot.slane %v11054_v30, 4  ;;  %v99_v9 = vcombine.high %v63_v17, %v63_v17 }
  0xf7   :  { %v2728_v36 = vsel %vm14500_vm12, %v2700_v31, %v2726_v24  ;;  %v11056_v61 = vpop.permute.xlu0 %2428  ;;  %3336 = vrot.lane.b32.xlu1 %v3019_v21, %s14594_s18  ;;  %v3454_v13 = vld [vmem:[#allocation2 + $0x200] sm:$0xff] }
  0xf8   :  { %2751 = vst [vmem:[#allocation2 + $0x240] sm:$0xcc] %v2728_v36  ;;  %v14493_v44 = vrot.slane %v11056_v61, 4  ;;  %v2591_v40 = vsel %vm250_vm0, %v2580_v42, %v14494_v32 }
  0xf9   :  { %3202 = vrot.lane.b32.xlu0 %v2890_v39, %s14592_s27  ;;  %v2592_v21 = vsel %vm2589_vm14, %v2564_v33, %v2591_v40  ;;  %v2922_v55 = vpop.permute.xlu1 %2921  ;;  %9072 = vst.sshfl [vmem:[#allocation2 + $0x28] sm:$0xf pattern:$0x76325410] %v99_v9 }
  0xfa   :  { %v2454_v31 = vsel %vm250_vm0, %v2443_v18, %v14493_v44  ;;  %2614 = vst [vmem:[#allocation2 + $0x248] sm:$0x33] %v2592_v21  ;;  %v200_v18 = vcombine.low %v11074_v20, %v11074_v20  ;;  %v2939_v29 = vrot.slane %v2922_v55, 4 }
  0xfb   :  { %v2455_v39 = vsel %vm14502_vm15, %v2427_v15, %v2454_v31  ;;  %v11078_v3 = vpop.permute.xlu0 %2703  ;;  %371 = vrot.lane.b32.xlu1 %v11063_v54, %s14593_s26  ;;  %vm4014_vm15 = vcmask 818176  }
  0xfc   :  { %2477 = vst [vmem:[#allocation2 + $0x208] sm:$0xcc] %v2455_v39  ;;  %v14492_v42 = vrot.slane %v11078_v3, 4 }
  0xfd   :  { %233 = vrot.lane.b32.xlu0 %v10817_v19, %s14591_s28  ;;  %v3058_v17 = vpop.permute.xlu1 %3057 }
  0xfe   :  { %v2729_v15 = vsel %vm250_vm0, %v2718_v22, %v14492_v42  ;;  %v11097_v22 = vrot.slane %v11074_v20, %v10588_v8 }
  0xff   :  { %v2730_v33 = vsel %vm14500_vm12, %v2702_v4, %v2729_v15  ;;  %v2924_v16 = vpop.permute.xlu0 %2923  ;;  %v3462_v24 = vld [vmem:[#allocation2 + $0x240] sm:$0xff]  ;;  %3338 = vrot.lane.b32.xlu1 %v11031_v53, %s14594_s18  ;;  %v11100_v4 = vrot.slane %v200_v18, %v10588_v8  ;;  %vm4018_vm12 = vcmask 1041408  }
 0x100   :  { %2752 = vst [vmem:[#allocation2 + $0x248] sm:$0xcc] %v2730_v33  ;;  %v2940_v36 = vrot.slane %v2924_v16, 4  ;;  %v9159_v40 = vcombine.high %v3454_v13, %v3462_v24  ;;  %v9158_v31 = vcombine.low %v3454_v13, %v3462_v24  ;;  %v3075_v33 = vrot.slane %v3058_v17, 4 }
 0x101   :  { %509 = vrot.lane.b32.xlu0 %v10817_v19, %s14592_s27  ;;  %v3195_v9 = vpop.permute.xlu1 %3194 }
 0x102   :  { %v2948_v21 = vsel %vm250_vm0, %v2939_v29, %v2940_v36  ;;  %4075 = vmatprep.subr.bf16.mxu0 %v9159_v40  ;;  %v3212_v24 = vrot.slane %v3195_v9, 4 }
 0x103   :  { %v2949_v39 = vsel %vm252_vm2, %v2922_v55, %v2948_v21  ;;  %v3060_v15 = vpop.permute.xlu0 %3059  ;;  %4076 = vmatpush1.bf16.msra.mxu0 %v9158_v31  ;;  %373 = vrot.lane.b32.xlu1 %v11097_v22, %s14593_s26  ;;  %v3455_v21 = vld [vmem:[#allocation2 + $0x208] sm:$0xff] }
 0x104   :  { %2972 = vst [vmem:[#allocation2 + $0x280] sm:$0xcc] %v2949_v39  ;;  %v3076_v13 = vrot.slane %v3060_v15, 4 }
 0x105   :  { %235 = vrot.lane.b32.xlu0 %v11100_v4, %s14591_s28  ;;  %v11110_v40 = vpop.permute.xlu1 %2925 }
 0x106   :  { %v3084_v18 = vsel %vm250_vm0, %v3075_v33, %v3076_v13  ;;  %v14498_v31 = vrot.slane %v11110_v40, 4 }
 0x107   :  { %v3085_v29 = vsel %vm389_vm1, %v3058_v17, %v3084_v18  ;;  %v3197_v55 = vpop.permute.xlu0 %3196  ;;  %v3463_v0 = vld [vmem:[#allocation2 + $0x248] sm:$0xff]  ;;  %646 = vrot.lane.b32.xlu1 %v11063_v54, %s14594_s18 }
 0x108   :  { %3108 = vst [vmem:[#allocation2 + $0x2c0] sm:$0x33] %v3085_v29  ;;  %v3213_v39 = vrot.slane %v3197_v55, 4  ;;  %v9161_v42 = vcombine.high %v3455_v21, %v3463_v0  ;;  %v9160_v44 = vcombine.low %v3455_v21, %v3463_v0  ;;  %v2950_v17 = vsel %vm250_vm0, %v2940_v36, %v14498_v31 }
 0x109   :  { %511 = vrot.lane.b32.xlu0 %v11100_v4, %s14592_s27  ;;  %v2951_v18 = vsel %vm252_vm2, %v2924_v16, %v2950_v17  ;;  %v11123_v32 = vpop.permute.xlu1 %3198 }
 0x10a   :  { %v3221_v33 = vsel %vm250_vm0, %v3212_v24, %v3213_v39  ;;  %4116 = vmatprep.subr.bf16.mxu1 %v9161_v42  ;;  %2973 = vst [vmem:[#allocation2 + $0x288] sm:$0xcc] %v2951_v18  ;;  %v14497_v21 = vrot.slane %v11123_v32, 4 }
 0x10b   :  { %v3222_v29 = vsel %vm527_vm3, %v3195_v9, %v3221_v33  ;;  %v11125_v0 = vpop.permute.xlu0 %3061  ;;  %4117 = vmatpush1.bf16.msra.mxu1 %v9160_v44  ;;  %921 = vrot.lane.b32.xlu1 %v11063_v54, %s14595_s17 }
 0x10c   :  { %3245 = vst [vmem:[#allocation2 + $0x2c0] sm:$0xcc] %v3222_v29  ;;  %v14496_v43 = vrot.slane %v11125_v0, 4  ;;  %v3223_v42 = vsel %vm250_vm0, %v3213_v39, %v14497_v21  ;;  %v3470_v29 = vld [vmem:[#allocation2 + $0x280] sm:$0xff] }
 0x10d   :  { %784 = vrot.lane.b32.xlu0 %v10817_v19, %s14596_s30  ;;  %v3224_v16 = vsel %vm527_vm3, %v3197_v55, %v3223_v42  ;;  %v3333_v9 = vpop.permute.xlu1 %3332 }
 0x10e   :  { %v3086_v44 = vsel %vm250_vm0, %v3076_v13, %v14496_v43  ;;  %3246 = vst [vmem:[#allocation2 + $0x2c8] sm:$0xcc] %v3224_v16  ;;  %v3349_v17 = vrot.slane %v3333_v9, 4 }
 0x10f   :  { %v3087_v36 = vsel %vm389_vm1, %v3060_v15, %v3086_v44  ;;  %v3331_v24 = vpop.permute.xlu0 %3330  ;;  %648 = vrot.lane.b32.xlu1 %v11097_v22, %s14594_s18 }
 0x110   :  { %3109 = vst [vmem:[#allocation2 + $0x2c8] sm:$0x33] %v3087_v36  ;;  %v3348_v33 = vrot.slane %v3331_v24, 4 }
 0x111   :  { %1059 = vrot.lane.b32.xlu0 %v10817_v19, %s14581_s24  ;;  %v368_v18 = vpop.permute.xlu1 %367  ;;  %v3471_v43 = vld [vmem:[#allocation2 + $0x288] sm:$0xff] }
 0x112   :  { %v3357_v39 = vsel %vm250_vm0, %v3348_v33, %v3349_v17  ;;  %v382_v42 = vrot.slane %v368_v18, 4 }
 0x113   :  { %v3358_v13 = vsel %vm664_vm4, %v3331_v24, %v3357_v39  ;;  %v230_v55 = vpop.permute.xlu0 %229  ;;  %v3478_v15 = vld [vmem:[#allocation2 + $0x2c0] sm:$0xff]  ;;  %923 = vrot.lane.b32.xlu1 %v11097_v22, %s14595_s17 }
 0x114   :  { %3381 = vst [vmem:[#allocation2 + $0x300] sm:$0x33] %v3358_v13  ;;  %v244_v44 = vrot.slane %v230_v55, 4  ;;  %v9175_v16 = vcombine.high %v3470_v29, %v3478_v15  ;;  %v9174_v36 = vcombine.low %v3470_v29, %v3478_v15  ;;  %v393_v33 = vsel %vm250_vm0, %v381_v49, %v382_v42 }
 0x115   :  { %786 = vrot.lane.b32.xlu0 %v11100_v4, %s14596_s30  ;;  %v394_v39 = vsel %vm389_vm1, %v10761_v46, %v393_v33  ;;  %v11161_v29 = vpop.permute.xlu1 %3334 }
 0x116   :  { %v256_v24 = vsel %vm250_vm0, %v243_v50, %v244_v44  ;;  %4077 = vmatprep.subr.bf16.mxu0 %v9175_v16  ;;  %415 = vst [vmem:[#allocation2 + $0x50] sm:$0x33] %v394_v39  ;;  %v3350_v49 = vrot.slane %v11161_v29, 4 }
 0x117   :  { %v257_v13 = vsel %vm252_vm2, %v10763_v47, %v256_v24  ;;  %v506_v15 = vpop.permute.xlu0 %505  ;;  %4078 = vmatpush1.bf16.msra.mxu0 %v9174_v36  ;;  %v3479_v21 = vld [vmem:[#allocation2 + $0x2c8] sm:$0xff]  ;;  %1196 = vrot.lane.b32.xlu1 %v11063_v54, %s14582_s0 }
 0x118   :  { %278 = vst [vmem:[#allocation2 + $0x10] sm:$0xcc] %v257_v13  ;;  %v520_v31 = vrot.slane %v506_v15, 4  ;;  %v9177_v59 = vcombine.high %v3471_v43, %v3479_v21  ;;  %v9176_v50 = vcombine.low %v3471_v43, %v3479_v21  ;;  %v3359_v46 = vsel %vm250_vm0, %v3349_v17, %v3350_v49 }
 0x119   :  { %1061 = vrot.lane.b32.xlu0 %v11100_v4, %s14581_s24  ;;  %v3360_v16 = vsel %vm664_vm4, %v3333_v9, %v3359_v46  ;;  %v11177_v21 = vpop.permute.xlu1 %369 }
 0x11a   :  { %v531_v47 = vsel %vm250_vm0, %v519_v58, %v520_v31  ;;  %4118 = vmatprep.subr.bf16.mxu1 %v9177_v59  ;;  %3382 = vst [vmem:[#allocation2 + $0x308] sm:$0x33] %v3360_v16  ;;  %v383_v17 = vrot.slane %v11177_v21, 4 }
 0x11b   :  { %v532_v43 = vsel %vm527_vm3, %v10783_v57, %v531_v47  ;;  %v11179_v36 = vpop.permute.xlu0 %231  ;;  %4119 = vmatpush1.bf16.msra.mxu1 %v9176_v50  ;;  %v3486_v33 = vld [vmem:[#allocation2 + $0x300] sm:$0x33]  ;;  %1471 = vrot.lane.b32.xlu1 %v11063_v54, %s14583_s25 }
 0x11c   :  { %553 = vst [vmem:[#allocation2 + $0x50] sm:$0xcc] %v532_v43  ;;  %v245_v24 = vrot.slane %v11179_v36, 4  ;;  %v9191_v58 = vcombine.high %v3486_v33, %v3486_v33  ;;  %v9190_v59 = vcombine.low %v3486_v33, %v3486_v33  ;;  %v395_v57 = vsel %vm250_vm0, %v382_v42, %v383_v17  ;;  %v11202_v42 = vld [vmem:[%s14597_s16] sm:$0x7] }
 0x11d   :  { %1334 = vrot.lane.b32.xlu0 %v10817_v19, %s14584_s23  ;;  %v396_v13 = vsel %vm389_vm1, %v368_v18, %v395_v57  ;;  %v643_v46 = vpop.permute.xlu1 %642 }
 0x11e   :  { %v258_v9 = vsel %vm250_vm0, %v244_v44, %v245_v24  ;;  %9206 = vmatprep.subr.msk.bf16.mxu0 %vm4018_vm12, %v9191_v58  ;;  %v4020_v39 = vsel %vm4018_vm12, %v9190_v59, 0  ;;  %416 = vst [vmem:[#allocation2 + $0x58] sm:$0x33] %v396_v13  ;;  %v657_v44 = vrot.slane %v643_v46, 4 }
 0x11f   :  { %v259_v50 = vsel %vm252_vm2, %v230_v55, %v258_v9  ;;  %v11197_v47 = vpop.permute.xlu0 %507  ;;  %4080 = vmatpush1.bf16.msra.mxu0 %v4020_v39  ;;  %1198 = vrot.lane.b32.xlu1 %v11097_v22, %s14582_s0  ;;  %v3392_v9 = vld [vmem:[#allocation2 + $0x10] sm:$0xff] }
 0x120   :  { %279 = vst [vmem:[#allocation2 + $0x18] sm:$0xcc] %v259_v50  ;;  %v14503_v16 = vrot.slane %v11197_v47, 4  ;;  %v668_v18 = vsel %vm250_vm0, %v656_v38, %v657_v44 }
 0x121   :  { %1609 = vrot.lane.b32.xlu0 %v10817_v19, %s14585_s22  ;;  %v669_v43 = vsel %vm664_vm4, %v10835_v35, %v668_v18  ;;  %v918_v58 = vpop.permute.xlu1 %917  ;;  %v3487_v57 = vld [vmem:[#allocation2 + $0x308] sm:$0x33] }
 0x122   :  { %v533_v55 = vsel %vm250_vm0, %v520_v31, %v14503_v16  ;;  %9207 = vmatmul.mubr.msk.bf16.vlgmr.msra.gmra.mrb[0].mxu0 %vm4014_vm15, %v11202_v42  ;;  %690 = vst [vmem:[#allocation2 + $0x90] sm:$0x33] %v669_v43  ;;  %v932_v38 = vrot.slane %v918_v58, 4  ;;  %v9193_v31 = vcombine.high %v3487_v57, %v3487_v57 }
 0x123   :  { %v534_v33 = vsel %vm527_vm3, %v506_v15, %v533_v55  ;;  %v781_v59 = vpop.permute.xlu0 %780  ;;  %v3400_v39 = vld [vmem:[#allocation2 + $0x50] sm:$0xff]  ;;  %4181 = vmatprep.mubr.bf16.mxu0 %v10470_v23  ;;  %1473 = vrot.lane.b32.xlu1 %v11097_v22, %s14583_s25  ;;  %v9192_v15 = vcombine.low %v3487_v57, %v3487_v57 }
 0x124   :  { %554 = vst [vmem:[#allocation2 + $0x58] sm:$0xcc] %v534_v33  ;;  %v795_v13 = vrot.slane %v781_v59, 4  ;;  %v9098_v50 = vcombine.low %v3392_v9, %v3400_v39  ;;  %v9099_v35 = vcombine.high %v3392_v9, %v3400_v39  ;;  %v943_v18 = vsel %vm250_vm0, %v931_v51, %v932_v38  ;;  %9208 = vmatprep.subr.msk.bf16.mxu1 %vm4018_vm12, %v9193_v31 }
 0x125   :  { %1336 = vrot.lane.b32.xlu0 %v11100_v4, %s14584_s23  ;;  %v944_v43 = vsel %vm939_vm6, %v10849_v45, %v943_v18  ;;  %v11236_v16 = vpop.permute.xlu1 %644  ;;  %v4026_v9 = vsel %vm4018_vm12, %v9192_v15, 0 }
 0x126   :  { %v806_v55 = vsel %vm250_vm0, %v794_v52, %v795_v13  ;;  %4149 = vmatprep.subr.bf16.mxu0 %v9099_v35  ;;  %965 = vst [vmem:[#allocation2 + $0xd0] sm:$0x33] %v944_v43  ;;  %v658_v51 = vrot.slane %v11236_v16, 4  ;;  %4121 = vmatpush1.bf16.msra.mxu1 %v4026_v9 }
 0x127   :  { %v807_v33 = vsel %vm14523_vm5, %v10851_v48, %v806_v55  ;;  %v1056_v57 = vpop.permute.xlu0 %1055  ;;  %4150 = vmatpush1.bf16.msra.mxu0 %v9098_v50  ;;  %1746 = vrot.lane.b32.xlu1 %v11063_v54, %s14586_s2  ;;  %v3393_v15 = vld [vmem:[#allocation2 + $0x18] sm:$0xff] }
 0x128   :  { %828 = vst [vmem:[#allocation2 + $0x90] sm:$0xcc] %v807_v33  ;;  %v1070_v39 = vrot.slane %v1056_v57, 4  ;;  %v670_v45 = vsel %vm250_vm0, %v657_v44, %v658_v51 }
 0x129   :  { %1611 = vrot.lane.b32.xlu0 %v11100_v4, %s14585_s22  ;;  %v671_v52 = vsel %vm664_vm4, %v643_v46, %v670_v45  ;;  %v11253_v50 = vpop.permute.xlu1 %919  ;;  %9209 = vmatmul.mubr.msk.bf16.vlgmr.msra.gmra.mrb[0].mxu1 %vm4014_vm15, %v11202_v42 }
 0x12a   :  { %v1081_v48 = vsel %vm250_vm0, %v1069_v63, %v1070_v39  ;;  %691 = vst [vmem:[#allocation2 + $0x98] sm:$0x33] %v671_v52  ;;  %v933_v44 = vrot.slane %v11253_v50, 4  ;;  %4222 = vmatprep.mubr.bf16.mxu1 %v10470_v23 }
 0x12b   :  { %v1082_v31 = vsel %vm1077_vm7, %v10867_v62, %v1081_v48  ;;  %v11255_v35 = vpop.permute.xlu0 %782  ;;  %v3401_v18 = vld [vmem:[#allocation2 + $0x58] sm:$0xff]  ;;  %2021 = vrot.lane.b32.xlu1 %v11063_v54, %s14587_s21 }
 0x12c   :  { %1103 = vst [vmem:[#allocation2 + $0xd0] sm:$0xcc] %v1082_v31  ;;  %v796_v63 = vrot.slane %v11255_v35, 4  ;;  %v9100_v55 = vcombine.low %v3393_v15, %v3401_v18  ;;  %v9101_v46 = vcombine.high %v3393_v15, %v3401_v18  ;;  %v945_v62 = vsel %vm250_vm0, %v932_v38, %v933_v44 }
 0x12d   :  { %1884 = vrot.lane.b32.xlu0 %v10817_v19, %s14588_s19  ;;  %v946_v33 = vsel %vm939_vm6, %v918_v58, %v945_v62  ;;  %v1193_v45 = vpop.permute.xlu1 %1192  ;;  %v10424_v58 = vld [vmem:[%s14578_s29 + $0x10] sm:$0xff] }
 0x12e   :  { %v808_v43 = vsel %vm250_vm0, %v795_v13, %v796_v63  ;;  %4190 = vmatprep.subr.bf16.mxu1 %v9101_v46  ;;  %966 = vst [vmem:[#allocation2 + $0xd8] sm:$0x33] %v946_v33  ;;  %v1207_v54 = vrot.slane %v1193_v45, 4 }
 0x12f   :  { %v809_v9 = vsel %vm14523_vm5, %v781_v59, %v808_v43  ;;  %v11274_v48 = vpop.permute.xlu0 %1057  ;;  %4191 = vmatpush1.bf16.msra.mxu1 %v9100_v55  ;;  %1748 = vrot.lane.b32.xlu1 %v11097_v22, %s14586_s2  ;;  %v2249_v59 = vcombine.high %v10424_v58, %v10424_v58  ;;  %v3408_v46 = vld [vmem:[#allocation2 + $0x90] sm:$0xff] }
 0x130   :  { %829 = vst [vmem:[#allocation2 + $0x98] sm:$0xcc] %v809_v9  ;;  %v1071_v52 = vrot.slane %v11274_v48, 4  ;;  %v1218_v38 = vsel %vm250_vm0, %v1206_v41, %v1207_v54 }
 0x131   :  { %2159 = vrot.lane.b32.xlu0 %v10817_v19, %s14589_s20  ;;  %v1219_v31 = vsel %vm14524_vm8, %v10896_v37, %v1218_v38  ;;  %v1468_v18 = vpop.permute.xlu1 %1467  ;;  %v2263_v37 = vrot.slane %v2249_v59, %v10588_v8 }
 0x132   :  { %v1083_v13 = vsel %vm250_vm0, %v1070_v39, %v1071_v52  ;;  %1240 = vst [vmem:[#allocation2 + $0x110] sm:$0x33] %v1219_v31  ;;  %v1482_v43 = vrot.slane %v1468_v18, 4 }
 0x133   :  { %v1084_v15 = vsel %vm1077_vm7, %v1056_v57, %v1083_v13  ;;  %v1331_v55 = vpop.permute.xlu0 %1330  ;;  %v3416_v62 = vld [vmem:[#allocation2 + $0xd0] sm:$0xff]  ;;  %2023 = vrot.lane.b32.xlu1 %v11097_v22, %s14587_s21 }
 0x134   :  { %1104 = vst [vmem:[#allocation2 + $0xd8] sm:$0xcc] %v1084_v15  ;;  %v1345_v33 = vrot.slane %v1331_v55, 4  ;;  %v9114_v9 = vcombine.low %v3408_v46, %v3416_v62  ;;  %v9115_v58 = vcombine.high %v3408_v46, %v3416_v62  ;;  %v1493_v41 = vsel %vm250_vm0, %v1481_v1, %v1482_v43 }
 0x135   :  { %1886 = vrot.lane.b32.xlu0 %v11100_v4, %s14588_s19  ;;  %v1494_v39 = vsel %vm1489_vm10, %v10909_v56, %v1493_v41  ;;  %v11308_v13 = vpop.permute.xlu1 %1194 }
 0x136   :  { %v1356_v57 = vsel %vm250_vm0, %v1344_v2, %v1345_v33  ;;  %4151 = vmatprep.subr.bf16.mxu0 %v9115_v58  ;;  %1515 = vst [vmem:[#allocation2 + $0x150] sm:$0x33] %v1494_v39  ;;  %v1208_v59 = vrot.slane %v11308_v13, 4 }
 0x137   :  { %v1357_v38 = vsel %vm14507_vm9, %v10911_v60, %v1356_v57  ;;  %v1606_v31 = vpop.permute.xlu0 %1605  ;;  %4152 = vmatpush1.bf16.msra.mxu0 %v9114_v9  ;;  %2296 = vrot.lane.b32.xlu1 %v2263_v37, %s14598_s13  ;;  %v3409_v9 = vld [vmem:[#allocation2 + $0x98] sm:$0xff] }
 0x138   :  { %1378 = vst [vmem:[#allocation2 + $0x110] sm:$0xcc] %v1357_v38  ;;  %v1620_v1 = vrot.slane %v1606_v31, 4  ;;  %v1220_v56 = vsel %vm250_vm0, %v1207_v54, %v1208_v59 }
 0x139   :  { %2161 = vrot.lane.b32.xlu0 %v11100_v4, %s14589_s20  ;;  %v1221_v2 = vsel %vm14524_vm8, %v1193_v45, %v1220_v56  ;;  %v11323_v46 = vpop.permute.xlu1 %1469 }
 0x13a   :  { %v1631_v60 = vsel %vm250_vm0, %v1619_v11, %v1620_v1  ;;  %1241 = vst [vmem:[#allocation2 + $0x118] sm:$0x33] %v1221_v2  ;;  %v1483_v41 = vrot.slane %v11323_v46, 4 }
 0x13b   :  { %v1632_v15 = vsel %vm14508_vm11, %v10927_v10, %v1631_v60  ;;  %v11325_v62 = vpop.permute.xlu0 %1332  ;;  %v3417_v58 = vld [vmem:[#allocation2 + $0xd8] sm:$0xff]  ;;  %2571 = vrot.lane.b32.xlu1 %v2263_v37, %s14599_s15 }
 0x13c   :  { %1653 = vst [vmem:[#allocation2 + $0x150] sm:$0xcc] %v1632_v15  ;;  %v1346_v54 = vrot.slane %v11325_v62, 4  ;;  %v9116_v57 = vcombine.low %v3409_v9, %v3417_v58  ;;  %v9117_v39 = vcombine.high %v3409_v9, %v3417_v58  ;;  %v1495_v10 = vsel %vm250_vm0, %v1482_v43, %v1483_v41  ;;  %v2761_v43 = vld [vmem:[%s14578_s29 + $0x12] sm:$0xff] }
 0x13d   :  { %2434 = vrot.lane.b32.xlu0 %v10817_v19, %s14590_s1  ;;  %v1496_v45 = vsel %vm1489_vm10, %v1468_v18, %v1495_v10  ;;  %v1743_v56 = vpop.permute.xlu1 %1742  ;;  %9088 = vst.sshfl [vmem:[#allocation2 + $0x2a0] sm:$0xf pattern:$0x76325410] %v2761_v43 }
 0x13e   :  { %v1358_v11 = vsel %vm250_vm0, %v1345_v33, %v1346_v54  ;;  %4192 = vmatprep.subr.bf16.mxu1 %v9117_v39  ;;  %1516 = vst [vmem:[#allocation2 + $0x158] sm:$0x33] %v1496_v45  ;;  %v1757_v37 = vrot.slane %v1743_v56, 4 }
 0x13f   :  { %v1359_v38 = vsel %vm14507_vm9, %v1331_v55, %v1358_v11  ;;  %v11340_v60 = vpop.permute.xlu0 %1607  ;;  %4193 = vmatpush1.bf16.msra.mxu1 %v9116_v57  ;;  %2298 = vrot.lane.b32.xlu1 %v11097_v22, %s14598_s13  ;;  %vm14601_vm9 = vcmask 506880   ;;  %v3424_v57 = vld [vmem:[#allocation2 + $0x110] sm:$0xff] }
 0x140   :  { %1379 = vst [vmem:[#allocation2 + $0x118] sm:$0xcc] %v1359_v38  ;;  %v1621_v2 = vrot.slane %v11340_v60, 4  ;;  %v1768_v18 = vsel %vm250_vm0, %v1756_v12, %v1757_v37 }
 0x141   :  { %2709 = vrot.lane.b32.xlu0 %v10817_v19, %s14600_s12  ;;  %v1769_v33 = vsel %vm14601_vm9, %v10956_v6, %v1768_v18  ;;  %v2018_v9 = vpop.permute.xlu1 %2017  ;;  %v3020_v6 = vcombine.high %v11014_v7, %v11014_v7  ;;  %vm14602_vm9 = vcmask 490496  }
 0x142   :  { %v1633_v55 = vsel %vm250_vm0, %v1620_v1, %v1621_v2  ;;  %1790 = vst [vmem:[#allocation2 + $0x190] sm:$0x33] %v1769_v33  ;;  %v2032_v19 = vrot.slane %v2018_v9, 4  ;;  %v11374_v1 = vld [vmem:[%s14578_s29 + $0x1a] sm:$0xff] }
 0x143   :  { %v1634_v15 = vsel %vm14508_vm11, %v1606_v31, %v1633_v55  ;;  %v1881_v58 = vpop.permute.xlu0 %1880  ;;  %v3432_v39 = vld [vmem:[#allocation2 + $0x150] sm:$0xff]  ;;  %2573 = vrot.lane.b32.xlu1 %v11097_v22, %s14599_s15  ;;  %vm14603_vm11 = vcmask 498688  }
 0x144   :  { %1654 = vst [vmem:[#allocation2 + $0x158] sm:$0xcc] %v1634_v15  ;;  %v1895_v10 = vrot.slane %v1881_v58, 4  ;;  %v9130_v11 = vcombine.low %v3424_v57, %v3432_v39  ;;  %v9131_v45 = vcombine.high %v3424_v57, %v3432_v39  ;;  %v2043_v12 = vsel %vm250_vm0, %v2031_v27, %v2032_v19 }
 0x145   :  { %2436 = vrot.lane.b32.xlu0 %v11100_v4, %s14590_s1  ;;  %v2044_v38 = vsel %vm14602_vm9, %v10969_v25, %v2043_v12  ;;  %v11380_v18 = vpop.permute.xlu1 %1744  ;;  %v2797_v27 = vcombine.high %v2761_v43, %v2761_v43  ;;  %v3034_v25 = vrot.slane %v3020_v6, %v10588_v8  ;;  %v14604_v15 = vrot.slane %v10987_v34, 4 }
 0x146   :  { %v1906_v31 = vsel %vm250_vm0, %v1894_v28, %v1895_v10  ;;  %4153 = vmatprep.subr.bf16.mxu0 %v9131_v45  ;;  %2065 = vst [vmem:[#allocation2 + $0x1d0] sm:$0x33] %v2044_v38  ;;  %v1758_v28 = vrot.slane %v11380_v18, 4  ;;  %vm14606_vm9 = vcmask 261120  }
 0x147   :  { %v1907_v7 = vsel %vm14603_vm11, %v10971_v26, %v1906_v31  ;;  %v2156_v55 = vpop.permute.xlu0 %2155  ;;  %4154 = vmatpush1.bf16.msra.mxu0 %v9130_v11  ;;  %2931 = vrot.lane.b32.xlu1 %v11031_v53, %s14591_s28  ;;  %v2898_v26 = vcombine.low %v11374_v1, %v11374_v1  ;;  %9089 = vst.sshfl [vmem:[#allocation2 + $0x2a8] sm:$0xf pattern:$0x76325410] %v2797_v27  ;;  %vm14605_vm11 = vcmask 506880   ;;  %v3425_v6 = vld [vmem:[#allocation2 + $0x118] sm:$0xff] }
 0x148   :  { %1928 = vst [vmem:[#allocation2 + $0x190] sm:$0xcc] %v1907_v7  ;;  %v2170_v33 = vrot.slane %v2156_v55, 4  ;;  %v1770_v43 = vsel %vm250_vm0, %v1757_v37, %v1758_v28 }
 0x149   :  { %2711 = vrot.lane.b32.xlu0 %v11100_v4, %s14600_s12  ;;  %v1771_v39 = vsel %vm14605_vm11, %v1743_v56, %v1770_v43  ;;  %v11399_v4 = vpop.permute.xlu1 %2019  ;;  %v2905_v56 = vrot.slane %v2898_v26, %v10588_v8  ;;  %vm14607_vm11 = vcmask 490496  }
 0x14a   :  { %v2181_v57 = vsel %vm250_vm0, %v14604_v15, %v2170_v33  ;;  %1791 = vst [vmem:[#allocation2 + $0x198] sm:$0x33] %v1771_v39  ;;  %v14510_v31 = vrot.slane %v11399_v4, 4 }
 0x14b   :  { %v2182_v11 = vsel %vm14606_vm9, %v10987_v34, %v2181_v57  ;;  %v11401_v45 = vpop.permute.xlu0 %1882  ;;  %v3433_v12 = vld [vmem:[#allocation2 + $0x158] sm:$0xff]  ;;  %3204 = vrot.lane.b32.xlu1 %v11031_v53, %s14592_s27  ;;  %v11410_v34 = vrot.slane %v11374_v1, %v10588_v8  ;;  %vm14608_vm9 = vcmask 498688  }
 0x14c   :  { %2203 = vst [vmem:[#allocation2 + $0x1d0] sm:$0xcc] %v2182_v11  ;;  %v14509_v37 = vrot.slane %v11401_v45, 4  ;;  %v9132_v38 = vcombine.low %v3425_v6, %v3433_v12  ;;  %v9133_v7 = vcombine.high %v3425_v6, %v3433_v12  ;;  %v2045_v27 = vsel %vm250_vm0, %v2032_v19, %v14510_v31  ;;  %v64_v19 = vld [vmem:[%s14578_s29 + $0x18] sm:$0xff] }
 0x14d   :  { %3067 = vrot.lane.b32.xlu0 %v3034_v25, %s14593_s26  ;;  %v2046_v15 = vsel %vm14607_vm11, %v2018_v9, %v2045_v27  ;;  %v2293_v57 = vpop.permute.xlu1 %2292  ;;  %v339_v9 = vcombine.high %v11074_v20, %v11074_v20  ;;  %9073 = vst.sshfl [vmem:[#allocation2 + $0x30] sm:$0xf pattern:$0x76325410] %v64_v19  ;;  %vm14610_vm11 = vcmask 261120  }
 0x14e   :  { %v1908_v43 = vsel %vm250_vm0, %v1895_v10, %v14509_v37  ;;  %4194 = vmatprep.subr.bf16.mxu1 %v9133_v7  ;;  %2066 = vst [vmem:[#allocation2 + $0x1d8] sm:$0x33] %v2046_v15  ;;  %v2307_v26 = vrot.slane %v2293_v57, 4 }
 0x14f   :  { %v1909_v53 = vsel %vm14608_vm9, %v1881_v58, %v1908_v43  ;;  %v11421_v39 = vpop.permute.xlu0 %2157  ;;  %4195 = vmatpush1.bf16.msra.mxu1 %v9132_v38  ;;  %3069 = vrot.lane.b32.xlu1 %v11410_v34, %s14593_s26  ;;  %v14609_v58 = vrot.slane %v11036_v14, 4  ;;  %v3440_v43 = vld [vmem:[#allocation2 + $0x190] sm:$0xff]  ;;  %vm14613_vm9 = vcmask 244736  }
 0x150   :  { %1929 = vst [vmem:[#allocation2 + $0x198] sm:$0xcc] %v1909_v53  ;;  %v14519_v11 = vrot.slane %v11421_v39, 4 }
 0x151   :  { %2933 = vrot.lane.b32.xlu0 %v2905_v56, %s14591_s28  ;;  %v2318_v10 = vsel %vm250_vm0, %v14609_v58, %v2307_v26  ;;  %v2568_v7 = vpop.permute.xlu1 %2567  ;;  %v14612_v58 = vrot.slane %v11056_v61, 4 }
 0x152   :  { %v2183_v6 = vsel %vm250_vm0, %v2170_v33, %v14519_v11  ;;  %v2319_v12 = vsel %vm2314_vm13, %v11036_v14, %v2318_v10  ;;  %v2582_v20 = vrot.slane %v2568_v7, 4  ;;  %v11444_v33 = vrot.slane %v339_v9, %v10588_v8 }
 0x153   :  { %v2184_v38 = vsel %vm14610_vm11, %v2156_v55, %v2183_v6  ;;  %v2431_v27 = vpop.permute.xlu0 %2430  ;;  %v3448_v15 = vld [vmem:[#allocation2 + $0x1d0] sm:$0xff]  ;;  %2340 = vst [vmem:[#allocation2 + $0x210] sm:$0x33] %v2319_v12  ;;  %3340 = vrot.lane.b32.xlu1 %v3034_v25, %s14594_s18  ;;  %v14611_v14 = vrot.slane %v11054_v30, 4  ;;  %v114_v9 = vcombine.high %v64_v19, %v64_v19  ;;  %vm14615_vm11 = vcmask 228352  }
 0x154   :  { %2204 = vst [vmem:[#allocation2 + $0x1d8] sm:$0xcc] %v2184_v38  ;;  %v2445_v53 = vrot.slane %v2431_v27, 4  ;;  %v9146_v37 = vcombine.low %v3440_v43, %v3448_v15  ;;  %v9147_v31 = vcombine.high %v3440_v43, %v3448_v15 }
 0x155   :  { %3206 = vrot.lane.b32.xlu0 %v2905_v56, %s14592_s27  ;;  %v2593_v55 = vsel %vm250_vm0, %v14611_v14, %v2582_v20  ;;  %v11456_v12 = vpop.permute.xlu1 %2294  ;;  %9074 = vst.sshfl [vmem:[#allocation2 + $0x38] sm:$0xf pattern:$0x76325410] %v114_v9 }
 0x156   :  { %v2456_v10 = vsel %vm250_vm0, %v14612_v58, %v2445_v53  ;;  %4155 = vmatprep.subr.bf16.mxu0 %v9147_v31  ;;  %v2594_v6 = vsel %vm2589_vm14, %v11054_v30, %v2593_v55  ;;  %v14515_v38 = vrot.slane %v11456_v12, 4  ;;  %v10145_v30 = vld [vmem:[%s14578_s29 + $0x20] ss:$0 sps:$4 sm:$0x33]   ;;  %v14614_v31 = vrot.slane %v11078_v3, 4 }
 0x157   :  { %v2457_v25 = vsel %vm14613_vm9, %v11056_v61, %v2456_v10  ;;  %v2706_v56 = vpop.permute.xlu0 %2705  ;;  %4156 = vmatpush1.bf16.msra.mxu0 %v9146_v37  ;;  %2615 = vst [vmem:[#allocation2 + $0x250] sm:$0x33] %v2594_v6  ;;  %375 = vrot.lane.b32.xlu1 %v11444_v33, %s14593_s26  ;;  %v3441_v58 = vld [vmem:[#allocation2 + $0x198] sm:$0xff] }
 0x158   :  { %2478 = vst [vmem:[#allocation2 + $0x210] sm:$0xcc] %v2457_v25  ;;  %v2720_v43 = vrot.slane %v2706_v56, 4  ;;  %v2320_v61 = vsel %vm250_vm0, %v2307_v26, %v14515_v38 }
 0x159   :  { %237 = vrot.lane.b32.xlu0 %v11097_v22, %s14591_s28  ;;  %v2321_v19 = vsel %vm2314_vm13, %v2293_v57, %v2320_v61  ;;  %v11475_v14 = vpop.permute.xlu1 %2569  ;;  %v10146_v57 = vld [vmem:[%s14578_s29 + $0x20] ss:$0 sps:$4 sm:$0x33]  }
 0x15a   :  { %v2731_v37 = vsel %vm250_vm0, %v14614_v31, %v2720_v43  ;;  %2341 = vst [vmem:[#allocation2 + $0x218] sm:$0x33] %v2321_v19  ;;  %v14514_v6 = vrot.slane %v11475_v14, 4 }
 0x15b   :  { %v2732_v15 = vsel %vm14615_vm11, %v11078_v3, %v2731_v37  ;;  %v11477_v55 = vpop.permute.xlu0 %2432  ;;  %v3449_v10 = vld [vmem:[#allocation2 + $0x1d8] sm:$0xff]  ;;  %3342 = vrot.lane.b32.xlu1 %v11410_v34, %s14594_s18  ;;  %v222_v3 = vrot.slane %v10145_v30, %v10588_v8  ;;  %v11498_v37 = vld.sshfl [vmem:[%s14578_s29 + $0x20] sm:$0x3 pattern:$0x76325410] }
 0x15c   :  { %2753 = vst [vmem:[#allocation2 + $0x250] sm:$0xcc] %v2732_v15  ;;  %v14513_v26 = vrot.slane %v11477_v55, 4  ;;  %v9148_v25 = vcombine.low %v3441_v58, %v3449_v10  ;;  %v9149_v9 = vcombine.high %v3441_v58, %v3449_v10  ;;  %v2595_v61 = vsel %vm250_vm0, %v2582_v20, %v14514_v6 }
 0x15d   :  { %513 = vrot.lane.b32.xlu0 %v11097_v22, %s14592_s27  ;;  %v2596_v30 = vsel %vm2589_vm14, %v2568_v7, %v2595_v61  ;;  %v2928_v15 = vpop.permute.xlu1 %2927  ;;  %v14616_v7 = vrot.slane %v11110_v40, 4 }
 0x15e   :  { %v2458_v31 = vsel %vm250_vm0, %v2445_v53, %v14513_v26  ;;  %4196 = vmatprep.subr.bf16.mxu1 %v9149_v9  ;;  %2616 = vst [vmem:[#allocation2 + $0x258] sm:$0x33] %v2596_v30  ;;  %v2942_v20 = vrot.slane %v2928_v15, 4  ;;  %v498_v53 = vrot.slane %v10146_v57, %v10588_v8 }
 0x15f   :  { %v2459_v19 = vsel %vm14613_vm9, %v2431_v27, %v2458_v31  ;;  %v11502_v58 = vpop.permute.xlu0 %2707  ;;  %4197 = vmatpush1.bf16.msra.mxu1 %v9148_v25  ;;  %377 = vrot.lane.b32.xlu1 %v11498_v37, %s14593_s26  ;;  %vm14620_vm9 = vcmask 752640  }
 0x160   :  { %2479 = vst [vmem:[#allocation2 + $0x218] sm:$0xcc] %v2459_v19  ;;  %v14516_v10 = vrot.slane %v11502_v58, 4  ;;  %v2952_v27 = vsel %vm250_vm0, %v14616_v7, %v2942_v20  ;;  %v3456_v19 = vld [vmem:[#allocation2 + $0x210] sm:$0xff] }
 0x161   :  { %239 = vrot.lane.b32.xlu0 %v222_v3, %s14591_s28  ;;  %v2953_v9 = vsel %vm252_vm2, %v11110_v40, %v2952_v27  ;;  %v3201_v31 = vpop.permute.xlu1 %3200 }
 0x162   :  { %v2733_v25 = vsel %vm250_vm0, %v2720_v43, %v14516_v10  ;;  %2974 = vst [vmem:[#allocation2 + $0x290] sm:$0xcc] %v2953_v9  ;;  %v3215_v3 = vrot.slane %v3201_v31, 4  ;;  %v14617_v43 = vrot.slane %v11123_v32, 4 }
 0x163   :  { %v2734_v61 = vsel %vm14615_vm11, %v2706_v56, %v2733_v25  ;;  %v3064_v30 = vpop.permute.xlu0 %3063  ;;  %v3464_v26 = vld [vmem:[#allocation2 + $0x250] sm:$0xff]  ;;  %650 = vrot.lane.b32.xlu1 %v11444_v33, %s14594_s18  ;;  %v14618_v56 = vrot.slane %v11125_v0, 4  ;;  %vm14621_vm11 = vcmask 515072  }
 0x164   :  { %2754 = vst [vmem:[#allocation2 + $0x258] sm:$0xcc] %v2734_v61  ;;  %v3078_v57 = vrot.slane %v3064_v30, 4  ;;  %v9162_v6 = vcombine.low %v3456_v19, %v3464_v26  ;;  %v9163_v38 = vcombine.high %v3456_v19, %v3464_v26  ;;  %v3225_v40 = vsel %vm250_vm0, %v14617_v43, %v3215_v3 }
 0x165   :  { %515 = vrot.lane.b32.xlu0 %v498_v53, %s14592_s27  ;;  %v3226_v27 = vsel %vm527_vm3, %v11123_v32, %v3225_v40  ;;  %v11531_v25 = vpop.permute.xlu1 %3065  ;;  %v10147_v32 = vld [vmem:[%s14578_s29 + $0x20] ss:$0 sps:$4 sm:$0x33]  }
 0x166   :  { %v3088_v7 = vsel %vm250_vm0, %v14618_v56, %v3078_v57  ;;  %4157 = vmatprep.subr.bf16.mxu0 %v9163_v38  ;;  %3247 = vst [vmem:[#allocation2 + $0x2d0] sm:$0xcc] %v3226_v27  ;;  %v14517_v53 = vrot.slane %v11531_v25, 4 }
 0x167   :  { %v3089_v26 = vsel %vm389_vm1, %v11125_v0, %v3088_v7  ;;  %v11533_v9 = vpop.permute.xlu0 %2929  ;;  %4158 = vmatpush1.bf16.msra.mxu0 %v9162_v6  ;;  %925 = vrot.lane.b32.xlu1 %v11444_v33, %s14595_s17  ;;  %v3457_v56 = vld [vmem:[#allocation2 + $0x218] sm:$0xff] }
 0x168   :  { %3110 = vst [vmem:[#allocation2 + $0x2d0] sm:$0x33] %v3089_v26  ;;  %v14518_v61 = vrot.slane %v11533_v9, 4  ;;  %v3090_v0 = vsel %vm250_vm0, %v3078_v57, %v14517_v53 }
 0x169   :  { %788 = vrot.lane.b32.xlu0 %v11097_v22, %s14596_s30  ;;  %v3091_v6 = vsel %vm389_vm1, %v3064_v30, %v3090_v0  ;;  %v3337_v43 = vpop.permute.xlu1 %3336 }
 0x16a   :  { %v2954_v38 = vsel %vm250_vm0, %v2942_v20, %v14518_v61  ;;  %3111 = vst [vmem:[#allocation2 + $0x2d8] sm:$0x33] %v3091_v6  ;;  %v3351_v27 = vrot.slane %v3337_v43, 4  ;;  %v10148_v20 = vld [vmem:[%s14578_s29 + $0x20] ss:$0 sps:$4 sm:$0x33]  }
 0x16b   :  { %v2955_v19 = vsel %vm252_vm2, %v2928_v15, %v2954_v38  ;;  %v11552_v40 = vpop.permute.xlu0 %3202  ;;  %v3465_v7 = vld [vmem:[#allocation2 + $0x258] sm:$0xff]  ;;  %652 = vrot.lane.b32.xlu1 %v11498_v37, %s14594_s18  ;;  %v773_v15 = vrot.slane %v10147_v32, %v10588_v8 }
 0x16c   :  { %2975 = vst [vmem:[#allocation2 + $0x298] sm:$0xcc] %v2955_v19  ;;  %v3216_v26 = vrot.slane %v11552_v40, 4  ;;  %v9164_v10 = vcombine.low %v3457_v56, %v3465_v7  ;;  %v9165_v57 = vcombine.high %v3457_v56, %v3465_v7  ;;  %v3361_v30 = vsel %vm250_vm0, %v3350_v49, %v3351_v27  ;;  %v3472_v56 = vld [vmem:[#allocation2 + $0x290] sm:$0xff] }
 0x16d   :  { %1063 = vrot.lane.b32.xlu0 %v11097_v22, %s14581_s24  ;;  %v3362_v38 = vsel %vm664_vm4, %v11161_v29, %v3361_v30  ;;  %v372_v19 = vpop.permute.xlu1 %371  ;;  %v1048_v29 = vrot.slane %v10148_v20, %v10588_v8 }
 0x16e   :  { %v3227_v0 = vsel %vm250_vm0, %v3215_v3, %v3216_v26  ;;  %4198 = vmatprep.subr.bf16.mxu1 %v9165_v57  ;;  %3383 = vst [vmem:[#allocation2 + $0x310] sm:$0x33] %v3362_v38  ;;  %v384_v53 = vrot.slane %v372_v19, 4 }
 0x16f   :  { %v3228_v6 = vsel %vm527_vm3, %v3201_v31, %v3227_v0  ;;  %v234_v32 = vpop.permute.xlu0 %233  ;;  %4199 = vmatpush1.bf16.msra.mxu1 %v9164_v10  ;;  %v3480_v7 = vld [vmem:[#allocation2 + $0x2d0] sm:$0xff]  ;;  %927 = vrot.lane.b32.xlu1 %v11498_v37, %s14595_s17 }
 0x170   :  { %3248 = vst [vmem:[#allocation2 + $0x2d8] sm:$0xcc] %v3228_v6  ;;  %v246_v61 = vrot.slane %v234_v32, 4  ;;  %v9178_v49 = vcombine.low %v3472_v56, %v3480_v7  ;;  %v9179_v11 = vcombine.high %v3472_v56, %v3480_v7  ;;  %v397_v31 = vsel %vm250_vm0, %v383_v17, %v384_v53 }
 0x171   :  { %790 = vrot.lane.b32.xlu0 %v773_v15, %s14596_s30  ;;  %v398_v3 = vsel %vm389_vm1, %v11177_v21, %v397_v31  ;;  %v11586_v30 = vpop.permute.xlu1 %3338 }
 0x172   :  { %v260_v10 = vsel %vm250_vm0, %v245_v24, %v246_v61  ;;  %4159 = vmatprep.subr.bf16.mxu0 %v9179_v11  ;;  %417 = vst [vmem:[#allocation2 + $0x60] sm:$0x33] %v398_v3  ;;  %v3352_v20 = vrot.slane %v11586_v30, 4  ;;  %v10150_v3 = vld [vmem:[%s14578_s29 + $0x20] ss:$0 sps:$4 sm:$0x33]  }
 0x173   :  { %v261_v57 = vsel %vm252_vm2, %v11179_v36, %v260_v10  ;;  %v510_v15 = vpop.permute.xlu0 %509  ;;  %4160 = vmatpush1.bf16.msra.mxu0 %v9178_v49  ;;  %1200 = vrot.lane.b32.xlu1 %v11444_v33, %s14582_s0  ;;  %v14619_v36 = vrot.slane %v11197_v47, 4  ;;  %v3473_v7 = vld [vmem:[#allocation2 + $0x298] sm:$0xff] }
 0x174   :  { %280 = vst [vmem:[#allocation2 + $0x20] sm:$0xcc] %v261_v57  ;;  %v522_v17 = vrot.slane %v510_v15, 4  ;;  %v3363_v21 = vsel %vm250_vm0, %v3351_v27, %v3352_v20 }
 0x175   :  { %1065 = vrot.lane.b32.xlu0 %v1048_v29, %s14581_s24  ;;  %v3364_v11 = vsel %vm664_vm4, %v3337_v43, %v3363_v21  ;;  %v11601_v38 = vpop.permute.xlu1 %373  ;;  %v3488_v56 = vld [vmem:[#allocation2 + $0x310] sm:$0x33] }
 0x176   :  { %v535_v24 = vsel %vm250_vm0, %v14619_v36, %v522_v17  ;;  %3384 = vst [vmem:[#allocation2 + $0x318] sm:$0x33] %v3364_v11  ;;  %v385_v27 = vrot.slane %v11601_v38, 4  ;;  %v9195_v31 = vcombine.high %v3488_v56, %v3488_v56  ;;  %v9194_v43 = vcombine.low %v3488_v56, %v3488_v56 }
 0x177   :  { %v536_v0 = vsel %vm527_vm3, %v11197_v47, %v535_v24  ;;  %v11603_v6 = vpop.permute.xlu0 %235  ;;  %v3481_v49 = vld [vmem:[#allocation2 + $0x2d8] sm:$0xff]  ;;  %1475 = vrot.lane.b32.xlu1 %v11444_v33, %s14583_s25 }
 0x178   :  { %555 = vst [vmem:[#allocation2 + $0x60] sm:$0xcc] %v536_v0  ;;  %v247_v29 = vrot.slane %v11603_v6, 4  ;;  %v9180_v10 = vcombine.low %v3473_v7, %v3481_v49  ;;  %v9181_v47 = vcombine.high %v3473_v7, %v3481_v49  ;;  %v399_v57 = vsel %vm250_vm0, %v384_v53, %v385_v27  ;;  %9210 = vmatprep.subr.msk.bf16.mxu0 %vm4018_vm12, %v9195_v31 }
 0x179   :  { %1338 = vrot.lane.b32.xlu0 %v11097_v22, %s14584_s23  ;;  %v400_v36 = vsel %vm389_vm1, %v372_v19, %v399_v57  ;;  %v647_v11 = vpop.permute.xlu1 %646  ;;  %v4032_v56 = vsel %vm4018_vm12, %v9194_v43, 0  ;;  %v10152_v19 = vld [vmem:[%s14578_s29 + $0x20] ss:$0 sps:$4 sm:$0x33]  }
 0x17a   :  { %v262_v21 = vsel %vm250_vm0, %v246_v61, %v247_v29  ;;  %4200 = vmatprep.subr.bf16.mxu1 %v9181_v47  ;;  %418 = vst [vmem:[#allocation2 + $0x68] sm:$0x33] %v400_v36  ;;  %v659_v7 = vrot.slane %v647_v11, 4  ;;  %4162 = vmatpush1.bf16.msra.mxu0 %v4032_v56  ;;  %v1323_v61 = vrot.slane %v10150_v3, %v10588_v8 }
 0x17b   :  { %v263_v24 = vsel %vm252_vm2, %v234_v32, %v262_v21  ;;  %v11623_v0 = vpop.permute.xlu0 %511  ;;  %4201 = vmatpush1.bf16.msra.mxu1 %v9180_v10  ;;  %1202 = vrot.lane.b32.xlu1 %v11498_v37, %s14582_s0  ;;  %v3394_v57 = vld [vmem:[#allocation2 + $0x20] sm:$0xff] }
 0x17c   :  { %281 = vst [vmem:[#allocation2 + $0x28] sm:$0xcc] %v263_v24  ;;  %v523_v53 = vrot.slane %v11623_v0, 4  ;;  %v672_v32 = vsel %vm250_vm0, %v658_v51, %v659_v7 }
 0x17d   :  { %1613 = vrot.lane.b32.xlu0 %v11097_v22, %s14585_s22  ;;  %v673_v31 = vsel %vm664_vm4, %v11236_v16, %v672_v32  ;;  %v922_v47 = vpop.permute.xlu1 %921  ;;  %v3489_v3 = vld [vmem:[#allocation2 + $0x318] sm:$0x33]  ;;  %9211 = vmatmul.mubr.msk.bf16.vlgmr.msra.gmra.mrb[4].mxu0 %vm4014_vm15, %v11202_v42 }
 0x17e   :  { %v537_v49 = vsel %vm250_vm0, %v522_v17, %v523_v53  ;;  %692 = vst [vmem:[#allocation2 + $0xa0] sm:$0x33] %v673_v31  ;;  %v934_v51 = vrot.slane %v922_v47, 4  ;;  %v9197_v24 = vcombine.high %v3489_v3, %v3489_v3  ;;  %4263 = vmatprep.mubr.bf16.mxu0 %v10470_v23  ;;  %v1598_v17 = vrot.slane %v10152_v19, %v10588_v8 }
 0x17f   :  { %v538_v10 = vsel %vm527_vm3, %v510_v15, %v537_v49  ;;  %v785_v43 = vpop.permute.xlu0 %784  ;;  %v3402_v21 = vld [vmem:[#allocation2 + $0x60] sm:$0xff]  ;;  %1477 = vrot.lane.b32.xlu1 %v11498_v37, %s14583_s25  ;;  %v9196_v15 = vcombine.low %v3489_v3, %v3489_v3 }
 0x180   :  { %556 = vst [vmem:[#allocation2 + $0x68] sm:$0xcc] %v538_v10  ;;  %v797_v36 = vrot.slane %v785_v43, 4  ;;  %v9102_v56 = vcombine.low %v3394_v57, %v3402_v21  ;;  %v9103_v16 = vcombine.high %v3394_v57, %v3402_v21  ;;  %v947_v32 = vsel %vm250_vm0, %v933_v44, %v934_v51  ;;  %9212 = vmatprep.subr.msk.bf16.mxu1 %vm4018_vm12, %v9197_v24 }
 0x181   :  { %1340 = vrot.lane.b32.xlu0 %v1323_v61, %s14584_s23  ;;  %v948_v31 = vsel %vm939_vm6, %v11253_v50, %v947_v32  ;;  %v11662_v10 = vpop.permute.xlu1 %648  ;;  %v4038_v3 = vsel %vm4018_vm12, %v9196_v15, 0 }
 0x182   :  { %v810_v49 = vsel %vm250_vm0, %v796_v63, %v797_v36  ;;  %4231 = vmatprep.subr.bf16.mxu0 %v9103_v16  ;;  %967 = vst [vmem:[#allocation2 + $0xe0] sm:$0x33] %v948_v31  ;;  %v660_v44 = vrot.slane %v11662_v10, 4  ;;  %4203 = vmatpush1.bf16.msra.mxu1 %v4038_v3 }
 0x183   :  { %v811_v61 = vsel %vm14523_vm5, %v11255_v35, %v810_v49  ;;  %v1060_v19 = vpop.permute.xlu0 %1059  ;;  %4232 = vmatpush1.bf16.msra.mxu0 %v9102_v56  ;;  %1750 = vrot.lane.b32.xlu1 %v11444_v33, %s14586_s2  ;;  %v3395_v16 = vld [vmem:[#allocation2 + $0x28] sm:$0xff] }
 0x184   :  { %830 = vst [vmem:[#allocation2 + $0xa0] sm:$0xcc] %v811_v61  ;;  %v1072_v57 = vrot.slane %v1060_v19, 4  ;;  %v674_v50 = vsel %vm250_vm0, %v659_v7, %v660_v44 }
 0x185   :  { %1615 = vrot.lane.b32.xlu0 %v1598_v17, %s14585_s22  ;;  %v675_v63 = vsel %vm664_vm4, %v647_v11, %v674_v50  ;;  %v11678_v24 = vpop.permute.xlu1 %923  ;;  %9213 = vmatmul.mubr.msk.bf16.vlgmr.msra.gmra.mrb[4].mxu1 %vm4014_vm15, %v11202_v42  ;;  %v10153_v42 = vld [vmem:[%s14578_s29 + $0x20] ss:$0 sps:$4 sm:$0x33]  }
 0x186   :  { %v1085_v35 = vsel %vm250_vm0, %v1071_v52, %v1072_v57  ;;  %693 = vst [vmem:[#allocation2 + $0xa8] sm:$0x33] %v675_v63  ;;  %v935_v7 = vrot.slane %v11678_v24, 4  ;;  %4304 = vmatprep.mubr.bf16.mxu1 %v10470_v23 }
 0x187   :  { %v1086_v21 = vsel %vm1077_vm7, %v11274_v48, %v1085_v35  ;;  %v11680_v56 = vpop.permute.xlu0 %786  ;;  %v3403_v15 = vld [vmem:[#allocation2 + $0x68] sm:$0xff]  ;;  %2025 = vrot.lane.b32.xlu1 %v11444_v33, %s14587_s21 }
 0x188   :  { %1105 = vst [vmem:[#allocation2 + $0xe0] sm:$0xcc] %v1086_v21  ;;  %v798_v52 = vrot.slane %v11680_v56, 4  ;;  %v9104_v17 = vcombine.low %v3395_v16, %v3403_v15  ;;  %v9105_v11 = vcombine.high %v3395_v16, %v3403_v15  ;;  %v949_v48 = vsel %vm250_vm0, %v934_v51, %v935_v7 }
 0x189   :  { %1888 = vrot.lane.b32.xlu0 %v11097_v22, %s14588_s19  ;;  %v950_v49 = vsel %vm939_vm6, %v922_v47, %v949_v48  ;;  %v1197_v61 = vpop.permute.xlu1 %1196  ;;  %v1873_v51 = vrot.slane %v10153_v42, %v10588_v8  ;;  %v10154_v47 = vld [vmem:[%s14578_s29 + $0x20] ss:$0 sps:$4 sm:$0x33]  }
 0x18a   :  { %v812_v32 = vsel %vm250_vm0, %v797_v36, %v798_v52  ;;  %4272 = vmatprep.subr.bf16.mxu1 %v9105_v11  ;;  %968 = vst [vmem:[#allocation2 + $0xe8] sm:$0x33] %v950_v49  ;;  %v1209_v50 = vrot.slane %v1197_v61, 4 }
 0x18b   :  { %v813_v31 = vsel %vm14523_vm5, %v785_v43, %v812_v32  ;;  %v11702_v3 = vpop.permute.xlu0 %1061  ;;  %4273 = vmatpush1.bf16.msra.mxu1 %v9104_v17  ;;  %1752 = vrot.lane.b32.xlu1 %v11498_v37, %s14586_s2  ;;  %v3410_v17 = vld [vmem:[#allocation2 + $0xa0] sm:$0xff] }
 0x18c   :  { %831 = vst [vmem:[#allocation2 + $0xa8] sm:$0xcc] %v813_v31  ;;  %v1073_v35 = vrot.slane %v11702_v3, 4  ;;  %v1222_v43 = vsel %vm250_vm0, %v1208_v59, %v1209_v50  ;;  %v2148_v59 = vrot.slane %v10154_v47, %v10588_v8 }
 0x18d   :  { %2163 = vrot.lane.b32.xlu0 %v11097_v22, %s14589_s20  ;;  %v1223_v63 = vsel %vm14524_vm8, %v11308_v13, %v1222_v43  ;;  %v1472_v16 = vpop.permute.xlu1 %1471 }
 0x18e   :  { %v1087_v36 = vsel %vm250_vm0, %v1072_v57, %v1073_v35  ;;  %1242 = vst [vmem:[#allocation2 + $0x120] sm:$0x33] %v1223_v63  ;;  %v1484_v42 = vrot.slane %v1472_v16, 4 }
 0x18f   :  { %v1088_v21 = vsel %vm1077_vm7, %v1060_v19, %v1087_v36  ;;  %v1335_v15 = vpop.permute.xlu0 %1334  ;;  %v3418_v11 = vld [vmem:[#allocation2 + $0xe0] sm:$0xff]  ;;  %2027 = vrot.lane.b32.xlu1 %v11498_v37, %s14587_s21 }
 0x190   :  { %1106 = vst [vmem:[#allocation2 + $0xe8] sm:$0xcc] %v1088_v21  ;;  %v1347_v48 = vrot.slane %v1335_v15, 4  ;;  %v9118_v32 = vcombine.low %v3410_v17, %v3418_v11  ;;  %v9119_v49 = vcombine.high %v3410_v17, %v3418_v11  ;;  %v1497_v13 = vsel %vm250_vm0, %v1483_v41, %v1484_v42 }
 0x191   :  { %1890 = vrot.lane.b32.xlu0 %v1873_v51, %s14588_s19  ;;  %v1498_v57 = vsel %vm1489_vm10, %v11323_v46, %v1497_v13  ;;  %v11736_v43 = vpop.permute.xlu1 %1198 }
 0x192   :  { %v1360_v19 = vsel %vm250_vm0, %v1346_v54, %v1347_v48  ;;  %4233 = vmatprep.subr.bf16.mxu0 %v9119_v49  ;;  %1517 = vst [vmem:[#allocation2 + $0x160] sm:$0x33] %v1498_v57  ;;  %v1210_v47 = vrot.slane %v11736_v43, 4 }
 0x193   :  { %v1361_v31 = vsel %vm14620_vm9, %v11325_v62, %v1360_v19  ;;  %v1610_v51 = vpop.permute.xlu0 %1609  ;;  %4234 = vmatpush1.bf16.msra.mxu0 %v9118_v32  ;;  %2300 = vrot.lane.b32.xlu1 %v11444_v33, %s14598_s13  ;;  %v3411_v17 = vld [vmem:[#allocation2 + $0xa8] sm:$0xff] }
 0x194   :  { %1380 = vst [vmem:[#allocation2 + $0x120] sm:$0xcc] %v1361_v31  ;;  %v1622_v41 = vrot.slane %v1610_v51, 4  ;;  %v1224_v46 = vsel %vm250_vm0, %v1209_v50, %v1210_v47 }
 0x195   :  { %2165 = vrot.lane.b32.xlu0 %v2148_v59, %s14589_s20  ;;  %v1225_v54 = vsel %vm14524_vm8, %v1197_v61, %v1224_v46  ;;  %v11751_v63 = vpop.permute.xlu1 %1473  ;;  %s14661_s20 = sld [smem:[#allocation32_spill]] }
 0x196   :  { %v1635_v62 = vsel %vm250_vm0, %v1621_v2, %v1622_v41  ;;  %1243 = vst [vmem:[#allocation2 + $0x128] sm:$0x33] %v1225_v54  ;;  %v1485_v32 = vrot.slane %v11751_v63, 4 }
 0x197   :  { %v1636_v36 = vsel %vm14621_vm11, %v11340_v60, %v1635_v62  ;;  %v11753_v21 = vpop.permute.xlu0 %1336  ;;  %v3419_v11 = vld [vmem:[#allocation2 + $0xe8] sm:$0xff]  ;;  %2575 = vrot.lane.b32.xlu1 %v11444_v33, %s14599_s15  ;;  %v10155_v60 = vld [vmem:[%s14578_s29 + $0x20] ss:$0 sps:$4 sm:$0x33]   ;;  %vm14622_vm11 = vcmask 506880  }
 0x198   :  { %1655 = vst [vmem:[#allocation2 + $0x160] sm:$0xcc] %v1636_v36  ;;  %v1348_v50 = vrot.slane %v11753_v21, 4  ;;  %v9120_v49 = vcombine.low %v3411_v17, %v3419_v11  ;;  %v9121_v59 = vcombine.high %v3411_v17, %v3419_v11  ;;  %v1499_v2 = vsel %vm250_vm0, %v1484_v42, %v1485_v32  ;;  %v2762_v42 = vld [vmem:[%s14578_s29 + $0x1a] sm:$0xff] }
 0x199   :  { %2438 = vrot.lane.b32.xlu0 %v11097_v22, %s14590_s1  ;;  %v1500_v13 = vsel %vm1489_vm10, %v1472_v16, %v1499_v2  ;;  %v1747_v19 = vpop.permute.xlu1 %1746  ;;  %v2423_v16 = vrot.slane %v10155_v60, %v10588_v8  ;;  %9090 = vst.sshfl [vmem:[#allocation2 + $0x2b0] sm:$0xf pattern:$0x76325410] %v2762_v42 }
 0x19a   :  { %v1362_v61 = vsel %vm250_vm0, %v1347_v48, %v1348_v50  ;;  %4274 = vmatprep.subr.bf16.mxu1 %v9121_v59  ;;  %1518 = vst [vmem:[#allocation2 + $0x168] sm:$0x33] %v1500_v13  ;;  %v1759_v31 = vrot.slane %v1747_v19, 4  ;;  %v14625_v13 = vrot.slane %v11401_v45, 4 }
 0x19b   :  { %v1363_v33 = vsel %vm14620_vm9, %v1335_v15, %v1362_v61  ;;  %v11772_v57 = vpop.permute.xlu0 %1611  ;;  %4275 = vmatpush1.bf16.msra.mxu1 %v9120_v49  ;;  %2302 = vrot.lane.b32.xlu1 %v11498_v37, %s14598_s13  ;;  %v10156_v15 = vld [vmem:[%s14578_s29 + $0x20] ss:$0 sps:$4 sm:$0x33]   ;;  %vm14623_vm9 = vcmask 515072  }
 0x19c   :  { %1381 = vst [vmem:[#allocation2 + $0x128] sm:$0xcc] %v1363_v33  ;;  %v1623_v46 = vrot.slane %v11772_v57, 4  ;;  %v1772_v48 = vsel %vm250_vm0, %v1758_v28, %v1759_v31  ;;  %v3426_v11 = vld [vmem:[#allocation2 + $0x120] sm:$0xff]  ;;  %v2698_v28 = vrot.slane %v10156_v15, %v10588_v8 }
 0x19d   :  { %2713 = vrot.lane.b32.xlu0 %v11097_v22, %s14600_s12  ;;  %v1773_v54 = vsel %vm14622_vm11, %v11380_v18, %v1772_v48  ;;  %v2022_v36 = vpop.permute.xlu1 %2021  ;;  %v3035_v18 = vcombine.high %v11374_v1, %v11374_v1  ;;  %vm14626_vm11 = vcmask 490496   ;;  %v2812_v1 = vcombine.high %v2762_v42, %v2762_v42 }
 0x19e   :  { %v1637_v62 = vsel %vm250_vm0, %v1622_v41, %v1623_v46  ;;  %1792 = vst [vmem:[#allocation2 + $0x1a0] sm:$0x33] %v1773_v54  ;;  %v2034_v59 = vrot.slane %v2022_v36, 4 }
 0x19f   :  { %v1638_v22 = vsel %vm14623_vm9, %v1610_v51, %v1637_v62  ;;  %v1885_v17 = vpop.permute.xlu0 %1884  ;;  %v3434_v49 = vld [vmem:[#allocation2 + $0x160] sm:$0xff]  ;;  %2577 = vrot.lane.b32.xlu1 %v11498_v37, %s14599_s15  ;;  %v14624_v51 = vrot.slane %v11399_v4, 4  ;;  %vm14627_vm9 = vcmask 498688   ;;  %s14533_s15 = smov 76  }
 0x1a0   :  { %1656 = vst [vmem:[#allocation2 + $0x168] sm:$0xcc] %v1638_v22  ;;  %v1897_v60 = vrot.slane %v1885_v17, 4  ;;  %v9134_v2 = vcombine.low %v3426_v11, %v3434_v49  ;;  %v9135_v61 = vcombine.high %v3426_v11, %v3434_v49  ;;  %v14628_v22 = vrot.slane %v11421_v39, 4 }
 0x1a1   :  { %2440 = vrot.lane.b32.xlu0 %v2423_v16, %s14590_s1  ;;  %v2047_v41 = vsel %vm250_vm0, %v14624_v51, %v2034_v59  ;;  %v11811_v16 = vpop.permute.xlu1 %1748  ;;  %9091 = vst.sshfl [vmem:[#allocation2 + $0x2b8] sm:$0xf pattern:$0x76325410] %v2812_v1  ;;  %s14525_s1 = smov 80  }
 0x1a2   :  { %v1910_v33 = vsel %vm250_vm0, %v14625_v13, %v1897_v60  ;;  %4235 = vmatprep.subr.bf16.mxu0 %v9135_v61  ;;  %v2048_v48 = vsel %vm14626_vm11, %v11399_v4, %v2047_v41  ;;  %v1760_v62 = vrot.slane %v11811_v16, 4  ;;  %v3049_v4 = vrot.slane %v3035_v18, %v10588_v8 }
 0x1a3   :  { %v1911_v37 = vsel %vm14627_vm9, %v11401_v45, %v1910_v33  ;;  %v2160_v15 = vpop.permute.xlu0 %2159  ;;  %4236 = vmatpush1.bf16.msra.mxu0 %v9134_v2  ;;  %2067 = vst [vmem:[#allocation2 + $0x1e0] sm:$0x33] %v2048_v48  ;;  %2935 = vrot.lane.b32.xlu1 %v11410_v34, %s14591_s28  ;;  %v10157_v45 = vld [vmem:[%s14578_s29 + $0x22] ss:$0 sps:$4 sm:$0x33]   ;;  %vm14629_vm11 = vcmask 506880  }
 0x1a4   :  { %1930 = vst [vmem:[#allocation2 + $0x1a0] sm:$0xcc] %v1911_v37  ;;  %v2172_v54 = vrot.slane %v2160_v15, 4  ;;  %v1774_v42 = vsel %vm250_vm0, %v1759_v31, %v1760_v62  ;;  %vm14630_vm9 = vcmask 261120   ;;  %v3427_v18 = vld [vmem:[#allocation2 + $0x128] sm:$0xff] }
 0x1a5   :  { %2715 = vrot.lane.b32.xlu0 %v2698_v28, %s14600_s12  ;;  %v1775_v49 = vsel %vm14629_vm11, %v1747_v19, %v1774_v42  ;;  %v11830_v61 = vpop.permute.xlu1 %2023  ;;  %v10158_v19 = vld [vmem:[%s14578_s29 + $0x22] ss:$0 sps:$4 sm:$0x33]   ;;  %vm14631_vm11 = vcmask 490496  }
 0x1a6   :  { %v2185_v11 = vsel %vm250_vm0, %v14628_v22, %v2172_v54  ;;  %1793 = vst [vmem:[#allocation2 + $0x1a8] sm:$0x33] %v1775_v49  ;;  %v2035_v41 = vrot.slane %v11830_v61, 4  ;;  %v14633_v49 = vrot.slane %v11456_v12, 4 }
 0x1a7   :  { %v2186_v2 = vsel %vm14630_vm9, %v11421_v39, %v2185_v11  ;;  %v11832_v28 = vpop.permute.xlu0 %1886  ;;  %v3435_v51 = vld [vmem:[#allocation2 + $0x168] sm:$0xff]  ;;  %3208 = vrot.lane.b32.xlu1 %v11410_v34, %s14592_s27  ;;  %v2920_v39 = vrot.slane %v10157_v45, %v10588_v8  ;;  %v9092_v34 = vld.sshfl [vmem:[%s14578_s29 + $0x22] sm:$0x3 pattern:$0x76325410]  ;;  %vm14632_vm9 = vcmask 498688  }
 0x1a8   :  { %2205 = vst [vmem:[#allocation2 + $0x1e0] sm:$0xcc] %v2186_v2  ;;  %v1898_v31 = vrot.slane %v11832_v28, 4  ;;  %v9136_v13 = vcombine.low %v3427_v18, %v3435_v51  ;;  %v9137_v33 = vcombine.high %v3427_v18, %v3435_v51  ;;  %v2049_v48 = vsel %vm250_vm0, %v2034_v59, %v2035_v41  ;;  %s10471_s29 = smov 112  }
 0x1a9   :  { %3071 = vrot.lane.b32.xlu0 %v3049_v4, %s14593_s26  ;;  %v2050_v1 = vsel %vm14631_vm11, %v2022_v36, %v2049_v48  ;;  %v2297_v42 = vpop.permute.xlu1 %2296  ;;  %vm14634_vm11 = vcmask 261120  }
 0x1aa   :  { %v1912_v37 = vsel %vm250_vm0, %v1897_v60, %v1898_v31  ;;  %4276 = vmatprep.subr.bf16.mxu1 %v9137_v33  ;;  %2068 = vst [vmem:[#allocation2 + $0x1e8] sm:$0x33] %v2050_v1  ;;  %v2309_v59 = vrot.slane %v2297_v42, 4  ;;  %v3193_v60 = vrot.slane %v10158_v19, %v10588_v8 }
 0x1ab   :  { %v1913_v45 = vsel %vm14632_vm9, %v1885_v17, %v1912_v37  ;;  %v11854_v22 = vpop.permute.xlu0 %2161  ;;  %4277 = vmatpush1.bf16.msra.mxu1 %v9136_v13  ;;  %3073 = vrot.lane.b32.xlu1 %v9092_v34, %s14593_s26  ;;  %v3442_v33 = vld [vmem:[#allocation2 + $0x1a0] sm:$0xff]  ;;  %vm14637_vm9 = vcmask 244736  }
 0x1ac   :  { %1931 = vst [vmem:[#allocation2 + $0x1a8] sm:$0xcc] %v1913_v45  ;;  %v2173_v11 = vrot.slane %v11854_v22, 4  ;;  %v2322_v36 = vsel %vm250_vm0, %v14633_v49, %v2309_v59 }
 0x1ad   :  { %2937 = vrot.lane.b32.xlu0 %v2920_v39, %s14591_s28  ;;  %v2323_v2 = vsel %vm2314_vm13, %v11456_v12, %v2322_v36  ;;  %v2572_v51 = vpop.permute.xlu1 %2571 }
 0x1ae   :  { %v2187_v17 = vsel %vm250_vm0, %v2172_v54, %v2173_v11  ;;  %2342 = vst [vmem:[#allocation2 + $0x220] sm:$0x33] %v2323_v2  ;;  %v2584_v39 = vrot.slane %v2572_v51, 4  ;;  %v14635_v54 = vrot.slane %v11475_v14, 4 }
 0x1af   :  { %v2188_v18 = vsel %vm14634_vm11, %v2160_v15, %v2187_v17  ;;  %v2435_v13 = vpop.permute.xlu0 %2434  ;;  %v3450_v48 = vld [vmem:[#allocation2 + $0x1e0] sm:$0xff]  ;;  %3344 = vrot.lane.b32.xlu1 %v3049_v4, %s14594_s18  ;;  %v14636_v15 = vrot.slane %v11477_v55, 4  ;;  %vm14639_vm11 = vcmask 228352  }
 0x1b0   :  { %2206 = vst [vmem:[#allocation2 + $0x1e8] sm:$0xcc] %v2188_v18  ;;  %v2447_v19 = vrot.slane %v2435_v13, 4  ;;  %v9150_v37 = vcombine.low %v3442_v33, %v3450_v48  ;;  %v9151_v1 = vcombine.high %v3442_v33, %v3450_v48  ;;  %v2597_v12 = vsel %vm250_vm0, %v14635_v54, %v2584_v39 }
 0x1b1   :  { %3210 = vrot.lane.b32.xlu0 %v3193_v60, %s14592_s27  ;;  %v2598_v49 = vsel %vm2589_vm14, %v11475_v14, %v2597_v12  ;;  %v11881_v17 = vpop.permute.xlu1 %2298  ;;  %v14638_v14 = vrot.slane %v11502_v58, 4 }
 0x1b2   :  { %v2460_v45 = vsel %vm250_vm0, %v14636_v15, %v2447_v19  ;;  %4237 = vmatprep.subr.bf16.mxu0 %v9151_v1  ;;  %2617 = vst [vmem:[#allocation2 + $0x260] sm:$0x33] %v2598_v49  ;;  %v2310_v60 = vrot.slane %v11881_v17, 4 }
 0x1b3   :  { %v2461_v36 = vsel %vm14637_vm9, %v11477_v55, %v2460_v45  ;;  %v2710_v4 = vpop.permute.xlu0 %2709  ;;  %4238 = vmatpush1.bf16.msra.mxu0 %v9150_v37  ;;  %v3443_v54 = vld [vmem:[#allocation2 + $0x1a8] sm:$0xff] }
 0x1b4   :  { %2480 = vst [vmem:[#allocation2 + $0x220] sm:$0xcc] %v2461_v36  ;;  %v2722_v2 = vrot.slane %v2710_v4, 4  ;;  %v2324_v18 = vsel %vm250_vm0, %v2309_v59, %v2310_v60 }
 0x1b5   :  { %3346 = vrot.lane.b32.xlu0 %v9092_v34, %s14594_s18  ;;  %v2325_v55 = vsel %vm2314_vm13, %v2297_v42, %v2324_v18  ;;  %v11894_v37 = vpop.permute.xlu1 %2573 }
 0x1b6   :  { %v2735_v33 = vsel %vm250_vm0, %v14638_v14, %v2722_v2  ;;  %2343 = vst [vmem:[#allocation2 + $0x228] sm:$0x33] %v2325_v55  ;;  %v2585_v34 = vrot.slane %v11894_v37, 4 }
 0x1b7   :  { %v2736_v48 = vsel %vm14639_vm11, %v11502_v58, %v2735_v33  ;;  %v11896_v1 = vpop.permute.xlu0 %2436  ;;  %v3451_v12 = vld [vmem:[#allocation2 + $0x1e8] sm:$0xff] }
 0x1b8   :  { %2755 = vst [vmem:[#allocation2 + $0x260] sm:$0xcc] %v2736_v48  ;;  %v2448_v59 = vrot.slane %v11896_v1, 4  ;;  %v9152_v15 = vcombine.low %v3443_v54, %v3451_v12  ;;  %v9153_v45 = vcombine.high %v3443_v54, %v3451_v12  ;;  %v2599_v42 = vsel %vm250_vm0, %v2584_v39, %v2585_v34 }
 0x1b9   :  { %v2600_v49 = vsel %vm2589_vm14, %v2572_v51, %v2599_v42  ;;  %v2932_v18 = vpop.permute.xlu1 %2931  ;;  %v14640_v39 = vrot.slane %v11533_v9, 4 }
 0x1ba   :  { %v2462_v58 = vsel %vm250_vm0, %v2447_v19, %v2448_v59  ;;  %4278 = vmatprep.subr.bf16.mxu1 %v9153_v45  ;;  %2618 = vst [vmem:[#allocation2 + $0x268] sm:$0x33] %v2600_v49  ;;  %v2944_v33 = vrot.slane %v2932_v18, 4 }
 0x1bb   :  { %v2463_v36 = vsel %vm14637_vm9, %v2435_v13, %v2462_v58  ;;  %v11908_v14 = vpop.permute.xlu0 %2711  ;;  %4279 = vmatpush1.bf16.msra.mxu1 %v9152_v15  ;;  %v3458_v15 = vld [vmem:[#allocation2 + $0x220] sm:$0xff]  ;;  %vm14642_vm9 = vcmask 752640  }
 0x1bc   :  { %2481 = vst [vmem:[#allocation2 + $0x228] sm:$0xcc] %v2463_v36  ;;  %v2723_v55 = vrot.slane %v11908_v14, 4  ;;  %v2956_v48 = vsel %vm250_vm0, %v14640_v39, %v2944_v33 }
 0x1bd   :  { %v2957_v51 = vsel %vm252_vm2, %v11533_v9, %v2956_v48  ;;  %v3205_v54 = vpop.permute.xlu1 %3204 }
 0x1be   :  { %v2737_v19 = vsel %vm250_vm0, %v2722_v2, %v2723_v55  ;;  %2976 = vst [vmem:[#allocation2 + $0x2a0] sm:$0xcc] %v2957_v51  ;;  %v3217_v42 = vrot.slane %v3205_v54, 4  ;;  %v14641_v2 = vrot.slane %v11531_v25, 4 }
 0x1bf   :  { %v2738_v13 = vsel %vm14639_vm11, %v2710_v4, %v2737_v19  ;;  %v3068_v12 = vpop.permute.xlu0 %3067  ;;  %v3466_v45 = vld [vmem:[#allocation2 + $0x260] sm:$0xff]  ;;  %vm14643_vm11 = vcmask 515072  }
 0x1c0   :  { %2756 = vst [vmem:[#allocation2 + $0x268] sm:$0xcc] %v2738_v13  ;;  %v3080_v58 = vrot.slane %v3068_v12, 4  ;;  %v9166_v49 = vcombine.low %v3458_v15, %v3466_v45  ;;  %v9167_v36 = vcombine.high %v3458_v15, %v3466_v45  ;;  %v3229_v39 = vsel %vm250_vm0, %v3216_v26, %v3217_v42 }
 0x1c1   :  { %v3230_v4 = vsel %vm527_vm3, %v11552_v40, %v3229_v39  ;;  %v11930_v19 = vpop.permute.xlu1 %3069 }
 0x1c2   :  { %v3092_v9 = vsel %vm250_vm0, %v14641_v2, %v3080_v58  ;;  %4239 = vmatprep.subr.bf16.mxu0 %v9167_v36  ;;  %3249 = vst [vmem:[#allocation2 + $0x2e0] sm:$0xcc] %v3230_v4  ;;  %v14520_v26 = vrot.slane %v11930_v19, 4 }
 0x1c3   :  { %v3093_v48 = vsel %vm389_vm1, %v11531_v25, %v3092_v9  ;;  %v11932_v51 = vpop.permute.xlu0 %2933  ;;  %4240 = vmatpush1.bf16.msra.mxu0 %v9166_v49  ;;  %v3459_v39 = vld [vmem:[#allocation2 + $0x228] sm:$0xff] }
 0x1c4   :  { %3112 = vst [vmem:[#allocation2 + $0x2e0] sm:$0x33] %v3093_v48  ;;  %v14521_v13 = vrot.slane %v11932_v51, 4  ;;  %v3094_v15 = vsel %vm250_vm0, %v3080_v58, %v14520_v26 }
 0x1c5   :  { %v3095_v25 = vsel %vm389_vm1, %v3068_v12, %v3094_v15  ;;  %v3341_v36 = vpop.permute.xlu1 %3340 }
 0x1c6   :  { %v2958_v40 = vsel %vm250_vm0, %v2944_v33, %v14521_v13  ;;  %3113 = vst [vmem:[#allocation2 + $0x2e8] sm:$0x33] %v3095_v25  ;;  %v3353_v9 = vrot.slane %v3341_v36, 4 }
 0x1c7   :  { %v2959_v45 = vsel %vm252_vm2, %v2932_v18, %v2958_v40  ;;  %v11944_v49 = vpop.permute.xlu0 %3206  ;;  %v3467_v2 = vld [vmem:[#allocation2 + $0x268] sm:$0xff] }
 0x1c8   :  { %2977 = vst [vmem:[#allocation2 + $0x2a8] sm:$0xcc] %v2959_v45  ;;  %v3218_v4 = vrot.slane %v11944_v49, 4  ;;  %v9168_v48 = vcombine.low %v3459_v39, %v3467_v2  ;;  %v9169_v58 = vcombine.high %v3459_v39, %v3467_v2  ;;  %v3365_v33 = vsel %vm250_vm0, %v3352_v20, %v3353_v9  ;;  %v3474_v45 = vld [vmem:[#allocation2 + $0x2a0] sm:$0xff] }
 0x1c9   :  { %v3366_v12 = vsel %vm664_vm4, %v11586_v30, %v3365_v33  ;;  %v376_v40 = vpop.permute.xlu1 %375 }
 0x1ca   :  { %v3231_v18 = vsel %vm250_vm0, %v3217_v42, %v3218_v4  ;;  %4280 = vmatprep.subr.bf16.mxu1 %v9169_v58  ;;  %3385 = vst [vmem:[#allocation2 + $0x320] sm:$0x33] %v3366_v12  ;;  %v386_v39 = vrot.slane %v376_v40, 4 }
 0x1cb   :  { %v3232_v15 = vsel %vm527_vm3, %v3205_v54, %v3231_v18  ;;  %v238_v25 = vpop.permute.xlu0 %237  ;;  %4281 = vmatpush1.bf16.msra.mxu1 %v9168_v48  ;;  %v3482_v26 = vld [vmem:[#allocation2 + $0x2e0] sm:$0xff] }
 0x1cc   :  { %3250 = vst [vmem:[#allocation2 + $0x2e8] sm:$0xcc] %v3232_v15  ;;  %v248_v2 = vrot.slane %v238_v25, 4  ;;  %v9182_v20 = vcombine.low %v3474_v45, %v3482_v26  ;;  %v9183_v13 = vcombine.high %v3474_v45, %v3482_v26  ;;  %v401_v42 = vsel %vm250_vm0, %v385_v27, %v386_v39 }
 0x1cd   :  { %v402_v54 = vsel %vm389_vm1, %v11601_v38, %v401_v42  ;;  %v11966_v58 = vpop.permute.xlu1 %3342 }
 0x1ce   :  { %v264_v30 = vsel %vm250_vm0, %v247_v29, %v248_v2  ;;  %4241 = vmatprep.subr.bf16.mxu0 %v9183_v13  ;;  %419 = vst [vmem:[#allocation2 + $0x70] sm:$0x33] %v402_v54  ;;  %v14522_v26 = vrot.slane %v11966_v58, 4 }
 0x1cf   :  { %v265_v48 = vsel %vm252_vm2, %v11603_v6, %v264_v30  ;;  %v514_v33 = vpop.permute.xlu0 %513  ;;  %4242 = vmatpush1.bf16.msra.mxu0 %v9182_v20  ;;  %v3475_v45 = vld [vmem:[#allocation2 + $0x2a8] sm:$0xff] }
 0x1d0   :  { %282 = vst [vmem:[#allocation2 + $0x30] sm:$0xcc] %v265_v48  ;;  %v524_v27 = vrot.slane %v514_v33, 4  ;;  %v3367_v29 = vsel %vm250_vm0, %v3353_v9, %v14522_v26 }
 0x1d1   :  { %v3368_v13 = vsel %vm664_vm4, %v3341_v36, %v3367_v29  ;;  %v378_v18 = vpop.permute.xlu1 %377  ;;  %v3490_v15 = vld [vmem:[#allocation2 + $0x320] sm:$0x33] }
 0x1d2   :  { %v539_v38 = vsel %vm250_vm0, %v523_v53, %v524_v27  ;;  %3386 = vst [vmem:[#allocation2 + $0x328] sm:$0x33] %v3368_v13  ;;  %v387_v42 = vrot.slane %v378_v18, 4  ;;  %v9199_v54 = vcombine.high %v3490_v15, %v3490_v15  ;;  %v9198_v26 = vcombine.low %v3490_v15, %v3490_v15 }
 0x1d3   :  { %v540_v6 = vsel %vm527_vm3, %v11623_v0, %v539_v38  ;;  %v240_v12 = vpop.permute.xlu0 %239  ;;  %v3483_v20 = vld [vmem:[#allocation2 + $0x2e8] sm:$0xff] }
 0x1d4   :  { %557 = vst [vmem:[#allocation2 + $0x70] sm:$0xcc] %v540_v6  ;;  %v249_v30 = vrot.slane %v240_v12, 4  ;;  %v9184_v9 = vcombine.low %v3475_v45, %v3483_v20  ;;  %v9185_v48 = vcombine.high %v3475_v45, %v3483_v20  ;;  %v403_v53 = vsel %vm250_vm0, %v386_v39, %v387_v42  ;;  %9214 = vmatprep.subr.msk.bf16.mxu0 %vm4018_vm12, %v9199_v54 }
 0x1d5   :  { %v404_v0 = vsel %vm389_vm1, %v376_v40, %v403_v53  ;;  %v651_v38 = vpop.permute.xlu1 %650  ;;  %v4044_v6 = vsel %vm4018_vm12, %v9198_v26, 0 }
 0x1d6   :  { %v266_v36 = vsel %vm250_vm0, %v248_v2, %v249_v30  ;;  %4282 = vmatprep.subr.bf16.mxu1 %v9185_v48  ;;  %420 = vst [vmem:[#allocation2 + $0x78] sm:$0x33] %v404_v0  ;;  %v661_v18 = vrot.slane %v651_v38, 4  ;;  %4244 = vmatpush1.bf16.msra.mxu0 %v4044_v6  ;;  %v11994_v30 = vld [vmem:[%s14597_s16] sm:$0x7]  ;;  %s14531_s16 = smov 77  }
 0x1d7   :  { %v267_v29 = vsel %vm252_vm2, %v238_v25, %v266_v36  ;;  %v516_v13 = vpop.permute.xlu0 %515  ;;  %4283 = vmatpush1.bf16.msra.mxu1 %v9184_v9  ;;  %v3396_v20 = vld [vmem:[#allocation2 + $0x30] sm:$0xff] }
 0x1d8   :  { %283 = vst [vmem:[#allocation2 + $0x38] sm:$0xcc] %v267_v29  ;;  %v525_v12 = vrot.slane %v516_v13, 4  ;;  %v676_v39 = vsel %vm250_vm0, %v660_v44, %v661_v18 }
 0x1d9   :  { %v677_v40 = vsel %vm664_vm4, %v11662_v10, %v676_v39  ;;  %v926_v15 = vpop.permute.xlu1 %925  ;;  %v3491_v26 = vld [vmem:[#allocation2 + $0x328] sm:$0x33]  ;;  %9215 = vmatmul.mubr.msk.bf16.vlgmr.msra.gmra.mrb[8].mxu0 %vm4014_vm15, %v11994_v30 }
 0x1da   :  { %v541_v2 = vsel %vm250_vm0, %v524_v27, %v525_v12  ;;  %694 = vst [vmem:[#allocation2 + $0xb0] sm:$0x33] %v677_v40  ;;  %v936_v44 = vrot.slane %v926_v15, 4  ;;  %v9201_v10 = vcombine.high %v3491_v26, %v3491_v26  ;;  %4345 = vmatprep.mubr.bf16.mxu0 %v10470_v23  ;;  %v9200_v9 = vcombine.low %v3491_v26, %v3491_v26 }
 0x1db   :  { %v542_v25 = vsel %vm527_vm3, %v514_v33, %v541_v2  ;;  %v789_v45 = vpop.permute.xlu0 %788  ;;  %v3404_v42 = vld [vmem:[#allocation2 + $0x70] sm:$0xff] }
 0x1dc   :  { %558 = vst [vmem:[#allocation2 + $0x78] sm:$0xcc] %v542_v25  ;;  %v799_v27 = vrot.slane %v789_v45, 4  ;;  %v9106_v54 = vcombine.low %v3396_v20, %v3404_v42  ;;  %v9107_v33 = vcombine.high %v3396_v20, %v3404_v42  ;;  %v951_v48 = vsel %vm250_vm0, %v935_v7, %v936_v44  ;;  %9216 = vmatprep.subr.msk.bf16.mxu1 %vm4018_vm12, %v9201_v10 }
 0x1dd   :  { %v952_v36 = vsel %vm939_vm6, %v11678_v24, %v951_v48  ;;  %v653_v29 = vpop.permute.xlu1 %652  ;;  %v4050_v6 = vsel %vm4018_vm12, %v9200_v9, 0 }
 0x1de   :  { %v814_v53 = vsel %vm250_vm0, %v798_v52, %v799_v27  ;;  %4313 = vmatprep.subr.bf16.mxu0 %v9107_v33  ;;  %969 = vst [vmem:[#allocation2 + $0xf0] sm:$0x33] %v952_v36  ;;  %v662_v7 = vrot.slane %v653_v29, 4  ;;  %4285 = vmatpush1.bf16.msra.mxu1 %v4050_v6 }
 0x1df   :  { %v815_v0 = vsel %vm14523_vm5, %v11680_v56, %v814_v53  ;;  %v1064_v13 = vpop.permute.xlu0 %1063  ;;  %4314 = vmatpush1.bf16.msra.mxu0 %v9106_v54  ;;  %v3397_v25 = vld [vmem:[#allocation2 + $0x38] sm:$0xff] }
 0x1e0   :  { %832 = vst [vmem:[#allocation2 + $0xb0] sm:$0xcc] %v815_v0  ;;  %v1074_v12 = vrot.slane %v1064_v13, 4  ;;  %v678_v52 = vsel %vm250_vm0, %v661_v18, %v662_v7 }
 0x1e1   :  { %v679_v39 = vsel %vm664_vm4, %v651_v38, %v678_v52  ;;  %v928_v2 = vpop.permute.xlu1 %927  ;;  %9217 = vmatmul.mubr.msk.bf16.vlgmr.msra.gmra.mrb[8].mxu1 %vm4014_vm15, %v11994_v30 }
 0x1e2   :  { %v1089_v24 = vsel %vm250_vm0, %v1073_v35, %v1074_v12  ;;  %695 = vst [vmem:[#allocation2 + $0xb8] sm:$0x33] %v679_v39  ;;  %v937_v20 = vrot.slane %v928_v2, 4  ;;  %4386 = vmatprep.mubr.bf16.mxu1 %v10470_v23 }
 0x1e3   :  { %v1090_v56 = vsel %vm1077_vm7, %v11702_v3, %v1089_v24  ;;  %v791_v40 = vpop.permute.xlu0 %790  ;;  %v3405_v26 = vld [vmem:[#allocation2 + $0x78] sm:$0xff] }
 0x1e4   :  { %1107 = vst [vmem:[#allocation2 + $0xf0] sm:$0xcc] %v1090_v56  ;;  %v800_v18 = vrot.slane %v791_v40, 4  ;;  %v9108_v42 = vcombine.low %v3397_v25, %v3405_v26  ;;  %v9109_v10 = vcombine.high %v3397_v25, %v3405_v26  ;;  %v953_v35 = vsel %vm250_vm0, %v936_v44, %v937_v20 }
 0x1e5   :  { %v954_v3 = vsel %vm939_vm6, %v926_v15, %v953_v35  ;;  %v1201_v33 = vpop.permute.xlu1 %1200 }
 0x1e6   :  { %v816_v38 = vsel %vm250_vm0, %v799_v27, %v800_v18  ;;  %4354 = vmatprep.subr.bf16.mxu1 %v9109_v10  ;;  %970 = vst [vmem:[#allocation2 + $0xf8] sm:$0x33] %v954_v3  ;;  %v1211_v48 = vrot.slane %v1201_v33, 4 }
 0x1e7   :  { %v817_v54 = vsel %vm14523_vm5, %v789_v45, %v816_v38  ;;  %v1066_v9 = vpop.permute.xlu0 %1065  ;;  %4355 = vmatpush1.bf16.msra.mxu1 %v9108_v42  ;;  %v3412_v0 = vld [vmem:[#allocation2 + $0xb0] sm:$0xff]  ;;  %vm14646_vm5 = vcmask 515072  }
 0x1e8   :  { %833 = vst [vmem:[#allocation2 + $0xb8] sm:$0xcc] %v817_v54  ;;  %v1075_v53 = vrot.slane %v1066_v9, 4  ;;  %v1226_v23 = vsel %vm250_vm0, %v1210_v47, %v1211_v48 }
 0x1e9   :  { %v1227_v27 = vsel %vm14524_vm8, %v11736_v43, %v1226_v23  ;;  %v1476_v36 = vpop.permute.xlu1 %1475 }
 0x1ea   :  { %v1091_v44 = vsel %vm250_vm0, %v1074_v12, %v1075_v53  ;;  %1244 = vst [vmem:[#allocation2 + $0x130] sm:$0x33] %v1227_v27  ;;  %v1486_v6 = vrot.slane %v1476_v36, 4 }
 0x1eb   :  { %v1092_v15 = vsel %vm1077_vm7, %v1064_v13, %v1091_v44  ;;  %v1339_v45 = vpop.permute.xlu0 %1338  ;;  %v3420_v29 = vld [vmem:[#allocation2 + $0xf0] sm:$0xff]  ;;  %v12039_v13 = vsub.s32 0, %v10585_v5 }
 0x1ec   :  { %1108 = vst [vmem:[#allocation2 + $0xf8] sm:$0xcc] %v1092_v15  ;;  %v1349_v7 = vrot.slane %v1339_v45, 4  ;;  %v9122_v52 = vcombine.low %v3412_v0, %v3420_v29  ;;  %v9123_v24 = vcombine.high %v3412_v0, %v3420_v29  ;;  %v1501_v47 = vsel %vm250_vm0, %v1485_v32, %v1486_v6  ;;  %v12048_v32 = vld [vmem:[%s14431_s4] sm:$0xff] }
 0x1ed   :  { %v1502_v12 = vsel %vm1489_vm10, %v11751_v63, %v1501_v47  ;;  %v1203_v56 = vpop.permute.xlu1 %1202  ;;  %v12059_v26 = vrot.slane %v12048_v32, %v12039_v13 }
 0x1ee   :  { %v1364_v43 = vsel %vm250_vm0, %v1348_v50, %v1349_v7  ;;  %4315 = vmatprep.subr.bf16.mxu0 %v9123_v24  ;;  %v12051_v50 = vsub.s32 1, %v10585_v5  ;;  %1519 = vst [vmem:[#allocation2 + $0x170] sm:$0x33] %v1502_v12  ;;  %v1212_v40 = vrot.slane %v1203_v56, 4 }
 0x1ef   :  { %v1365_v39 = vsel %vm14642_vm9, %v11753_v21, %v1364_v43  ;;  %v1614_v2 = vpop.permute.xlu0 %1613  ;;  %4316 = vmatpush1.bf16.msra.mxu0 %v9122_v52  ;;  %v3413_v35 = vld [vmem:[#allocation2 + $0xb8] sm:$0xff]  ;;  %vm4495_vm9 = vcmask 1045504  }
 0x1f0   :  { %1382 = vst [vmem:[#allocation2 + $0x130] sm:$0xcc] %v1365_v39  ;;  %v1624_v25 = vrot.slane %v1614_v2, 4  ;;  %v1228_v63 = vsel %vm250_vm0, %v1211_v48, %v1212_v40  ;;  %v12066_v3 = vrot.slane %v12048_v32, %v12051_v50 }
 0x1f1   :  { %v1229_v20 = vsel %vm14524_vm8, %v1201_v33, %v1228_v63  ;;  %v1478_v42 = vpop.permute.xlu1 %1477  ;;  %vm14653_vm8 = vcmask 261120  }
 0x1f2   :  { %v1639_v21 = vsel %vm250_vm0, %v1623_v46, %v1624_v25  ;;  %1245 = vst [vmem:[#allocation2 + $0x138] sm:$0x33] %v1229_v20  ;;  %v1487_v46 = vrot.slane %v1478_v42, 4 }
 0x1f3   :  { %v1640_v18 = vsel %vm14643_vm11, %v11772_v57, %v1639_v21  ;;  %v1341_v10 = vpop.permute.xlu0 %1340  ;;  %v3421_v38 = vld [vmem:[#allocation2 + $0xf8] sm:$0xff]  ;;  %vm14644_vm11 = vcmask 752640  }
 0x1f4   :  { %1657 = vst [vmem:[#allocation2 + $0x170] sm:$0xcc] %v1640_v18  ;;  %v1350_v54 = vrot.slane %v1341_v10, 4  ;;  %v9124_v9 = vcombine.low %v3413_v35, %v3421_v38  ;;  %v9125_v48 = vcombine.high %v3413_v35, %v3421_v38  ;;  %v1503_v33 = vsel %vm250_vm0, %v1486_v6, %v1487_v46 }
 0x1f5   :  { %v12068_v53 = vpop.f32.mrb[0].mxu0  ;;  %v1504_v27 = vsel %vm1489_vm10, %v1476_v36, %v1503_v33  ;;  %v1751_v0 = vpop.permute.xlu1 %1750  ;;  %v12081_v6 = vsub.s32 2, %v10585_v5 }
 0x1f6   :  { %v1366_v57 = vsel %vm250_vm0, %v1349_v7, %v1350_v54  ;;  %4356 = vmatprep.subr.bf16.mxu1 %v9125_v48  ;;  %v4479_v23 = vmul.f32 %v12059_v26, %v12068_v53  ;;  %v12074_v44 = vpop.f32.mrb[1].mxu0  ;;  %1520 = vst [vmem:[#allocation2 + $0x178] sm:$0x33] %v1504_v27  ;;  %v1761_v7 = vrot.slane %v1751_v0, 4 }
 0x1f7   :  { %v1367_v15 = vsel %vm14644_vm11, %v1339_v45, %v1366_v57  ;;  %v1616_v29 = vpop.permute.xlu0 %1615  ;;  %4357 = vmatpush1.bf16.msra.mxu1 %v9124_v9  ;;  %v4480_v52 = vmul.f32 %v12066_v3, %v12074_v44  ;;  %v4105_v43 = vpop.f32.mrb[2].mxu0  ;;  %v12086_v45 = vsub.s32 3, %v10585_v5  ;;  %vm14645_vm11 = vcmask 506880   ;;  %v3428_v42 = vld [vmem:[#allocation2 + $0x130] sm:$0xff] }
 0x1f8   :  { %1383 = vst [vmem:[#allocation2 + $0x138] sm:$0xcc] %v1367_v15  ;;  %v1625_v24 = vrot.slane %v1616_v29, 4  ;;  %v4496_v47 = vsel %vm4495_vm9, %v4479_v23, 0.0  ;;  %v4106_v12 = vpop.f32.mrb[3].mxu0  ;;  %v1776_v39 = vsel %vm250_vm0, %v1760_v62, %v1761_v7  ;;  %v12097_v35 = vrot.slane %v12048_v32, %v12081_v6 }
 0x1f9   :  { %v4497_v36 = vsel %vm4495_vm9, %v4480_v52, 0.0  ;;  %v1777_v63 = vsel %vm14645_vm11, %v11811_v16, %v1776_v39  ;;  %v2026_v20 = vpop.permute.xlu1 %2025  ;;  %v12101_v54 = vrot.slane %v12048_v32, %v12086_v45  ;;  %vm14648_vm11 = vcmask 498688  }
 0x1fa   :  { %v1641_v56 = vsel %vm250_vm0, %v1624_v25, %v1625_v24  ;;  %v4498_v40 = vadd.f32 %v4497_v36, %v4496_v47  ;;  %1794 = vst [vmem:[#allocation2 + $0x1b0] sm:$0x33] %v1777_v63  ;;  %v2036_v38 = vrot.slane %v2026_v20, 4 }
 0x1fb   :  { %v1642_v21 = vsel %vm14646_vm5, %v1614_v2, %v1641_v56  ;;  %v1889_v18 = vpop.permute.xlu0 %1888  ;;  %v3436_v10 = vld [vmem:[#allocation2 + $0x170] sm:$0xff]  ;;  %vm14647_vm5 = vcmask 490496  }
 0x1fc   :  { %1658 = vst [vmem:[#allocation2 + $0x178] sm:$0xcc] %v1642_v21  ;;  %v1899_v62 = vrot.slane %v1889_v18, 4  ;;  %v9138_v46 = vcombine.low %v3428_v42, %v3436_v10  ;;  %v9139_v25 = vcombine.high %v3428_v42, %v3436_v10  ;;  %v2051_v16 = vsel %vm250_vm0, %v2035_v41, %v2036_v38  ;;  %v12109_v9 = vpop.f32.mrb[0].mxu1 }
 0x1fd   :  { %v2052_v48 = vsel %vm14647_vm5, %v11830_v61, %v2051_v16  ;;  %v1753_v57 = vpop.permute.xlu1 %1752  ;;  %v4481_v27 = vmul.f32 %v12097_v35, %v12109_v9  ;;  %vm14649_vm5 = vcmask 506880  }
 0x1fe   :  { %v1914_v2 = vsel %vm250_vm0, %v1898_v31, %v1899_v62  ;;  %4317 = vmatprep.subr.bf16.mxu0 %v9139_v25  ;;  %2069 = vst [vmem:[#allocation2 + $0x1f0] sm:$0x33] %v2052_v48  ;;  %v1762_v41 = vrot.slane %v1753_v57, 4  ;;  %v12117_v31 = vpop.f32.mrb[1].mxu1 }
 0x1ff   :  { %v1915_v33 = vsel %vm14648_vm11, %v11832_v28, %v1914_v2  ;;  %v2164_v23 = vpop.permute.xlu0 %2163  ;;  %4318 = vmatpush1.bf16.msra.mxu0 %v9138_v46  ;;  %v4499_v29 = vsel %vm4495_vm9, %v4481_v27, 0.0  ;;  %v4482_v61 = vmul.f32 %v12101_v54, %v12117_v31  ;;  %v4146_v52 = vpop.f32.mrb[2].mxu1  ;;  %vm14650_vm11 = vcmask 261120   ;;  %v3429_v63 = vld [vmem:[#allocation2 + $0x138] sm:$0xff] }
 0x200   :  { %1932 = vst [vmem:[#allocation2 + $0x1b0] sm:$0xcc] %v1915_v33  ;;  %v2174_v15 = vrot.slane %v2164_v23, 4  ;;  %v1778_v28 = vsel %vm250_vm0, %v1761_v7, %v1762_v41  ;;  %v4500_v47 = vadd.f32 %v4499_v29, %v4498_v40  ;;  %v4147_v43 = vpop.f32.mrb[3].mxu1 }
 0x201   :  { %v1779_v36 = vsel %vm14649_vm5, %v1751_v0, %v1778_v28  ;;  %v2028_v39 = vpop.permute.xlu1 %2027  ;;  %v4501_v42 = vsel %vm4495_vm9, %v4482_v61, 0.0  ;;  %vm14651_vm5 = vcmask 490496  }
 0x202   :  { %v2189_v24 = vsel %vm250_vm0, %v2173_v11, %v2174_v15  ;;  %1795 = vst [vmem:[#allocation2 + $0x1b8] sm:$0x33] %v1779_v36  ;;  %v2037_v7 = vrot.slane %v2028_v39, 4  ;;  %v12130_v11 = vadd.f32 %v4501_v42, %v4500_v47 }
 0x203   :  { %v2190_v12 = vsel %vm14650_vm11, %v11854_v22, %v2189_v24  ;;  %v1891_v56 = vpop.permute.xlu0 %1890  ;;  %v3437_v21 = vld [vmem:[#allocation2 + $0x178] sm:$0xff]  ;;  %vm14652_vm11 = vcmask 498688  }
 0x204   :  { %2207 = vst [vmem:[#allocation2 + $0x1f0] sm:$0xcc] %v2190_v12  ;;  %v1900_v10 = vrot.slane %v1891_v56, 4  ;;  %v9140_v46 = vcombine.low %v3429_v63, %v3437_v21  ;;  %v9141_v25 = vcombine.high %v3429_v63, %v3437_v21  ;;  %v2053_v40 = vsel %vm250_vm0, %v2036_v38, %v2037_v7 }
 0x205   :  { %v2054_v22 = vsel %vm14651_vm5, %v2026_v20, %v2053_v40  ;;  %v2301_v2 = vpop.permute.xlu1 %2300  ;;  %vm14655_vm5 = vcmask 228352  }
 0x206   :  { %v1916_v0 = vsel %vm250_vm0, %v1899_v62, %v1900_v10  ;;  %4358 = vmatprep.subr.bf16.mxu1 %v9141_v25  ;;  %2070 = vst [vmem:[#allocation2 + $0x1f8] sm:$0x33] %v2054_v22  ;;  %v2311_v33 = vrot.slane %v2301_v2, 4 }
 0x207   :  { %v1917_v16 = vsel %vm14652_vm11, %v1889_v18, %v1916_v0  ;;  %v2166_v48 = vpop.permute.xlu0 %2165  ;;  %4359 = vmatpush1.bf16.msra.mxu1 %v9140_v46  ;;  %v3444_v29 = vld [vmem:[#allocation2 + $0x1b0] sm:$0xff]  ;;  %vm14658_vm11 = vmmov %vm14655_vm5 }
 0x208   :  { %1933 = vst [vmem:[#allocation2 + $0x1b8] sm:$0xcc] %v1917_v16  ;;  %v2175_v57 = vrot.slane %v2166_v48, 4  ;;  %v2326_v27 = vsel %vm250_vm0, %v2310_v60, %v2311_v33 }
 0x209   :  { %v2327_v62 = vsel %vm2314_vm13, %v11881_v17, %v2326_v27  ;;  %v2576_v41 = vpop.permute.xlu1 %2575 }
 0x20a   :  { %v2191_v38 = vsel %vm250_vm0, %v2174_v15, %v2175_v57  ;;  %2344 = vst [vmem:[#allocation2 + $0x230] sm:$0x33] %v2327_v62  ;;  %v2586_v52 = vrot.slane %v2576_v41, 4 }
 0x20b   :  { %v2192_v20 = vsel %vm14653_vm8, %v2164_v23, %v2191_v38  ;;  %v2439_v18 = vpop.permute.xlu0 %2438  ;;  %v3452_v61 = vld [vmem:[#allocation2 + $0x1f0] sm:$0xff]  ;;  %vm14654_vm8 = vcmask 244736  }
 0x20c   :  { %2208 = vst [vmem:[#allocation2 + $0x1f8] sm:$0xcc] %v2192_v20  ;;  %v2449_v28 = vrot.slane %v2439_v18, 4  ;;  %v9154_v24 = vcombine.low %v3444_v29, %v3452_v61  ;;  %v9155_v47 = vcombine.high %v3444_v29, %v3452_v61  ;;  %v2601_v60 = vsel %vm250_vm0, %v2585_v34, %v2586_v52 }
 0x20d   :  { %v2602_v23 = vsel %vm2589_vm14, %v11894_v37, %v2601_v60  ;;  %v2303_v43 = vpop.permute.xlu1 %2302  ;;  %v14659_v60 = vrot.slane %v11930_v19, 4 }
 0x20e   :  { %v2464_v17 = vsel %vm250_vm0, %v2448_v59, %v2449_v28  ;;  %4319 = vmatprep.subr.bf16.mxu0 %v9155_v47  ;;  %2619 = vst [vmem:[#allocation2 + $0x270] sm:$0x33] %v2602_v23  ;;  %v2312_v12 = vrot.slane %v2303_v43, 4 }
 0x20f   :  { %v2465_v15 = vsel %vm14654_vm8, %v11896_v1, %v2464_v17  ;;  %v2714_v36 = vpop.permute.xlu0 %2713  ;;  %4320 = vmatpush1.bf16.msra.mxu0 %v9154_v24  ;;  %v3445_v21 = vld [vmem:[#allocation2 + $0x1b8] sm:$0xff] }
 0x210   :  { %2482 = vst [vmem:[#allocation2 + $0x230] sm:$0xcc] %v2465_v15  ;;  %v2724_v39 = vrot.slane %v2714_v36, 4  ;;  %v2328_v34 = vsel %vm250_vm0, %v2311_v33, %v2312_v12  ;;  %v14657_v33 = vrot.slane %v11932_v51, 4 }
 0x211   :  { %v2329_v56 = vsel %vm2314_vm13, %v2301_v2, %v2328_v34  ;;  %v2578_v63 = vpop.permute.xlu1 %2577  ;;  %vm14656_vm13 = vmmov %vm14654_vm8  ;;  %vm14676_vm8 = vcmask 785408  }
 0x212   :  { %v2739_v59 = vsel %vm250_vm0, %v2723_v55, %v2724_v39  ;;  %2345 = vst [vmem:[#allocation2 + $0x238] sm:$0x33] %v2329_v56  ;;  %v2587_v7 = vrot.slane %v2578_v63, 4 }
 0x213   :  { %v2740_v37 = vsel %vm14655_vm5, %v11908_v14, %v2739_v59  ;;  %v2441_v1 = vpop.permute.xlu0 %2440  ;;  %v3453_v42 = vld [vmem:[#allocation2 + $0x1f8] sm:$0xff]  ;;  %vm14677_vm5 = vmmov %vm14676_vm8 }
 0x214   :  { %2757 = vst [vmem:[#allocation2 + $0x270] sm:$0xcc] %v2740_v37  ;;  %v2450_v10 = vrot.slane %v2441_v1, 4  ;;  %v9156_v46 = vcombine.low %v3445_v21, %v3453_v42  ;;  %v9157_v25 = vcombine.high %v3445_v21, %v3453_v42  ;;  %v2603_v40 = vsel %vm250_vm0, %v2586_v52, %v2587_v7 }
 0x215   :  { %v2604_v55 = vsel %vm2589_vm14, %v2576_v41, %v2603_v40  ;;  %v2936_v14 = vpop.permute.xlu1 %2935  ;;  %v14660_v7 = vrot.slane %v11966_v58, 4  ;;  %vm6834_vm14 = vcmask 900096  }
 0x216   :  { %v2466_v0 = vsel %vm250_vm0, %v2449_v28, %v2450_v10  ;;  %4360 = vmatprep.subr.bf16.mxu1 %v9157_v25  ;;  %2620 = vst [vmem:[#allocation2 + $0x278] sm:$0x33] %v2604_v55  ;;  %v2946_v2 = vrot.slane %v2936_v14, 4 }
 0x217   :  { %v2467_v22 = vsel %vm14656_vm13, %v2439_v18, %v2466_v0  ;;  %v2716_v16 = vpop.permute.xlu0 %2715  ;;  %4361 = vmatpush1.bf16.msra.mxu1 %v9156_v46  ;;  %v3460_v18 = vld [vmem:[#allocation2 + $0x230] sm:$0xff] }
 0x218   :  { %2483 = vst [vmem:[#allocation2 + $0x238] sm:$0xcc] %v2467_v22  ;;  %v2725_v48 = vrot.slane %v2716_v16, 4  ;;  %v2960_v57 = vsel %vm250_vm0, %v14657_v33, %v2946_v2 }
 0x219   :  { %v2961_v38 = vsel %vm252_vm2, %v11932_v51, %v2960_v57  ;;  %v3209_v20 = vpop.permute.xlu1 %3208 }
 0x21a   :  { %v2741_v27 = vsel %vm250_vm0, %v2724_v39, %v2725_v48  ;;  %2978 = vst [vmem:[#allocation2 + $0x2b0] sm:$0xcc] %v2961_v38  ;;  %v3219_v61 = vrot.slane %v3209_v20, 4 }
 0x21b   :  { %v2742_v62 = vsel %vm14658_vm11, %v2714_v36, %v2741_v27  ;;  %v3072_v41 = vpop.permute.xlu0 %3071  ;;  %v3468_v29 = vld [vmem:[#allocation2 + $0x270] sm:$0xff]  ;;  %vm14679_vm11 = vcmask 752640  }
 0x21c   :  { %2758 = vst [vmem:[#allocation2 + $0x278] sm:$0xcc] %v2742_v62  ;;  %v3082_v52 = vrot.slane %v3072_v41, 4  ;;  %v9170_v28 = vcombine.low %v3460_v18, %v3468_v29  ;;  %v9171_v24 = vcombine.high %v3460_v18, %v3468_v29  ;;  %v3233_v47 = vsel %vm250_vm0, %v3218_v4, %v3219_v61 }
 0x21d   :  { %v3234_v17 = vsel %vm527_vm3, %v11944_v49, %v3233_v47  ;;  %v3074_v15 = vpop.permute.xlu1 %3073  ;;  %v4421_v47 = vsub.s32 5, %v10585_v5 }
 0x21e   :  { %v3096_v51 = vsel %vm250_vm0, %v14659_v60, %v3082_v52  ;;  %4321 = vmatprep.subr.bf16.mxu0 %v9171_v24  ;;  %3251 = vst [vmem:[#allocation2 + $0x2f0] sm:$0xcc] %v3234_v17  ;;  %v3083_v36 = vrot.slane %v3074_v15, 4  ;;  %v4417_v24 = vsub.s32 4, %v10585_v5 }
 0x21f   :  { %v3097_v23 = vsel %vm389_vm1, %v11930_v19, %v3096_v51  ;;  %v2938_v43 = vpop.permute.xlu0 %2937  ;;  %4322 = vmatpush1.bf16.msra.mxu0 %v9170_v28  ;;  %v3461_v37 = vld [vmem:[#allocation2 + $0x238] sm:$0xff]  ;;  %v12208_v51 = vrot.slane %v12048_v32, %v4421_v47 }
 0x220   :  { %3114 = vst [vmem:[#allocation2 + $0x2f0] sm:$0x33] %v3097_v23  ;;  %v2947_v12 = vrot.slane %v2938_v43, 4  ;;  %v3098_v4 = vsel %vm250_vm0, %v3082_v52, %v3083_v36  ;;  %v12205_v60 = vrot.slane %v12048_v32, %v4417_v24  ;;  %v4425_v43 = vsub.s32 6, %v10585_v5 }
 0x221   :  { %v3099_v34 = vsel %vm389_vm1, %v3072_v41, %v3098_v4  ;;  %v3345_v56 = vpop.permute.xlu1 %3344  ;;  %v3476_v55 = vld [vmem:[#allocation2 + $0x2b0] sm:$0xff] }
 0x222   :  { %v2962_v39 = vsel %vm250_vm0, %v2946_v2, %v2947_v12  ;;  %3115 = vst [vmem:[#allocation2 + $0x2f8] sm:$0x33] %v3099_v34  ;;  %v3355_v19 = vrot.slane %v3345_v56, 4  ;;  %v4429_v12 = vsub.s32 7, %v10585_v5  ;;  %v8002_v5 = vld [vmem:[%s14437_s10 + $0x2c0] sm:$0xff] }
 0x223   :  { %v2963_v59 = vsel %vm252_vm2, %v2936_v14, %v2962_v39  ;;  %v3211_v49 = vpop.permute.xlu0 %3210  ;;  %v3469_v63 = vld [vmem:[#allocation2 + $0x278] sm:$0xff] }
 0x224   :  { %2979 = vst [vmem:[#allocation2 + $0x2b8] sm:$0xcc] %v2963_v59  ;;  %v3220_v1 = vrot.slane %v3211_v49, 4  ;;  %v9172_v21 = vcombine.low %v3461_v37, %v3469_v63  ;;  %v9173_v42 = vcombine.high %v3461_v37, %v3469_v63  ;;  %v3369_v10 = vsel %vm250_vm0, %v14660_v7, %v3355_v19 }
 0x225   :  { %v3370_v25 = vsel %vm664_vm4, %v11966_v58, %v3369_v10  ;;  %v12227_v37 = vrot.slane %v12048_v32, %v4429_v12 }
 0x226   :  { %v3235_v46 = vsel %vm250_vm0, %v3219_v61, %v3220_v1  ;;  %4362 = vmatprep.subr.bf16.mxu1 %v9173_v42  ;;  %3387 = vst [vmem:[#allocation2 + $0x330] sm:$0x33] %v3370_v25 }
 0x227   :  { %v3236_v40 = vsel %vm527_vm3, %v3209_v20, %v3235_v46  ;;  %v3347_v0 = vpop.permute.xlu0 %3346  ;;  %4363 = vmatpush1.bf16.msra.mxu1 %v9172_v21  ;;  %v3484_v22 = vld [vmem:[#allocation2 + $0x2f0] sm:$0xff] }
 0x228   :  { %3252 = vst [vmem:[#allocation2 + $0x2f8] sm:$0xcc] %v3236_v40  ;;  %v3356_v14 = vrot.slane %v3347_v0, 4  ;;  %v9186_v16 = vcombine.low %v3476_v55, %v3484_v22  ;;  %v9187_v2 = vcombine.high %v3476_v55, %v3484_v22 }
 0x22a   :  { %v3371_v48 = vsel %vm250_vm0, %v3355_v19, %v3356_v14  ;;  %4323 = vmatprep.subr.bf16.mxu0 %v9187_v2 }
 0x22b   :  { %v3372_v33 = vsel %vm664_vm4, %v3345_v56, %v3371_v48  ;;  %4324 = vmatpush1.bf16.msra.mxu0 %v9186_v16  ;;  %v3477_v58 = vld [vmem:[#allocation2 + $0x2b8] sm:$0xff]  ;;  %v12224_v56 = vrot.slane %v12048_v32, %v4425_v43  ;;  %v4396_v32 = vld [vmem:[%s14431_s4 + $0x8] sm:$0xff]  ;;  %s10477_s4 = smov 79  }
 0x22c   :  { %3388 = vst [vmem:[#allocation2 + $0x338] sm:$0x33] %v3372_v33  ;;  %v12243_v40 = vrot.slane %v4396_v32, %v12039_v13  ;;  %v12246_v0 = vrot.slane %v4396_v32, %v12051_v50 }
 0x22d   :  { %v3492_v57 = vld [vmem:[#allocation2 + $0x330] sm:$0x33] }
 0x22e   :  { %v9203_v38 = vcombine.high %v3492_v57, %v3492_v57  ;;  %v9202_v41 = vcombine.low %v3492_v57, %v3492_v57 }
 0x22f   :  { %v3485_v27 = vld [vmem:[#allocation2 + $0x2f8] sm:$0xff] }
 0x230   :  { %v9188_v62 = vcombine.low %v3477_v58, %v3485_v27  ;;  %v9189_v20 = vcombine.high %v3477_v58, %v3485_v27  ;;  %9218 = vmatprep.subr.msk.bf16.mxu0 %vm4018_vm12, %v9203_v38  ;;  %v4056_v18 = vsel %vm4018_vm12, %v9202_v41, 0  ;;  %v12259_v27 = vrot.slane %v4396_v32, %v12081_v6 }
 0x231   :  { %4326 = vmatpush1.bf16.msra.mxu0 %v4056_v18 }
 0x232   :  { %4364 = vmatprep.subr.bf16.mxu1 %v9189_v20 }
 0x233   :  { %4365 = vmatpush1.bf16.msra.mxu1 %v9188_v62  ;;  %v3493_v29 = vld [vmem:[#allocation2 + $0x338] sm:$0x33]  ;;  %v12262_v62 = vrot.slane %v4396_v32, %v12086_v45 }
 0x234   :  { %v9205_v61 = vcombine.high %v3493_v29, %v3493_v29  ;;  %v9204_v52 = vcombine.low %v3493_v29, %v3493_v29  ;;  %9219 = vmatmul.mubr.msk.bf16.vlgmr.msra.gmra.mrb[12].mxu0 %vm4014_vm15, %v11994_v30 }
 0x236   :  { %9220 = vmatprep.subr.msk.bf16.mxu1 %vm4018_vm12, %v9205_v61  ;;  %v4062_v28 = vsel %vm4018_vm12, %v9204_v52, 0  ;;  %vm6858_vm12 = vcmask 891904  }
 0x237   :  { %4367 = vmatpush1.bf16.msra.mxu1 %v4062_v28 }
 0x23a   :  { %9221 = vmatmul.mubr.msk.bf16.vlgmr.msra.gmra.mrb[12].mxu1 %vm4014_vm15, %v11994_v30  ;;  %vm14675_vm15 = vcmask 760832  }
 0x23b   :  { %vm14678_vm13 = vmmov %vm14675_vm15 }
 0x250   :  { %v12210_v17 = vpop.f32.mrb[4].mxu0 }
 0x251   :  { %v4483_v23 = vmul.f32 %v12205_v60, %v12210_v17  ;;  %v12214_v15 = vpop.f32.mrb[5].mxu0 }
 0x252   :  { %v4484_v30 = vmul.f32 %v12208_v51, %v12214_v15  ;;  %v4187_v36 = vpop.f32.mrb[6].mxu0 }
 0x253   :  { %v4503_v4 = vsel %vm4495_vm9, %v4483_v23, 0.0  ;;  %v4188_v39 = vpop.f32.mrb[7].mxu0 }
 0x254   :  { %v4504_v34 = vadd.f32 %v4503_v4, %v12130_v11  ;;  %v4505_v59 = vsel %vm4495_vm9, %v4484_v30, 0.0  ;;  %v12274_v4 = vrot.slane %v4396_v32, %v4417_v24  ;;  %v12276_v39 = vrot.slane %v4396_v32, %v4421_v47 }
 0x256   :  { %v4506_v49 = vadd.f32 %v4505_v59, %v4504_v34 }
 0x258   :  { %v12229_v63 = vpop.f32.mrb[4].mxu1 }
 0x259   :  { %v4485_v19 = vmul.f32 %v12224_v56, %v12229_v63  ;;  %v12233_v1 = vpop.f32.mrb[5].mxu1 }
 0x25a   :  { %v4486_v21 = vmul.f32 %v12227_v37, %v12233_v1  ;;  %v4228_v11 = vpop.f32.mrb[6].mxu1 }
 0x25b   :  { %v4507_v42 = vsel %vm4495_vm9, %v4485_v19, 0.0  ;;  %v4229_v7 = vpop.f32.mrb[7].mxu1  ;;  %v12284_v19 = vrot.slane %v4396_v32, %v4425_v43 }
 0x25c   :  { %v4508_v10 = vadd.f32 %v4507_v42, %v4506_v49  ;;  %v4509_v46 = vsel %vm4495_vm9, %v4486_v21, 0.0  ;;  %v12288_v42 = vrot.slane %v4396_v32, %v4429_v12 }
 0x25e   :  { %v4510_v25 = vadd.f32 %v4509_v46, %v4508_v10 }
 0x2ac   :  { %v12248_v55 = vpop.f32.mrb[8].mxu0 }
 0x2ad   :  { %v4487_v22 = vmul.f32 %v12243_v40, %v12248_v55  ;;  %v12252_v14 = vpop.f32.mrb[9].mxu0 }
 0x2ae   :  { %v4488_v16 = vmul.f32 %v12246_v0, %v12252_v14  ;;  %v4269_v2 = vpop.f32.mrb[10].mxu0 }
 0x2af   :  { %v4511_v48 = vsel %vm4495_vm9, %v4487_v22, 0.0  ;;  %v4270_v33 = vpop.f32.mrb[11].mxu0 }
 0x2b0   :  { %v4512_v57 = vadd.f32 %v4511_v48, %v4510_v25  ;;  %v4513_v58 = vsel %vm4495_vm9, %v4488_v16, 0.0 }
 0x2b2   :  { %v4514_v38 = vadd.f32 %v4513_v58, %v4512_v57 }
 0x2b4   :  { %v12264_v20 = vpop.f32.mrb[8].mxu1 }
 0x2b5   :  { %v4489_v41 = vmul.f32 %v12259_v27, %v12264_v20  ;;  %v12268_v18 = vpop.f32.mrb[9].mxu1 }
 0x2b6   :  { %v4490_v29 = vmul.f32 %v12262_v62, %v12268_v18  ;;  %v4310_v61 = vpop.f32.mrb[10].mxu1 }
 0x2b7   :  { %v4515_v52 = vsel %vm4495_vm9, %v4489_v41, 0.0  ;;  %v4311_v28 = vpop.f32.mrb[11].mxu1 }
 0x2b8   :  { %v4516_v23 = vadd.f32 %v4515_v52, %v4514_v38  ;;  %v4517_v30 = vsel %vm4495_vm9, %v4490_v29, 0.0 }
 0x2ba   :  { %v4518_v36 = vadd.f32 %v4517_v30, %v4516_v23 }
 0x307   :  { %v12278_v34 = vpop.f32.mrb[12].mxu0 }
 0x308   :  { %v4491_v59 = vmul.f32 %v12274_v4, %v12278_v34  ;;  %v12282_v49 = vpop.f32.mrb[13].mxu0 }
 0x309   :  { %v4492_v21 = vmul.f32 %v12276_v39, %v12282_v49  ;;  %v4351_v11 = vpop.f32.mrb[14].mxu0 }
 0x30a   :  { %v4519_v24 = vsel %vm4495_vm9, %v4491_v59, 0.0  ;;  %v4352_v7 = vpop.f32.mrb[15].mxu0 }
 0x30b   :  { %v4520_v47 = vadd.f32 %v4519_v24, %v4518_v36  ;;  %v4521_v10 = vsel %vm4495_vm9, %v4492_v21, 0.0 }
 0x30d   :  { %v12292_v46 = vpop.f32.mrb[12].mxu1  ;;  %v4522_v43 = vadd.f32 %v4521_v10, %v4520_v47 }
 0x30e   :  { %v4493_v25 = vmul.f32 %v12284_v19, %v12292_v46  ;;  %v12296_v22 = vpop.f32.mrb[13].mxu1 }
 0x30f   :  { %v4494_v16 = vmul.f32 %v12288_v42, %v12296_v22  ;;  %v4392_v2 = vpop.f32.mrb[14].mxu1 }
 0x310   :  { %v4523_v12 = vsel %vm4495_vm9, %v4493_v25, 0.0  ;;  %v4393_v32 = vpop.f32.mrb[15].mxu1 }
 0x311   :  { %v4524_v48 = vadd.f32 %v4523_v12, %v4522_v43  ;;  %v4525_v33 = vsel %vm4495_vm9, %v4494_v16, 0.0 }
 0x313   :  { %v4526_v57 = vadd.f32 %v4525_v33, %v4524_v48 }
 0x315   :  { %4527 = vadd.xlane.f32.xlu1 %v4526_v57 }
 0x3a2   :  { %v4528_v58 = vpop.xlane.xlu1 %4527 }
 0x3a3   :  { %v12302_v38 = vmul.f32 0.0006377551, %v4528_v58 }
 0x3a5   :  { %v4530_v41 = vsub.f32 %v12068_v53, %v12302_v38  ;;  %v4531_v29 = vsub.f32 %v12074_v44, %v12302_v38  ;;  %v4532_v61 = vsub.f32 %v12109_v9, %v12302_v38  ;;  %v4533_v52 = vsub.f32 %v12117_v31, %v12302_v38 }
 0x3a6   :  { %v4534_v30 = vsub.f32 %v12210_v17, %v12302_v38  ;;  %v4535_v59 = vsub.f32 %v12214_v15, %v12302_v38  ;;  %v4536_v7 = vsub.f32 %v12229_v63, %v12302_v38  ;;  %v4539_v48 = vsub.f32 %v12252_v14, %v12302_v38 }
 0x3a7   :  { %v4546_v28 = vmul.f32 %v4530_v41, %v12059_v26  ;;  %v4547_v23 = vmul.f32 %v4531_v29, %v12066_v3  ;;  %v4548_v36 = vmul.f32 %v4532_v61, %v12097_v35  ;;  %v4549_v21 = vmul.f32 %v4533_v52, %v12101_v54 }
 0x3a8   :  { %v4550_v47 = vmul.f32 %v4534_v30, %v12205_v60  ;;  %v4537_v3 = vsub.f32 %v12233_v1, %v12302_v38  ;;  %v4551_v10 = vmul.f32 %v4535_v59, %v12208_v51  ;;  %v4538_v54 = vsub.f32 %v12248_v55, %v12302_v38 }
 0x3a9   :  { %v4562_v11 = vmul.f32 %v4546_v28, %v4546_v28  ;;  %v4563_v24 = vmul.f32 %v4547_v23, %v4547_v23  ;;  %v4564_v26 = vmul.f32 %v4548_v36, %v4548_v36  ;;  %v4565_v25 = vmul.f32 %v4549_v21, %v4549_v21 }
 0x3aa   :  { %v4552_v2 = vmul.f32 %v4536_v7, %v12224_v56  ;;  %v4566_v12 = vmul.f32 %v4550_v47, %v4550_v47  ;;  %v4553_v51 = vmul.f32 %v4537_v3, %v12227_v37  ;;  %v4567_v33 = vmul.f32 %v4551_v10, %v4551_v10 }
 0x3ab   :  { %v4578_v35 = vsel %vm4495_vm9, %v4562_v11, 0.0  ;;  %v4579_v43 = vsel %vm4495_vm9, %v4563_v24, 0.0  ;;  %v4581_v60 = vsel %vm4495_vm9, %v4564_v26, 0.0  ;;  %v4583_v57 = vsel %vm4495_vm9, %v4565_v25, 0.0 }
 0x3ac   :  { %v4580_v16 = vadd.f32 %v4579_v43, %v4578_v35  ;;  %v4540_v41 = vsub.f32 %v12264_v20, %v12302_v38  ;;  %v4554_v29 = vmul.f32 %v4538_v54, %v12243_v40  ;;  %v4568_v61 = vmul.f32 %v4552_v2, %v4552_v2 }
 0x3ad   :  { %v4585_v56 = vsel %vm4495_vm9, %v4566_v12, 0.0  ;;  %v4541_v28 = vsub.f32 %v12268_v18, %v12302_v38  ;;  %v4555_v23 = vmul.f32 %v4539_v48, %v12246_v0  ;;  %v4569_v30 = vmul.f32 %v4553_v51, %v4553_v51 }
 0x3ae   :  { %v4582_v32 = vadd.f32 %v4581_v60, %v4580_v16  ;;  %v4587_v37 = vsel %vm4495_vm9, %v4567_v33, 0.0  ;;  %v4542_v59 = vsub.f32 %v12278_v34, %v12302_v38  ;;  %v4556_v21 = vmul.f32 %v4540_v41, %v12259_v27 }
 0x3af   :  { %v4570_v11 = vmul.f32 %v4554_v29, %v4554_v29  ;;  %v4589_v40 = vsel %vm4495_vm9, %v4568_v61, 0.0  ;;  %v4543_v7 = vsub.f32 %v12282_v49, %v12302_v38  ;;  %v4557_v47 = vmul.f32 %v4541_v28, %v12262_v62 }
 0x3b0   :  { %v4584_v58 = vadd.f32 %v4583_v57, %v4582_v32  ;;  %v4571_v26 = vmul.f32 %v4555_v23, %v4555_v23  ;;  %v4591_v0 = vsel %vm4495_vm9, %v4569_v30, 0.0  ;;  %v4544_v10 = vsub.f32 %v12292_v46, %v12302_v38 }
 0x3b1   :  { %v4558_v25 = vmul.f32 %v4542_v59, %v12274_v4  ;;  %v4572_v35 = vmul.f32 %v4556_v21, %v4556_v21  ;;  %v4593_v27 = vsel %vm4495_vm9, %v4570_v11, 0.0  ;;  %v4545_v16 = vsub.f32 %v12296_v22, %v12302_v38  ;;  %v10167_v59 = vld [vmem:[%s14432_s5 + $0x10] ss:$8 sps:$4 sm:$0xff]   ;;  %v10172_v21 = vld [vmem:[%s14432_s5 + $0x24] ss:$8 sps:$4 sm:$0xff]  }
 0x3b2   :  { %v4586_v52 = vadd.f32 %v4585_v56, %v4584_v58  ;;  %v4559_v54 = vmul.f32 %v4543_v7, %v12276_v39  ;;  %v4573_v2 = vmul.f32 %v4557_v47, %v4557_v47  ;;  %v4595_v62 = vsel %vm4495_vm9, %v4571_v26, 0.0  ;;  %v10170_v11 = vld [vmem:[%s14432_s5 + $0x20] ss:$8 sps:$4 sm:$0xff]   ;;  %v10178_v7 = vld [vmem:[%s14432_s5 + $0x44] ss:$8 sps:$4 sm:$0xff]  }
 0x3b3   :  { %v4560_v60 = vmul.f32 %v4544_v10, %v12284_v19  ;;  %v4574_v32 = vmul.f32 %v4558_v25, %v4558_v25  ;;  %v4597_v48 = vsel %vm4495_vm9, %v4572_v35, 0.0  ;;  %v4561_v4 = vmul.f32 %v4545_v16, %v12288_v42  ;;  %v10164_v42 = vld [vmem:[%s14432_s5] ss:$8 sps:$4 sm:$0xff]   ;;  %v10181_v26 = vld [vmem:[%s14432_s5 + $0x54] ss:$8 sps:$4 sm:$0xff]  }
 0x3b4   :  { %v4588_v36 = vadd.f32 %v4587_v37, %v4586_v52  ;;  %v4575_v33 = vmul.f32 %v4559_v54, %v4559_v54  ;;  %v4599_v57 = vsel %vm4495_vm9, %v4573_v2, 0.0  ;;  %v10166_v37 = vld [vmem:[%s14432_s5 + $0x4] ss:$8 sps:$4 sm:$0xff]   ;;  %v10176_v47 = vld [vmem:[%s14432_s5 + $0x40] ss:$8 sps:$4 sm:$0xff]  }
 0x3b5   :  { %v4576_v41 = vmul.f32 %v4560_v60, %v4560_v60  ;;  %v4601_v29 = vsel %vm4495_vm9, %v4574_v32, 0.0  ;;  %v4577_v61 = vmul.f32 %v4561_v4, %v4561_v4  ;;  %5454 = vmatprep.subr.bf16.mxu0 %v10166_v37  ;;  %6403 = vmatprep.subr.bf16.mxu1 %v10166_v37  ;;  %v10182_v10 = vld [vmem:[%s14432_s5 + $0x60] ss:$8 sps:$4 sm:$0xff]   ;;  %v10187_v25 = vld [vmem:[%s14432_s5 + $0x74] ss:$8 sps:$4 sm:$0xff]  }
 0x3b6   :  { %v4590_v24 = vadd.f32 %v4589_v40, %v4588_v36  ;;  %v4603_v56 = vsel %vm4495_vm9, %v4575_v33, 0.0  ;;  %v10169_v36 = vld [vmem:[%s14432_s5 + $0x14] ss:$8 sps:$4 sm:$0xff]   ;;  %5455 = vmatpush1.bf16.msra.mxu0 %v10164_v42  ;;  %6404 = vmatpush1.bf16.msra.mxu1 %v10164_v42  ;;  %v10185_v35 = vld [vmem:[%s14432_s5 + $0x70] ss:$8 sps:$4 sm:$0xff]  }
 0x3b7   :  { %v4605_v19 = vsel %vm4495_vm9, %v4576_v41, 0.0  ;;  %v4607_v23 = vsel %vm4495_vm9, %v4577_v61, 0.0  ;;  %5456 = vmatprep.subr.bf16.mxu0 %v10169_v36  ;;  %6405 = vmatprep.subr.bf16.mxu1 %v10169_v36  ;;  %v10175_v40 = vld [vmem:[%s14432_s5 + $0x34] ss:$8 sps:$4 sm:$0xff]   ;;  %v10191_v54 = vld [vmem:[%s14432_s5 + $0x90] ss:$8 sps:$4 sm:$0xff]  }
 0x3b8   :  { %v4592_v3 = vadd.f32 %v4591_v0, %v4590_v24  ;;  %v10173_v24 = vld [vmem:[%s14432_s5 + $0x30] ss:$8 sps:$4 sm:$0xff]   ;;  %v10193_v16 = vld [vmem:[%s14432_s5 + $0x94] ss:$8 sps:$4 sm:$0xff]   ;;  %v10196_v2 = vld [vmem:[%s14432_s5 + $0xa4] ss:$8 sps:$4 sm:$0xff]  }
 0x3b9   :  { %v10179_v0 = vld [vmem:[%s14432_s5 + $0x50] ss:$8 sps:$4 sm:$0xff]   ;;  %v10202_v32 = vld [vmem:[%s14432_s5 + $0xc4] ss:$8 sps:$4 sm:$0xff]   ;;  %vm6897_vm9 = vcmask 883712  }
 0x3ba   :  { %v4594_v43 = vadd.f32 %v4593_v27, %v4592_v3  ;;  %5457 = vmatpush1.bf16.msra.mxu0 %v10167_v59  ;;  %6406 = vmatpush1.bf16.msra.mxu1 %v10167_v59  ;;  %v10184_v3 = vld [vmem:[%s14432_s5 + $0x64] ss:$8 sps:$4 sm:$0xff]   ;;  %v10197_v60 = vld [vmem:[%s14432_s5 + $0xb0] ss:$8 sps:$4 sm:$0xff]  }
 0x3bb   :  { %5458 = vmatprep.subr.bf16.mxu0 %v10172_v21  ;;  %6407 = vmatprep.subr.bf16.mxu1 %v10172_v21  ;;  %v10190_v27 = vld [vmem:[%s14432_s5 + $0x84] ss:$8 sps:$4 sm:$0xff]   ;;  %v10203_v4 = vld [vmem:[%s14432_s5 + $0xd0] ss:$8 sps:$4 sm:$0xff]  }
 0x3bc   :  { %v4596_v12 = vadd.f32 %v4595_v62, %v4594_v43  ;;  %v10188_v43 = vld [vmem:[%s14432_s5 + $0x80] ss:$8 sps:$4 sm:$0xff]  }
 0x3bd   :  { %v10194_v62 = vld [vmem:[%s14432_s5 + $0xa0] ss:$8 sps:$4 sm:$0xff]  }
 0x3be   :  { %v4598_v51 = vadd.f32 %v4597_v48, %v4596_v12  ;;  %5459 = vmatpush1.bf16.msra.mxu0 %v10170_v11  ;;  %6408 = vmatpush1.bf16.msra.mxu1 %v10170_v11  ;;  %v10199_v12 = vld [vmem:[%s14432_s5 + $0xb4] ss:$8 sps:$4 sm:$0xff]   ;;  %v10200_v48 = vld [vmem:[%s14432_s5 + $0xc0] ss:$8 sps:$4 sm:$0xff]  }
 0x3bf   :  { %5460 = vmatprep.subr.bf16.mxu0 %v10175_v40  ;;  %6409 = vmatprep.subr.bf16.mxu1 %v10175_v40  ;;  %v4612_v41 = vld [vmem:[%s14661_s20] sm:$0x3f]  ;;  %s10474_s20 = smov 109  }
 0x3c0   :  { %v4600_v58 = vadd.f32 %v4599_v57, %v4598_v51  ;;  %v10205_v51 = vld [vmem:[%s14432_s5 + $0xd4] ss:$8 sps:$4 sm:$0xff]   ;;  %v4616_v61 = vld [vmem:[%s14430_s3] sm:$0x3f]  ;;  %s10472_s3 = smov 111  }
 0x3c2   :  { %v4602_v39 = vadd.f32 %v4601_v29, %v4600_v58  ;;  %5461 = vmatpush1.bf16.msra.mxu0 %v10173_v24  ;;  %6410 = vmatpush1.bf16.msra.mxu1 %v10173_v24 }
 0x3c3   :  { %5462 = vmatprep.subr.bf16.mxu0 %v10178_v7  ;;  %6411 = vmatprep.subr.bf16.mxu1 %v10178_v7 }
 0x3c4   :  { %v4604_v52 = vadd.f32 %v4603_v56, %v4602_v39  ;;  %v10206_v56 = vld [vmem:[%s14432_s5 + $0xe0] ss:$8 sps:$4 sm:$0xff]  }
 0x3c6   :  { %v4606_v28 = vadd.f32 %v4605_v19, %v4604_v52  ;;  %5463 = vmatpush1.bf16.msra.mxu0 %v10176_v47  ;;  %6412 = vmatpush1.bf16.msra.mxu1 %v10176_v47  ;;  %v10208_v52 = vld [vmem:[%s14432_s5 + $0xe4] ss:$8 sps:$4 sm:$0xff]  }
 0x3c7   :  { %5464 = vmatprep.subr.bf16.mxu0 %v10181_v26  ;;  %6413 = vmatprep.subr.bf16.mxu1 %v10181_v26 }
 0x3c8   :  { %v4608_v30 = vadd.f32 %v4607_v23, %v4606_v28  ;;  %v10209_v23 = vld [vmem:[%s14432_s5 + $0xf0] ss:$8 sps:$4 sm:$0xff]  }
 0x3ca   :  { %4609 = vadd.xlane.f32.xlu0 %v4608_v30  ;;  %5465 = vmatpush1.bf16.msra.mxu0 %v10179_v0  ;;  %v10211_v30 = vld [vmem:[%s14432_s5 + $0xf4] ss:$8 sps:$4 sm:$0xff]  }
 0x3cb   :  { %6414 = vmatpush1.bf16.msra.mxu1 %v10179_v0  ;;  %5466 = vmatprep.subr.bf16.mxu0 %v10184_v3 }
 0x3cc   :  { %6415 = vmatprep.subr.bf16.mxu1 %v10184_v3 }
 0x3ce   :  { %5467 = vmatpush1.bf16.msra.mxu0 %v10182_v10 }
 0x3cf   :  { %6416 = vmatpush1.bf16.msra.mxu1 %v10182_v10  ;;  %5468 = vmatprep.subr.bf16.mxu0 %v10187_v25 }
 0x3d0   :  { %6417 = vmatprep.subr.bf16.mxu1 %v10187_v25 }
 0x3d2   :  { %5469 = vmatpush1.bf16.msra.mxu0 %v10185_v35 }
 0x3d3   :  { %6418 = vmatpush1.bf16.msra.mxu1 %v10185_v35  ;;  %5470 = vmatprep.subr.bf16.mxu0 %v10190_v27 }
 0x3d4   :  { %6419 = vmatprep.subr.bf16.mxu1 %v10190_v27 }
 0x3d6   :  { %5471 = vmatpush1.bf16.msra.mxu0 %v10188_v43 }
 0x3d7   :  { %6420 = vmatpush1.bf16.msra.mxu1 %v10188_v43  ;;  %5472 = vmatprep.subr.bf16.mxu0 %v10193_v16 }
 0x3d8   :  { %6421 = vmatprep.subr.bf16.mxu1 %v10193_v16 }
 0x3da   :  { %5473 = vmatpush1.bf16.msra.mxu0 %v10191_v54 }
 0x3db   :  { %6422 = vmatpush1.bf16.msra.mxu1 %v10191_v54  ;;  %5474 = vmatprep.subr.bf16.mxu0 %v10196_v2  ;;  %v10217_v54 = vld [vmem:[%s14432_s5 + $0x114] ss:$8 sps:$4 sm:$0xff]  }
 0x3dc   :  { %6423 = vmatprep.subr.bf16.mxu1 %v10196_v2 }
 0x3de   :  { %5475 = vmatpush1.bf16.msra.mxu0 %v10194_v62 }
 0x3df   :  { %6424 = vmatpush1.bf16.msra.mxu1 %v10194_v62  ;;  %5476 = vmatprep.subr.bf16.mxu0 %v10199_v12 }
 0x3e0   :  { %6425 = vmatprep.subr.bf16.mxu1 %v10199_v12  ;;  %v10215_v12 = vld [vmem:[%s14432_s5 + $0x110] ss:$8 sps:$4 sm:$0xff]  }
 0x3e2   :  { %5477 = vmatpush1.bf16.msra.mxu0 %v10197_v60 }
 0x3e3   :  { %6426 = vmatpush1.bf16.msra.mxu1 %v10197_v60  ;;  %5478 = vmatprep.subr.bf16.mxu0 %v10202_v32  ;;  %v10220_v60 = vld [vmem:[%s14432_s5 + $0x124] ss:$8 sps:$4 sm:$0xff]  }
 0x3e4   :  { %6427 = vmatprep.subr.bf16.mxu1 %v10202_v32  ;;  %v10218_v32 = vld [vmem:[%s14432_s5 + $0x120] ss:$8 sps:$4 sm:$0xff]  }
 0x3e6   :  { %5479 = vmatpush1.bf16.msra.mxu0 %v10200_v48 }
 0x3e7   :  { %6428 = vmatpush1.bf16.msra.mxu1 %v10200_v48  ;;  %5480 = vmatprep.subr.bf16.mxu0 %v10205_v51  ;;  %v10223_v48 = vld [vmem:[%s14432_s5 + $0x134] ss:$8 sps:$4 sm:$0xff]  }
 0x3e8   :  { %6429 = vmatprep.subr.bf16.mxu1 %v10205_v51  ;;  %v10221_v51 = vld [vmem:[%s14432_s5 + $0x130] ss:$8 sps:$4 sm:$0xff]  }
 0x3ea   :  { %5481 = vmatpush1.bf16.msra.mxu0 %v10203_v4 }
 0x3eb   :  { %6430 = vmatpush1.bf16.msra.mxu1 %v10203_v4  ;;  %5482 = vmatprep.subr.bf16.mxu0 %v10208_v52  ;;  %v10226_v4 = vld [vmem:[%s14432_s5 + $0x144] ss:$8 sps:$4 sm:$0xff]  }
 0x3ec   :  { %6431 = vmatprep.subr.bf16.mxu1 %v10208_v52  ;;  %v10236_v52 = vld [vmem:[%s14432_s5 + $0x180] ss:$8 sps:$4 sm:$0xff]  }
 0x3ee   :  { %5483 = vmatpush1.bf16.msra.mxu0 %v10206_v56 }
 0x3ef   :  { %6432 = vmatpush1.bf16.msra.mxu1 %v10206_v56  ;;  %5484 = vmatprep.subr.bf16.mxu0 %v10211_v30  ;;  %v10238_v56 = vld [vmem:[%s14432_s5 + $0x184] ss:$8 sps:$4 sm:$0xff]  }
 0x3f0   :  { %6433 = vmatprep.subr.bf16.mxu1 %v10211_v30  ;;  %v10242_v30 = vld [vmem:[%s14432_s5 + $0x1a0] ss:$8 sps:$4 sm:$0xff]  }
 0x3f2   :  { %5485 = vmatpush1.bf16.msra.mxu0 %v10209_v23 }
 0x3f3   :  { %6434 = vmatpush1.bf16.msra.mxu1 %v10209_v23  ;;  %v10244_v23 = vld [vmem:[%s14432_s5 + $0x1a4] ss:$8 sps:$4 sm:$0xff]  }
 0x457   :  { %v4610_v33 = vpop.xlane.xlu0 %4609 }
 0x458   :  { %v4611_v57 = vmul.f32 0.0006377551, %v4610_v33  ;;  %v10224_v33 = vld [vmem:[%s14432_s5 + $0x140] ss:$8 sps:$4 sm:$0xff]  }
 0x45a   :  { %v4613_v58 = vadd.f32 1e-05, %v4611_v57  ;;  %v10229_v57 = vld [vmem:[%s14432_s5 + $0x154] ss:$8 sps:$4 sm:$0xff]  }
 0x45c   :  { %10418 = vrsqrt.f32 %v4613_v58  ;;  %v10227_v58 = vld [vmem:[%s14432_s5 + $0x150] ss:$8 sps:$4 sm:$0xff]  }
 0x466   :  { %v10419_v29 = vpop.eup %10418 }
 0x467   :  { %v4615_v39 = vmul.f32 %v10419_v29, %v4612_v41  ;;  %v10232_v41 = vld [vmem:[%s14432_s5 + $0x164] ss:$8 sps:$4 sm:$0xff]   ;;  %v10230_v29 = vld [vmem:[%s14432_s5 + $0x160] ss:$8 sps:$4 sm:$0xff]  }
 0x469   :  { %4621 = vperm.xlu0 %10067, %v4615_v39   ;;  %v4617_v19 = vmul.f32 %v4615_v39, %v12302_v38  ;;  %v10214_v38 = vld [vmem:[%s14432_s5 + $0x104] ss:$8 sps:$4 sm:$0xff]   ;;  %v10235_v39 = vld [vmem:[%s14432_s5 + $0x174] ss:$8 sps:$4 sm:$0xff]  }
 0x46a   :  { %5495 = vmatprep.subr.bf16.mxu0 %v10214_v38  ;;  %6444 = vmatprep.subr.bf16.mxu1 %v10214_v38  ;;  %v10247_v38 = vld [vmem:[%s14432_s5 + $0x1b4] ss:$8 sps:$4 sm:$0xff]  }
 0x46b   :  { %v4618_v28 = vsub.f32 %v4616_v61, %v4617_v19  ;;  %v10233_v61 = vld [vmem:[%s14432_s5 + $0x170] ss:$8 sps:$4 sm:$0xff]   ;;  %v10241_v19 = vld [vmem:[%s14432_s5 + $0x194] ss:$8 sps:$4 sm:$0xff]  }
 0x46d   :  { %4642 = vperm.xlu1 %10068, %v4618_v28   ;;  %v10239_v28 = vld [vmem:[%s14432_s5 + $0x190] ss:$8 sps:$4 sm:$0xff]  }
 0x4e8   :  { %v12474_v42 = vpop.permute.xlu0 %4621 }
 0x4e9   :  { %v4625_v37 = vmul.f32 %v12474_v42, %v12074_v44  ;;  %v4633_v36 = vmul.f32 %v12474_v42, %v12252_v14  ;;  %v4624_v59 = vmul.f32 %v12474_v42, %v12068_v53  ;;  %v4632_v21 = vmul.f32 %v12474_v42, %v12248_v55 }
 0x4ea   :  { %v4627_v40 = vmul.f32 %v12474_v42, %v12117_v31  ;;  %v4635_v24 = vmul.f32 %v12474_v42, %v12268_v18  ;;  %v10212_v18 = vld [vmem:[%s14432_s5 + $0x100] ss:$8 sps:$4 sm:$0xff]  }
 0x4ec   :  { %v12484_v11 = vpop.permute.xlu1 %4642 }
 0x4ed   :  { %v4646_v7 = vadd.f32 %v12484_v11, %v4625_v37  ;;  %v4654_v44 = vadd.f32 %v12484_v11, %v4633_v36  ;;  %v4645_v14 = vadd.f32 %v12484_v11, %v4624_v59  ;;  %v4653_v47 = vadd.f32 %v12484_v11, %v4632_v21  ;;  %v10245_v37 = vld [vmem:[%s14432_s5 + $0x1b0] ss:$8 sps:$4 sm:$0xff]   ;;  %v10250_v36 = vld [vmem:[%s14432_s5 + $0x1c4] ss:$8 sps:$4 sm:$0xff]   ;;  %v10248_v59 = vld [vmem:[%s14432_s5 + $0x1c0] ss:$8 sps:$4 sm:$0xff]  }
 0x4ee   :  { %v4648_v53 = vadd.f32 %v12484_v11, %v4627_v40  ;;  %v4656_v55 = vadd.f32 %v12484_v11, %v4635_v24  ;;  %v10253_v21 = vld [vmem:[%s14432_s5 + $0x1d4] ss:$8 sps:$4 sm:$0xff]   ;;  %v10251_v40 = vld [vmem:[%s14432_s5 + $0x1d0] ss:$8 sps:$4 sm:$0xff]   ;;  %v10256_v24 = vld [vmem:[%s14432_s5 + $0x1e4] ss:$8 sps:$4 sm:$0xff]  }
 0x4ef   :  { %v4662_v26 = vmax.f32 %v4646_v7, 0.0  ;;  %v4670_v0 = vmax.f32 %v4654_v44, 0.0  ;;  %v4661_v3 = vmax.f32 %v4645_v14, 0.0  ;;  %v4669_v10 = vmax.f32 %v4653_v47, 0.0  ;;  %v10254_v14 = vld [vmem:[%s14432_s5 + $0x1e0] ss:$8 sps:$4 sm:$0xff]  }
 0x4f0   :  { %v4664_v31 = vmax.f32 %v4648_v53, 0.0  ;;  %v4672_v25 = vmax.f32 %v4656_v55, 0.0  ;;  %v4626_v7 = vmul.f32 %v12474_v42, %v12109_v9  ;;  %v4634_v44 = vmul.f32 %v12474_v42, %v12264_v20  ;;  %v10259_v53 = vld [vmem:[%s14432_s5 + $0x1f4] ss:$8 sps:$4 sm:$0xff]  }
 0x4f1   :  { %v4679_v35 = vpack.c.bf16 %v4662_v26, %v4662_v26  ;;  %v5628_v27 = vpack.c.bf16 %v4670_v0, %v4670_v0  ;;  %v4678_v43 = vpack.c.bf16 %v4661_v3, %v4661_v3  ;;  %v5627_v16 = vpack.c.bf16 %v4669_v10, %v4669_v10  ;;  %v10262_v10 = vld [vmem:[%s14432_s5 + $0x204] ss:$8 sps:$4 sm:$0xff]  }
 0x4f2   :  { %v4681_v2 = vpack.c.bf16 %v4664_v31, %v4664_v31  ;;  %v5630_v62 = vpack.c.bf16 %v4672_v25, %v4672_v25  ;;  %v4629_v47 = vmul.f32 %v12474_v42, %v12214_v15  ;;  %v4647_v9 = vadd.f32 %v12484_v11, %v4626_v7  ;;  %v10257_v15 = vld [vmem:[%s14432_s5 + $0x1f0] ss:$8 sps:$4 sm:$0xff]  }
 0x4f3   :  { %5486 = vmatprep.mubr.bf16.mxu0 %v4679_v35  ;;  %6435 = vmatprep.mubr.bf16.mxu1 %v5628_v27  ;;  %v4655_v55 = vadd.f32 %v12484_v11, %v4634_v44  ;;  %v4637_v20 = vmul.f32 %v12474_v42, %v12282_v49  ;;  %v10260_v35 = vld [vmem:[%s14432_s5 + $0x200] ss:$8 sps:$4 sm:$0xff]  }
 0x4f4   :  { %5487 = vmatmul.mubr.bf16.vlgmr.msra.gmra.mrb[16].mxu0 %v4678_v43  ;;  %6436 = vmatmul.mubr.bf16.vlgmr.msra.gmra.mrb[16].mxu1 %v5627_v16  ;;  %v4650_v26 = vadd.f32 %v12484_v11, %v4629_v47  ;;  %v4663_v3 = vmax.f32 %v4647_v9, 0.0  ;;  %v10265_v16 = vld [vmem:[%s14432_s5 + $0x214] ss:$8 sps:$4 sm:$0xff]   ;;  %v10272_v44 = vld [vmem:[%s14432_s5 + $0x240] ss:$8 sps:$4 sm:$0xff]  }
 0x4f5   :  { %5496 = vmatpush1.bf16.msra.mxu0 %v10212_v18  ;;  %6445 = vmatpush1.bf16.msra.mxu1 %v10212_v18  ;;  %v4658_v0 = vadd.f32 %v12484_v11, %v4637_v20  ;;  %v4671_v31 = vmax.f32 %v4655_v55, 0.0  ;;  %v10277_v47 = vld [vmem:[%s14432_s5 + $0x254] ss:$8 sps:$4 sm:$0xff]   ;;  %v6844_v55 = vld [vmem:[#allocation3 + $0x10] sm:$0x7] }
 0x4f6   :  { %5527 = vmatprep.mubr.bf16.mxu0 %v4681_v2  ;;  %6476 = vmatprep.mubr.bf16.mxu1 %v5630_v62  ;;  %v4666_v25 = vmax.f32 %v4650_v26, 0.0  ;;  %v4680_v18 = vpack.c.bf16 %v4663_v3, %v4663_v3  ;;  %v10263_v2 = vld [vmem:[%s14432_s5 + $0x210] ss:$8 sps:$4 sm:$0xff]   ;;  %v10280_v3 = vld [vmem:[%s14432_s5 + $0x264] ss:$8 sps:$4 sm:$0xff]  }
 0x4f7   :  { %5497 = vmatprep.subr.bf16.mxu0 %v10217_v54  ;;  %6446 = vmatprep.subr.bf16.mxu1 %v10217_v54  ;;  %v4674_v49 = vmax.f32 %v4658_v0, 0.0  ;;  %v5629_v27 = vpack.c.bf16 %v4671_v31, %v4671_v31  ;;  %v6582_v62 = vld [vmem:[#allocation3 + $0x10] sm:$0x7] }
 0x4f8   :  { %v4683_v43 = vpack.c.bf16 %v4666_v25, %v4666_v25  ;;  %v7010_v0 = vld [vmem:[#allocation3 + $0x10] sm:$0x7] }
 0x4f9   :  { %5498 = vmatpush1.bf16.msra.mxu0 %v10215_v12  ;;  %6447 = vmatpush1.bf16.msra.mxu1 %v10215_v12  ;;  %v5632_v54 = vpack.c.bf16 %v4674_v49, %v4674_v49  ;;  %v6628_v12 = vld [vmem:[#allocation3 + $0x10] sm:$0x7]  ;;  %v7016_v25 = vrot.slane %v7010_v0, 5 }
 0x4fa   :  { %5499 = vmatprep.subr.bf16.mxu0 %v10220_v60  ;;  %6448 = vmatprep.subr.bf16.mxu1 %v10220_v60  ;;  %v10268_v60 = vld [vmem:[%s14432_s5 + $0x224] ss:$8 sps:$4 sm:$0xff]  }
 0x4fd   :  { %5500 = vmatpush1.bf16.msra.mxu0 %v10218_v32  ;;  %6449 = vmatpush1.bf16.msra.mxu1 %v10218_v32  ;;  %v6588_v32 = vrot.slane %v6582_v62, 5  ;;  %v6987_v62 = vld [vmem:[#allocation3 + $0x10] sm:$0x7] }
 0x4fe   :  { %5501 = vmatprep.subr.bf16.mxu0 %v10223_v48  ;;  %6450 = vmatprep.subr.bf16.mxu1 %v10223_v48  ;;  %v6634_v48 = vrot.slane %v6628_v12, 6  ;;  %v7153_v12 = vld [vmem:[#allocation3 + $0x10] sm:$0x7] }
 0x501   :  { %5502 = vmatpush1.bf16.msra.mxu0 %v10221_v51  ;;  %6451 = vmatpush1.bf16.msra.mxu1 %v10221_v51  ;;  %v6723_v51 = vld [vmem:[#allocation3 + $0x10] sm:$0x7] }
 0x502   :  { %5503 = vmatprep.subr.bf16.mxu0 %v10226_v4  ;;  %6452 = vmatprep.subr.bf16.mxu1 %v10226_v4  ;;  %v6770_v4 = vld [vmem:[#allocation3 + $0x10] sm:$0x7] }
 0x505   :  { %5504 = vmatpush1.bf16.msra.mxu0 %v10224_v33  ;;  %6453 = vmatpush1.bf16.msra.mxu1 %v10224_v33  ;;  %v6591_v33 = vrot.slane %v6588_v32, 4 }
 0x506   :  { %5505 = vmatprep.subr.bf16.mxu0 %v10229_v57  ;;  %6454 = vmatprep.subr.bf16.mxu1 %v10229_v57  ;;  %v6637_v57 = vrot.slane %v6634_v48, 4 }
 0x509   :  { %5506 = vmatpush1.bf16.msra.mxu0 %v10227_v58  ;;  %6455 = vmatpush1.bf16.msra.mxu1 %v10227_v58  ;;  %v6729_v58 = vrot.slane %v6723_v51, 5 }
 0x50a   :  { %5507 = vmatprep.subr.bf16.mxu0 %v10232_v41  ;;  %6456 = vmatprep.subr.bf16.mxu1 %v10232_v41  ;;  %v6776_v41 = vrot.slane %v6770_v4, 6  ;;  %v7159_v4 = vrot.slane %v7153_v12, 5  ;;  %v10317_v12 = vld [vmem:[%s14432_s5 + $0x330] ss:$8 sps:$4 sm:$0xff]  }
 0x50d   :  { %5508 = vmatpush1.bf16.msra.mxu0 %v10230_v29  ;;  %6457 = vmatpush1.bf16.msra.mxu1 %v10230_v29  ;;  %v10266_v29 = vld [vmem:[%s14432_s5 + $0x220] ss:$8 sps:$4 sm:$0xff]  }
 0x50e   :  { %5509 = vmatprep.subr.bf16.mxu0 %v10235_v39  ;;  %6458 = vmatprep.subr.bf16.mxu1 %v10235_v39  ;;  %v6674_v39 = vld [vmem:[#allocation3 + $0x10] sm:$0x7] }
 0x511   :  { %5510 = vmatpush1.bf16.msra.mxu0 %v10233_v61  ;;  %6459 = vmatpush1.bf16.msra.mxu1 %v10233_v61  ;;  %v10271_v61 = vld [vmem:[%s14432_s5 + $0x234] ss:$8 sps:$4 sm:$0xff]  }
 0x512   :  { %5511 = vmatprep.subr.bf16.mxu0 %v10238_v56  ;;  %6460 = vmatprep.subr.bf16.mxu1 %v10238_v56  ;;  %v10069_v56 = vpack.i.bf16 %v6591_v33, %v6588_v32  ;;  %v10286_v32 = vld [vmem:[%s14432_s5 + $0x284] ss:$8 sps:$4 sm:$0xff]  }
 0x514   :  { %10070 = vrot.lane.b32.xlu1 %v10069_v56, %s14591_s28  ;;  %v10287_v56 = vld [vmem:[%s14432_s5 + $0x290] ss:$8 sps:$4 sm:$0xff]  }
 0x515   :  { %5512 = vmatpush1.bf16.msra.mxu0 %v10236_v52  ;;  %6461 = vmatpush1.bf16.msra.mxu1 %v10236_v52  ;;  %v10074_v52 = vpack.i.bf16 %v6637_v57, %v6634_v48  ;;  %v10284_v57 = vld [vmem:[%s14432_s5 + $0x280] ss:$8 sps:$4 sm:$0xff]  }
 0x516   :  { %5513 = vmatprep.subr.bf16.mxu0 %v10241_v19  ;;  %6462 = vmatprep.subr.bf16.mxu1 %v10241_v19  ;;  %v10269_v19 = vld [vmem:[%s14432_s5 + $0x230] ss:$8 sps:$4 sm:$0xff]  }
 0x517   :  { %10075 = vrot.lane.b32.xlu0 %v10074_v52, %s14593_s26  ;;  %v7129_v52 = vld [vmem:[#allocation3 + $0x10] sm:$0x7] }
 0x519   :  { %5514 = vmatpush1.bf16.msra.mxu0 %v10239_v28  ;;  %6463 = vmatpush1.bf16.msra.mxu1 %v10239_v28  ;;  %v6680_v28 = vrot.slane %v6674_v39, 7  ;;  %v7162_v39 = vrot.slane %v7159_v4, 4 }
 0x51a   :  { %5515 = vmatprep.subr.bf16.mxu0 %v10244_v23  ;;  %6464 = vmatprep.subr.bf16.mxu1 %v10244_v23  ;;  %v6732_v23 = vrot.slane %v6729_v58, 4 }
 0x51b   :  { %6685 = vrot.lane.b32.xlu1 %v6680_v28, %s14592_s27  ;;  %v10109_v28 = vpack.i.bf16 %v7162_v39, %v7159_v4  ;;  %v10328_v4 = vld [vmem:[%s14432_s5 + $0x364] ss:$8 sps:$4 sm:$0xff]   ;;  %v10337_v39 = vld [vmem:[%s14432_s5 + $0x394] ss:$8 sps:$4 sm:$0xff]  }
 0x51d   :  { %5516 = vmatpush1.bf16.msra.mxu0 %v10242_v30  ;;  %6465 = vmatpush1.bf16.msra.mxu1 %v10242_v30  ;;  %v6779_v30 = vrot.slane %v6776_v41, 4 }
 0x51e   :  { %5517 = vmatprep.subr.bf16.mxu0 %v10247_v38  ;;  %6466 = vmatprep.subr.bf16.mxu1 %v10247_v38  ;;  %v6700_v38 = vld [vmem:[#allocation3 + $0x10] sm:$0x7] }
 0x51f   :  { %6708 = vrot.lane.b32.xlu0 %v6700_v38, %s14594_s18  ;;  %v7247_v38 = vld [vmem:[#allocation3 + $0x10] sm:$0x7] }
 0x521   :  { %5518 = vmatpush1.bf16.msra.mxu0 %v10245_v37  ;;  %6467 = vmatpush1.bf16.msra.mxu1 %v10245_v37  ;;  %v6868_v37 = vld [vmem:[#allocation3 + $0x10] sm:$0x7] }
 0x522   :  { %5519 = vmatprep.subr.bf16.mxu0 %v10250_v36  ;;  %6468 = vmatprep.subr.bf16.mxu1 %v10250_v36  ;;  %v6915_v36 = vld [vmem:[#allocation3 + $0x10] sm:$0x7] }
 0x523   :  { %v6921_v7 = vrot.slane %v6915_v36, 6  ;;  %v7253_v36 = vrot.slane %v7247_v38, 7  ;;  %v10349_v38 = vld [vmem:[%s14432_s5 + $0x3d4] ss:$8 sps:$4 sm:$0xff]  }
 0x525   :  { %5520 = vmatpush1.bf16.msra.mxu0 %v10248_v59  ;;  %6469 = vmatpush1.bf16.msra.mxu1 %v10248_v59  ;;  %v10274_v59 = vld [vmem:[%s14432_s5 + $0x244] ss:$8 sps:$4 sm:$0xff]   ;;  %v6924_v26 = vrot.slane %v6921_v7, 4 }
 0x526   :  { %5521 = vmatprep.subr.bf16.mxu0 %v10253_v21  ;;  %6470 = vmatprep.subr.bf16.mxu1 %v10253_v21  ;;  %v10079_v21 = vpack.i.bf16 %v6732_v23, %v6729_v58  ;;  %v7102_v58 = vld [vmem:[#allocation3 + $0x10] sm:$0x7] }
 0x527   :  { %v10094_v31 = vpack.i.bf16 %v6924_v26, %v6921_v7  ;;  %v10299_v7 = vld [vmem:[%s14432_s5 + $0x2d0] ss:$8 sps:$4 sm:$0xff]   ;;  %v4639_v26 = vmul.f32 %v12474_v42, %v12296_v22  ;;  %v10308_v22 = vld [vmem:[%s14432_s5 + $0x300] ss:$8 sps:$4 sm:$0xff]  }
 0x528   :  { %10080 = vrot.lane.b32.xlu1 %v10079_v21, %s10471_s29  ;;  %v10298_v21 = vld [vmem:[%s14432_s5 + $0x2c4] ss:$8 sps:$4 sm:$0xff]  }
 0x529   :  { %5522 = vmatpush1.bf16.msra.mxu0 %v10251_v40  ;;  %6471 = vmatpush1.bf16.msra.mxu1 %v10251_v40  ;;  %v10084_v40 = vpack.i.bf16 %v6779_v30, %v6776_v41  ;;  %v10289_v41 = vld [vmem:[%s14432_s5 + $0x294] ss:$8 sps:$4 sm:$0xff]   ;;  %v10290_v30 = vld [vmem:[%s14432_s5 + $0x2a0] ss:$8 sps:$4 sm:$0xff]  }
 0x52a   :  { %5523 = vmatprep.subr.bf16.mxu0 %v10256_v24  ;;  %6472 = vmatprep.subr.bf16.mxu1 %v10256_v24  ;;  %v6874_v24 = vrot.slane %v6868_v37, 5  ;;  %v10295_v37 = vld [vmem:[%s14432_s5 + $0x2b4] ss:$8 sps:$4 sm:$0xff]  }
 0x52b   :  { %10085 = vrot.lane.b32.xlu0 %v10084_v40, %s10472_s3  ;;  %v10296_v40 = vld [vmem:[%s14432_s5 + $0x2c0] ss:$8 sps:$4 sm:$0xff]  }
 0x52c   :  { %v6877_v20 = vrot.slane %v6874_v24, 4 }
 0x52d   :  { %5524 = vmatpush1.bf16.msra.mxu0 %v10254_v14  ;;  %6473 = vmatpush1.bf16.msra.mxu1 %v10254_v14  ;;  %v6817_v14 = vld [vmem:[#allocation3 + $0x10] sm:$0x7] }
 0x52e   :  { %5525 = vmatprep.subr.bf16.mxu0 %v10259_v53  ;;  %6474 = vmatprep.subr.bf16.mxu1 %v10259_v53  ;;  %v10275_v53 = vld [vmem:[%s14432_s5 + $0x250] ss:$8 sps:$4 sm:$0xff]   ;;  %v6823_v9 = vrot.slane %v6817_v14, 7  ;;  %v4628_v14 = vmul.f32 %v12474_v42, %v12210_v17 }
 0x52f   :  { %6852 = vrot.lane.b32.xlu0 %v6844_v55, %s10474_s20 }
 0x530   :  { %6828 = vrot.lane.b32.xlu1 %v6823_v9, %s10473_s14  ;;  %v10307_v9 = vld [vmem:[%s14432_s5 + $0x2f4] ss:$8 sps:$4 sm:$0xff]   ;;  %v4649_v55 = vadd.f32 %v12484_v11, %v4628_v14 }
 0x531   :  { %5526 = vmatpush1.bf16.msra.mxu0 %v10257_v15  ;;  %6475 = vmatpush1.bf16.msra.mxu1 %v10257_v15  ;;  %v7056_v15 = vld [vmem:[#allocation3 + $0x10] sm:$0x7] }
 0x532   :  { %5536 = vmatprep.subr.bf16.mxu0 %v10262_v10  ;;  %6485 = vmatprep.subr.bf16.mxu1 %v10262_v10  ;;  %v10089_v10 = vpack.i.bf16 %v6877_v20, %v6874_v24  ;;  %v7062_v49 = vrot.slane %v7056_v15, 6  ;;  %v10301_v24 = vld [vmem:[%s14432_s5 + $0x2d4] ss:$8 sps:$4 sm:$0xff]   ;;  %v4631_v20 = vmul.f32 %v12474_v42, %v12233_v1  ;;  %v4660_v15 = vadd.f32 %v12484_v11, %v4639_v26  ;;  %v10310_v1 = vld [vmem:[%s14432_s5 + $0x304] ss:$8 sps:$4 sm:$0xff]  }
 0x533   :  { %10095 = vrot.lane.b32.xlu0 %v10094_v31, %s14596_s30  ;;  %v7274_v26 = vld [vmem:[#allocation3 + $0x10] sm:$0x7] }
 0x534   :  { %5528 = vmatmul.mubr.bf16.vlgmr.msra.gmra.mrb[16].mxu0 %v4680_v18  ;;  %6477 = vmatmul.mubr.bf16.vlgmr.msra.gmra.mrb[16].mxu1 %v5629_v27  ;;  %v6961_v18 = vld [vmem:[#allocation3 + $0x10] sm:$0x7]  ;;  %v10283_v27 = vld [vmem:[%s14432_s5 + $0x274] ss:$8 sps:$4 sm:$0xff]   ;;  %v4652_v0 = vadd.f32 %v12484_v11, %v4631_v20 }
 0x535   :  { %5537 = vmatpush1.bf16.msra.mxu0 %v10260_v35  ;;  %5568 = vmatprep.mubr.bf16.mxu0 %v4683_v43  ;;  %v10281_v43 = vld [vmem:[%s14432_s5 + $0x270] ss:$8 sps:$4 sm:$0xff]  }
 0x536   :  { %6486 = vmatpush1.bf16.msra.mxu1 %v10260_v35  ;;  %6517 = vmatprep.mubr.bf16.mxu1 %v5632_v54  ;;  %v10278_v35 = vld [vmem:[%s14432_s5 + $0x260] ss:$8 sps:$4 sm:$0xff]   ;;  %v7019_v54 = vrot.slane %v7016_v25, 4  ;;  %v4668_v31 = vmax.f32 %v4652_v0, 0.0 }
 0x537   :  { %5538 = vmatprep.subr.bf16.mxu0 %v10265_v16  ;;  %6487 = vmatprep.subr.bf16.mxu1 %v10265_v16  ;;  %v6967_v16 = vrot.slane %v6961_v18, 7  ;;  %v10313_v18 = vld [vmem:[%s14432_s5 + $0x314] ss:$8 sps:$4 sm:$0xff]  }
 0x538   :  { %10090 = vrot.lane.b32.xlu1 %v10089_v10, %s14527_s8  ;;  %6995 = vrot.lane.b32.xlu0 %v6987_v62, %s14581_s24  ;;  %v10099_v48 = vpack.i.bf16 %v7019_v54, %v7016_v25  ;;  %v4676_v25 = vmax.f32 %v4660_v15, 0.0  ;;  %v10316_v54 = vld [vmem:[%s14432_s5 + $0x324] ss:$8 sps:$4 sm:$0xff]   ;;  %v10319_v62 = vld [vmem:[%s14432_s5 + $0x334] ss:$8 sps:$4 sm:$0xff]   ;;  %s14715_s8 = sld [smem:[#allocation33_spill]] }
 0x539   :  { %5539 = vmatpush1.bf16.msra.mxu0 %v10263_v2 }
 0x53a   :  { %6488 = vmatpush1.bf16.msra.mxu1 %v10263_v2  ;;  %5540 = vmatprep.subr.bf16.mxu0 %v10268_v60  ;;  %v7065_v2 = vrot.slane %v7062_v49, 4 }
 0x53b   :  { %6489 = vmatprep.subr.bf16.mxu1 %v10268_v60  ;;  %v7200_v60 = vld [vmem:[#allocation3 + $0x10] sm:$0x7] }
 0x53c   :  { %6972 = vrot.lane.b32.xlu1 %v6967_v16, %s14595_s17  ;;  %v10104_v51 = vpack.i.bf16 %v7065_v2, %v7062_v49  ;;  %v7206_v33 = vrot.slane %v7200_v60, 6  ;;  %v10311_v16 = vld [vmem:[%s14432_s5 + $0x310] ss:$8 sps:$4 sm:$0xff]   ;;  %v10314_v2 = vld [vmem:[%s14432_s5 + $0x320] ss:$8 sps:$4 sm:$0xff]  }
 0x53d   :  { %5541 = vmatpush1.bf16.msra.mxu0 %v10266_v29  ;;  %v10322_v60 = vld [vmem:[%s14432_s5 + $0x344] ss:$8 sps:$4 sm:$0xff]  }
 0x53e   :  { %6490 = vmatpush1.bf16.msra.mxu1 %v10266_v29  ;;  %5542 = vmatprep.subr.bf16.mxu0 %v10271_v61  ;;  %v7108_v29 = vrot.slane %v7102_v58, 7  ;;  %v10329_v58 = vld [vmem:[%s14432_s5 + $0x370] ss:$8 sps:$4 sm:$0xff]  }
 0x53f   :  { %6491 = vmatprep.subr.bf16.mxu1 %v10271_v61  ;;  %10105 = vrot.lane.b32.xlu0 %v10104_v51, %s14584_s23  ;;  %v7209_v61 = vrot.slane %v7206_v33, 4  ;;  %v10323_v51 = vld [vmem:[%s14432_s5 + $0x350] ss:$8 sps:$4 sm:$0xff]  }
 0x540   :  { %10100 = vrot.lane.b32.xlu1 %v10099_v48, %s14582_s0  ;;  %v10325_v48 = vld [vmem:[%s14432_s5 + $0x354] ss:$8 sps:$4 sm:$0xff]  }
 0x541   :  { %5543 = vmatpush1.bf16.msra.mxu0 %v10269_v19  ;;  %v10114_v23 = vpack.i.bf16 %v7209_v61, %v7206_v33  ;;  %v10326_v33 = vld [vmem:[%s14432_s5 + $0x360] ss:$8 sps:$4 sm:$0xff]   ;;  %v10335_v61 = vld [vmem:[%s14432_s5 + $0x390] ss:$8 sps:$4 sm:$0xff]  }
 0x542   :  { %6492 = vmatpush1.bf16.msra.mxu1 %v10269_v19  ;;  %5544 = vmatprep.subr.bf16.mxu0 %v10274_v59  ;;  %v10292_v19 = vld [vmem:[%s14432_s5 + $0x2a4] ss:$8 sps:$4 sm:$0xff]  }
 0x543   :  { %6493 = vmatprep.subr.bf16.mxu1 %v10274_v59  ;;  %7137 = vrot.lane.b32.xlu0 %v7129_v52, %s10477_s4  ;;  %v10293_v59 = vld [vmem:[%s14432_s5 + $0x2b0] ss:$8 sps:$4 sm:$0xff]   ;;  %v10338_v52 = vld [vmem:[%s14432_s5 + $0x3a0] ss:$8 sps:$4 sm:$0xff]  }
 0x544   :  { %7113 = vrot.lane.b32.xlu1 %v7108_v29, %s14525_s1  ;;  %v10332_v29 = vld [vmem:[%s14432_s5 + $0x380] ss:$8 sps:$4 sm:$0xff]  }
 0x545   :  { %5545 = vmatpush1.bf16.msra.mxu0 %v10272_v44 }
 0x546   :  { %6494 = vmatpush1.bf16.msra.mxu1 %v10272_v44  ;;  %5546 = vmatprep.subr.bf16.mxu0 %v10277_v47  ;;  %v10304_v44 = vld [vmem:[%s14432_s5 + $0x2e4] ss:$8 sps:$4 sm:$0xff]  }
 0x547   :  { %6495 = vmatprep.subr.bf16.mxu1 %v10277_v47  ;;  %10115 = vrot.lane.b32.xlu0 %v10114_v23, %s14531_s16  ;;  %v10302_v47 = vld [vmem:[%s14432_s5 + $0x2e0] ss:$8 sps:$4 sm:$0xff]   ;;  %v10346_v23 = vld [vmem:[%s14432_s5 + $0x3c4] ss:$8 sps:$4 sm:$0xff]  }
 0x548   :  { %10110 = vrot.lane.b32.xlu1 %v10109_v28, %s14529_s11  ;;  %v10341_v28 = vld [vmem:[%s14432_s5 + $0x3b0] ss:$8 sps:$4 sm:$0xff]  }
 0x549   :  { %5547 = vmatpush1.bf16.msra.mxu0 %v10275_v53 }
 0x54a   :  { %6496 = vmatpush1.bf16.msra.mxu1 %v10275_v53  ;;  %5548 = vmatprep.subr.bf16.mxu0 %v10280_v3  ;;  %v4636_v53 = vmul.f32 %v12474_v42, %v12278_v34  ;;  %v10305_v34 = vld [vmem:[%s14432_s5 + $0x2f0] ss:$8 sps:$4 sm:$0xff]  }
 0x54b   :  { %6497 = vmatprep.subr.bf16.mxu1 %v10280_v3  ;;  %v4665_v3 = vmax.f32 %v4649_v55, 0.0  ;;  %7282 = vrot.lane.b32.xlu0 %v7274_v26, %s14583_s25 }
 0x54c   :  { %7258 = vrot.lane.b32.xlu1 %v7253_v36, %s14533_s15  ;;  %v4657_v17 = vadd.f32 %v12484_v11, %v4636_v53  ;;  %v10352_v36 = vld [vmem:[%s14432_s5 + $0x3e4] ss:$8 sps:$4 sm:$0xff]   ;;  %v7297_v53 = vld [vmem:[#allocation3 + $0x10] sm:$0x7] }
 0x54d   :  { %5549 = vmatpush1.bf16.msra.mxu0 %v10278_v35  ;;  %v4682_v49 = vpack.c.bf16 %v4665_v3, %v4665_v3 }
 0x54e   :  { %6498 = vmatpush1.bf16.msra.mxu1 %v10278_v35  ;;  %5550 = vmatprep.subr.bf16.mxu0 %v10283_v27  ;;  %v4673_v10 = vmax.f32 %v4657_v17, 0.0 }
 0x54f   :  { %6499 = vmatprep.subr.bf16.mxu1 %v10283_v27  ;;  %v4685_v27 = vpack.c.bf16 %v4668_v31, %v4668_v31 }
 0x550   :  { %v5631_v35 = vpack.c.bf16 %v4673_v10, %v4673_v10 }
 0x551   :  { %5551 = vmatpush1.bf16.msra.mxu0 %v10281_v43 }
 0x552   :  { %6500 = vmatpush1.bf16.msra.mxu1 %v10281_v43  ;;  %5552 = vmatprep.subr.bf16.mxu0 %v10286_v32  ;;  %v5634_v43 = vpack.c.bf16 %v4676_v25, %v4676_v25 }
 0x553   :  { %6501 = vmatprep.subr.bf16.mxu1 %v10286_v32  ;;  %v10320_v32 = vld [vmem:[%s14432_s5 + $0x340] ss:$8 sps:$4 sm:$0xff]  }
 0x555   :  { %5553 = vmatpush1.bf16.msra.mxu0 %v10284_v57 }
 0x556   :  { %6502 = vmatpush1.bf16.msra.mxu1 %v10284_v57  ;;  %5554 = vmatprep.subr.bf16.mxu0 %v10289_v41  ;;  %v10331_v57 = vld [vmem:[%s14432_s5 + $0x374] ss:$8 sps:$4 sm:$0xff]  }
 0x557   :  { %6503 = vmatprep.subr.bf16.mxu1 %v10289_v41  ;;  %v10334_v41 = vld [vmem:[%s14432_s5 + $0x384] ss:$8 sps:$4 sm:$0xff]  }
 0x559   :  { %5555 = vmatpush1.bf16.msra.mxu0 %v10287_v56 }
 0x55a   :  { %6504 = vmatpush1.bf16.msra.mxu1 %v10287_v56  ;;  %5556 = vmatprep.subr.bf16.mxu0 %v10292_v19  ;;  %v10340_v56 = vld [vmem:[%s14432_s5 + $0x3a4] ss:$8 sps:$4 sm:$0xff]  }
 0x55b   :  { %6505 = vmatprep.subr.bf16.mxu1 %v10292_v19  ;;  %v10343_v19 = vld [vmem:[%s14432_s5 + $0x3b4] ss:$8 sps:$4 sm:$0xff]  }
 0x55d   :  { %5557 = vmatpush1.bf16.msra.mxu0 %v10290_v30 }
 0x55e   :  { %6506 = vmatpush1.bf16.msra.mxu1 %v10290_v30  ;;  %5558 = vmatprep.subr.bf16.mxu0 %v10295_v37  ;;  %v10344_v30 = vld [vmem:[%s14432_s5 + $0x3c0] ss:$8 sps:$4 sm:$0xff]  }
 0x55f   :  { %6507 = vmatprep.subr.bf16.mxu1 %v10295_v37  ;;  %v10347_v37 = vld [vmem:[%s14432_s5 + $0x3d0] ss:$8 sps:$4 sm:$0xff]  }
 0x561   :  { %5559 = vmatpush1.bf16.msra.mxu0 %v10293_v59 }
 0x562   :  { %6508 = vmatpush1.bf16.msra.mxu1 %v10293_v59  ;;  %5560 = vmatprep.subr.bf16.mxu0 %v10298_v21  ;;  %v4630_v59 = vmul.f32 %v12474_v42, %v12229_v63  ;;  %v10353_v63 = vld [vmem:[%s14432_s5 + $0x3f0] ss:$8 sps:$4 sm:$0xff]  }
 0x563   :  { %6509 = vmatprep.subr.bf16.mxu1 %v10298_v21  ;;  %v10350_v21 = vld [vmem:[%s14432_s5 + $0x3e0] ss:$8 sps:$4 sm:$0xff]  }
 0x565   :  { %5561 = vmatpush1.bf16.msra.mxu0 %v10296_v40 }
 0x566   :  { %6510 = vmatpush1.bf16.msra.mxu1 %v10296_v40  ;;  %5562 = vmatprep.subr.bf16.mxu0 %v10301_v24  ;;  %v4638_v40 = vmul.f32 %v12474_v42, %v12292_v46 }
 0x567   :  { %6511 = vmatprep.subr.bf16.mxu1 %v10301_v24  ;;  %v10355_v24 = vld [vmem:[%s14432_s5 + $0x3f4] ss:$8 sps:$4 sm:$0xff]   ;;  %s14662_s5 = smov 108  }
 0x569   :  { %5563 = vmatpush1.bf16.msra.mxu0 %v10299_v7 }
 0x56a   :  { %6512 = vmatpush1.bf16.msra.mxu1 %v10299_v7  ;;  %5564 = vmatprep.subr.bf16.mxu0 %v10304_v44  ;;  %v4651_v7 = vadd.f32 %v12484_v11, %v4630_v59 }
 0x56b   :  { %6513 = vmatprep.subr.bf16.mxu1 %v10304_v44  ;;  %v4659_v44 = vadd.f32 %v12484_v11, %v4638_v40  ;;  %v7343_v11 = vld [vmem:[#allocation3 + $0x10] sm:$0x7] }
 0x56c   :  { %v4667_v14 = vmax.f32 %v4651_v7, 0.0  ;;  %v7349_v17 = vrot.slane %v7343_v11, 6 }
 0x56d   :  { %5565 = vmatpush1.bf16.msra.mxu0 %v10302_v47  ;;  %v4675_v46 = vmax.f32 %v4659_v44, 0.0 }
 0x56e   :  { %6514 = vmatpush1.bf16.msra.mxu1 %v10302_v47  ;;  %5566 = vmatprep.subr.bf16.mxu0 %v10307_v9  ;;  %v4684_v42 = vpack.c.bf16 %v4667_v14, %v4667_v14  ;;  %v7352_v0 = vrot.slane %v7349_v17, 4 }
 0x56f   :  { %6515 = vmatprep.subr.bf16.mxu1 %v10307_v9  ;;  %v5633_v47 = vpack.c.bf16 %v4675_v46, %v4675_v46  ;;  %v7303_v9 = vrot.slane %v7297_v53, 5 }
 0x570   :  { %v10124_v15 = vpack.i.bf16 %v7352_v0, %v7349_v17 }
 0x571   :  { %5567 = vmatpush1.bf16.msra.mxu0 %v10305_v34  ;;  %v7306_v55 = vrot.slane %v7303_v9, 4 }
 0x572   :  { %6516 = vmatpush1.bf16.msra.mxu1 %v10305_v34  ;;  %5577 = vmatprep.subr.bf16.mxu0 %v10310_v1  ;;  %v7389_v34 = vld [vmem:[#allocation3 + $0x10] sm:$0x7] }
 0x573   :  { %6526 = vmatprep.subr.bf16.mxu1 %v10310_v1  ;;  %v10119_v20 = vpack.i.bf16 %v7306_v55, %v7303_v9  ;;  %v7395_v3 = vrot.slane %v7389_v34, 7  ;;  %10125 = vrot.lane.b32.xlu0 %v10124_v15, %s14586_s2 }
 0x574   :  { %5569 = vmatmul.mubr.bf16.vlgmr.msra.gmra.mrb[16].mxu0 %v4682_v49 }
 0x575   :  { %6518 = vmatmul.mubr.bf16.vlgmr.msra.gmra.mrb[16].mxu1 %v5631_v35  ;;  %5578 = vmatpush1.bf16.msra.mxu0 %v10308_v22 }
 0x576   :  { %5609 = vmatprep.mubr.bf16.mxu0 %v4685_v27  ;;  %6527 = vmatpush1.bf16.msra.mxu1 %v10308_v22 }
 0x577   :  { %6558 = vmatprep.mubr.bf16.mxu1 %v5634_v43  ;;  %5579 = vmatprep.subr.bf16.mxu0 %v10313_v18 }
 0x578   :  { %6528 = vmatprep.subr.bf16.mxu1 %v10313_v18  ;;  %10120 = vrot.lane.b32.xlu1 %v10119_v20, %s14585_s22 }
 0x579   :  { %5580 = vmatpush1.bf16.msra.mxu0 %v10311_v16 }
 0x57a   :  { %6529 = vmatpush1.bf16.msra.mxu1 %v10311_v16  ;;  %5581 = vmatprep.subr.bf16.mxu0 %v10316_v54 }
 0x57b   :  { %6530 = vmatprep.subr.bf16.mxu1 %v10316_v54 }
 0x57c   :  { %7400 = vrot.lane.b32.xlu1 %v7395_v3, %s14588_s19 }
 0x57d   :  { %5582 = vmatpush1.bf16.msra.mxu0 %v10314_v2 }
 0x57e   :  { %6531 = vmatpush1.bf16.msra.mxu1 %v10314_v2  ;;  %5583 = vmatprep.subr.bf16.mxu0 %v10319_v62 }
 0x57f   :  { %6532 = vmatprep.subr.bf16.mxu1 %v10319_v62 }
 0x581   :  { %5584 = vmatpush1.bf16.msra.mxu0 %v10317_v12 }
 0x582   :  { %6533 = vmatpush1.bf16.msra.mxu1 %v10317_v12  ;;  %5585 = vmatprep.subr.bf16.mxu0 %v10322_v60 }
 0x583   :  { %6534 = vmatprep.subr.bf16.mxu1 %v10322_v60 }
 0x585   :  { %5586 = vmatpush1.bf16.msra.mxu0 %v10320_v32 }
 0x586   :  { %6535 = vmatpush1.bf16.msra.mxu1 %v10320_v32  ;;  %5587 = vmatprep.subr.bf16.mxu0 %v10325_v48  ;;  %v12904_v55 = vpop.permute.xlu1 %10070 }
 0x587   :  { %6536 = vmatprep.subr.bf16.mxu1 %v10325_v48 }
 0x589   :  { %5588 = vmatpush1.bf16.msra.mxu0 %v10323_v51 }
 0x58a   :  { %6537 = vmatpush1.bf16.msra.mxu1 %v10323_v51  ;;  %5589 = vmatprep.subr.bf16.mxu0 %v10328_v4 }
 0x58b   :  { %6538 = vmatprep.subr.bf16.mxu1 %v10328_v4 }
 0x58d   :  { %5590 = vmatpush1.bf16.msra.mxu0 %v10326_v33  ;;  %v12918_v3 = vpop.permute.xlu1 %6685 }
 0x58e   :  { %6539 = vmatpush1.bf16.msra.mxu1 %v10326_v33  ;;  %5591 = vmatprep.subr.bf16.mxu0 %v10331_v57 }
 0x58f   :  { %6540 = vmatprep.subr.bf16.mxu1 %v10331_v57 }
 0x591   :  { %5592 = vmatpush1.bf16.msra.mxu0 %v10329_v58 }
 0x592   :  { %6541 = vmatpush1.bf16.msra.mxu1 %v10329_v58  ;;  %5593 = vmatprep.subr.bf16.mxu0 %v10334_v41 }
 0x593   :  { %6542 = vmatprep.subr.bf16.mxu1 %v10334_v41 }
 0x595   :  { %5594 = vmatpush1.bf16.msra.mxu0 %v10332_v29 }
 0x596   :  { %6543 = vmatpush1.bf16.msra.mxu1 %v10332_v29  ;;  %5595 = vmatprep.subr.bf16.mxu0 %v10337_v39 }
 0x597   :  { %6544 = vmatprep.subr.bf16.mxu1 %v10337_v39 }
 0x599   :  { %5596 = vmatpush1.bf16.msra.mxu0 %v10335_v61 }
 0x59a   :  { %6545 = vmatpush1.bf16.msra.mxu1 %v10335_v61  ;;  %5597 = vmatprep.subr.bf16.mxu0 %v10340_v56 }
 0x59b   :  { %6546 = vmatprep.subr.bf16.mxu1 %v10340_v56 }
 0x59d   :  { %5598 = vmatpush1.bf16.msra.mxu0 %v10338_v52 }
 0x59e   :  { %6547 = vmatpush1.bf16.msra.mxu1 %v10338_v52  ;;  %5599 = vmatprep.subr.bf16.mxu0 %v10343_v19 }
 0x59f   :  { %6548 = vmatprep.subr.bf16.mxu1 %v10343_v19 }
 0x5a1   :  { %5600 = vmatpush1.bf16.msra.mxu0 %v10341_v28 }
 0x5a2   :  { %6549 = vmatpush1.bf16.msra.mxu1 %v10341_v28  ;;  %5601 = vmatprep.subr.bf16.mxu0 %v10346_v23 }
 0x5a3   :  { %6550 = vmatprep.subr.bf16.mxu1 %v10346_v23 }
 0x5a5   :  { %5602 = vmatpush1.bf16.msra.mxu0 %v10344_v30 }
 0x5a6   :  { %6551 = vmatpush1.bf16.msra.mxu1 %v10344_v30  ;;  %5603 = vmatprep.subr.bf16.mxu0 %v10349_v38 }
 0x5a7   :  { %6552 = vmatprep.subr.bf16.mxu1 %v10349_v38 }
 0x5a9   :  { %5604 = vmatpush1.bf16.msra.mxu0 %v10347_v37 }
 0x5aa   :  { %6553 = vmatpush1.bf16.msra.mxu1 %v10347_v37  ;;  %5605 = vmatprep.subr.bf16.mxu0 %v10352_v36 }
 0x5ab   :  { %6554 = vmatprep.subr.bf16.mxu1 %v10352_v36 }
 0x5ad   :  { %5606 = vmatpush1.bf16.msra.mxu0 %v10350_v21 }
 0x5ae   :  { %6555 = vmatpush1.bf16.msra.mxu1 %v10350_v21  ;;  %5607 = vmatprep.subr.bf16.mxu0 %v10355_v24 }
 0x5af   :  { %6556 = vmatprep.subr.bf16.mxu1 %v10355_v24 }
 0x5b1   :  { %5608 = vmatpush1.bf16.msra.mxu0 %v10353_v63 }
 0x5b2   :  { %6557 = vmatpush1.bf16.msra.mxu1 %v10353_v63 }
 0x5b4   :  { %5610 = vmatmul.mubr.bf16.vlgmr.msra.gmra.mrb[16].mxu0 %v4684_v42 }
 0x5b5   :  { %6559 = vmatmul.mubr.bf16.vlgmr.msra.gmra.mrb[16].mxu1 %v5633_v47 }
 0x687   :  { %v5611_v1 = vpop.f32.mrb[16].mxu0 }
 0x688   :  { %v6560_v10 = vpop.f32.mrb[16].mxu1  ;;  %v5613_v31 = vpop.f32.mrb[17].mxu0 }
 0x689   :  { %v9533_v22 = vpack.c.bf16 %v5613_v31, %v5611_v1  ;;  %v6562_v25 = vpop.f32.mrb[17].mxu1  ;;  %v5615_v49 = vpop.f32.mrb[18].mxu0 }
 0x68a   :  { %v9534_v35 = vpack.c.bf16 %v6562_v25, %v6560_v10  ;;  %v6564_v18 = vpop.f32.mrb[18].mxu1  ;;  %v5616_v27 = vpop.f32.mrb[19].mxu0 }
 0x68b   :  { %5626 = vst [vmem:[#allocation3] sm:$0x77] %v9533_v22  ;;  %v6565_v43 = vpop.f32.mrb[19].mxu1  ;;  %v12923_v1 = vpop.permute.xlu0 %10075 }
 0x68c   :  { %6575 = vst [vmem:[#allocation3 + $0x8] sm:$0x77] %v9534_v35  ;;  %v12936_v35 = vpop.permute.xlu1 %10080 }
 0x68f   :  { %v12938_v43 = vpop.permute.xlu0 %6708 }
 0x692   :  { %v6576_v16 = vld [vmem:[#allocation3] sm:$0x77] }
 0x693   :  { %v6698_v54 = vld [vmem:[#allocation3] sm:$0x77]  ;;  %6578 = vst [vmem:[#allocation4] sm:$0x77] %v6576_v16  ;;  %v6577_v2 = vld [vmem:[#allocation3 + $0x8] sm:$0x77] }
 0x694   :  { %6704 = vrot.lane.b32.xlu1 %v6698_v54, %s14594_s18  ;;  %v6699_v62 = vld [vmem:[#allocation3 + $0x8] sm:$0x77]  ;;  %6579 = vst [vmem:[#allocation4 + $0x8] sm:$0x77] %v6577_v2  ;;  %v6842_v60 = vld [vmem:[#allocation3] sm:$0x77] }
 0x695   :  { %6706 = vrot.lane.b32.xlu0 %v6699_v62, %s14594_s18  ;;  %v6843_v12 = vld [vmem:[#allocation3 + $0x8] sm:$0x77]  ;;  %v6985_v32 = vld [vmem:[#allocation3] sm:$0x77]  ;;  %s14666_s18 = smov 76  }
 0x696   :  { %v6986_v48 = vld [vmem:[#allocation3 + $0x8] sm:$0x77]  ;;  %v7127_v4 = vld [vmem:[#allocation3] sm:$0x77] }
 0x697   :  { %v7128_v51 = vld [vmem:[#allocation3 + $0x8] sm:$0x77]  ;;  %v7272_v33 = vld [vmem:[#allocation3] sm:$0x77] }
 0x698   :  { %6850 = vrot.lane.b32.xlu1 %v6843_v12, %s10474_s20  ;;  %v12842_v57 = vld [vmem:[#allocation3] sm:$0x77]  ;;  %v7273_v58 = vld [vmem:[#allocation3 + $0x8] sm:$0x77] }
 0x699   :  { %6848 = vrot.lane.b32.xlu0 %v6842_v60, %s10474_s20  ;;  %v6673_v41 = vld [vmem:[#allocation3 + $0x8] sm:$0x77]  ;;  %v6586_v29 = vrot.slane %v12842_v57, 5  ;;  %v12857_v28 = vld [vmem:[#allocation3] sm:$0x77]  ;;  %v12952_v60 = vpop.permute.xlu1 %6828 }
 0x69a   :  { %v6679_v39 = vrot.slane %v6673_v41, 7  ;;  %v12847_v61 = vld [vmem:[#allocation3 + $0x8] sm:$0x77]  ;;  %v12862_v23 = vld [vmem:[#allocation3] sm:$0x77]  ;;  %v6632_v30 = vrot.slane %v12857_v28, 6 }
 0x69b   :  { %v12852_v56 = vld [vmem:[#allocation3 + $0x8] sm:$0x77]  ;;  %v6587_v52 = vrot.slane %v12847_v61, 5  ;;  %v6774_v38 = vrot.slane %v12862_v23, 6  ;;  %v6815_v36 = vld [vmem:[#allocation3] sm:$0x77] }
 0x69c   :  { %6991 = vrot.lane.b32.xlu1 %v6985_v32, %s14581_s24  ;;  %v6728_v19 = vrot.slane %v12852_v56, 5  ;;  %v12869_v37 = vld [vmem:[#allocation3 + $0x8] sm:$0x77]  ;;  %v6821_v21 = vrot.slane %v6815_v36, 7  ;;  %v6672_v40 = vld [vmem:[#allocation3] sm:$0x77]  ;;  %v12957_v32 = vpop.permute.xlu0 %10085 }
 0x69d   :  { %6993 = vrot.lane.b32.xlu0 %v6986_v48, %s14581_s24  ;;  %v6633_v59 = vrot.slane %v12869_v37, 6  ;;  %v12881_v24 = vld [vmem:[#allocation3] sm:$0x77]  ;;  %v6678_v7 = vrot.slane %v6672_v40, 7  ;;  %v12895_v47 = vld [vmem:[#allocation3 + $0x8] sm:$0x77]  ;;  %v12970_v41 = vpop.permute.xlu1 %10090 }
 0x69e   :  { %v6872_v44 = vrot.slane %v12881_v24, 5  ;;  %v12885_v63 = vld [vmem:[#allocation3] sm:$0x77]  ;;  %v6960_v53 = vld [vmem:[#allocation3 + $0x8] sm:$0x77]  ;;  %v6775_v9 = vrot.slane %v12895_v47, 6 }
 0x69f   :  { %v12888_v14 = vld [vmem:[#allocation3] sm:$0x77]  ;;  %v6727_v46 = vrot.slane %v12885_v63, 5  ;;  %v6966_v11 = vrot.slane %v6960_v53, 7  ;;  %v6816_v20 = vld [vmem:[#allocation3 + $0x8] sm:$0x77] }
 0x6a0   :  { %7135 = vrot.lane.b32.xlu1 %v7128_v51, %s10477_s4  ;;  %v14540_v42 = vrot.slane %v12888_v14, 6  ;;  %v12909_v17 = vld [vmem:[#allocation3 + $0x8] sm:$0x77]  ;;  %v6822_v26 = vrot.slane %v6816_v20, 7  ;;  %v12916_v15 = vld [vmem:[#allocation3] sm:$0x77] }
 0x6a1   :  { %7133 = vrot.lane.b32.xlu0 %v7127_v4, %s10477_s4  ;;  %v14539_v0 = vrot.slane %v12909_v17, 5  ;;  %v12913_v34 = vld [vmem:[#allocation3 + $0x8] sm:$0x77]  ;;  %v7060_v31 = vrot.slane %v12916_v15, 6  ;;  %v7100_v25 = vld [vmem:[#allocation3] sm:$0x77] }
 0x6a2   :  { %v14542_v10 = vrot.slane %v12913_v34, 5  ;;  %v12927_v22 = vld [vmem:[#allocation3 + $0x8] sm:$0x77]  ;;  %v7106_v18 = vrot.slane %v7100_v25, 7  ;;  %v6959_v27 = vld [vmem:[#allocation3] sm:$0x77] }
 0x6a3   :  { %v6920_v49 = vrot.slane %v12927_v22, 6  ;;  %v12943_v16 = vld [vmem:[#allocation3] sm:$0x77]  ;;  %s14663_s24 = smov 80   ;;  %v6965_v54 = vrot.slane %v6959_v27, 7  ;;  %v6590_v24 = vrot.slane %v6587_v52, 4 }
 0x6a4   :  { %7278 = vrot.lane.b32.xlu1 %v7272_v33, %s14583_s25  ;;  %v7157_v2 = vrot.slane %v12943_v16, 5  ;;  %v12947_v62 = vld [vmem:[#allocation3] sm:$0x77]  ;;  %v12961_v4 = vld [vmem:[#allocation3 + $0x8] sm:$0x77]  ;;  %v6635_v57 = vrot.slane %v6632_v30, 4 }
 0x6a5   :  { %7280 = vrot.lane.b32.xlu0 %v7273_v58, %s14583_s25  ;;  %v12950_v12 = vld [vmem:[#allocation3] sm:$0x77]  ;;  %s14664_s25 = smov 78   ;;  %v7014_v48 = vrot.slane %v12947_v62, 5  ;;  %v7246_v33 = vld [vmem:[#allocation3 + $0x8] sm:$0x77] }
 0x6a6   :  { %v14536_v51 = vrot.slane %v12950_v12, 6  ;;  %v14537_v58 = vrot.slane %v12961_v4, 6  ;;  %v7101_v36 = vld [vmem:[#allocation3 + $0x8] sm:$0x77]  ;;  %v12984_v20 = vld [vmem:[#allocation3] sm:$0x77] }
 0x6a7   :  { %v12977_v40 = vld [vmem:[#allocation3 + $0x8] sm:$0x77]  ;;  %v14541_v27 = vrot.slane %v12984_v20, 6  ;;  %v6731_v22 = vrot.slane %v6728_v19, 4  ;;  %v14667_v47 = vrot.slane %v12913_v34, 5  ;;  %s14748_s4 = sld [smem:[#allocation37_spill]] }
 0x6a8   :  { %6592 = vrot.lane.b32.xlu1 %v6586_v29, %s14591_s28  ;;  %v14535_v53 = vrot.slane %v12977_v40, 5 }
 0x6a9   :  { %6683 = vrot.lane.b32.xlu0 %v6679_v39, %s14592_s27  ;;  %v7252_v39 = vrot.slane %v7246_v33, 7  ;;  %v7387_v33 = vld [vmem:[#allocation3] sm:$0x77] }
 0x6ac   :  { %6594 = vrot.lane.b32.xlu1 %v6587_v52, %s14591_s28 }
 0x6ad   :  { %6735 = vrot.lane.b32.xlu0 %v6728_v19, %s10471_s29 }
 0x6b0   :  { %6638 = vrot.lane.b32.xlu1 %v6632_v30, %s14593_s26  ;;  %v6778_v30 = vrot.slane %v6775_v9, 4 }
 0x6b1   :  { %6780 = vrot.lane.b32.xlu0 %v6774_v38, %s10472_s3 }
 0x6b4   :  { %6640 = vrot.lane.b32.xlu1 %v6633_v59, %s14593_s26 }
 0x6b5   :  { %6824 = vrot.lane.b32.xlu0 %v6821_v21, %s10473_s14  ;;  %v12972_v21 = vpop.permute.xlu0 %6852 }
 0x6b6   :  { %v6856_v56 = vrot.slane %v12972_v21, 4 }
 0x6b8   :  { %6681 = vrot.lane.b32.xlu1 %v6678_v7, %s14592_s27  ;;  %s14665_s27 = smov 77   ;;  %v7107_v7 = vrot.slane %v7101_v36, 7 }
 0x6b9   :  { %6878 = vrot.lane.b32.xlu0 %v6872_v44, %s14662_s5  ;;  %v12991_v25 = vpop.permute.xlu0 %10095 }
 0x6bc   :  { %6733 = vrot.lane.b32.xlu1 %v6727_v46, %s10471_s29 }
 0x6bd   :  { %6925 = vrot.lane.b32.xlu0 %v14540_v42, %s14596_s30 }
 0x6c0   :  { %6782 = vrot.lane.b32.xlu1 %v6775_v9, %s10472_s3  ;;  %v6876_v9 = vrot.slane %v14667_v47, 4 }
 0x6c1   :  { %6970 = vrot.lane.b32.xlu0 %v6966_v11, %s14595_s17  ;;  %v12981_v11 = vld [vmem:[#allocation3 + $0x8] sm:$0x77] }
 0x6c4   :  { %6826 = vrot.lane.b32.xlu1 %v6822_v26, %s10473_s14  ;;  %v12986_v26 = vpop.permute.xlu1 %6972  ;;  %s14740_s14 = sld [smem:[#allocation35_spill]] }
 0x6c5   :  { %7022 = vrot.lane.b32.xlu0 %v14539_v0, %s14582_s0  ;;  %v7295_v0 = vld [vmem:[#allocation3] sm:$0x77] }
 0x6c8   :  { %6880 = vrot.lane.b32.xlu1 %v14542_v10, %s14662_s5  ;;  %v13001_v36 = vpop.permute.xlu1 %10100  ;;  %v13017_v10 = vld [vmem:[#allocation3 + $0x8] sm:$0x77] }
 0x6c9   :  { %7066 = vrot.lane.b32.xlu0 %v7060_v31, %s14584_s23  ;;  %v7348_v37 = vrot.slane %v13017_v10, 6 }
 0x6cc   :  { %6927 = vrot.lane.b32.xlu1 %v6920_v49, %s14596_s30  ;;  %v13010_v42 = vpop.permute.xlu1 %7113 }
 0x6cd   :  { %7109 = vrot.lane.b32.xlu0 %v7106_v18, %s14663_s24  ;;  %v14538_v18 = vrot.slane %v12981_v11, 5 }
 0x6d0   :  { %6968 = vrot.lane.b32.xlu1 %v6965_v54, %s14595_s17  ;;  %v7199_v54 = vld [vmem:[#allocation3 + $0x8] sm:$0x77] }
 0x6d1   :  { %7163 = vrot.lane.b32.xlu0 %v7157_v2, %s14664_s25 }
 0x6d4   :  { %7020 = vrot.lane.b32.xlu1 %v7014_v48, %s14582_s0 }
 0x6d5   :  { %7210 = vrot.lane.b32.xlu0 %v14536_v51, %s14665_s27  ;;  %v13003_v51 = vpop.permute.xlu0 %6995 }
 0x6d8   :  { %7068 = vrot.lane.b32.xlu1 %v14537_v58, %s14584_s23 }
 0x6d9   :  { %7256 = vrot.lane.b32.xlu0 %v7252_v39, %s14666_s18  ;;  %v7205_v39 = vrot.slane %v7199_v54, 6  ;;  %v13013_v54 = vpop.permute.xlu0 %10105 }
 0x6db   :  { %v7208_v62 = vrot.slane %v7205_v39, 4 }
 0x6dc   :  { %7111 = vrot.lane.b32.xlu1 %v7107_v7, %s14663_s24  ;;  %v7393_v7 = vrot.slane %v7387_v33, 7  ;;  %v7301_v33 = vrot.slane %v7295_v0, 5 }
 0x6dd   :  { %7309 = vrot.lane.b32.xlu0 %v14535_v53, %s14585_s22  ;;  %v7245_v53 = vld [vmem:[#allocation3] sm:$0x77] }
 0x6de   :  { %v7251_v58 = vrot.slane %v7245_v53, 7  ;;  %v7388_v53 = vld [vmem:[#allocation3 + $0x8] sm:$0x77] }
 0x6df   :  { %v7394_v63 = vrot.slane %v7388_v53, 7 }
 0x6e0   :  { %7165 = vrot.lane.b32.xlu1 %v14538_v18, %s14664_s25  ;;  %v6636_v18 = vrot.slane %v6633_v59, 4  ;;  %v13022_v59 = vpop.permute.xlu1 %10110 }
 0x6e1   :  { %7353 = vrot.lane.b32.xlu0 %v14541_v27, %s14586_s2  ;;  %v6730_v27 = vrot.slane %v6727_v46, 4  ;;  %v6875_v46 = vrot.slane %v6872_v44, 4 }
 0x6e4   :  { %7212 = vrot.lane.b32.xlu1 %v7205_v39, %s14665_s27  ;;  %v13035_v0 = vpop.permute.xlu1 %7258 }
 0x6e5   :  { %7396 = vrot.lane.b32.xlu0 %v7393_v7, %s14588_s19  ;;  %v7017_v7 = vrot.slane %v7014_v48, 4  ;;  %v6712_v48 = vrot.slane %v12938_v43, 4 }
 0x6e8   :  { %7254 = vrot.lane.b32.xlu1 %v7251_v58, %s14666_s18  ;;  %v6777_v58 = vrot.slane %v6774_v38, 4  ;;  %v6589_v38 = vrot.slane %v6586_v29, 4  ;;  %v13048_v44 = vpop.permute.xlu1 %10120  ;;  %v7063_v29 = vrot.slane %v7060_v31, 4  ;;  %s14750_s18 = sld [smem:[#allocation41_spill]] }
 0x6e9   :  { %6646 = vrot.lane.b32.xlu0 %v6636_v18, %s14593_s26  ;;  %v13026_v18 = vpop.permute.xlu0 %7137 }
 0x6ec   :  { %7307 = vrot.lane.b32.xlu1 %v7301_v33, %s14585_s22  ;;  %v13061_v61 = vpop.permute.xlu1 %7400 }
 0x6ed   :  { %6739 = vrot.lane.b32.xlu0 %v6730_v27, %s10471_s29  ;;  %v13038_v23 = vpop.permute.xlu0 %10115  ;;  %v6923_v27 = vrot.slane %v6920_v49, 4  ;;  %v7160_v49 = vrot.slane %v7157_v2, 4 }
 0x6f0   :  { %7355 = vrot.lane.b32.xlu1 %v7348_v37, %s14586_s2 }
 0x6f1   :  { %6786 = vrot.lane.b32.xlu0 %v6777_v58, %s10472_s3  ;;  %v13052_v58 = vpop.permute.xlu0 %7282 }
 0x6f4   :  { %7398 = vrot.lane.b32.xlu1 %v7394_v63, %s14588_s19  ;;  %s14745_s19 = sld [smem:[#allocation38_spill]] }
 0x6f5   :  { %6884 = vrot.lane.b32.xlu0 %v6875_v46, %s14662_s5  ;;  %v13064_v52 = vpop.permute.xlu0 %10125 }
 0x6f8   :  { %6598 = vrot.lane.b32.xlu1 %v6589_v38, %s14591_s28  ;;  %v7304_v38 = vrot.slane %v7301_v33, 4 }
 0x6f9   :  { %6933 = vrot.lane.b32.xlu0 %v6923_v27, %s14596_s30 }
 0x6fc   :  { %6600 = vrot.lane.b32.xlu1 %v6590_v24, %s14591_s28 }
 0x6fd   :  { %7026 = vrot.lane.b32.xlu0 %v7017_v7, %s14582_s0 }
 0x700   :  { %6644 = vrot.lane.b32.xlu1 %v6635_v57, %s14593_s26  ;;  %v14668_v57 = vrot.slane %v12888_v14, 6 }
 0x701   :  { %7072 = vrot.lane.b32.xlu0 %v7063_v29, %s14584_s23 }
 0x702   :  { %v6922_v29 = vrot.slane %v14668_v57, 4 }
 0x704   :  { %6741 = vrot.lane.b32.xlu1 %v6731_v22, %s10471_s29 }
 0x705   :  { %7169 = vrot.lane.b32.xlu0 %v7160_v49, %s14664_s25 }
 0x706   :  { %v6705_v28 = vpop.permute.xlu1 %6704 }
 0x707   :  { %v6710_v15 = vrot.slane %v6705_v28, 4  ;;  %v6707_v31 = vpop.permute.xlu0 %6706 }
 0x708   :  { %v6711_v53 = vrot.slane %v6707_v31, 4  ;;  %6788 = vrot.lane.b32.xlu1 %v6778_v30, %s10472_s3 }
 0x709   :  { %7218 = vrot.lane.b32.xlu0 %v7208_v62, %s14665_s27  ;;  %v7141_v62 = vrot.slane %v13026_v18, 4 }
 0x70a   :  { %v6713_v19 = vsel %vm250_vm0, %v6710_v15, %v6711_v53  ;;  %v6715_v16 = vsel %vm250_vm0, %v6711_v53, %v6712_v48  ;;  %v6851_v2 = vpop.permute.xlu1 %6850  ;;  %v6999_v15 = vrot.slane %v13003_v51, 4 }
 0x70b   :  { %v6714_v39 = vsel %vm664_vm4, %v6705_v28, %v6713_v19  ;;  %v6716_v43 = vsel %vm664_vm4, %v6707_v31, %v6715_v16  ;;  %v6855_v63 = vrot.slane %v6851_v2, 4  ;;  %v6849_v46 = vpop.permute.xlu0 %6848  ;;  %v14669_v28 = vrot.slane %v12984_v20, 6 }
 0x70c   :  { %6719 = vst [vmem:[#allocation4 + $0x30] sm:$0x77] %v6714_v39  ;;  %6720 = vst [vmem:[#allocation4 + $0x38] sm:$0x77] %v6716_v43  ;;  %v6854_v21 = vrot.slane %v6849_v46, 4  ;;  %6886 = vrot.lane.b32.xlu1 %v6876_v9, %s14662_s5  ;;  %vm7143_vm4 = vcmask 646144  }
 0x70d   :  { %v6860_v27 = vsel %vm250_vm0, %v6855_v63, %v6856_v56  ;;  %7313 = vrot.lane.b32.xlu0 %v7304_v38, %s14585_s22  ;;  %v7350_v30 = vrot.slane %v14669_v28, 4  ;;  %v14670_v56 = vrot.slane %v12909_v17, 5  ;;  %v7413_v9 = vld [vmem:[#allocation3] sm:$0x77]  ;;  %v7286_v17 = vrot.slane %v13052_v58, 4  ;;  %s14749_s5 = sld [smem:[#allocation39_spill]] }
 0x70e   :  { %v6861_v24 = vsel %vm6858_vm12, %v6851_v2, %v6860_v27  ;;  %v6857_v34 = vsel %vm250_vm0, %v6854_v21, %v6855_v63  ;;  %v6992_v7 = vpop.permute.xlu1 %6991  ;;  %v7415_v21 = vld [vmem:[#allocation3 + $0x10] sm:$0x7] }
 0x70f   :  { %6865 = vst [vmem:[#allocation4 + $0x68] sm:$0x77] %v6861_v24  ;;  %v6859_v33 = vsel %vm6858_vm12, %v6849_v46, %v6857_v34  ;;  %v6997_v22 = vrot.slane %v6992_v7, 4  ;;  %v6994_v49 = vpop.permute.xlu0 %6993  ;;  %v7018_v19 = vrot.slane %v14670_v56, 4  ;;  %v14671_v46 = vrot.slane %v12961_v4, 6  ;;  %vm14680_vm12 = vmmov %vm14679_vm11 }
 0x710   :  { %6864 = vst [vmem:[#allocation4 + $0x60] sm:$0x77] %v6859_v33  ;;  %v6998_v31 = vrot.slane %v6994_v49, 4  ;;  %6931 = vrot.lane.b32.xlu1 %v6922_v29, %s14596_s30  ;;  %v14672_v4 = vrot.slane %v12981_v11, 5 }
 0x711   :  { %7359 = vrot.lane.b32.xlu0 %v7350_v30, %s14586_s2  ;;  %v7064_v38 = vrot.slane %v14671_v46, 4  ;;  %v10077_v46 = vunpack.i.l.bf16 %v12923_v1 }
 0x712   :  { %v7000_v14 = vsel %vm250_vm0, %v6997_v22, %v6998_v31  ;;  %v7002_v48 = vsel %vm250_vm0, %v6998_v31, %v6999_v15  ;;  %v7136_v53 = vpop.permute.xlu1 %7135  ;;  %v7161_v33 = vrot.slane %v14672_v4, 4  ;;  %v10072_v22 = vunpack.i.l.bf16 %v12904_v55 }
 0x713   :  { %v7001_v20 = vsel %vm1077_vm7, %v6992_v7, %v7000_v14  ;;  %v7003_v51 = vsel %vm1077_vm7, %v6994_v49, %v7002_v48  ;;  %v7140_v16 = vrot.slane %v7136_v53, 4  ;;  %v7134_v2 = vpop.permute.xlu0 %7133  ;;  %v6689_v15 = vrot.slane %v12918_v3, 4 }
 0x714   :  { %7006 = vst [vmem:[#allocation4 + $0x90] sm:$0x77] %v7001_v20  ;;  %7007 = vst [vmem:[#allocation4 + $0x98] sm:$0x77] %v7003_v51  ;;  %v7139_v47 = vrot.slane %v7134_v2, 4  ;;  %7028 = vrot.lane.b32.xlu1 %v7018_v19, %s14582_s0  ;;  %v10082_v31 = vunpack.i.l.bf16 %v12936_v35  ;;  %v14673_v48 = vrot.slane %v12950_v12, 6 }
 0x715   :  { %v7145_v18 = vsel %vm250_vm0, %v7140_v16, %v7141_v62  ;;  %7419 = vrot.lane.b32.xlu0 %v7413_v9, %s14587_s21  ;;  %v6606_v56 = vrot.slane %v10072_v22, 4  ;;  %vm6752_vm7 = vcmask 916480  }
 0x716   :  { %v7146_v39 = vsel %vm7143_vm4, %v7136_v53, %v7145_v18  ;;  %v7142_v43 = vsel %vm250_vm0, %v7139_v47, %v7140_v16  ;;  %v7279_v63 = vpop.permute.xlu1 %7278  ;;  %v7207_v53 = vrot.slane %v14673_v48, 4  ;;  %v6747_v3 = vrot.slane %v10082_v31, 4  ;;  %v10414_v31 = vld [vmem:[%s14433_s6 + $0x4] ss:$8 sps:$4 sm:$0xff]  }
 0x717   :  { %7150 = vst [vmem:[#allocation4 + $0xc8] sm:$0x77] %v7146_v39  ;;  %v7144_v27 = vsel %vm7143_vm4, %v7134_v2, %v7142_v43  ;;  %v7284_v24 = vrot.slane %v7279_v63, 4  ;;  %v7281_v34 = vpop.permute.xlu0 %7280  ;;  %v14674_v43 = vrot.slane %v12977_v40, 5  ;;  %vm7119_vm4 = vcmask 654336  }
 0x718   :  { %7149 = vst [vmem:[#allocation4 + $0xc0] sm:$0x77] %v7144_v27  ;;  %v7285_v7 = vrot.slane %v7281_v34, 4  ;;  %7074 = vrot.lane.b32.xlu1 %v7064_v38, %s14584_s23 }
 0x719   :  { %7423 = vrot.lane.b32.xlu0 %v7415_v21, %s14587_s21 }
 0x71a   :  { %v7287_v58 = vsel %vm250_vm0, %v7284_v24, %v7285_v7  ;;  %v7289_v57 = vsel %vm250_vm0, %v7285_v7, %v7286_v17  ;;  %v6593_v29 = vpop.permute.xlu1 %6592  ;;  %v7351_v24 = vrot.slane %v7348_v37, 4  ;;  %v7414_v37 = vld [vmem:[#allocation3 + $0x8] sm:$0x77] }
 0x71b   :  { %v7288_v49 = vsel %vm1489_vm10, %v7279_v63, %v7287_v58  ;;  %v7290_v28 = vsel %vm1489_vm10, %v7281_v34, %v7289_v57  ;;  %v6684_v30 = vpop.permute.xlu0 %6683  ;;  %v6604_v19 = vrot.slane %v6593_v29, 4  ;;  %v7305_v63 = vrot.slane %v14674_v43, 4 }
 0x71c   :  { %7293 = vst [vmem:[#allocation4 + $0xf0] sm:$0x77] %v7288_v49  ;;  %7294 = vst [vmem:[#allocation4 + $0xf8] sm:$0x77] %v7290_v28  ;;  %v6688_v62 = vrot.slane %v6684_v30, 4  ;;  %7171 = vrot.lane.b32.xlu1 %v7161_v33, %s14664_s25  ;;  %v6652_v34 = vrot.slane %v10077_v46, 4 }
 0x71d   :  { %vm7675_vm10 = vcmask 179200   ;;  %s14716_s25 = sld [smem:[#allocation34_spill]] }
 0x71e   :  { %v6692_v14 = vsel %vm250_vm0, %v6688_v62, %v6689_v15  ;;  %v6595_v11 = vpop.permute.xlu1 %6594  ;;  %9523 = vmatprep.mubr.msk.bf16.mxu0 %vm7675_vm10, %v10414_v31  ;;  %9525 = vmatprep.mubr.msk.bf16.mxu1 %vm7675_vm10, %v10414_v31  ;;  %vm14681_vm10 = vcmask 515072  }
 0x71f   :  { %v6693_v20 = vsel %vm527_vm3, %v6684_v30, %v6692_v14  ;;  %v6736_v51 = vpop.permute.xlu0 %6735  ;;  %v6605_v16 = vrot.slane %v6595_v11, 4  ;;  %v10087_v14 = vunpack.i.l.bf16 %v12957_v32 }
 0x720   :  { %6697 = vst [vmem:[#allocation4 + $0x28] sm:$0xee] %v6693_v20  ;;  %v6746_v2 = vrot.slane %v6736_v51, 4  ;;  %7216 = vrot.lane.b32.xlu1 %v7207_v53, %s14665_s27  ;;  %s14747_s27 = sld [smem:[#allocation40_spill]] }
 0x721   :  { %v6610_v47 = vsel %vm250_vm0, %v6604_v19, %v6605_v16  ;;  %v6612_v9 = vsel %vm250_vm0, %v6605_v16, %v6606_v56  ;;  %v6794_v19 = vrot.slane %v10087_v14, 4 }
 0x722   :  { %v6754_v18 = vsel %vm250_vm0, %v6746_v2, %v6747_v3  ;;  %v6611_v12 = vsel %vm252_vm2, %v6593_v29, %v6610_v47  ;;  %v6613_v17 = vsel %vm252_vm2, %v6595_v11, %v6612_v9  ;;  %v6639_v39 = vpop.permute.xlu1 %6638  ;;  %v6976_v3 = vrot.slane %v12986_v26, 4 }
 0x723   :  { %v6755_v38 = vsel %vm6752_vm7, %v6736_v51, %v6754_v18  ;;  %6622 = vst [vmem:[#allocation4] sm:$0x88] %v6611_v12  ;;  %6623 = vst [vmem:[#allocation4 + $0x8] sm:$0x88] %v6613_v17  ;;  %v6781_v21 = vpop.permute.xlu0 %6780  ;;  %v6650_v7 = vrot.slane %v6639_v39, 4  ;;  %v10102_v47 = vunpack.i.l.bf16 %v13001_v36  ;;  %v10092_v18 = vunpack.i.l.bf16 %v12970_v41 }
 0x724   :  { %6765 = vst [vmem:[#allocation4 + $0x38] sm:$0x88] %v6755_v38  ;;  %7315 = vrot.lane.b32.xlu1 %v7305_v63, %s14585_s22  ;;  %v6792_v20 = vrot.slane %v6781_v21, 4  ;;  %v6832_v17 = vrot.slane %v12952_v60, 4  ;;  %s10485_s22 = smov [#allocation6]  }
 0x726   :  { %v6641_v27 = vpop.permute.xlu1 %6640 }
 0x727   :  { %v6825_v58 = vpop.permute.xlu0 %6824  ;;  %v6651_v57 = vrot.slane %v6641_v27, 4 }
 0x728   :  { %7361 = vrot.lane.b32.xlu1 %v7351_v24, %s14586_s2  ;;  %v6830_v38 = vrot.slane %v6825_v58, 4  ;;  %s14739_s2 = sld [smem:[#allocation36_spill]] }
 0x729   :  { %v6656_v40 = vsel %vm250_vm0, %v6650_v7, %v6651_v57  ;;  %v6658_v29 = vsel %vm250_vm0, %v6651_v57, %v6652_v34  ;;  %v7034_v34 = vrot.slane %v10102_v47, 4  ;;  %v6892_v57 = vrot.slane %v10092_v18, 4 }
 0x72a   :  { %v6657_v4 = vsel %vm389_vm1, %v6639_v39, %v6656_v40  ;;  %v6659_v33 = vsel %vm389_vm1, %v6641_v27, %v6658_v29  ;;  %v6682_v22 = vpop.permute.xlu1 %6681 }
 0x72b   :  { %6668 = vst [vmem:[#allocation4 + $0x10] sm:$0xcc] %v6657_v4  ;;  %6669 = vst [vmem:[#allocation4 + $0x18] sm:$0xcc] %v6659_v33  ;;  %v13147_v49 = vpop.permute.xlu0 %6878  ;;  %v6687_v10 = vrot.slane %v6682_v22, 4 }
 0x72c   :  { %7421 = vrot.lane.b32.xlu1 %v7414_v37, %s14587_s21 }
 0x72d   :  { %v6690_v28 = vsel %vm250_vm0, %v6687_v10, %v6688_v62  ;;  %v6890_v10 = vrot.slane %v13147_v49, 4 }
 0x72e   :  { %v6691_v30 = vsel %vm527_vm3, %v6682_v22, %v6690_v28  ;;  %v6734_v15 = vpop.permute.xlu1 %6733  ;;  %vm6799_vm3 = vcmask 908288  }
 0x72f   :  { %6696 = vst [vmem:[#allocation4 + $0x20] sm:$0xee] %v6691_v30  ;;  %v13156_v11 = vpop.permute.xlu0 %6925  ;;  %v6745_v48 = vrot.slane %v6734_v15, 4 }
 0x731   :  { %v6751_v53 = vsel %vm250_vm0, %v6745_v48, %v6746_v2 }
 0x732   :  { %v6753_v62 = vsel %vm6752_vm7, %v6734_v15, %v6751_v53  ;;  %v6783_v56 = vpop.permute.xlu1 %6782 }
 0x733   :  { %6764 = vst [vmem:[#allocation4 + $0x30] sm:$0x88] %v6753_v62  ;;  %v6971_v51 = vpop.permute.xlu0 %6970  ;;  %v6793_v16 = vrot.slane %v6783_v56, 4  ;;  %v6937_v62 = vrot.slane %v13156_v11, 4 }
 0x734   :  { %v6975_v9 = vrot.slane %v6971_v51, 4 }
 0x735   :  { %v6798_v12 = vsel %vm250_vm0, %v6792_v20, %v6793_v16  ;;  %v6801_v2 = vsel %vm250_vm0, %v6793_v16, %v6794_v19 }
 0x736   :  { %v6979_v39 = vsel %vm250_vm0, %v6975_v9, %v6976_v3  ;;  %v6800_v43 = vsel %vm6799_vm3, %v6781_v21, %v6798_v12  ;;  %v6802_v63 = vsel %vm6799_vm3, %v6783_v56, %v6801_v2  ;;  %v6827_v46 = vpop.permute.xlu1 %6826  ;;  %v10097_v21 = vunpack.i.l.bf16 %v12991_v25 }
 0x737   :  { %v6980_v26 = vsel %vm939_vm6, %v6971_v51, %v6979_v39  ;;  %6811 = vst [vmem:[#allocation4 + $0x40] sm:$0xcc] %v6800_v43  ;;  %6812 = vst [vmem:[#allocation4 + $0x48] sm:$0xcc] %v6802_v63  ;;  %v7023_v27 = vpop.permute.xlu0 %7022  ;;  %v6831_v24 = vrot.slane %v6827_v46, 4  ;;  %v10107_v39 = vunpack.i.l.bf16 %v13013_v54 }
 0x738   :  { %6984 = vst [vmem:[#allocation4 + $0x88] sm:$0xee] %v6980_v26  ;;  %v7033_v7 = vrot.slane %v7023_v27, 4  ;;  %v6939_v53 = vrot.slane %v10097_v21, 4 }
 0x739   :  { %v6833_v60 = vsel %vm250_vm0, %v6830_v38, %v6831_v24  ;;  %v6836_v40 = vsel %vm250_vm0, %v6831_v24, %v6832_v17  ;;  %v7080_v26 = vrot.slane %v10107_v39, 4 }
 0x73a   :  { %v7040_v29 = vsel %vm250_vm0, %v7033_v7, %v7034_v34  ;;  %v6835_v4 = vsel %vm6834_vm14, %v6825_v58, %v6833_v60  ;;  %v6837_v33 = vsel %vm6834_vm14, %v6827_v46, %v6836_v40  ;;  %v6881_v22 = vpop.permute.xlu1 %6880  ;;  %v7262_v34 = vrot.slane %v13035_v0, 4 }
 0x73b   :  { %v7041_v37 = vsel %vm14675_vm15, %v7023_v27, %v7040_v29  ;;  %6840 = vst [vmem:[#allocation4 + $0x50] sm:$0xee] %v6835_v4  ;;  %6841 = vst [vmem:[#allocation4 + $0x58] sm:$0xee] %v6837_v33  ;;  %v7067_v28 = vpop.permute.xlu0 %7066  ;;  %v6891_v30 = vrot.slane %v6881_v22, 4  ;;  %v10112_v40 = vunpack.i.l.bf16 %v13022_v59  ;;  %v7117_v29 = vrot.slane %v13010_v42, 4 }
 0x73c   :  { %7051 = vst [vmem:[#allocation4 + $0x98] sm:$0x88] %v7041_v37  ;;  %v7078_v27 = vrot.slane %v7067_v28, 4  ;;  %vm7182_vm14 = vcmask 637952   ;;  %vm7229_vm15 = vcmask 629760  }
 0x73d   :  { %v6896_v15 = vsel %vm250_vm0, %v6890_v10, %v6891_v30  ;;  %v6899_v31 = vsel %vm250_vm0, %v6891_v30, %v6892_v57  ;;  %v10122_v57 = vunpack.i.l.bf16 %v13048_v44  ;;  %v7177_v42 = vrot.slane %v10112_v40, 4 }
 0x73e   :  { %v6898_v14 = vsel %vm6897_vm9, %v13147_v49, %v6896_v15  ;;  %v6900_v58 = vsel %vm6897_vm9, %v6881_v22, %v6899_v31  ;;  %v6928_v48 = vpop.permute.xlu1 %6927 }
 0x73f   :  { %6909 = vst [vmem:[#allocation4 + $0x60] sm:$0x88] %v6898_v14  ;;  %6910 = vst [vmem:[#allocation4 + $0x68] sm:$0x88] %v6900_v58  ;;  %v7110_v56 = vpop.permute.xlu0 %7109  ;;  %v6938_v19 = vrot.slane %v6928_v48, 4  ;;  %v7321_v31 = vrot.slane %v10122_v57, 4 }
 0x740   :  { %v7115_v10 = vrot.slane %v7110_v56, 4 }
 0x741   :  { %v6943_v20 = vsel %vm250_vm0, %v6937_v62, %v6938_v19  ;;  %v6945_v51 = vsel %vm250_vm0, %v6938_v19, %v6939_v53 }
 0x742   :  { %v6944_v16 = vsel %vm14676_vm8, %v13156_v11, %v6943_v20  ;;  %v6946_v3 = vsel %vm14677_vm5, %v6928_v48, %v6945_v51  ;;  %v6969_v49 = vpop.permute.xlu1 %6968  ;;  %v10117_v48 = vunpack.i.l.bf16 %v13038_v23  ;;  %vm14682_vm8 = vmmov %vm14681_vm10  ;;  %vm14683_vm5 = vcmask 506880  }
 0x743   :  { %6955 = vst [vmem:[#allocation4 + $0x70] sm:$0xcc] %v6944_v16  ;;  %6956 = vst [vmem:[#allocation4 + $0x78] sm:$0xcc] %v6946_v3  ;;  %v7164_v47 = vpop.permute.xlu0 %7163  ;;  %v6974_v18 = vrot.slane %v6969_v49, 4 }
 0x744   :  { %v7175_v51 = vrot.slane %v7164_v47, 4  ;;  %v7224_v39 = vrot.slane %v10117_v48, 4 }
 0x745   :  { %v6977_v12 = vsel %vm250_vm0, %v6974_v18, %v6975_v9 }
 0x746   :  { %v6978_v2 = vsel %vm939_vm6, %v6969_v49, %v6977_v12  ;;  %v7021_v17 = vpop.permute.xlu1 %7020  ;;  %vm7264_vm6 = vcmask 621568  }
 0x747   :  { %6983 = vst [vmem:[#allocation4 + $0x80] sm:$0xee] %v6978_v2  ;;  %v13190_v43 = vpop.permute.xlu0 %7210  ;;  %v7032_v63 = vrot.slane %v7021_v17, 4 }
 0x749   :  { %v7038_v11 = vsel %vm250_vm0, %v7032_v63, %v7033_v7  ;;  %v7222_v63 = vrot.slane %v13190_v43, 4 }
 0x74a   :  { %v7039_v46 = vsel %vm14678_vm13, %v7021_v17, %v7038_v11  ;;  %v7069_v38 = vpop.permute.xlu1 %7068  ;;  %vm14684_vm13 = vmmov %vm14683_vm5 }
 0x74b   :  { %7050 = vst [vmem:[#allocation4 + $0x90] sm:$0x88] %v7039_v46  ;;  %v13194_v24 = vpop.permute.xlu0 %7256  ;;  %v7079_v9 = vrot.slane %v7069_v38, 4 }
 0x74c   :  { %v7261_v60 = vrot.slane %v13194_v24, 4 }
 0x74d   :  { %v7084_v7 = vsel %vm250_vm0, %v7078_v27, %v7079_v9  ;;  %v7086_v21 = vsel %vm250_vm0, %v7079_v9, %v7080_v26 }
 0x74e   :  { %v7266_v4 = vsel %vm250_vm0, %v7261_v60, %v7262_v34  ;;  %v7085_v33 = vsel %vm14679_vm11, %v7067_v28, %v7084_v7  ;;  %v7087_v22 = vsel %vm14680_vm12, %v7069_v38, %v7086_v21  ;;  %v7112_v0 = vpop.permute.xlu1 %7111  ;;  %v10078_v38 = vunpack.i.h.bf16 %v12923_v1 }
 0x74f   :  { %v7267_v37 = vsel %vm7264_vm6, %v13194_v24, %v7266_v4  ;;  %7096 = vst [vmem:[#allocation4 + $0xa0] sm:$0xcc] %v7085_v33  ;;  %7097 = vst [vmem:[#allocation4 + $0xa8] sm:$0xcc] %v7087_v22  ;;  %v7310_v30 = vpop.permute.xlu0 %7309  ;;  %v7116_v15 = vrot.slane %v7112_v0, 4  ;;  %vm14687_vm12 = vcmask 785408  }
 0x750   :  { %7271 = vst [vmem:[#allocation4 + $0xe8] sm:$0xee] %v7267_v37  ;;  %v7320_v14 = vrot.slane %v7310_v30, 4  ;;  %v6655_v40 = vrot.slane %v10078_v38, 4 }
 0x751   :  { %v7118_v58 = vsel %vm250_vm0, %v7115_v10, %v7116_v15  ;;  %v7121_v28 = vsel %vm250_vm0, %v7116_v15, %v7117_v29 }
 0x752   :  { %v7327_v53 = vsel %vm250_vm0, %v7320_v14, %v7321_v31  ;;  %v7120_v62 = vsel %vm7119_vm4, %v7110_v56, %v7118_v58  ;;  %v7122_v19 = vsel %vm7119_vm4, %v7112_v0, %v7121_v28  ;;  %v7166_v20 = vpop.permute.xlu1 %7165  ;;  %vm14693_vm4 = vmmov %vm14682_vm8 }
 0x753   :  { %v7328_v16 = vsel %vm14681_vm10, %v7310_v30, %v7327_v53  ;;  %7125 = vst [vmem:[#allocation4 + $0xb0] sm:$0xee] %v7120_v62  ;;  %7126 = vst [vmem:[#allocation4 + $0xb8] sm:$0xee] %v7122_v19  ;;  %v7354_v3 = vpop.permute.xlu0 %7353  ;;  %v7176_v49 = vrot.slane %v7166_v20, 4 }
 0x754   :  { %7338 = vst [vmem:[#allocation4 + $0xf8] sm:$0x88] %v7328_v16  ;;  %v7365_v15 = vrot.slane %v7354_v3, 4  ;;  %v10098_v16 = vunpack.i.h.bf16 %v12991_v25  ;;  %vm14694_vm10 = vmmov %vm14693_vm4 }
 0x755   :  { %v7181_v18 = vsel %vm250_vm0, %v7175_v51, %v7176_v49  ;;  %v7184_v12 = vsel %vm250_vm0, %v7176_v49, %v7177_v42 }
 0x756   :  { %v7183_v2 = vsel %vm7182_vm14, %v7164_v47, %v7181_v18  ;;  %v7185_v17 = vsel %vm7182_vm14, %v7166_v20, %v7184_v12  ;;  %v7213_v56 = vpop.permute.xlu1 %7212 }
 0x757   :  { %7194 = vst [vmem:[#allocation4 + $0xc0] sm:$0x88] %v7183_v2  ;;  %7195 = vst [vmem:[#allocation4 + $0xc8] sm:$0x88] %v7185_v17  ;;  %v7397_v11 = vpop.permute.xlu0 %7396  ;;  %v7223_v46 = vrot.slane %v7213_v56, 4  ;;  %v10073_v17 = vunpack.i.h.bf16 %v12904_v55 }
 0x758   :  { %v7402_v19 = vrot.slane %v7397_v11, 4 }
 0x759   :  { %v7228_v26 = vsel %vm250_vm0, %v7222_v63, %v7223_v46  ;;  %v7231_v27 = vsel %vm250_vm0, %v7223_v46, %v7224_v39  ;;  %v6609_v46 = vrot.slane %v10073_v17, 4 }
 0x75a   :  { %v7230_v47 = vsel %vm7229_vm15, %v13190_v43, %v7228_v26  ;;  %v7232_v24 = vsel %vm7229_vm15, %v7213_v56, %v7231_v27  ;;  %v7255_v9 = vpop.permute.xlu1 %7254  ;;  %v10127_v43 = vunpack.i.l.bf16 %v13064_v52  ;;  %v6942_v56 = vrot.slane %v10098_v16, 4 }
 0x75b   :  { %7241 = vst [vmem:[#allocation4 + $0xd0] sm:$0xcc] %v7230_v47  ;;  %7242 = vst [vmem:[#allocation4 + $0xd8] sm:$0xcc] %v7232_v24  ;;  %v13224_v34 = vpop.permute.xlu0 %6646  ;;  %v7260_v57 = vrot.slane %v7255_v9, 4 }
 0x75c   :  { %v6654_v7 = vrot.slane %v13224_v34, 4  ;;  %v7367_v30 = vrot.slane %v10127_v43, 4 }
 0x75d   :  { %v7263_v1 = vsel %vm250_vm0, %v7260_v57, %v7261_v60  ;;  %v10083_v57 = vunpack.i.h.bf16 %v12936_v35  ;;  %v10118_v35 = vunpack.i.h.bf16 %v13038_v23 }
 0x75e   :  { %v6662_v21 = vsel %vm250_vm0, %v6654_v7, %v6655_v40  ;;  %v7265_v29 = vsel %vm7264_vm6, %v7255_v9, %v7263_v1  ;;  %v7308_v4 = vpop.permute.xlu1 %7307  ;;  %vm14685_vm6 = vcmask 498688  }
 0x75f   :  { %v6663_v33 = vsel %vm389_vm1, %v13224_v34, %v6662_v21  ;;  %7270 = vst [vmem:[#allocation4 + $0xe0] sm:$0xee] %v7265_v29  ;;  %v13233_v22 = vpop.permute.xlu0 %6739  ;;  %v7319_v0 = vrot.slane %v7308_v4, 4  ;;  %vm14686_vm11 = vmmov %vm14685_vm6  ;;  %v10088_v21 = vunpack.i.h.bf16 %v12957_v32 }
 0x760   :  { %6671 = vst [vmem:[#allocation4 + $0x28] sm:$0x11] %v6663_v33  ;;  %v6750_v33 = vrot.slane %v10083_v57, 4 }
 0x761   :  { %v7325_v10 = vsel %vm250_vm0, %v7319_v0, %v7320_v14  ;;  %v7404_v14 = vrot.slane %v13061_v61, 4  ;;  %v6748_v0 = vrot.slane %v13233_v22, 4 }
 0x762   :  { %v7326_v37 = vsel %vm14682_vm8, %v7308_v4, %v7325_v10  ;;  %v7356_v60 = vpop.permute.xlu1 %7355  ;;  %vm14697_vm8 = vcmask 490496  }
 0x763   :  { %7337 = vst [vmem:[#allocation4 + $0xf0] sm:$0x88] %v7326_v37  ;;  %v13237_v31 = vpop.permute.xlu0 %6786  ;;  %v7366_v42 = vrot.slane %v7356_v60, 4 }
 0x764   :  { %v6795_v32 = vrot.slane %v13237_v31, 4 }
 0x765   :  { %v7371_v58 = vsel %vm250_vm0, %v7365_v15, %v7366_v42  ;;  %v7373_v28 = vsel %vm250_vm0, %v7366_v42, %v7367_v30 }
 0x766   :  { %v7372_v48 = vsel %vm14683_vm5, %v7354_v3, %v7371_v58  ;;  %v7374_v53 = vsel %vm14684_vm13, %v7356_v60, %v7373_v28  ;;  %v7399_v62 = vpop.permute.xlu1 %7398  ;;  %v6797_v60 = vrot.slane %v10088_v21, 4  ;;  %vm7679_vm13 = vcmask 1042432  }
 0x767   :  { %7383 = vst [vmem:[#allocation4 + $0x100] sm:$0xcc] %v7372_v48  ;;  %7384 = vst [vmem:[#allocation4 + $0x108] sm:$0xcc] %v7374_v53  ;;  %v13244_v20 = vpop.permute.xlu0 %6884  ;;  %v7403_v51 = vrot.slane %v7399_v62, 4  ;;  %v10093_v53 = vunpack.i.h.bf16 %v12970_v41 }
 0x769   :  { %v7405_v49 = vsel %vm250_vm0, %v7402_v19, %v7403_v51  ;;  %v7407_v18 = vsel %vm250_vm0, %v7403_v51, %v7404_v14  ;;  %v7227_v51 = vrot.slane %v10118_v35, 4 }
 0x76a   :  { %v7406_v12 = vsel %vm14685_vm6, %v7397_v11, %v7405_v49  ;;  %v7408_v3 = vsel %vm14686_vm11, %v7399_v62, %v7407_v18  ;;  %v6599_v2 = vpop.permute.xlu1 %6598  ;;  %v10364_v18 = vld [vmem:[#allocation4 + $0x2c] ss:$16 sps:$4 sm:$0xff]   ;;  %vm8233_vm6 = vcmask 130048  }
 0x76b   :  { %7411 = vst [vmem:[#allocation4 + $0x110] sm:$0xee] %v7406_v12  ;;  %7412 = vst [vmem:[#allocation4 + $0x118] sm:$0xee] %v7408_v3  ;;  %v13252_v61 = vpop.permute.xlu0 %6933  ;;  %v6607_v38 = vrot.slane %v6599_v2, 4 }
 0x76c   :  { %v6941_v39 = vrot.slane %v13252_v61, 4 }
 0x76e   :  { %v6949_v25 = vsel %vm250_vm0, %v6941_v39, %v6942_v56  ;;  %v6601_v63 = vpop.permute.xlu1 %6600 }
 0x76f   :  { %v6950_v11 = vsel %vm14687_vm12, %v13252_v61, %v6949_v25  ;;  %v13260_v26 = vpop.permute.xlu0 %7026  ;;  %v6608_v55 = vrot.slane %v6601_v63, 4  ;;  %v6895_v25 = vrot.slane %v10093_v53, 4 }
 0x770   :  { %6958 = vst [vmem:[#allocation4 + $0x88] sm:$0x11] %v6950_v11  ;;  %v7035_v21 = vrot.slane %v13260_v26, 4 }
 0x771   :  { %v6614_v27 = vsel %vm250_vm0, %v6607_v38, %v6608_v55  ;;  %v6616_v47 = vsel %vm250_vm0, %v6608_v55, %v6609_v46  ;;  %v10362_v38 = vld [vmem:[#allocation4 + $0x28] ss:$16 sps:$4 sm:$0xff]  }
 0x772   :  { %v6615_v24 = vsel %vm252_vm2, %v6599_v2, %v6614_v27  ;;  %v6617_v9 = vsel %vm252_vm2, %v6601_v63, %v6616_v47  ;;  %v6645_v34 = vpop.permute.xlu1 %6644  ;;  %v6893_v63 = vrot.slane %v13244_v20, 4  ;;  %vm14689_vm2 = vcmask 760832  }
 0x773   :  { %6624 = vst [vmem:[#allocation4 + $0x10] sm:$0x33] %v6615_v24  ;;  %6625 = vst [vmem:[#allocation4 + $0x18] sm:$0x33] %v6617_v9  ;;  %v13267_v40 = vpop.permute.xlu0 %7072  ;;  %v6653_v1 = vrot.slane %v6645_v34, 4 }
 0x774   :  { %v7081_v61 = vrot.slane %v13267_v40, 4 }
 0x775   :  { %v6660_v29 = vsel %vm250_vm0, %v6653_v1, %v6654_v7  ;;  %v10108_v1 = vunpack.i.h.bf16 %v13013_v54 }
 0x776   :  { %v6661_v4 = vsel %vm389_vm1, %v6645_v34, %v6660_v29  ;;  %v6742_v43 = vpop.permute.xlu1 %6741  ;;  %vm14688_vm1 = vmmov %vm14687_vm12  ;;  %vm10483_vm12 = vmmov 0  }
 0x777   :  { %6670 = vst [vmem:[#allocation4 + $0x20] sm:$0x11] %v6661_v4  ;;  %v13273_v10 = vpop.permute.xlu0 %7169  ;;  %v6749_v37 = vrot.slane %v6742_v43, 4  ;;  %v7083_v35 = vrot.slane %v10108_v1, 4 }
 0x779   :  { %v6756_v30 = vsel %vm250_vm0, %v6748_v0, %v6749_v37  ;;  %v6758_v15 = vsel %vm250_vm0, %v6749_v37, %v6750_v33 }
 0x77a   :  { %v6757_v7 = vsel %vm6752_vm7, %v13233_v22, %v6756_v30  ;;  %v6759_v42 = vsel %vm6752_vm7, %v6742_v43, %v6758_v15  ;;  %v6789_v58 = vpop.permute.xlu1 %6788  ;;  %v10356_v28 = vld [vmem:[#allocation4] ss:$16 sps:$4 sm:$0xff]   ;;  %v10358_v48 = vld [vmem:[#allocation4 + $0x4] ss:$16 sps:$4 sm:$0xff]   ;;  %v10359_v14 = vld [vmem:[#allocation4 + $0x8] ss:$16 sps:$4 sm:$0xff]  }
 0x77b   :  { %6766 = vst [vmem:[#allocation4 + $0x40] sm:$0x33] %v6757_v7  ;;  %6767 = vst [vmem:[#allocation4 + $0x48] sm:$0x33] %v6759_v42  ;;  %v13283_v23 = vpop.permute.xlu0 %7218  ;;  %v6796_v62 = vrot.slane %v6789_v58, 4  ;;  %7692 = vmatprep.subr.bf16.mxu0 %v10358_v48 }
 0x77c   :  { %v10361_v19 = vld [vmem:[#allocation4 + $0xc] ss:$16 sps:$4 sm:$0xff]   ;;  %v7226_v16 = vrot.slane %v13283_v23, 4  ;;  %7693 = vmatpush1.bf16.msra.mxu0 %v10356_v28  ;;  %vm14690_vm7 = vmmov %vm14689_vm2 }
 0x77d   :  { %v6803_v22 = vsel %vm250_vm0, %v6795_v32, %v6796_v62  ;;  %v6805_v49 = vsel %vm250_vm0, %v6796_v62, %v6797_v60  ;;  %7735 = vmatprep.subr.bf16.mxu1 %v10361_v19 }
 0x77e   :  { %v7235_v41 = vsel %vm250_vm0, %v7226_v16, %v7227_v51  ;;  %v6804_v12 = vsel %vm6799_vm3, %v13237_v31, %v6803_v22  ;;  %v6806_v3 = vsel %vm6799_vm3, %v6789_v58, %v6805_v49  ;;  %v6887_v2 = vpop.permute.xlu1 %6886  ;;  %7736 = vmatpush1.bf16.msra.mxu1 %v10359_v14  ;;  %v10365_v17 = vld [vmem:[#allocation4 + $0x20] ss:$16 sps:$4 sm:$0xff]   ;;  %v10367_v56 = vld [vmem:[#allocation4 + $0x24] ss:$16 sps:$4 sm:$0xff]   ;;  %v10103_v31 = vunpack.i.h.bf16 %v13001_v36 }
 0x77f   :  { %v7236_v46 = vsel %vm7229_vm15, %v13283_v23, %v7235_v41  ;;  %6813 = vst [vmem:[#allocation4 + $0x50] sm:$0x11] %v6804_v12  ;;  %6814 = vst [vmem:[#allocation4 + $0x58] sm:$0x11] %v6806_v3  ;;  %v6894_v11 = vrot.slane %v6887_v2, 4  ;;  %7737 = vmatprep.subr.bf16.mxu1 %v10364_v18  ;;  %7694 = vmatprep.subr.bf16.mxu0 %v10367_v56  ;;  %v10113_v58 = vunpack.i.h.bf16 %v13022_v59  ;;  %vm14691_vm3 = vcmask 752640  }
 0x780   :  { %7244 = vst [vmem:[#allocation4 + $0xe8] sm:$0x11] %v7236_v46  ;;  %7695 = vmatpush1.bf16.msra.mxu0 %v10365_v17  ;;  %v7037_v57 = vrot.slane %v10103_v31, 4  ;;  %v7178_v41 = vrot.slane %v13273_v10, 4  ;;  %v10123_v17 = vunpack.i.h.bf16 %v13048_v44  ;;  %v10128_v31 = vunpack.i.h.bf16 %v13064_v52 }
 0x781   :  { %v6901_v55 = vsel %vm250_vm0, %v6893_v63, %v6894_v11  ;;  %v6903_v27 = vsel %vm250_vm0, %v6894_v11, %v6895_v25  ;;  %v7180_v18 = vrot.slane %v10113_v58, 4 }
 0x782   :  { %v6902_v47 = vsel %vm6897_vm9, %v13244_v20, %v6901_v55  ;;  %v6904_v24 = vsel %vm6897_vm9, %v6887_v2, %v6903_v27  ;;  %v6932_v9 = vpop.permute.xlu1 %6931  ;;  %7738 = vmatpush1.bf16.msra.mxu1 %v10362_v38  ;;  %vm14692_vm9 = vmmov %vm14691_vm3  ;;  %v10380_v2 = vld [vmem:[#allocation4 + $0x88] ss:$16 sps:$4 sm:$0xff]   ;;  %v7324_v38 = vrot.slane %v10123_v17, 4 }
 0x783   :  { %6911 = vst [vmem:[#allocation4 + $0x70] sm:$0x33] %v6902_v47  ;;  %6912 = vst [vmem:[#allocation4 + $0x78] sm:$0x33] %v6904_v24  ;;  %v6940_v34 = vrot.slane %v6932_v9, 4 }
 0x785   :  { %v6947_v36 = vsel %vm250_vm0, %v6940_v34, %v6941_v39  ;;  %v13312_v39 = vpop.permute.xlu0 %7313 }
 0x786   :  { %v6948_v29 = vsel %vm14688_vm1, %v6932_v9, %v6947_v36  ;;  %v7029_v4 = vpop.permute.xlu1 %7028  ;;  %v10368_v20 = vld [vmem:[#allocation4 + $0x40] ss:$16 sps:$4 sm:$0xff]   ;;  %v10370_v43 = vld [vmem:[#allocation4 + $0x44] ss:$16 sps:$4 sm:$0xff]   ;;  %v10371_v0 = vld [vmem:[#allocation4 + $0x48] ss:$16 sps:$4 sm:$0xff]  }
 0x787   :  { %6957 = vst [vmem:[#allocation4 + $0x80] sm:$0x11] %v6948_v29  ;;  %v7036_v33 = vrot.slane %v7029_v4, 4  ;;  %v10373_v37 = vld [vmem:[#allocation4 + $0x4c] ss:$16 sps:$4 sm:$0xff]   ;;  %7696 = vmatprep.subr.bf16.mxu0 %v10370_v43  ;;  %v7322_v55 = vrot.slane %v13312_v39, 4 }
 0x788   :  { %7739 = vmatprep.subr.bf16.mxu1 %v10373_v37  ;;  %7697 = vmatpush1.bf16.msra.mxu0 %v10368_v20  ;;  %v7370_v36 = vrot.slane %v10128_v31, 4  ;;  %vm8880_vm1 = vcmask 982016  }
 0x789   :  { %v7042_v60 = vsel %vm250_vm0, %v7035_v21, %v7036_v33  ;;  %v7044_v54 = vsel %vm250_vm0, %v7036_v33, %v7037_v57  ;;  %7740 = vmatpush1.bf16.msra.mxu1 %v10371_v0  ;;  %v7360_v3 = vpop.permute.xlu0 %7359 }
 0x78a   :  { %v7043_v30 = vsel %vm14689_vm2, %v13260_v26, %v7042_v60  ;;  %v7045_v15 = vsel %vm14690_vm7, %v7029_v4, %v7044_v54  ;;  %v7075_v32 = vpop.permute.xlu1 %7074  ;;  %v10374_v7 = vld [vmem:[#allocation4 + $0x60] ss:$16 sps:$4 sm:$0xff]   ;;  %v10376_v42 = vld [vmem:[#allocation4 + $0x64] ss:$16 sps:$4 sm:$0xff]   ;;  %v10377_v48 = vld [vmem:[#allocation4 + $0x68] ss:$16 sps:$4 sm:$0xff]  }
 0x78b   :  { %7052 = vst [vmem:[#allocation4 + $0xa0] sm:$0x33] %v7043_v30  ;;  %7053 = vst [vmem:[#allocation4 + $0xa8] sm:$0x33] %v7045_v15  ;;  %v7082_v28 = vrot.slane %v7075_v32, 4  ;;  %7698 = vmatprep.subr.bf16.mxu0 %v10376_v42  ;;  %vm8973_vm2 = vcmask 687104  }
 0x78c   :  { %v10379_v53 = vld [vmem:[#allocation4 + $0x6c] ss:$16 sps:$4 sm:$0xff]   ;;  %7699 = vmatpush1.bf16.msra.mxu0 %v10374_v7  ;;  %vm9051_vm7 = vcmask 74752  }
 0x78d   :  { %v7088_v62 = vsel %vm250_vm0, %v7081_v61, %v7082_v28  ;;  %v7090_v14 = vsel %vm250_vm0, %v7082_v28, %v7083_v35  ;;  %7741 = vmatprep.subr.bf16.mxu1 %v10379_v53  ;;  %v10382_v26 = vld [vmem:[#allocation4 + $0x8c] ss:$16 sps:$4 sm:$0xff]   ;;  %v7420_v27 = vpop.permute.xlu0 %7419 }
 0x78e   :  { %v7089_v19 = vsel %vm14691_vm3, %v13267_v40, %v7088_v62  ;;  %v7091_v51 = vsel %vm14692_vm9, %v7075_v32, %v7090_v14  ;;  %v7172_v22 = vpop.permute.xlu1 %7171  ;;  %7742 = vmatpush1.bf16.msra.mxu1 %v10377_v48  ;;  %v10383_v59 = vld [vmem:[#allocation4 + $0x80] ss:$16 sps:$4 sm:$0xff]   ;;  %v10385_v49 = vld [vmem:[#allocation4 + $0x84] ss:$16 sps:$4 sm:$0xff]   ;;  %v7425_v58 = vrot.slane %v7420_v27, 4 }
 0x78f   :  { %7098 = vst [vmem:[#allocation4 + $0xb0] sm:$0x11] %v7089_v19  ;;  %7099 = vst [vmem:[#allocation4 + $0xb8] sm:$0x11] %v7091_v51  ;;  %v7179_v12 = vrot.slane %v7172_v22, 4  ;;  %7743 = vmatprep.subr.bf16.mxu1 %v10382_v26  ;;  %7700 = vmatprep.subr.bf16.mxu0 %v10385_v49 }
 0x790   :  { %7701 = vmatpush1.bf16.msra.mxu0 %v10383_v59  ;;  %v10398_v48 = vld [vmem:[#allocation4 + $0xe8] ss:$16 sps:$4 sm:$0xff]  }
 0x791   :  { %v7186_v40 = vsel %vm250_vm0, %v7178_v41, %v7179_v12  ;;  %v7188_v56 = vsel %vm250_vm0, %v7179_v12, %v7180_v18  ;;  %v7424_v33 = vpop.permute.xlu0 %7423 }
 0x792   :  { %v7187_v25 = vsel %vm7182_vm14, %v13273_v10, %v7186_v40  ;;  %v7189_v63 = vsel %vm7182_vm14, %v7172_v22, %v7188_v56  ;;  %v7217_v46 = vpop.permute.xlu1 %7216  ;;  %7744 = vmatpush1.bf16.msra.mxu1 %v10380_v2  ;;  %v7427_v61 = vrot.slane %v7424_v33, 4  ;;  %vm14695_vm14 = vmmov %vm14683_vm5  ;;  %v10416_v56 = vld [vmem:[%s14433_s6] ss:$8 sps:$4 sm:$0xff]  }
 0x793   :  { %7196 = vst [vmem:[#allocation4 + $0xd0] sm:$0x33] %v7187_v25  ;;  %7197 = vst [vmem:[#allocation4 + $0xd8] sm:$0x33] %v7189_v63  ;;  %v7225_v11 = vrot.slane %v7217_v46, 4 }
 0x794   :  { %v7778_v25 = vld [vmem:[%s14436_s9] sm:$0xf] }
 0x795   :  { %v7233_v44 = vsel %vm250_vm0, %v7225_v11, %v7226_v16  ;;  %v7368_v16 = vrot.slane %v7360_v3, 4  ;;  %v7783_v63 = vrot.slane %v7778_v25, %v12039_v13  ;;  %v7787_v11 = vrot.slane %v7778_v25, %v12051_v50 }
 0x796   :  { %v7234_v47 = vsel %vm7229_vm15, %v7217_v46, %v7233_v44  ;;  %v7316_v10 = vpop.permute.xlu1 %7315  ;;  %v10386_v24 = vld [vmem:[#allocation4 + $0xa0] ss:$16 sps:$4 sm:$0xff]   ;;  %v10388_v9 = vld [vmem:[#allocation4 + $0xa4] ss:$16 sps:$4 sm:$0xff]   ;;  %v10389_v57 = vld [vmem:[#allocation4 + $0xa8] ss:$16 sps:$4 sm:$0xff]   ;;  %v7791_v46 = vrot.slane %v7778_v25, %v12081_v6  ;;  %v7795_v13 = vrot.slane %v7778_v25, %v12086_v45 }
 0x797   :  { %7243 = vst [vmem:[#allocation4 + $0xe0] sm:$0x11] %v7234_v47  ;;  %v7323_v34 = vrot.slane %v7316_v10, 4  ;;  %v10391_v1 = vld [vmem:[#allocation4 + $0xac] ss:$16 sps:$4 sm:$0xff]   ;;  %7702 = vmatprep.subr.bf16.mxu0 %v10388_v9  ;;  %vm14696_vm15 = vmmov %vm14683_vm5  ;;  %v7919_v25 = vld [vmem:[%s14437_s10 + $0x28] sm:$0xff] }
 0x798   :  { %7745 = vmatprep.subr.bf16.mxu1 %v10391_v1  ;;  %7703 = vmatpush1.bf16.msra.mxu0 %v10386_v24  ;;  %vm14698_vm5 = vmmov %vm14697_vm8 }
 0x799   :  { %v7329_v52 = vsel %vm250_vm0, %v7322_v55, %v7323_v34  ;;  %v7331_v23 = vsel %vm250_vm0, %v7323_v34, %v7324_v38  ;;  %7746 = vmatpush1.bf16.msra.mxu1 %v10389_v57 }
 0x79a   :  { %v7330_v21 = vsel %vm14693_vm4, %v13312_v39, %v7329_v52  ;;  %v7332_v29 = vsel %vm14694_vm10, %v7316_v10, %v7331_v23  ;;  %v7362_v4 = vpop.permute.xlu1 %7361  ;;  %v10392_v20 = vld [vmem:[#allocation4 + $0xc0] ss:$16 sps:$4 sm:$0xff]   ;;  %v10394_v43 = vld [vmem:[#allocation4 + $0xc4] ss:$16 sps:$4 sm:$0xff]   ;;  %v10395_v37 = vld [vmem:[#allocation4 + $0xc8] ss:$16 sps:$4 sm:$0xff]  }
 0x79b   :  { %7339 = vst [vmem:[#allocation4 + $0x100] sm:$0x33] %v7330_v21  ;;  %7340 = vst [vmem:[#allocation4 + $0x108] sm:$0x33] %v7332_v29  ;;  %v7369_v0 = vrot.slane %v7362_v4, 4  ;;  %7704 = vmatprep.subr.bf16.mxu0 %v10394_v43 }
 0x79c   :  { %v10397_v35 = vld [vmem:[#allocation4 + $0xcc] ss:$16 sps:$4 sm:$0xff]   ;;  %7705 = vmatpush1.bf16.msra.mxu0 %v10392_v20 }
 0x79d   :  { %v7375_v60 = vsel %vm250_vm0, %v7368_v16, %v7369_v0  ;;  %v7377_v54 = vsel %vm250_vm0, %v7369_v0, %v7370_v36  ;;  %7747 = vmatprep.subr.bf16.mxu1 %v10397_v35  ;;  %v10400_v39 = vld [vmem:[#allocation4 + $0xec] ss:$16 sps:$4 sm:$0xff]  }
 0x79e   :  { %v7376_v30 = vsel %vm14695_vm14, %v7360_v3, %v7375_v60  ;;  %v7378_v15 = vsel %vm14696_vm15, %v7362_v4, %v7377_v54  ;;  %v7422_v32 = vpop.permute.xlu1 %7421  ;;  %7748 = vmatpush1.bf16.msra.mxu1 %v10395_v37  ;;  %v10401_v7 = vld [vmem:[#allocation4 + $0xe0] ss:$16 sps:$4 sm:$0xff]   ;;  %v10403_v42 = vld [vmem:[#allocation4 + $0xe4] ss:$16 sps:$4 sm:$0xff]  }
 0x79f   :  { %7385 = vst [vmem:[#allocation4 + $0x110] sm:$0x11] %v7376_v30  ;;  %7386 = vst [vmem:[#allocation4 + $0x118] sm:$0x11] %v7378_v15  ;;  %v7426_v28 = vrot.slane %v7422_v32, 4  ;;  %7749 = vmatprep.subr.bf16.mxu1 %v10400_v39  ;;  %7706 = vmatprep.subr.bf16.mxu0 %v10403_v42 }
 0x7a0   :  { %7707 = vmatpush1.bf16.msra.mxu0 %v10401_v7 }
 0x7a1   :  { %v7428_v53 = vsel %vm250_vm0, %v7425_v58, %v7426_v28  ;;  %v7430_v62 = vsel %vm250_vm0, %v7426_v28, %v7427_v61 }
 0x7a2   :  { %v7429_v14 = vsel %vm14697_vm8, %v7420_v27, %v7428_v53  ;;  %v7431_v26 = vsel %vm14698_vm5, %v7422_v32, %v7430_v62  ;;  %7750 = vmatpush1.bf16.msra.mxu1 %v10398_v48 }
 0x7a3   :  { %7434 = vst [vmem:[#allocation4 + $0x120] sm:$0x77] %v7429_v14  ;;  %7435 = vst [vmem:[#allocation4 + $0x128] sm:$0x77] %v7431_v26 }
 0x7a6   :  { %v10404_v19 = vld [vmem:[#allocation4 + $0x100] ss:$16 sps:$4 sm:$0xff]   ;;  %v10406_v51 = vld [vmem:[#allocation4 + $0x104] ss:$16 sps:$4 sm:$0xff]   ;;  %v10407_v22 = vld [vmem:[#allocation4 + $0x108] ss:$16 sps:$4 sm:$0xff]  }
 0x7a7   :  { %v10409_v59 = vld [vmem:[#allocation4 + $0x10c] ss:$16 sps:$4 sm:$0xff]   ;;  %7708 = vmatprep.subr.bf16.mxu0 %v10406_v51 }
 0x7a8   :  { %7751 = vmatprep.subr.bf16.mxu1 %v10409_v59  ;;  %7709 = vmatpush1.bf16.msra.mxu0 %v10404_v19 }
 0x7a9   :  { %7752 = vmatpush1.bf16.msra.mxu1 %v10407_v22 }
 0x7aa   :  { %v7474_v49 = vld [vmem:[#allocation4 + $0x120] sm:$0x77]  ;;  %v7475_v18 = vld [vmem:[#allocation4 + $0x128] sm:$0x77] }
 0x7ab   :  { %v9519_v41 = vcombine.high %v7474_v49, %v7474_v49  ;;  %v9521_v12 = vcombine.high %v7475_v18, %v7475_v18  ;;  %v9518_v3 = vcombine.low %v7474_v49, %v7474_v49  ;;  %v9520_v2 = vcombine.low %v7475_v18, %v7475_v18 }
 0x7ad   :  { %9522 = vmatprep.subr.msk.bf16.mxu0 %vm7679_vm13, %v9519_v41  ;;  %9524 = vmatprep.subr.msk.bf16.mxu1 %vm7679_vm13, %v9521_v12  ;;  %v7681_v17 = vsel %vm7679_vm13, %v9518_v3, 0  ;;  %v7687_v40 = vsel %vm7679_vm13, %v9520_v2, 0 }
 0x7ae   :  { %7711 = vmatpush1.bf16.msra.mxu0 %v7681_v17  ;;  %7754 = vmatpush1.bf16.msra.mxu1 %v7687_v40 }
 0x7b1   :  { %7725 = vmatmul.mubr.bf16.vlgmr.msra.gmra.mrb[20].mxu0 %v10416_v56  ;;  %7768 = vmatmul.mubr.bf16.vlgmr.msra.gmra.mrb[20].mxu1 %v10416_v56  ;;  %v7915_v56 = vld [vmem:[%s14437_s10 + $0x8] sm:$0xff] }
 0x884   :  { %v13358_v38 = vpop.f32.mrb[20].mxu0  ;;  %v13360_v31 = vpop.f32.mrb[20].mxu1 }
 0x885   :  { %v7800_v44 = vmul.f32 %v7783_v63, %v13358_v38  ;;  %v13363_v55 = vpop.f32.mrb[21].mxu0  ;;  %v13365_v27 = vpop.f32.mrb[21].mxu1  ;;  %v7802_v47 = vmul.f32 %v7791_v46, %v13360_v31 }
 0x886   :  { %v7801_v10 = vmul.f32 %v7787_v11, %v13363_v55  ;;  %v13370_v24 = vpop.f32.mrb[22].mxu0  ;;  %v13372_v6 = vpop.f32.mrb[22].mxu1  ;;  %v7803_v36 = vmul.f32 %v7795_v13, %v13365_v27 }
 0x887   :  { %v7804_v50 = vmul.f32 %v7783_v63, %v13370_v24  ;;  %v13375_v9 = vpop.f32.mrb[23].mxu0  ;;  %v13377_v34 = vpop.f32.mrb[23].mxu1  ;;  %v7806_v52 = vmul.f32 %v7791_v46, %v13372_v6 }
 0x888   :  { %14699 = vst [vmem:[#allocation11_spill] sm:$0xff] %v13377_v34  ;;  %v7808_v57 = vadd.f32 %v7801_v10, %v7800_v44  ;;  %v7805_v1 = vmul.f32 %v7787_v11, %v13375_v9  ;;  %v7807_v45 = vmul.f32 %v7795_v13, %v13377_v34  ;;  %v7914_v44 = vld [vmem:[%s14437_s10] sm:$0xff] }
 0x88a   :  { %v7813_v23 = vadd.f32 %v7805_v1, %v7804_v50  ;;  %v7809_v16 = vadd.f32 %v7808_v57, %v7802_v47  ;;  %v7918_v47 = vld [vmem:[%s14437_s10 + $0x20] sm:$0xff]  ;;  %v7916_v50 = vld [vmem:[%s14437_s10 + $0x10] sm:$0xff]  ;;  %v7923_v1 = vld [vmem:[%s14437_s10 + $0x48] sm:$0xff] }
 0x88b   :  { %v7920_v57 = vld [vmem:[%s14437_s10 + $0x30] sm:$0xff] }
 0x88c   :  { %v7810_v21 = vadd.f32 %v7809_v16, %v7803_v36  ;;  %v7814_v29 = vadd.f32 %v7813_v23, %v7806_v52  ;;  %v13437_v36 = vpack.c.bf16 %v7920_v57, %v7916_v50  ;;  %v7927_v52 = vld [vmem:[%s14437_s10 + $0x68] sm:$0xff]  ;;  %v7925_v23 = vld [vmem:[%s14437_s10 + $0x58] sm:$0xff] }
 0x88d   :  { %v7929_v16 = vld [vmem:[%s14437_s10 + $0x78] sm:$0xff]  ;;  %v7955_v50 = vld [vmem:[%s14437_s10 + $0x148] sm:$0xff] }
 0x88e   :  { %7811 = vadd.xlane.f32.xlu1 %v7810_v21  ;;  %v7815_v4 = vadd.f32 %v7814_v29, %v7807_v45  ;;  %v13450_v45 = vpack.c.bf16 %v7927_v52, %v7923_v1  ;;  %v13452_v21 = vpack.c.bf16 %v7929_v16, %v7925_v23  ;;  %v7922_v29 = vld [vmem:[%s14437_s10 + $0x40] sm:$0xff]  ;;  %v7959_v57 = vld [vmem:[%s14437_s10 + $0x168] sm:$0xff]  ;;  %v7957_v1 = vld [vmem:[%s14437_s10 + $0x158] sm:$0xff] }
 0x88f   :  { %v7961_v52 = vld [vmem:[%s14437_s10 + $0x178] sm:$0xff] }
 0x890   :  { %7816 = vadd.xlane.f32.xlu0 %v7815_v4  ;;  %v7926_v4 = vld [vmem:[%s14437_s10 + $0x60] sm:$0xff] }
 0x91b   :  { %v7812_v20 = vpop.xlane.xlu1 %7811 }
 0x91c   :  { %v13383_v43 = vmul.f32 0.005, %v7812_v20  ;;  %v7924_v20 = vld [vmem:[%s14437_s10 + $0x50] sm:$0xff] }
 0x91d   :  { %v7817_v33 = vpop.xlane.xlu0 %7816 }
 0x91e   :  { %v13385_v0 = vmul.f32 0.005, %v7817_v33  ;;  %v7820_v37 = vsub.f32 %v13358_v38, %v13383_v43  ;;  %v7821_v35 = vsub.f32 %v13363_v55, %v13383_v43  ;;  %v7822_v60 = vsub.f32 %v13360_v31, %v13383_v43 }
 0x91f   :  { %v7823_v54 = vsub.f32 %v13365_v27, %v13383_v43  ;;  %v13464_v33 = vpack.c.bf16 %v7926_v4, %v7922_v29  ;;  %v13592_v29 = vpack.c.bf16 %v7959_v57, %v7955_v50  ;;  %v7954_v4 = vld [vmem:[%s14437_s10 + $0x140] sm:$0xff]  ;;  %v7976_v57 = vld [vmem:[%s14437_s10 + $0x1f0] sm:$0xff] }
 0x920   :  { %v7828_v61 = vmul.f32 %v7820_v37, %v7783_v63  ;;  %v7829_v39 = vmul.f32 %v7821_v35, %v7787_v11  ;;  %v7830_v30 = vmul.f32 %v7822_v60, %v7791_v46  ;;  %v7824_v15 = vsub.f32 %v13370_v24, %v13385_v0  ;;  %v7928_v37 = vld [vmem:[%s14437_s10 + $0x70] sm:$0xff]  ;;  %v7931_v35 = vld [vmem:[%s14437_s10 + $0x88] sm:$0xff] }
 0x921   :  { %v7825_v32 = vsub.f32 %v13375_v9, %v13385_v0  ;;  %v7826_v7 = vsub.f32 %v13372_v6, %v13385_v0  ;;  %v7827_v42 = vsub.f32 %v13377_v34, %v13385_v0  ;;  %v7831_v58 = vmul.f32 %v7823_v54, %v7795_v13  ;;  %v7935_v60 = vld [vmem:[%s14437_s10 + $0xa8] sm:$0xff]  ;;  %v8006_v34 = vld [vmem:[%s14437_s10 + $0x2e0] sm:$0xff] }
 0x922   :  { %v7836_v28 = vmul.f32 %v7828_v61, %v7828_v61  ;;  %v7837_v48 = vmul.f32 %v7829_v39, %v7829_v39  ;;  %v7832_v53 = vmul.f32 %v7824_v15, %v7783_v63  ;;  %v7838_v26 = vmul.f32 %v7830_v30, %v7830_v30  ;;  %v7917_v63 = vld [vmem:[%s14437_s10 + $0x18] sm:$0xff]  ;;  %v7930_v15 = vld [vmem:[%s14437_s10 + $0x80] sm:$0xff] }
 0x923   :  { %v7833_v62 = vmul.f32 %v7825_v32, %v7787_v11  ;;  %v7834_v14 = vmul.f32 %v7826_v7, %v7791_v46  ;;  %v7835_v22 = vmul.f32 %v7827_v42, %v7795_v13  ;;  %v7839_v49 = vmul.f32 %v7831_v58, %v7831_v58  ;;  %v7921_v11 = vld [vmem:[%s14437_s10 + $0x38] sm:$0xff]  ;;  %v7934_v7 = vld [vmem:[%s14437_s10 + $0xa0] sm:$0xff]  ;;  %v7932_v42 = vld [vmem:[%s14437_s10 + $0x90] sm:$0xff] }
 0x924   :  { %v7844_v19 = vadd.f32 %v7837_v48, %v7836_v28  ;;  %v7840_v51 = vmul.f32 %v7832_v53, %v7832_v53  ;;  %v13412_v46 = vpack.c.bf16 %v7919_v25, %v7915_v56  ;;  %v13423_v10 = vpack.c.bf16 %v7921_v11, %v7917_v63  ;;  %v7933_v39 = vld [vmem:[%s14437_s10 + $0x98] sm:$0xff]  ;;  %v7936_v58 = vld [vmem:[%s14437_s10 + $0xb0] sm:$0xff]  ;;  %v7939_v48 = vld [vmem:[%s14437_s10 + $0xc8] sm:$0xff] }
 0x925   :  { %v7841_v59 = vmul.f32 %v7833_v62, %v7833_v62  ;;  %v7842_v41 = vmul.f32 %v7834_v14, %v7834_v14  ;;  %v7843_v2 = vmul.f32 %v7835_v22, %v7835_v22  ;;  %v13425_v13 = vpack.c.bf16 %v7918_v47, %v7914_v44  ;;  %v7937_v30 = vld [vmem:[%s14437_s10 + $0xb8] sm:$0xff]  ;;  %v7943_v53 = vld [vmem:[%s14437_s10 + $0xe8] sm:$0xff]  ;;  %v7942_v22 = vld [vmem:[%s14437_s10 + $0xe0] sm:$0xff] }
 0x926   :  { %v7845_v18 = vadd.f32 %v7844_v19, %v7838_v26  ;;  %9657 = vmatprep.subr.bf16.mxu0 %v13412_v46  ;;  %9721 = vmatprep.subr.bf16.mxu1 %v13423_v10  ;;  %v13477_v54 = vpack.c.bf16 %v7928_v37, %v7924_v20  ;;  %v13479_v61 = vpack.c.bf16 %v7935_v60, %v7931_v35  ;;  %v7941_v62 = vld [vmem:[%s14437_s10 + $0xd8] sm:$0xff]  ;;  %v7946_v25 = vld [vmem:[%s14437_s10 + $0x100] sm:$0xff]  ;;  %v7948_v11 = vld [vmem:[%s14437_s10 + $0x110] sm:$0xff] }
 0x927   :  { %v7849_v12 = vadd.f32 %v7841_v59, %v7840_v51  ;;  %9659 = vmatpush1.bf16.msra.mxu0 %v13425_v13  ;;  %9723 = vmatpush1.bf16.msra.mxu1 %v13437_v36  ;;  %v13490_v32 = vpack.c.bf16 %v7937_v30, %v7933_v39  ;;  %v13502_v28 = vpack.c.bf16 %v7934_v7, %v7930_v15  ;;  %v7945_v19 = vld [vmem:[%s14437_s10 + $0xf8] sm:$0xff]  ;;  %v7938_v51 = vld [vmem:[%s14437_s10 + $0xc0] sm:$0xff]  ;;  %v7952_v47 = vld [vmem:[%s14437_s10 + $0x130] sm:$0xff] }
 0x928   :  { %v7846_v3 = vadd.f32 %v7845_v18, %v7839_v49  ;;  %9661 = vmatprep.subr.bf16.mxu0 %v13450_v45  ;;  %9725 = vmatprep.subr.bf16.mxu1 %v13452_v21  ;;  %v13515_v14 = vpack.c.bf16 %v7936_v58, %v7932_v42  ;;  %v13517_v26 = vpack.c.bf16 %v7943_v53, %v7939_v48  ;;  %v7940_v49 = vld [vmem:[%s14437_s10 + $0xd0] sm:$0xff]  ;;  %v7950_v63 = vld [vmem:[%s14437_s10 + $0x120] sm:$0xff]  ;;  %v7963_v39 = vld [vmem:[%s14437_s10 + $0x188] sm:$0xff] }
 0x929   :  { %v7850_v17 = vadd.f32 %v7849_v12, %v7842_v41  ;;  %v13529_v59 = vpack.c.bf16 %v7945_v19, %v7941_v62  ;;  %v7944_v18 = vld [vmem:[%s14437_s10 + $0xf0] sm:$0xff]  ;;  %v7947_v41 = vld [vmem:[%s14437_s10 + $0x108] sm:$0xff]  ;;  %v13586_v23 = vpack.c.bf16 %v7950_v63, %v7946_v25  ;;  %v13590_v16 = vpack.c.bf16 %v7952_v47, %v7948_v11  ;;  %v7958_v20 = vld [vmem:[%s14437_s10 + $0x160] sm:$0xff] }
 0x92a   :  { %7847 = vadd.xlane.f32.xlu0 %v7846_v3  ;;  %v7951_v12 = vld [vmem:[%s14437_s10 + $0x128] sm:$0xff]  ;;  %v7949_v3 = vld [vmem:[%s14437_s10 + $0x118] sm:$0xff]  ;;  %v7956_v37 = vld [vmem:[%s14437_s10 + $0x150] sm:$0xff]  ;;  %v13604_v35 = vpack.c.bf16 %v7961_v52, %v7957_v1  ;;  %v13622_v42 = vpack.c.bf16 %v7958_v20, %v7954_v4 }
 0x92b   :  { %v7851_v40 = vadd.f32 %v7850_v17, %v7843_v2  ;;  %9663 = vmatpush1.bf16.msra.mxu0 %v13464_v33  ;;  %9727 = vmatpush1.bf16.msra.mxu1 %v13477_v54  ;;  %v7953_v2 = vld [vmem:[%s14437_s10 + $0x138] sm:$0xff]  ;;  %v13550_v17 = vpack.c.bf16 %v7942_v22, %v7938_v51  ;;  %v13556_v56 = vpack.c.bf16 %v7951_v12, %v7947_v41  ;;  %v7960_v60 = vld [vmem:[%s14437_s10 + $0x170] sm:$0xff]  ;;  %v7967_v30 = vld [vmem:[%s14437_s10 + $0x1a8] sm:$0xff] }
 0x92c   :  { %9665 = vmatprep.subr.bf16.mxu0 %v13479_v61  ;;  %9729 = vmatprep.subr.bf16.mxu1 %v13490_v32  ;;  %v13568_v44 = vpack.c.bf16 %v7953_v2, %v7949_v3  ;;  %v7965_v15 = vld [vmem:[%s14437_s10 + $0x198] sm:$0xff]  ;;  %v13626_v58 = vpack.c.bf16 %v7960_v60, %v7956_v37  ;;  %v13628_v48 = vpack.c.bf16 %v7967_v30, %v7963_v39  ;;  %v7962_v53 = vld [vmem:[%s14437_s10 + $0x180] sm:$0xff]  ;;  %v7964_v19 = vld [vmem:[%s14437_s10 + $0x190] sm:$0xff] }
 0x92d   :  { %7852 = vadd.xlane.f32.xlu1 %v7851_v40  ;;  %v13554_v40 = vpack.c.bf16 %v7944_v18, %v7940_v49  ;;  %v7969_v7 = vld [vmem:[%s14437_s10 + $0x1b8] sm:$0xff]  ;;  %v7966_v62 = vld [vmem:[%s14437_s10 + $0x1a0] sm:$0xff]  ;;  %v7968_v22 = vld [vmem:[%s14437_s10 + $0x1b0] sm:$0xff] }
 0x92e   :  { %v13640_v51 = vpack.c.bf16 %v7969_v7, %v7965_v15  ;;  %v7971_v49 = vld [vmem:[%s14437_s10 + $0x1c8] sm:$0xff]  ;;  %v7973_v41 = vld [vmem:[%s14437_s10 + $0x1d8] sm:$0xff]  ;;  %v13658_v3 = vpack.c.bf16 %v7966_v62, %v7962_v53  ;;  %v13662_v2 = vpack.c.bf16 %v7968_v22, %v7964_v19  ;;  %v7970_v63 = vld [vmem:[%s14437_s10 + $0x1c0] sm:$0xff] }
 0x92f   :  { %9667 = vmatpush1.bf16.msra.mxu0 %v13502_v28  ;;  %9731 = vmatpush1.bf16.msra.mxu1 %v13515_v14  ;;  %v7975_v18 = vld [vmem:[%s14437_s10 + $0x1e8] sm:$0xff]  ;;  %v7977_v12 = vld [vmem:[%s14437_s10 + $0x1f8] sm:$0xff]  ;;  %v7974_v11 = vld [vmem:[%s14437_s10 + $0x1e0] sm:$0xff] }
 0x930   :  { %9669 = vmatprep.subr.bf16.mxu0 %v13517_v26  ;;  %9733 = vmatprep.subr.bf16.mxu1 %v13529_v59  ;;  %v13664_v25 = vpack.c.bf16 %v7975_v18, %v7971_v49  ;;  %v7972_v47 = vld [vmem:[%s14437_s10 + $0x1d0] sm:$0xff]  ;;  %v13676_v50 = vpack.c.bf16 %v7977_v12, %v7973_v41  ;;  %v7979_v1 = vld [vmem:[%s14437_s10 + $0x208] sm:$0xff]  ;;  %v7981_v4 = vld [vmem:[%s14437_s10 + $0x218] sm:$0xff]  ;;  %v13694_v37 = vpack.c.bf16 %v7974_v11, %v7970_v63 }
 0x931   :  { %v7983_v52 = vld [vmem:[%s14437_s10 + $0x228] sm:$0xff]  ;;  %v7985_v20 = vld [vmem:[%s14437_s10 + $0x238] sm:$0xff]  ;;  %v13698_v60 = vpack.c.bf16 %v7976_v57, %v7972_v47  ;;  %v7978_v30 = vld [vmem:[%s14437_s10 + $0x200] sm:$0xff] }
 0x932   :  { %v13700_v39 = vpack.c.bf16 %v7983_v52, %v7979_v1  ;;  %v7982_v15 = vld [vmem:[%s14437_s10 + $0x220] sm:$0xff]  ;;  %v7980_v7 = vld [vmem:[%s14437_s10 + $0x210] sm:$0xff]  ;;  %v13712_v53 = vpack.c.bf16 %v7985_v20, %v7981_v4  ;;  %v7987_v19 = vld [vmem:[%s14437_s10 + $0x248] sm:$0xff] }
 0x933   :  { %9671 = vmatpush1.bf16.msra.mxu0 %v13550_v17  ;;  %9735 = vmatpush1.bf16.msra.mxu1 %v13554_v40  ;;  %v7984_v62 = vld [vmem:[%s14437_s10 + $0x230] sm:$0xff]  ;;  %v7991_v22 = vld [vmem:[%s14437_s10 + $0x268] sm:$0xff]  ;;  %v7989_v49 = vld [vmem:[%s14437_s10 + $0x258] sm:$0xff]  ;;  %v13730_v41 = vpack.c.bf16 %v7982_v15, %v7978_v30 }
 0x934   :  { %9673 = vmatprep.subr.bf16.mxu0 %v13556_v56  ;;  %9737 = vmatprep.subr.bf16.mxu1 %v13568_v44  ;;  %v7993_v18 = vld [vmem:[%s14437_s10 + $0x278] sm:$0xff]  ;;  %v13734_v12 = vpack.c.bf16 %v7984_v62, %v7980_v7  ;;  %v13736_v63 = vpack.c.bf16 %v7991_v22, %v7987_v19  ;;  %v7986_v11 = vld [vmem:[%s14437_s10 + $0x240] sm:$0xff]  ;;  %v7988_v57 = vld [vmem:[%s14437_s10 + $0x250] sm:$0xff] }
 0x935   :  { %v7990_v47 = vld [vmem:[%s14437_s10 + $0x260] sm:$0xff]  ;;  %v13748_v1 = vpack.c.bf16 %v7993_v18, %v7989_v49  ;;  %v7992_v52 = vld [vmem:[%s14437_s10 + $0x270] sm:$0xff]  ;;  %v7995_v4 = vld [vmem:[%s14437_s10 + $0x288] sm:$0xff] }
 0x936   :  { %v7999_v20 = vld [vmem:[%s14437_s10 + $0x2a8] sm:$0xff]  ;;  %v7997_v30 = vld [vmem:[%s14437_s10 + $0x298] sm:$0xff]  ;;  %v13766_v7 = vpack.c.bf16 %v7990_v47, %v7986_v11  ;;  %v13770_v62 = vpack.c.bf16 %v7992_v52, %v7988_v57  ;;  %v7994_v22 = vld [vmem:[%s14437_s10 + $0x280] sm:$0xff] }
 0x937   :  { %9675 = vmatpush1.bf16.msra.mxu0 %v13586_v23  ;;  %9739 = vmatpush1.bf16.msra.mxu1 %v13590_v16  ;;  %v8001_v15 = vld [vmem:[%s14437_s10 + $0x2b8] sm:$0xff]  ;;  %v13772_v19 = vpack.c.bf16 %v7999_v20, %v7995_v4  ;;  %v7998_v49 = vld [vmem:[%s14437_s10 + $0x2a0] sm:$0xff]  ;;  %v7996_v18 = vld [vmem:[%s14437_s10 + $0x290] sm:$0xff] }
 0x938   :  { %9677 = vmatprep.subr.bf16.mxu0 %v13592_v29  ;;  %9741 = vmatprep.subr.bf16.mxu1 %v13604_v35  ;;  %14700 = vst [vmem:[#allocation12_spill] sm:$0xff] %v13766_v7  ;;  %14701 = vst [vmem:[#allocation13_spill] sm:$0xff] %v13770_v62  ;;  %v13784_v11 = vpack.c.bf16 %v8001_v15, %v7997_v30  ;;  %v8000_v47 = vld [vmem:[%s14437_s10 + $0x2b0] sm:$0xff]  ;;  %v8003_v57 = vld [vmem:[%s14437_s10 + $0x2c8] sm:$0xff]  ;;  %v13802_v30 = vpack.c.bf16 %v7998_v49, %v7994_v22 }
 0x939   :  { %14702 = vst [vmem:[#allocation14_spill] sm:$0xff] %v13772_v19  ;;  %v8007_v52 = vld [vmem:[%s14437_s10 + $0x2e8] sm:$0xff]  ;;  %v8005_v4 = vld [vmem:[%s14437_s10 + $0x2d8] sm:$0xff]  ;;  %v13806_v15 = vpack.c.bf16 %v8000_v47, %v7996_v18  ;;  %v8004_v22 = vld [vmem:[%s14437_s10 + $0x2d0] sm:$0xff] }
 0x93a   :  { %14703 = vst [vmem:[#allocation15_spill] sm:$0xff] %v13784_v11  ;;  %v8009_v20 = vld [vmem:[%s14437_s10 + $0x2f8] sm:$0xff]  ;;  %14704 = vst [vmem:[#allocation16_spill] sm:$0xff] %v13802_v30  ;;  %v13808_v8 = vpack.c.bf16 %v8007_v52, %v8003_v57  ;;  %v8008_v18 = vld [vmem:[%s14437_s10 + $0x2f0] sm:$0xff] }
 0x93b   :  { %9679 = vmatpush1.bf16.msra.mxu0 %v13622_v42  ;;  %9743 = vmatpush1.bf16.msra.mxu1 %v13626_v58  ;;  %14705 = vst [vmem:[#allocation17_spill] sm:$0xff] %v13806_v15  ;;  %v13820_v49 = vpack.c.bf16 %v8009_v20, %v8005_v4  ;;  %v8011_v47 = vld [vmem:[%s14437_s10 + $0x308] sm:$0xff]  ;;  %v8013_v52 = vld [vmem:[%s14437_s10 + $0x318] sm:$0xff]  ;;  %v13838_v20 = vpack.c.bf16 %v8006_v34, %v8002_v5  ;;  %v8012_v5 = vld [vmem:[%s14437_s10 + $0x310] sm:$0xff] }
 0x93c   :  { %9681 = vmatprep.subr.bf16.mxu0 %v13628_v48  ;;  %9745 = vmatprep.subr.bf16.mxu1 %v13640_v51  ;;  %14706 = vst [vmem:[#allocation18_spill] sm:$0xff] %v13808_v8  ;;  %v8015_v57 = vld [vmem:[%s14437_s10 + $0x328] sm:$0xff]  ;;  %v8017_v4 = vld [vmem:[%s14437_s10 + $0x338] sm:$0xff] }
 0x93d   :  { %14707 = vst [vmem:[#allocation19_spill] sm:$0xff] %v13820_v49  ;;  %v13856_v34 = vpack.c.bf16 %v8017_v4, %v8013_v52  ;;  %v8025_v52 = vld [vmem:[%s14437_s10 + $0x378] sm:$0xff] }
 0x93f   :  { %9683 = vmatpush1.bf16.msra.mxu0 %v13658_v3  ;;  %9747 = vmatpush1.bf16.msra.mxu1 %v13662_v2  ;;  %14709 = vst [vmem:[#allocation21_spill] sm:$0xff] %v13856_v34 }
 0x940   :  { %9685 = vmatprep.subr.bf16.mxu0 %v13664_v25  ;;  %9749 = vmatprep.subr.bf16.mxu1 %v13676_v50 }
 0x943   :  { %9687 = vmatpush1.bf16.msra.mxu0 %v13694_v37  ;;  %9751 = vmatpush1.bf16.msra.mxu1 %v13698_v60 }
 0x944   :  { %9689 = vmatprep.subr.bf16.mxu0 %v13700_v39  ;;  %9753 = vmatprep.subr.bf16.mxu1 %v13712_v53 }
 0x947   :  { %9691 = vmatpush1.bf16.msra.mxu0 %v13730_v41  ;;  %9755 = vmatpush1.bf16.msra.mxu1 %v13734_v12 }
 0x948   :  { %9693 = vmatprep.subr.bf16.mxu0 %v13736_v63  ;;  %9757 = vmatprep.subr.bf16.mxu1 %v13748_v1 }
 0x94b   :  { %9695 = vmatpush1.bf16.msra.mxu0 %v13766_v7  ;;  %9759 = vmatpush1.bf16.msra.mxu1 %v13770_v62  ;;  %v8010_v62 = vld [vmem:[%s14437_s10 + $0x300] sm:$0xff] }
 0x94c   :  { %9697 = vmatprep.subr.bf16.mxu0 %v13772_v19  ;;  %9761 = vmatprep.subr.bf16.mxu1 %v13784_v11  ;;  %v13842_v11 = vpack.c.bf16 %v8008_v18, %v8004_v22  ;;  %v13844_v19 = vpack.c.bf16 %v8015_v57, %v8011_v47  ;;  %v8014_v7 = vld [vmem:[%s14437_s10 + $0x320] sm:$0xff]  ;;  %v8016_v22 = vld [vmem:[%s14437_s10 + $0x330] sm:$0xff]  ;;  %v8019_v18 = vld [vmem:[%s14437_s10 + $0x348] sm:$0xff] }
 0x94d   :  { %v8023_v47 = vld [vmem:[%s14437_s10 + $0x368] sm:$0xff]  ;;  %v8021_v57 = vld [vmem:[%s14437_s10 + $0x358] sm:$0xff]  ;;  %v13874_v4 = vpack.c.bf16 %v8014_v7, %v8010_v62  ;;  %v8020_v62 = vld [vmem:[%s14437_s10 + $0x350] sm:$0xff] }
 0x94e   :  { %14708 = vst [vmem:[#allocation20_spill] sm:$0xff] %v13844_v19  ;;  %v13889_v7 = vpack.c.bf16 %v8025_v52, %v8021_v57 }
 0x94f   :  { %9699 = vmatpush1.bf16.msra.mxu0 %v13802_v30  ;;  %9763 = vmatpush1.bf16.msra.mxu1 %v13806_v15  ;;  %v8018_v15 = vld [vmem:[%s14437_s10 + $0x340] sm:$0xff] }
 0x950   :  { %9701 = vmatprep.subr.bf16.mxu0 %v13808_v8  ;;  %9765 = vmatprep.subr.bf16.mxu1 %v13820_v49  ;;  %v13878_v49 = vpack.c.bf16 %v8016_v22, %v8012_v5  ;;  %v13880_v8 = vpack.c.bf16 %v8023_v47, %v8019_v18  ;;  %v8022_v30 = vld [vmem:[%s14437_s10 + $0x360] sm:$0xff]  ;;  %14712 = vst [vmem:[#allocation24_spill] sm:$0xff] %v13889_v7  ;;  %v8024_v5 = vld [vmem:[%s14437_s10 + $0x370] sm:$0xff] }
 0x951   :  { %v13898_v22 = vpack.c.bf16 %v8022_v30, %v8018_v15  ;;  %v13902_v18 = vpack.c.bf16 %v8024_v5, %v8020_v62  ;;  %v7856_v15 = vld [vmem:[%s14715_s8] sm:$0xff] }
 0x952   :  { %14710 = vst [vmem:[#allocation22_spill] sm:$0xff] %v13878_v49  ;;  %14711 = vst [vmem:[#allocation23_spill] sm:$0xff] %v13880_v8 }
 0x953   :  { %9703 = vmatpush1.bf16.msra.mxu0 %v13838_v20  ;;  %9767 = vmatpush1.bf16.msra.mxu1 %v13842_v11  ;;  %14713 = vst [vmem:[#allocation25_spill] sm:$0xff] %v13898_v22  ;;  %14714 = vst [vmem:[#allocation26_spill] sm:$0xff] %v13902_v18 }
 0x954   :  { %9705 = vmatprep.subr.bf16.mxu0 %v13844_v19  ;;  %9769 = vmatprep.subr.bf16.mxu1 %v13856_v34 }
 0x957   :  { %9707 = vmatpush1.bf16.msra.mxu0 %v13874_v4  ;;  %9771 = vmatpush1.bf16.msra.mxu1 %v13878_v49 }
 0x958   :  { %9709 = vmatprep.subr.bf16.mxu0 %v13880_v8  ;;  %9773 = vmatprep.subr.bf16.mxu1 %v13889_v7  ;;  %v7865_v8 = vld [vmem:[%s14716_s25 + $0x8] sm:$0xff] }
 0x95b   :  { %9711 = vmatpush1.bf16.msra.mxu0 %v13898_v22  ;;  %9775 = vmatpush1.bf16.msra.mxu1 %v13902_v18  ;;  %v7857_v22 = vld [vmem:[%s14715_s8 + $0x8] sm:$0xff]  ;;  %v8033_v18 = vld [vmem:[%s14437_s10 + $0x3b8] sm:$0xff] }
 0x9b7   :  { %v7848_v47 = vpop.xlane.xlu0 %7847 }
 0x9b8   :  { %v7854_v57 = vmul.f32 0.005, %v7848_v47  ;;  %v7864_v47 = vld [vmem:[%s14716_s25] sm:$0xff] }
 0x9ba   :  { %v7858_v52 = vadd.f32 1e-05, %v7854_v57  ;;  %v7853_v34 = vpop.xlane.xlu1 %7852 }
 0x9bb   :  { %v7855_v19 = vmul.f32 0.005, %v7853_v34 }
 0x9bc   :  { %10420 = vrsqrt.f32 %v7858_v52  ;;  %v8031_v52 = vld [vmem:[%s14437_s10 + $0x3a8] sm:$0xff] }
 0x9bd   :  { %v7859_v30 = vadd.f32 1e-05, %v7855_v19  ;;  %v8027_v19 = vld [vmem:[%s14437_s10 + $0x388] sm:$0xff] }
 0x9bf   :  { %10422 = vrsqrt.f32 %v7859_v30  ;;  %v8029_v30 = vld [vmem:[%s14437_s10 + $0x398] sm:$0xff] }
 0x9c6   :  { %v10421_v62 = vpop.eup %10420 }
 0x9c7   :  { %v7862_v5 = vmul.f32 %v10421_v62, %v7856_v15  ;;  %v13926_v62 = vpack.c.bf16 %v8031_v52, %v8027_v19  ;;  %v8028_v19 = vld [vmem:[%s14437_s10 + $0x390] sm:$0xff] }
 0x9c8   :  { %v8032_v52 = vld [vmem:[%s14437_s10 + $0x3b0] sm:$0xff] }
 0x9c9   :  { %v10423_v57 = vpop.eup %10422  ;;  %7872 = vperm.xlu0 %10067, %v7862_v5   ;;  %v7866_v34 = vmul.f32 %v7862_v5, %v13383_v43  ;;  %v8026_v43 = vld [vmem:[%s14437_s10 + $0x380] sm:$0xff]  ;;  %9713 = vmatprep.subr.bf16.mxu0 %v13926_v62 }
 0x9ca   :  { %v7863_v15 = vmul.f32 %v10423_v57, %v7857_v22  ;;  %v8030_v5 = vld [vmem:[%s14437_s10 + $0x3a0] sm:$0xff]  ;;  %v13940_v22 = vpack.c.bf16 %v8033_v18, %v8029_v30  ;;  %v8037_v30 = vld [vmem:[%s14437_s10 + $0x3d8] sm:$0xff] }
 0x9cb   :  { %v7868_v7 = vsub.f32 %v7864_v47, %v7866_v34  ;;  %v13942_v57 = vpack.c.bf16 %v8030_v5, %v8026_v43  ;;  %v13952_v47 = vpack.c.bf16 %v8032_v52, %v8028_v19  ;;  %v8035_v34 = vld [vmem:[%s14437_s10 + $0x3c8] sm:$0xff]  ;;  %v8038_v43 = vld [vmem:[%s14437_s10 + $0x3e0] sm:$0xff]  ;;  %v8036_v52 = vld [vmem:[%s14437_s10 + $0x3d0] sm:$0xff] }
 0x9cc   :  { %v7867_v49 = vmul.f32 %v7863_v15, %v13385_v0  ;;  %9777 = vmatprep.subr.bf16.mxu1 %v13940_v22  ;;  %v8039_v0 = vld [vmem:[%s14437_s10 + $0x3e8] sm:$0xff] }
 0x9cd   :  { %7890 = vperm.xlu1 %10068, %v7868_v7   ;;  %9715 = vmatpush1.bf16.msra.mxu0 %v13942_v57  ;;  %v13966_v7 = vpack.c.bf16 %v8039_v0, %v8035_v34 }
 0x9ce   :  { %v7869_v18 = vsub.f32 %v7865_v8, %v7867_v49  ;;  %9779 = vmatpush1.bf16.msra.mxu1 %v13952_v47  ;;  %v8041_v8 = vld [vmem:[%s14437_s10 + $0x3f8] sm:$0xff]  ;;  %v8034_v49 = vld [vmem:[%s14437_s10 + $0x3c0] sm:$0xff] }
 0x9cf   :  { %14717 = vst [vmem:[#allocation27_spill] sm:$0xff] %v13966_v7  ;;  %v13977_v5 = vpack.c.bf16 %v8041_v8, %v8037_v30  ;;  %v13979_v19 = vpack.c.bf16 %v8038_v43, %v8034_v49  ;;  %9717 = vmatprep.subr.bf16.mxu0 %v13966_v7 }
 0x9d0   :  { %7895 = vperm.xlu0 %10067, %v7869_v18   ;;  %v8040_v18 = vld [vmem:[%s14437_s10 + $0x3f0] sm:$0xff]  ;;  %s9059_s10 = sshll.u32 %s10485_s22, 4  ;;  %s9060_s10 = int_to_ptr.vmem [resolvable:$true] %s9059_s10 }
 0x9d1   :  { %7877 = vperm.xlu1 %10068, %v7863_v15   ;;  %14718 = vst [vmem:[#allocation28_spill] sm:$0xff] %v13977_v5  ;;  %14719 = vst [vmem:[#allocation29_spill] sm:$0xff] %v13979_v19  ;;  %v13988_v34 = vpack.c.bf16 %v8040_v18, %v8036_v52  ;;  %9781 = vmatprep.subr.bf16.mxu1 %v13977_v5  ;;  %p10431_p1 = scmp.lt.s32.totalorder %s9060_s10, %s9060_s10 }
 0x9d2   :  { %9719 = vmatpush1.bf16.msra.mxu0 %v13979_v19 }
 0x9d3   :  { %9783 = vmatpush1.bf16.msra.mxu1 %v13988_v34  ;;  %9785 = vmatprep.subr.bf16.mxu0 %v13412_v46 }
 0x9d4   :  { %9849 = vmatprep.subr.bf16.mxu1 %v13423_v10 }
 0xa48   :  { %v7873_v15 = vpop.permute.xlu0 %7872 }
 0xa49   :  { %v7882_v0 = vmul.f32 %v7873_v15, %v13360_v31  ;;  %v7880_v30 = vmul.f32 %v7873_v15, %v13358_v38  ;;  %v7881_v8 = vmul.f32 %v7873_v15, %v13363_v55  ;;  %v7883_v31 = vmul.f32 %v7873_v15, %v13365_v27 }
 0xa4c   :  { %v7891_v49 = vpop.permute.xlu1 %7890 }
 0xa4d   :  { %v7898_v43 = vadd.f32 %v7891_v49, %v7880_v30  ;;  %v13998_v52 = vadd.f32 %v7891_v49, %v7882_v0  ;;  %v7899_v18 = vadd.f32 %v7891_v49, %v7881_v8  ;;  %v8658_v30 = vld [vmem:[%s14739_s2 + $0xa8] sm:$0xff] }
 0xa4f   :  { %v7906_v5 = vmax.f32 %v7898_v43, 0.0  ;;  %v7907_v19 = vmax.f32 %v7899_v18, 0.0  ;;  %v14009_v55 = vpop.permute.xlu0 %7895  ;;  %v8642_v43 = vld [vmem:[%s14739_s2 + $0x28] sm:$0xff]  ;;  %v8659_v18 = vld [vmem:[%s14739_s2 + $0xb0] sm:$0xff] }
 0xa50   :  { %v14000_v7 = vpop.permute.xlu1 %7877 }
 0xa51   :  { %v7884_v46 = vmul.f32 %v14000_v7, %v13370_v24  ;;  %v7885_v10 = vmul.f32 %v14000_v7, %v13375_v9  ;;  %v7886_v38 = vmul.f32 %v14000_v7, %v13372_v6  ;;  %8106 = vmatprep.mubr.f32.mxu0 %v7907_v19  ;;  %8183 = vmatprep.mubr.f32.mxu1 %v7907_v19 }
 0xa52   :  { %8107 = vmatmul.mubr.f32.vlgmr.msra.gmra.mrb[24].mxu0 %v7906_v5  ;;  %8184 = vmatmul.mubr.f32.vlgmr.msra.gmra.mrb[24].mxu1 %v7906_v5  ;;  %v7901_v9 = vadd.f32 %v7891_v49, %v7883_v31  ;;  %v8674_v5 = vld [vmem:[%s14739_s2 + $0x128] sm:$0xff]  ;;  %v8641_v49 = vld [vmem:[%s14739_s2 + $0x20] sm:$0xff] }
 0xa53   :  { %9787 = vmatpush1.bf16.msra.mxu0 %v13425_v13  ;;  %v7903_v0 = vadd.f32 %v14009_v55, %v7885_v10  ;;  %v7902_v24 = vadd.f32 %v14009_v55, %v7884_v46  ;;  %9851 = vmatpush1.bf16.msra.mxu1 %v13437_v36  ;;  %v14017_v6 = vadd.f32 %v14009_v55, %v7886_v38  ;;  %v14720_v36 = vld [vmem:[#allocation12_spill] sm:$0xff]  ;;  %v8660_v46 = vld [vmem:[%s14739_s2 + $0xb8] sm:$0xff]  ;;  %v8675_v10 = vld [vmem:[%s14739_s2 + $0x130] sm:$0xff] }
 0xa54   :  { %9789 = vmatprep.subr.bf16.mxu0 %v13450_v45  ;;  %9853 = vmatprep.subr.bf16.mxu1 %v13452_v21  ;;  %v7909_v13 = vmax.f32 %v7901_v9, 0.0  ;;  %v14721_v45 = vld [vmem:[#allocation13_spill] sm:$0xff]  ;;  %v14722_v21 = vld [vmem:[#allocation14_spill] sm:$0xff]  ;;  %v9922_v31 = vpack.c.bf16 %v8642_v43, %v8641_v49 }
 0xa55   :  { %v7911_v27 = vmax.f32 %v7903_v0, 0.0  ;;  %v7910_v19 = vmax.f32 %v7902_v24, 0.0  ;;  %v8676_v38 = vld [vmem:[%s14739_s2 + $0x138] sm:$0xff]  ;;  %v8643_v0 = vld [vmem:[%s14739_s2 + $0x30] sm:$0xff] }
 0xa56   :  { %v8644_v24 = vld [vmem:[%s14739_s2 + $0x38] sm:$0xff]  ;;  %v9954_v9 = vpack.c.bf16 %v8676_v38, %v8675_v10 }
 0xa57   :  { %9791 = vmatpush1.bf16.msra.mxu0 %v13464_v33  ;;  %8112 = vmatprep.mubr.f32.mxu0 %v7911_v27  ;;  %v14723_v33 = vld [vmem:[#allocation15_spill] sm:$0xff] }
 0xa58   :  { %9855 = vmatpush1.bf16.msra.mxu1 %v13477_v54  ;;  %8189 = vmatprep.mubr.f32.mxu1 %v7911_v27  ;;  %v14724_v54 = vld [vmem:[#allocation16_spill] sm:$0xff]  ;;  %v14282_v49 = vld [vmem:[%s14740_s14 + $0x38] sm:$0xff] }
 0xa59   :  { %8113 = vmatmul.mubr.f32.gmra.mrb[26].mxu0 %v7910_v19  ;;  %8190 = vmatmul.mubr.f32.gmra.mrb[26].mxu1 %v7910_v19  ;;  %v8662_v27 = vld [vmem:[%s14739_s2 + $0xc8] sm:$0xff]  ;;  %v8677_v19 = vld [vmem:[%s14739_s2 + $0x140] sm:$0xff] }
 0xa5a   :  { %9793 = vmatprep.subr.bf16.mxu0 %v13479_v61  ;;  %8469 = vmatprep.mubr.f32.mxu0 %v7909_v13  ;;  %v14725_v61 = vld [vmem:[#allocation17_spill] sm:$0xff] }
 0xa5b   :  { %9857 = vmatprep.subr.bf16.mxu1 %v13490_v32  ;;  %8546 = vmatprep.mubr.f32.mxu1 %v7909_v13  ;;  %v14726_v32 = vld [vmem:[#allocation18_spill] sm:$0xff]  ;;  %v8678_v13 = vld [vmem:[%s14739_s2 + $0x148] sm:$0xff] }
 0xa5c   :  { %9795 = vmatpush1.bf16.msra.mxu0 %v13502_v28  ;;  %9859 = vmatpush1.bf16.msra.mxu1 %v13515_v14  ;;  %v14727_v28 = vld [vmem:[#allocation19_spill] sm:$0xff]  ;;  %v14728_v14 = vld [vmem:[#allocation20_spill] sm:$0xff] }
 0xa5d   :  { %9797 = vmatprep.subr.bf16.mxu0 %v13517_v26  ;;  %9861 = vmatprep.subr.bf16.mxu1 %v13529_v59  ;;  %v14729_v26 = vld [vmem:[#allocation21_spill] sm:$0xff]  ;;  %v14730_v59 = vld [vmem:[#allocation22_spill] sm:$0xff] }
 0xa60   :  { %9799 = vmatpush1.bf16.msra.mxu0 %v13550_v17  ;;  %9863 = vmatpush1.bf16.msra.mxu1 %v13554_v40  ;;  %v14731_v17 = vld [vmem:[#allocation23_spill] sm:$0xff]  ;;  %v14732_v40 = vld [vmem:[#allocation24_spill] sm:$0xff] }
 0xa61   :  { %9801 = vmatprep.subr.bf16.mxu0 %v13556_v56  ;;  %9865 = vmatprep.subr.bf16.mxu1 %v13568_v44  ;;  %v14733_v56 = vld [vmem:[#allocation25_spill] sm:$0xff]  ;;  %v14734_v44 = vld [vmem:[#allocation26_spill] sm:$0xff] }
 0xa64   :  { %9803 = vmatpush1.bf16.msra.mxu0 %v13586_v23  ;;  %9867 = vmatpush1.bf16.msra.mxu1 %v13590_v16  ;;  %v14735_v23 = vld [vmem:[#allocation11_spill] sm:$0xff] }
 0xa65   :  { %9805 = vmatprep.subr.bf16.mxu0 %v13592_v29  ;;  %9869 = vmatprep.subr.bf16.mxu1 %v13604_v35  ;;  %v7887_v16 = vmul.f32 %v14000_v7, %v14735_v23  ;;  %v14736_v29 = vld [vmem:[#allocation27_spill] sm:$0xff]  ;;  %v14737_v35 = vld [vmem:[#allocation28_spill] sm:$0xff] }
 0xa66   :  { %v8673_v7 = vld [vmem:[%s14739_s2 + $0x120] sm:$0xff]  ;;  %v8666_v23 = vld [vmem:[%s14739_s2 + $0xe8] sm:$0xff] }
 0xa68   :  { %9807 = vmatpush1.bf16.msra.mxu0 %v13622_v42  ;;  %9871 = vmatpush1.bf16.msra.mxu1 %v13626_v58  ;;  %v7905_v42 = vadd.f32 %v14009_v55, %v7887_v16  ;;  %v14738_v58 = vld [vmem:[#allocation29_spill] sm:$0xff]  ;;  %v9924_v55 = vpack.c.bf16 %v8660_v46, %v8659_v18  ;;  %v8681_v16 = vld [vmem:[%s14739_s2 + $0x160] sm:$0xff] }
 0xa69   :  { %9809 = vmatprep.subr.bf16.mxu0 %v13628_v48  ;;  %9873 = vmatprep.subr.bf16.mxu1 %v13640_v51  ;;  %v7908_v48 = vmax.f32 %v13998_v52, 0.0  ;;  %v9951_v52 = vpack.c.bf16 %v8674_v5, %v8673_v7  ;;  %v14251_v7 = vld [vmem:[%s14740_s14 + $0x18] sm:$0xff]  ;;  %v14257_v5 = vld [vmem:[%s14740_s14 + $0x10] sm:$0xff] }
 0xa6a   :  { %v7913_v51 = vmax.f32 %v7905_v42, 0.0 }
 0xa6c   :  { %9811 = vmatpush1.bf16.msra.mxu0 %v13658_v3  ;;  %9875 = vmatpush1.bf16.msra.mxu1 %v13662_v2  ;;  %v7912_v3 = vmax.f32 %v14017_v6, 0.0  ;;  %v8669_v2 = vld [vmem:[%s14739_s2 + $0x100] sm:$0xff] }
 0xa6d   :  { %9813 = vmatprep.subr.bf16.mxu0 %v13664_v25  ;;  %9877 = vmatprep.subr.bf16.mxu1 %v13676_v50  ;;  %v8670_v25 = vld [vmem:[%s14739_s2 + $0x108] sm:$0xff]  ;;  %v8653_v50 = vld [vmem:[%s14739_s2 + $0x80] sm:$0xff] }
 0xa6e   :  { %v8661_v6 = vld [vmem:[%s14739_s2 + $0xc0] sm:$0xff] }
 0xa70   :  { %9815 = vmatpush1.bf16.msra.mxu0 %v13694_v37  ;;  %9879 = vmatpush1.bf16.msra.mxu1 %v13698_v60  ;;  %v10481_v37 = vmov 0.0|0.0   ;;  %v9945_v60 = vpack.c.bf16 %v8670_v25, %v8669_v2  ;;  %v8668_v2 = vld [vmem:[%s14739_s2 + $0xf8] sm:$0xff]  ;;  %v8683_v25 = vld [vmem:[%s14739_s2 + $0x170] sm:$0xff] }
 0xa71   :  { %9817 = vmatprep.subr.bf16.mxu0 %v13700_v39  ;;  %9881 = vmatprep.subr.bf16.mxu1 %v13712_v53  ;;  %v8654_v39 = vld [vmem:[%s14739_s2 + $0x88] sm:$0xff]  ;;  %v8637_v53 = vld [vmem:[%s14739_s2] sm:$0xff] }
 0xa74   :  { %9819 = vmatpush1.bf16.msra.mxu0 %v13730_v41  ;;  %9883 = vmatpush1.bf16.msra.mxu1 %v13734_v12  ;;  %v8638_v41 = vld [vmem:[%s14739_s2 + $0x8] sm:$0xff]  ;;  %v9912_v12 = vpack.c.bf16 %v8654_v39, %v8653_v50  ;;  %v8684_v50 = vld [vmem:[%s14739_s2 + $0x178] sm:$0xff] }
 0xa75   :  { %9821 = vmatprep.subr.bf16.mxu0 %v13736_v63  ;;  %9885 = vmatprep.subr.bf16.mxu1 %v13748_v1  ;;  %v9914_v63 = vpack.c.bf16 %v8638_v41, %v8637_v53  ;;  %v8671_v1 = vld [vmem:[%s14739_s2 + $0x110] sm:$0xff]  ;;  %v8652_v41 = vld [vmem:[%s14739_s2 + $0x78] sm:$0xff] }
 0xa76   :  { %v8651_v53 = vld [vmem:[%s14739_s2 + $0x70] sm:$0xff] }
 0xa78   :  { %9823 = vmatpush1.bf16.msra.mxu0 %v14720_v36  ;;  %9887 = vmatpush1.bf16.msra.mxu1 %v14721_v45  ;;  %v9926_v36 = vpack.c.bf16 %v8644_v24, %v8643_v0  ;;  %v9928_v45 = vpack.c.bf16 %v8662_v27, %v8661_v6 }
 0xa79   :  { %9825 = vmatprep.subr.bf16.mxu0 %v14722_v21  ;;  %9889 = vmatprep.subr.bf16.mxu1 %v14723_v33  ;;  %v8645_v21 = vld [vmem:[%s14739_s2 + $0x40] sm:$0xff]  ;;  %v8646_v33 = vld [vmem:[%s14739_s2 + $0x48] sm:$0xff] }
 0xa7c   :  { %9827 = vmatpush1.bf16.msra.mxu0 %v14724_v54  ;;  %9891 = vmatpush1.bf16.msra.mxu1 %v14725_v61  ;;  %v9957_v54 = vpack.c.bf16 %v8678_v13, %v8677_v19  ;;  %v8663_v61 = vld [vmem:[%s14739_s2 + $0xd0] sm:$0xff] }
 0xa7d   :  { %9829 = vmatprep.subr.bf16.mxu0 %v14726_v32  ;;  %9893 = vmatprep.subr.bf16.mxu1 %v14727_v28  ;;  %v8664_v32 = vld [vmem:[%s14739_s2 + $0xd8] sm:$0xff]  ;;  %v8679_v28 = vld [vmem:[%s14739_s2 + $0x150] sm:$0xff] }
 0xa80   :  { %9831 = vmatpush1.bf16.msra.mxu0 %v13838_v20  ;;  %9895 = vmatpush1.bf16.msra.mxu1 %v13842_v11  ;;  %v8672_v11 = vld [vmem:[%s14739_s2 + $0x118] sm:$0xff]  ;;  %v8655_v20 = vld [vmem:[%s14739_s2 + $0x90] sm:$0xff] }
 0xa81   :  { %9833 = vmatprep.subr.bf16.mxu0 %v14728_v14  ;;  %9897 = vmatprep.subr.bf16.mxu1 %v14729_v26  ;;  %v8680_v14 = vld [vmem:[%s14739_s2 + $0x158] sm:$0xff]  ;;  %v9930_v26 = vpack.c.bf16 %v8646_v33, %v8645_v21 }
 0xa84   :  { %9835 = vmatpush1.bf16.msra.mxu0 %v13874_v4  ;;  %9899 = vmatpush1.bf16.msra.mxu1 %v14730_v59  ;;  %v9948_v4 = vpack.c.bf16 %v8672_v11, %v8671_v1  ;;  %v9932_v59 = vpack.c.bf16 %v8664_v32, %v8663_v61  ;;  %v8686_v1 = vld [vmem:[%s14739_s2 + $0x188] sm:$0xff]  ;;  %v9942_v11 = vpack.c.bf16 %v8652_v41, %v8651_v53 }
 0xa85   :  { %9837 = vmatprep.subr.bf16.mxu0 %v14731_v17  ;;  %9901 = vmatprep.subr.bf16.mxu1 %v14732_v40  ;;  %v8647_v17 = vld [vmem:[%s14739_s2 + $0x50] sm:$0xff]  ;;  %v8648_v40 = vld [vmem:[%s14739_s2 + $0x58] sm:$0xff] }
 0xa88   :  { %9839 = vmatpush1.bf16.msra.mxu0 %v14733_v56  ;;  %9903 = vmatpush1.bf16.msra.mxu1 %v14734_v44  ;;  %v9960_v56 = vpack.c.bf16 %v8680_v14, %v8679_v28  ;;  %v8665_v44 = vld [vmem:[%s14739_s2 + $0xe0] sm:$0xff] }
 0xa89   :  { %9841 = vmatprep.subr.bf16.mxu0 %v13926_v62  ;;  %9905 = vmatprep.subr.bf16.mxu1 %v13940_v22  ;;  %v8656_v62 = vld [vmem:[%s14739_s2 + $0x98] sm:$0xff]  ;;  %v8639_v22 = vld [vmem:[%s14739_s2 + $0x10] sm:$0xff]  ;;  %v9936_v42 = vpack.c.bf16 %v8666_v23, %v8665_v44 }
 0xa8c   :  { %9843 = vmatpush1.bf16.msra.mxu0 %v13942_v57  ;;  %9907 = vmatpush1.bf16.msra.mxu1 %v13952_v47  ;;  %v8640_v57 = vld [vmem:[%s14739_s2 + $0x18] sm:$0xff]  ;;  %v9916_v47 = vpack.c.bf16 %v8656_v62, %v8655_v20 }
 0xa8d   :  { %9845 = vmatprep.subr.bf16.mxu0 %v14736_v29  ;;  %9909 = vmatprep.subr.bf16.mxu1 %v14737_v35  ;;  %v9918_v15 = vpack.c.bf16 %v8640_v57, %v8639_v22  ;;  %v8682_v29 = vld [vmem:[%s14739_s2 + $0x168] sm:$0xff]  ;;  %v9934_v35 = vpack.c.bf16 %v8648_v40, %v8647_v17 }
 0xa90   :  { %9847 = vmatpush1.bf16.msra.mxu0 %v14738_v58  ;;  %9911 = vmatpush1.bf16.msra.mxu1 %v13988_v34  ;;  %v8657_v34 = vld [vmem:[%s14739_s2 + $0xa0] sm:$0xff] }
 0xa91   :  { %9944 = vmatprep.subr.bf16.mxu1 %v10481_v37  ;;  %9913 = vmatprep.subr.bf16.mxu0 %v9912_v12  ;;  %v9920_v8 = vpack.c.bf16 %v8658_v30, %v8657_v34  ;;  %v8649_v58 = vld [vmem:[%s14739_s2 + $0x60] sm:$0xff]  ;;  %v9966_v12 = vpack.c.bf16 %v8684_v50, %v8683_v25  ;;  %v14272_v30 = vld [vmem:[%s14740_s14 + $0x8] sm:$0xff] }
 0xa92   :  { %v14262_v34 = vld [vmem:[%s14740_s14 + $0x20] sm:$0xff] }
 0xa93   :  { %8470 = vmatmul.mubr.f32.vlgmr.msra.gmra.mrb[28].mxu0 %v7908_v48  ;;  %8547 = vmatmul.mubr.f32.vlgmr.msra.gmra.mrb[28].mxu1 %v7908_v48  ;;  %v8650_v48 = vld [vmem:[%s14739_s2 + $0x68] sm:$0xff] }
 0xa94   :  { %8475 = vmatprep.mubr.f32.mxu0 %v7913_v51  ;;  %8552 = vmatprep.mubr.f32.mxu1 %v7913_v51  ;;  %v9963_v51 = vpack.c.bf16 %v8682_v29, %v8681_v16 }
 0xa95   :  { %9946 = vmatpush1.bf16.msra.mxu1 %v9945_v60  ;;  %9915 = vmatpush3.bf16.msra.mxu0 %v9914_v63  ;;  %v9938_v60 = vpack.c.bf16 %v8650_v48, %v8649_v58  ;;  %v8685_v63 = vld [vmem:[%s14739_s2 + $0x180] sm:$0xff] }
 0xa96   :  { %9947 = vmatprep.subr.bf16.mxu1 %v10481_v37  ;;  %9917 = vmatprep.subr.bf16.mxu0 %v9916_v47  ;;  %v9969_v20 = vpack.c.bf16 %v8686_v1, %v8685_v63  ;;  %v14246_v47 = vld [vmem:[%s14740_s14] sm:$0xff] }
 0xa97   :  { %8476 = vmatmul.mubr.f32.gmra.mrb[30].mxu0 %v7912_v3  ;;  %8553 = vmatmul.mubr.f32.gmra.mrb[30].mxu1 %v7912_v3  ;;  %v8667_v3 = vld [vmem:[%s14739_s2 + $0xf0] sm:$0xff] }
 0xa98   :  { %v9940_v39 = vpack.c.bf16 %v8668_v2, %v8667_v3 }
 0xa99   :  { %9949 = vmatpush1.bf16.msra.mxu1 %v9948_v4  ;;  %9919 = vmatpush3.bf16.msra.mxu0 %v9918_v15  ;;  %v14267_v15 = vld [vmem:[%s14740_s14 + $0x30] sm:$0xff] }
 0xa9a   :  { %9950 = vmatprep.subr.bf16.mxu1 %v10481_v37  ;;  %9921 = vmatprep.subr.bf16.mxu0 %v9920_v8  ;;  %v14277_v8 = vld [vmem:[%s14740_s14 + $0x28] sm:$0xff] }
 0xa9d   :  { %9952 = vmatpush1.bf16.msra.mxu1 %v9951_v52  ;;  %9923 = vmatpush3.bf16.msra.mxu0 %v9922_v31 }
 0xa9e   :  { %9953 = vmatprep.subr.bf16.mxu1 %v10481_v37  ;;  %9925 = vmatprep.subr.bf16.mxu0 %v9924_v55 }
 0xaa1   :  { %9955 = vmatpush1.bf16.msra.mxu1 %v9954_v9  ;;  %9927 = vmatpush3.bf16.msra.mxu0 %v9926_v36 }
 0xaa2   :  { %9956 = vmatprep.subr.bf16.mxu1 %v10481_v37  ;;  %9929 = vmatprep.subr.bf16.mxu0 %v9928_v45 }
 0xaa5   :  { %9958 = vmatpush1.bf16.msra.mxu1 %v9957_v54  ;;  %9931 = vmatpush3.bf16.msra.mxu0 %v9930_v26 }
 0xaa6   :  { %9959 = vmatprep.subr.bf16.mxu1 %v10481_v37  ;;  %9933 = vmatprep.subr.bf16.mxu0 %v9932_v59  ;;  %v10482_v59 = vmov 1966171168  }
 0xaa7   :  { %v8250_v17 = vunpack.c.l.s4 %v10482_v59 }
 0xaa9   :  { %9961 = vmatpush1.bf16.msra.mxu1 %v9960_v56  ;;  %9935 = vmatpush3.bf16.msra.mxu0 %v9934_v35  ;;  %v8251_v58 = vunpack.c.0.s8 %v8250_v17 }
 0xaaa   :  { %9962 = vmatprep.subr.bf16.mxu1 %v10481_v37  ;;  %9937 = vmatprep.subr.bf16.mxu0 %v9936_v42 }
 0xaad   :  { %9964 = vmatpush1.bf16.msra.mxu1 %v9963_v51  ;;  %9939 = vmatpush3.bf16.msra.mxu0 %v9938_v60 }
 0xaae   :  { %9965 = vmatprep.subr.bf16.mxu1 %v10481_v37  ;;  %9941 = vmatprep.subr.bf16.mxu0 %v9940_v39  ;;  %v14741_v39 = vld [vmem:[#allocation9_spill] sm:$0xff] }
 0xaaf   :  { %v8254_v53 = vsub.s32 %v8251_v58, %v14741_v39 }
 0xab1   :  { %9967 = vmatpush1.bf16.msra.mxu1 %v9966_v12  ;;  %9943 = vmatpush3.bf16.msra.mxu0 %v9942_v11 }
 0xab2   :  { %9968 = vmatprep.subr.bf16.mxu1 %v10481_v37  ;;  %9971 = vmatprep.subr.bf16.mxu0 %v10481_v37 }
 0xab5   :  { %9970 = vmatpush1.bf16.msra.mxu1 %v9969_v20 }
 0xab6   :  { %9992 = vmatprep.subr.bf16.mxu1 %v10481_v37 }
 0xb25   :  { %v8108_v4 = vpop.f32.mrb[24].mxu0  ;;  %v8185_v62 = vpop.f32.mrb[24].mxu1 }
 0xb26   :  { %v8110_v22 = vpop.f32.mrb[25].mxu0  ;;  %v8187_v57 = vpop.f32.mrb[25].mxu1  ;;  %v8204_v46 = vmul.f32 %v14246_v47, %v8108_v4  ;;  %v8206_v10 = vmul.f32 %v14257_v5, %v8185_v62  ;;  %v14742_v62 = vlaneseq }
 0xb27   :  { %v8207_v43 = vmul.f32 %v14251_v7, %v8187_v57  ;;  %v8205_v24 = vmul.f32 %v14272_v30, %v8110_v22  ;;  %v8861_v22 = vld [vmem:[%s14745_s19 + $0x18] sm:$0xff] }
 0xb28   :  { %vm14296_vm11 = vcmp.lt.s32.totalorder %v14742_v62, 400 }
 0xb29   :  { %v8234_v13 = vsel %vm8233_vm6, %v8207_v43, 0.0 }
 0xb2c   :  { %v8114_v52 = vpop.f32.mrb[26].mxu0  ;;  %v8191_v18 = vpop.f32.mrb[26].mxu1 }
 0xb2d   :  { %v8208_v38 = vmul.f32 %v14262_v34, %v8114_v52  ;;  %v8210_v31 = vmul.f32 %v14267_v15, %v8191_v18  ;;  %v8116_v55 = vpop.f32.mrb[27].mxu0  ;;  %v8193_v0 = vpop.f32.mrb[27].mxu1 }
 0xb2e   :  { %v8209_v9 = vmul.f32 %v14277_v8, %v8116_v55  ;;  %v8211_v6 = vmul.f32 %v14282_v49, %v8193_v0 }
 0xb2f   :  { %v8212_v27 = vadd.f32 %v8208_v38, %v8204_v46  ;;  %v8226_v19 = vadd.f32 %v8210_v31, %v8206_v10 }
 0xb30   :  { %v8219_v36 = vadd.f32 %v8209_v9, %v8205_v24  ;;  %v8235_v45 = vsel %vm8233_vm6, %v8211_v6, 0.0 }
 0xb31   :  { %v8213_v21 = vrot.slane %v8212_v27, 4  ;;  %v8227_v33 = vrot.slane %v8226_v19, 4  ;;  %v8236_v54 = vadd.f32 %v8235_v45, %v8234_v13 }
 0xb32   :  { %v8220_v61 = vrot.slane %v8219_v36, 4 }
 0xb33   :  { %v8214_v32 = vadd.f32 %v8213_v21, %v8212_v27  ;;  %v8228_v28 = vadd.f32 %v8227_v33, %v8226_v19  ;;  %v8237_v14 = vrot.slane %v8236_v54, 4 }
 0xb34   :  { %v8221_v26 = vadd.f32 %v8220_v61, %v8219_v36 }
 0xb35   :  { %v8215_v40 = vrot.slane %v8214_v32, 2  ;;  %v8229_v56 = vrot.slane %v8228_v28, 2  ;;  %v8238_v44 = vadd.f32 %v8237_v14, %v8236_v54 }
 0xb36   :  { %v8222_v23 = vrot.slane %v8221_v26, 2 }
 0xb37   :  { %v8216_v16 = vadd.f32 %v8215_v40, %v8214_v32  ;;  %v8230_v29 = vadd.f32 %v8229_v56, %v8228_v28  ;;  %v8239_v35 = vrot.slane %v8238_v44, 2 }
 0xb38   :  { %v8223_v42 = vadd.f32 %v8222_v23, %v8221_v26 }
 0xb39   :  { %v8217_v48 = vrot.slane %v8216_v16, 1  ;;  %v8231_v51 = vrot.slane %v8230_v29, 1  ;;  %v8240_v3 = vadd.f32 %v8239_v35, %v8238_v44 }
 0xb3a   :  { %v8224_v2 = vrot.slane %v8223_v42, 1 }
 0xb3b   :  { %v8218_v25 = vadd.f32 %v8217_v48, %v8216_v16  ;;  %v8241_v50 = vrot.slane %v8240_v3, 1  ;;  %v8232_v41 = vadd.f32 %v8231_v51, %v8230_v29 }
 0xb3c   :  { %v8225_v60 = vadd.f32 %v8224_v2, %v8223_v42 }
 0xb3d   :  { %v8242_v12 = vadd.f32 %v8241_v50, %v8240_v3 }
 0xb3e   :  { %v8247_v63 = vcombine.low %v8218_v25, %v8225_v60 }
 0xb3f   :  { %v8248_v1 = vcombine.low %v8232_v41, %v8242_v12  ;;  %v8858_v12 = vld [vmem:[%s14745_s19] sm:$0xff] }
 0xb40   :  { %v8255_v11 = vrot.slane %v8247_v63, %v8254_v53  ;;  %v8859_v63 = vld [vmem:[%s14745_s19 + $0x8] sm:$0xff] }
 0xb41   :  { %v8262_v20 = vrot.slane %v8248_v1, %v8254_v53 }
 0xb43   :  { %v8263_v4 = vcombine.low %v8255_v11, %v8262_v20  ;;  %v14746_v11 = vld [vmem:[#allocation10_spill] sm:$0xff] }
 0xb45   :  { %v8270_v57 = vrot.slane %v8263_v4, %v8254_v53 }
 0xb47   :  { %8276 = vst.msk [vmem:[#allocation5] ss:$2 sm:$0xf] %vm14296_vm11, %v8270_v57  ;;  %v9972_v57 = vpack.c.bf16 %v8859_v63, %v8858_v12 }
 0xb66   :  { %v8471_v43 = vpop.f32.mrb[28].mxu0  ;;  %v8548_v52 = vpop.f32.mrb[28].mxu1 }
 0xb67   :  { %v8473_v18 = vpop.f32.mrb[29].mxu0  ;;  %v8550_v46 = vpop.f32.mrb[29].mxu1  ;;  %v8567_v55 = vmul.f32 %v8471_v43, %v14246_v47  ;;  %v8569_v0 = vmul.f32 %v8548_v52, %v14257_v5 }
 0xb68   :  { %v8570_v10 = vmul.f32 %v8550_v46, %v14251_v7  ;;  %v8568_v19 = vmul.f32 %v8473_v18, %v14272_v30  ;;  %v8862_v18 = vld [vmem:[%s14745_s19 + $0x20] sm:$0xff]  ;;  %v8863_v46 = vld [vmem:[%s14745_s19 + $0x28] sm:$0xff] }
 0xb6a   :  { %v8477_v38 = vpop.f32.mrb[30].mxu0  ;;  %v8554_v31 = vpop.f32.mrb[30].mxu1  ;;  %v8596_v21 = vsel %vm8233_vm6, %v8570_v10, 0.0  ;;  %v9978_v10 = vpack.c.bf16 %v8863_v46, %v8862_v18 }
 0xb6b   :  { %v8571_v24 = vmul.f32 %v8477_v38, %v14262_v34  ;;  %v8573_v9 = vmul.f32 %v8554_v31, %v14267_v15  ;;  %v8479_v6 = vpop.f32.mrb[31].mxu0  ;;  %v8556_v27 = vpop.f32.mrb[31].mxu1  ;;  %v8864_v38 = vld [vmem:[%s14745_s19 + $0x30] sm:$0xff]  ;;  %v8865_v31 = vld [vmem:[%s14745_s19 + $0x38] sm:$0xff] }
 0xb6c   :  { %v8572_v13 = vmul.f32 %v8479_v6, %v14277_v8  ;;  %v8574_v36 = vmul.f32 %v8556_v27, %v14282_v49  ;;  %v8868_v6 = vld [vmem:[%s14745_s19 + $0x50] sm:$0xff]  ;;  %v8869_v27 = vld [vmem:[%s14745_s19 + $0x58] sm:$0xff] }
 0xb6d   :  { %v8575_v45 = vadd.f32 %v8571_v24, %v8567_v55  ;;  %v8589_v7 = vadd.f32 %v8573_v9, %v8569_v0  ;;  %v9981_v55 = vpack.c.bf16 %v8865_v31, %v8864_v38  ;;  %v8866_v0 = vld [vmem:[%s14745_s19 + $0x40] sm:$0xff]  ;;  %v8867_v24 = vld [vmem:[%s14745_s19 + $0x48] sm:$0xff] }
 0xb6e   :  { %v8582_v33 = vadd.f32 %v8572_v13, %v8568_v19  ;;  %v8597_v47 = vsel %vm8233_vm6, %v8574_v36, 0.0  ;;  %v9984_v9 = vpack.c.bf16 %v8867_v24, %v8866_v0  ;;  %v9987_v19 = vpack.c.bf16 %v8869_v27, %v8868_v6  ;;  %v8870_v13 = vld [vmem:[%s14745_s19 + $0x60] sm:$0xff]  ;;  %v8871_v36 = vld [vmem:[%s14745_s19 + $0x68] sm:$0xff] }
 0xb6f   :  { %v8576_v5 = vrot.slane %v8575_v45, 4  ;;  %v8590_v54 = vrot.slane %v8589_v7, 4  ;;  %v8598_v34 = vadd.f32 %v8597_v47, %v8596_v21  ;;  %v8955_v21 = vld [vmem:[%s14747_s27] sm:$0xff]  ;;  %v8957_v47 = vld [vmem:[%s14747_s27 + $0x10] sm:$0xff] }
 0xb70   :  { %v8583_v61 = vrot.slane %v8582_v33, 4 }
 0xb71   :  { %v8577_v15 = vadd.f32 %v8576_v5, %v8575_v45  ;;  %v8591_v32 = vadd.f32 %v8590_v54, %v8589_v7  ;;  %v8599_v28 = vrot.slane %v8598_v34, 4  ;;  %v9990_v45 = vpack.c.bf16 %v8871_v36, %v8870_v13  ;;  %v8958_v54 = vld [vmem:[%s14747_s27 + $0x18] sm:$0xff] }
 0xb72   :  { %v8584_v14 = vadd.f32 %v8583_v61, %v8582_v33  ;;  %v10484_v7 = vmov 0.0   ;;  %v8956_v33 = vld [vmem:[%s14747_s27 + $0x8] sm:$0xff]  ;;  %v9996_v61 = vpack.c.bf16 %v8958_v54, %v8957_v47 }
 0xb73   :  { %v8578_v30 = vrot.slane %v8577_v15, 2  ;;  %v8592_v26 = vrot.slane %v8591_v32, 2  ;;  %v8600_v8 = vadd.f32 %v8599_v28, %v8598_v34  ;;  %v9993_v5 = vpack.c.bf16 %v8956_v33, %v8955_v21  ;;  %v8872_v34 = vld [vmem:[%s14745_s19 + $0x70] sm:$0xff] }
 0xb74   :  { %v8585_v59 = vrot.slane %v8584_v14, 2 }
 0xb75   :  { %v8579_v49 = vadd.f32 %v8578_v30, %v8577_v15  ;;  %v8593_v17 = vadd.f32 %v8592_v26, %v8591_v32  ;;  %v8601_v40 = vrot.slane %v8600_v8, 2  ;;  %v8959_v15 = vld [vmem:[%s14747_s27 + $0x20] sm:$0xff]  ;;  %v8960_v32 = vld [vmem:[%s14747_s27 + $0x28] sm:$0xff]  ;;  %v8962_v30 = vld [vmem:[%s14747_s27 + $0x38] sm:$0xff] }
 0xb76   :  { %v8586_v56 = vadd.f32 %v8585_v59, %v8584_v14  ;;  %v9999_v28 = vpack.c.bf16 %v8960_v32, %v8959_v15  ;;  %v8961_v14 = vld [vmem:[%s14747_s27 + $0x30] sm:$0xff] }
 0xb77   :  { %v8580_v44 = vrot.slane %v8579_v49, 1  ;;  %v8594_v23 = vrot.slane %v8593_v17, 1  ;;  %v8602_v16 = vadd.f32 %v8601_v40, %v8600_v8  ;;  %v10002_v26 = vpack.c.bf16 %v8962_v30, %v8961_v14 }
 0xb78   :  { %v8587_v29 = vrot.slane %v8586_v56, 1 }
 0xb79   :  { %v8581_v35 = vadd.f32 %v8580_v44, %v8579_v49  ;;  %v8603_v42 = vrot.slane %v8602_v16, 1  ;;  %v8595_v48 = vadd.f32 %v8594_v23, %v8593_v17  ;;  %v9526_v49 = vld [vmem:[%s14748_s4] ss:$0 sm:$0xff] }
 0xb7a   :  { %v8588_v58 = vadd.f32 %v8587_v29, %v8586_v56  ;;  %v8963_v29 = vld [vmem:[%s14747_s27 + $0x40] sm:$0xff] }
 0xb7b   :  { %v8604_v51 = vadd.f32 %v8603_v42, %v8602_v16  ;;  %v8965_v42 = vld [vmem:[%s14747_s27 + $0x50] sm:$0xf] }
 0xb7c   :  { %v8609_v3 = vcombine.low %v8581_v35, %v8588_v58  ;;  %v9528_v58 = vld [vmem:[%s14749_s5] ss:$0 sm:$0xff] }
 0xb7d   :  { %v8610_v2 = vcombine.low %v8595_v48, %v8604_v51 }
 0xb7e   :  { %v8617_v25 = vrot.slane %v8609_v3, %v8254_v53 }
 0xb7f   :  { %v8624_v50 = vrot.slane %v8610_v2, %v8254_v53 }
 0xb81   :  { %v8625_v60 = vcombine.low %v8617_v25, %v8624_v50  ;;  %v9530_v25 = vld [vmem:[%s14750_s18] ss:$0 sm:$0xff] }
 0xb83   :  { %v8632_v39 = vrot.slane %v8625_v60, %v8254_v53  ;;  %v8860_v53 = vld [vmem:[%s14745_s19 + $0x10] sm:$0xff] }
 0xb84   :  { %v9975_v52 = vpack.c.bf16 %v8861_v22, %v8860_v53 }
 0xb85   :  { %8635 = vst.msk [vmem:[#allocation5 + $0x1] ss:$2 sm:$0xf] %vm14296_vm11, %v8632_v39 }
 0xb8c   :  { %v8636_v41 = vld [vmem:[#allocation5] sm:$0xff] }
 0xb8d   :  { %v8695_v1 = vcombine.high %v8636_v41, %v8636_v41  ;;  %v8702_v20 = vrot.slane %v8636_v41, %v14746_v11 }
 0xb8f   :  { %v8710_v4 = vcombine.high %v8702_v20, %v8702_v20  ;;  %v8709_v62 = vrot.slane %v8695_v1, %v14746_v11 }
 0xb91   :  { %8781 = vmatprep.mubr.f32.mxu0 %v8710_v4  ;;  %v8711_v43 = vcombine.high %v8709_v62, %v8709_v62 }
 0xb92   :  { %8782 = vmatmul.mubr.f32.vlgmr.msra.gmra.mrb[32].mxu0 %v8702_v20 }
 0xb93   :  { %9527 = vmatprep.mubr.msk.f32.mxu1 %vm8233_vm6, %v8711_v43  ;;  %9973 = vmatpush3.bf16.msra.mxu0 %v9972_v57 }
 0xb94   :  { %8852 = vmatmul.mubr.f32.vlgmr.msra.gmra.mrb[32].mxu1 %v8709_v62  ;;  %9974 = vmatprep.subr.bf16.mxu0 %v10481_v37 }
 0xb95   :  { %9628 = vmatprep.mubr.msk.f32.mxu0 %vm10483_vm12, %v10484_v7  ;;  %9653 = vmatprep.mubr.msk.f32.mxu1 %vm10483_vm12, %v10484_v7 }
 0xb96   :  { %9994 = vmatpush3.bf16.msra.mxu1 %v9993_v5 }
 0xb97   :  { %9976 = vmatpush3.bf16.msra.mxu0 %v9975_v52  ;;  %9995 = vmatprep.subr.bf16.mxu1 %v10481_v37 }
 0xb98   :  { %9977 = vmatprep.subr.bf16.mxu0 %v10481_v37 }
 0xb9a   :  { %9997 = vmatpush3.bf16.msra.mxu1 %v9996_v61 }
 0xb9b   :  { %9979 = vmatpush3.bf16.msra.mxu0 %v9978_v10  ;;  %9998 = vmatprep.subr.bf16.mxu1 %v10481_v37 }
 0xb9c   :  { %9980 = vmatprep.subr.bf16.mxu0 %v10481_v37 }
 0xb9e   :  { %10000 = vmatpush3.bf16.msra.mxu1 %v9999_v28 }
 0xb9f   :  { %9982 = vmatpush3.bf16.msra.mxu0 %v9981_v55  ;;  %10001 = vmatprep.subr.bf16.mxu1 %v10481_v37 }
 0xba0   :  { %9983 = vmatprep.subr.bf16.mxu0 %v10481_v37 }
 0xba2   :  { %10003 = vmatpush3.bf16.msra.mxu1 %v10002_v26 }
 0xba3   :  { %9985 = vmatpush3.bf16.msra.mxu0 %v9984_v9  ;;  %10004 = vmatprep.subr.bf16.mxu1 %v10481_v37 }
 0xba4   :  { %9986 = vmatprep.subr.bf16.mxu0 %v10481_v37 }
 0xba7   :  { %9988 = vmatpush3.bf16.msra.mxu0 %v9987_v19 }
 0xba8   :  { %9989 = vmatprep.subr.bf16.mxu0 %v10481_v37  ;;  %v8964_v37 = vld [vmem:[%s14747_s27 + $0x48] sm:$0xff]  ;;  %s10426_s27 = scalar_lea.vmem %s9060_s10, 32 }
 0xba9   :  { %v10005_v35 = vpack.c.bf16 %v8964_v37, %v8963_v29  ;;  %p10427_p0 = scmp.ne.s32.totalorder %s9060_s10, %s10426_s27  ;;  %p10432_p2 = scmp.lt.s32.totalorder %s10426_s27, %s10426_s27 }
 0xbab   :  { %9991 = vmatpush3.bf16.msra.mxu0 %v9990_v45  ;;  %10006 = vmatpush3.bf16.msra.mxu1 %v10005_v35  ;;  %p10433_p3 = por %p10432_p2, %p10431_p1 }
 0xbac   :  { %9626 = vmatprep.subr.mxu0 %v10484_v7  ;;  %9651 = vmatprep.subr.mxu1 %v10484_v7 }
 0xbad   :  { %p10434_p4 = pnand %p10433_p3, %p10427_p0 }
 0xbaf   :  { %9627 = vmatpush3.msra.mxu0 %v8872_v34  ;;  %9652 = vmatpush3.msk.msra.mxu1 %vm250_vm0, %v8965_v42 }
 0xc65   :  { %v9567_v8 = vpop.f32.mrb[32].mxu0 }
 0xc66   :  { %v9568_v59 = vpop.f32.mrb[33].mxu0 }
 0xc67   :  { %v9569_v17 = vadd.f32 %v9568_v59, %v9567_v8  ;;  %v8853_v40 = vpop.f32.mrb[32].mxu1 }
 0xc68   :  { %v8855_v56 = vpop.f32.mrb[33].mxu1 }
 0xc69   :  { %v8784_v44 = vadd.f32 %v9569_v17, %v9526_v49 }
 0xc6b   :  { %v8854_v23 = vadd.f32 %v8853_v40, %v8784_v44 }
 0xc6d   :  { %v8857_v16 = vmax.f32 %v8854_v23, 0.0 }
 0xc6f   :  { %9629 = vmatmul.mubr.msk.f32.vlgmr.msra.gmra.mrb[34].mxu0 %vm8880_vm1, %v8857_v16 }
 0xd42   :  { %v8950_v48 = vpop.f32.mrb[34].mxu0 }
 0xd43   :  { %v8951_v51 = vadd.f32 %v9528_v58, %v8950_v48  ;;  %v9630_v3 = vpop.f32.mrb[35].mxu0 }
 0xd45   :  { %v8954_v2 = vmax.f32 %v8951_v51, 0.0 }
 0xd47   :  { %9654 = vmatmul.mubr.msk.f32.vlgmr.msra.gmra.mrb[34].mxu1 %vm8973_vm2, %v8954_v2 }
 0xe1a   :  { %v9047_v50 = vpop.f32.mrb[34].mxu1 }
 0xe1b   :  { %v9048_v60 = vadd.f32 %v9530_v25, %v9047_v50  ;;  %v9655_v39 = vpop.f32.mrb[35].mxu1 }
 0xe1d   :  { %9052 = vst.msk [vmem:[#allocation6] sm:$0x3] %vm9051_vm7, %v9048_v60 }
 0xe1e   :  { %10437 = shalt.err (!%p10434_p4)
}
 0xe1f   :  { %s14751_s0 = sld [smem:[#allocation42_spill]] }
 0xe25   :  { %s10438_s6 = scalar_lea.hbm %s14751_s0, 32 }
 0xe26   :  { %p10439_p5 = scmp.ne.s32.totalorder %s14751_s0, %s10438_s6  ;;  %p10442_p6 = scmp.lt.u32.totalorder %s10438_s6, %s14751_s0 }
 0xe28   :  { %p10444_p7 = pnand %p10442_p6, %p10439_p5 }
 0xe2a   :  { %10447 = shalt.err (!%p10444_p7)
}
 0xe2b   :  { %9062 = dma.vmem_to_hbm [thread:$0]  %s9060_s10, 32, %s14751_s0, [#allocation7]  }
 0xe2c   :  { %10448 = dma.done.wait [#allocation7], 32  }
 0xe2d   :  { %10449 = vsyncadd [#allocation7], 4294967264 }
 0xe2e   :  { %9066 = vsyncpa [#allocation7], 1 }

</bundles_post_ra>
